<compile_context>
chip_gen: v7x
topology: tpu7x:2x2x1
jax: 0.10.0
libtpu: 0.0.40
codegen_flags: <defaults>
</compile_context>

<pallas_src>
import functools
import math

import jax
import jax.numpy as jnp
from jax.experimental import pallas as pl
from jax.experimental.pallas import tpu as pltpu


# ----------------------------------------------------------------------------
# In-kernel head split / merge helpers.
# ----------------------------------------------------------------------------
def _split_heads(x2, nb, seq, num_heads, dh, use_transpose):
    """(nb*seq, num_heads*dh) -> (nb*num_heads, seq, dh); batch index = b*H + h."""
    if use_transpose:
        x4 = x2.reshape(nb, seq, num_heads, dh)
        return jnp.transpose(x4, (0, 2, 1, 3)).reshape(nb * num_heads, seq, dh)
    # Fallback for Mosaic versions without general transpose support.
    parts = []
    for b in range(nb):
        xb = x2[b * seq:(b + 1) * seq, :]
        for h in range(num_heads):
            parts.append(xb[:, h * dh:(h + 1) * dh])
    return jnp.stack(parts, axis=0)


def _merge_heads(x3, nb, seq, num_heads, dh, use_transpose):
    """(nb*num_heads, seq, dh) -> (nb*seq, num_heads*dh)."""
    if use_transpose:
        x4 = x3.reshape(nb, num_heads, seq, dh)
        return jnp.transpose(x4, (0, 2, 1, 3)).reshape(nb * seq, num_heads * dh)
    rows = []
    for b in range(nb):
        rows.append(jnp.concatenate(
            [x3[b * num_heads + h] for h in range(num_heads)], axis=-1))
    return jnp.concatenate(rows, axis=0)


# ----------------------------------------------------------------------------
# Kernel: per grid step (batch_block, kv_block) -- fused projections + one
# online-softmax attention update over this KV chunk for all heads at once.
# ----------------------------------------------------------------------------
def _attention_kernel(num_heads, block_b, seq_q, block_k, compute_dtype,
                      use_transpose,
                      h_ref, c_ref, wq_ref, bq_ref, wkv_ref, bkv_ref, out_ref,
                      q_sc, m_sc, l_sc, acc_sc):
    f32 = jnp.float32
    H, Bt, Sq, Kt = num_heads, block_b, seq_q, block_k
    D = wq_ref.shape[1]                      # padded all-head size (mult. of 128)
    dh = D // H
    kv_idx = pl.program_id(1)

    # ---- init + Q projection / head split (once per batch block) ------------
    @pl.when(kv_idx == 0)
    def _():
        h = h_ref[...].astype(compute_dtype)                    # (Bt*Sq, Dh)
        wq = wq_ref[...].astype(compute_dtype)                  # (Dh, D)
        # 1/sqrt(dh) is already folded into wq / bq on the host.
        q = jnp.dot(h, wq, preferred_element_type=f32) + bq_ref[...]
        q_sc[...] = _split_heads(q, Bt, Sq, H, dh,
                                 use_transpose).astype(compute_dtype)
        m_sc[...] = jnp.full_like(m_sc, -jnp.inf)
        l_sc[...] = jnp.zeros_like(l_sc)
        acc_sc[...] = jnp.zeros_like(acc_sc)

    # ---- fused K|V projection for this KV chunk (single wide matmul) ---------
    c = c_ref[...].reshape(Bt * Kt, c_ref.shape[-1]).astype(compute_dtype)
    wkv = wkv_ref[...].astype(compute_dtype)                    # (Dc, 2D)
    kv = jnp.dot(c, wkv, preferred_element_type=f32) + bkv_ref[...]
    k = _split_heads(kv[:, :D], Bt, Kt, H, dh, use_transpose).astype(compute_dtype)
    v = _split_heads(kv[:, D:], Bt, Kt, H, dh, use_transpose).astype(compute_dtype)

    # ---- online softmax update (all (batch, head) pairs batched on the MXU) --
    s = jnp.einsum("bqd,bkd->bqk", q_sc[...], k,
                   preferred_element_type=f32)                  # (Bt*H, Sq, Kt)
    m_prev = m_sc[...]
    m_new = jnp.maximum(m_prev, jnp.max(s, axis=-1, keepdims=True))
    alpha = jnp.exp(m_prev - m_new)
    p = jnp.exp(s - m_new)                                      # f32 elementwise
    l_sc[...] = alpha * l_sc[...] + jnp.sum(p, axis=-1, keepdims=True)
    acc_sc[...] = alpha * acc_sc[...] + jnp.einsum(
        "bqk,bkd->bqd", p.astype(compute_dtype), v, preferred_element_type=f32)
    m_sc[...] = m_new

    # ---- finalize: normalize, merge heads, one lane-dense store --------------
    @pl.when(kv_idx == pl.num_programs(1) - 1)
    def _():
        approx = compute_dtype != jnp.float32
        ctx = acc_sc[...] * pl.reciprocal(l_sc[...], approx=approx)
        out_ref[...] = _merge_heads(ctx, Bt, Sq, H, dh,
                                    use_transpose).astype(out_ref.dtype)


# ----------------------------------------------------------------------------
# Host-side weight preprocessing (one-time): fold scale, fuse K|V, pad lanes.
# ----------------------------------------------------------------------------
def _pad_head_columns(w, b, num_heads, dh, dh_pad):
    if dh_pad == dh:
        return w, b
    in_dim = w.shape[0]
    w = jnp.pad(w.reshape(in_dim, num_heads, dh),
                ((0, 0), (0, 0), (0, dh_pad - dh)))
    b = jnp.pad(b.reshape(num_heads, dh), ((0, 0), (0, dh_pad - dh)))
    return w.reshape(in_dim, num_heads * dh_pad), b.reshape(num_heads * dh_pad)


def prepare_attention_params(params, *, num_heads):
    wq, bq = params["wq"], params["bq"]
    wk, bk = params["wk"], params["bk"]
    wv, bv = params["wv"], params["bv"]
    D = wq.shape[1]
    assert D % num_heads == 0
    dh = D // num_heads
    # Pad each head's output columns so H*dh_pad is a multiple of 128.  Zero
    # columns contribute 0 to q.k and produce 0 context channels (stripped).
    lane_req = 128 // math.gcd(num_heads, 128)
    dh_pad = ((dh + lane_req - 1) // lane_req) * lane_req
    sm_scale = 1.0 / math.sqrt(dh)
    wq_p, bq_p = _pad_head_columns(wq * sm_scale, bq * sm_scale,
                                   num_heads, dh, dh_pad)
    wk_p, bk_p = _pad_head_columns(wk, bk, num_heads, dh, dh_pad)
    wv_p, bv_p = _pad_head_columns(wv, bv, num_heads, dh, dh_pad)
    D_pad = num_heads * dh_pad
    return {
        "wq": wq_p.astype(jnp.float32),
        "bq": bq_p.reshape(1, D_pad).astype(jnp.float32),
        "wkv": jnp.concatenate([wk_p, wv_p], axis=1).astype(jnp.float32),
        "bkv": jnp.concatenate([bk_p, bv_p],
                               axis=0).reshape(1, 2 * D_pad).astype(jnp.float32),
        "num_heads": num_heads,
        "head_dim": dh,
        "head_dim_padded": dh_pad,
    }


# ----------------------------------------------------------------------------
# Tile-size heuristics.
# ----------------------------------------------------------------------------
def _pick_block_k(seq_k, target=512):
    if seq_k <= target:
        return seq_k
    for cand in range(target, 7, -8):       # multiples of 8, descending
        if seq_k % cand == 0:
            return cand
    return seq_k


def _pick_block_b(B, seq_q, n_kv, vmem_est, budget_bytes=24 * 1024 * 1024):
    divisors = [d for d in range(1, B + 1)
                if B % d == 0 and ((d * seq_q) % 8 == 0 or d == B)]
    best = divisors[0]
    for d in divisors:
        if vmem_est(d) > budget_bytes and d != divisors[0]:
            break
        steps = (B // d) * n_kv
        if d > best:
            # Keep >= 2 grid steps (megacore + pipelining) when the problem
            # allows, and >= 8 steps once the MXU M-dim is already well fed.
            if steps < 2 <= B * n_kv:
                break
            if best * seq_q >= 256 and steps < 8:
                break
        best = d
    return best


# ----------------------------------------------------------------------------
# Wrapper.
# ----------------------------------------------------------------------------
def attention_forward(hidden_states, context, prepared, *,
                      block_b=None, block_k=None, compute_dtype=jnp.bfloat16):
    """Pallas implementation of Attention.forward (eval mode, no mask)."""
    B, Sq, Dh_in = hidden_states.shape
    Bc, Sk, Dc = context.shape
    assert Bc == B
    H = prepared["num_heads"]
    dh = prepared["head_dim"]
    dh_pad = prepared["head_dim_padded"]
    D_pad = H * dh_pad

    wq = prepared["wq"].astype(compute_dtype)
    wkv = prepared["wkv"].astype(compute_dtype)
    bq = prepared["bq"]
    bkv = prepared["bkv"]

    if block_k is None:
        block_k = _pick_block_k(Sk)
    assert Sk % block_k == 0
    n_kv = Sk // block_k

    cs = jnp.dtype(compute_dtype).itemsize
    ins = jnp.dtype(hidden_states.dtype).itemsize
    cts = jnp.dtype(context.dtype).itemsize

    def vmem_est(bb):
        est = 2 * bb * Sq * Dh_in * ins                 # h block (double buffered)
        est += 2 * bb * block_k * Dc * cts              # c block (double buffered)
        est += 2 * bb * Sq * D_pad * ins                # out block
        est += (Dh_in + 2 * Dc + 3) * D_pad * cs        # weights + biases (x1 buffer)
        est += bb * H * Sq * (dh_pad * (cs + 4) + 8)    # q / acc / m / l scratch
        est += 3 * bb * H * Sq * block_k * 4            # s / exp / p temporaries
        est += bb * block_k * 2 * D_pad * (4 + cs)      # projected kv + casts
        return est

    if block_b is None:
        block_b = _pick_block_b(B, Sq, n_kv, vmem_est)
    assert B % block_b == 0

    h_flat = hidden_states.reshape(B * Sq, Dh_in)

    scratch_shapes = [
        pltpu.VMEM((block_b * H, Sq, dh_pad), compute_dtype),   # scaled, split Q
        pltpu.VMEM((block_b * H, Sq, 1), jnp.float32),          # running max
        pltpu.VMEM((block_b * H, Sq, 1), jnp.float32),          # running sum
        pltpu.VMEM((block_b * H, Sq, dh_pad), jnp.float32),     # accumulator
    ]

    def run(use_transpose, buffered_weights):
        kernel = functools.partial(_attention_kernel, H, block_b, Sq, block_k,
                                   compute_dtype, use_transpose)
        wkw = {"pipeline_mode": pl.Buffered(1)} if buffered_weights else {}
        in_specs = [
            pl.BlockSpec((block_b * Sq, Dh_in), lambda b, kv: (b, 0)),
            pl.BlockSpec((block_b, block_k, Dc), lambda b, kv: (b, kv, 0)),
            pl.BlockSpec((Dh_in, D_pad), lambda b, kv: (0, 0), **wkw),
            pl.BlockSpec((1, D_pad), lambda b, kv: (0, 0), **wkw),
            pl.BlockSpec((Dc, 2 * D_pad), lambda b, kv: (0, 0), **wkw),
            pl.BlockSpec((1, 2 * D_pad), lambda b, kv: (0, 0), **wkw),
        ]
        out_specs = pl.BlockSpec((block_b * Sq, D_pad), lambda b, kv: (b, 0))
        return pl.pallas_call(
            kernel,
            out_shape=jax.ShapeDtypeStruct((B * Sq, D_pad), hidden_states.dtype),
            grid=(B // block_b, n_kv),
            in_specs=in_specs,
            out_specs=out_specs,
            scratch_shapes=scratch_shapes,
            compiler_params=pltpu.CompilerParams(
                dimension_semantics=("parallel", "arbitrary"),
                vmem_limit_bytes=48 * 1024 * 1024),
        )(h_flat, context, wq, bq, wkv, bkv)

    # Primary path: transpose-based head split + single-buffered weights.
    # Fallbacks only exist so the kernel still runs on toolchains that reject
    # pipeline_mode or general transposes.
    last_err = None
    out_flat = None
    for use_transpose, buffered in ((True, True), (True, False), (False, False)):
        try:
            out_flat = run(use_transpose, buffered)
            break
        except Exception as err:            # pragma: no cover
            last_err = err
    if out_flat is None:
        raise last_err

    out = out_flat.reshape(B, Sq, H, dh_pad)
    if dh_pad != dh:
        out = out[..., :dh]                 # strip lane padding
    return out.reshape(B, Sq, H * dh)


# ----------------------------------------------------------------------------
# Pure-JAX reference (mirrors the PyTorch forward, eval mode, no mask).
# ----------------------------------------------------------------------------
def attention_reference(hidden_states, context, params, *, num_heads):
    B, Sq, _ = hidden_states.shape
    _, Sk, _ = context.shape
    D = params["wq"].shape[1]
    dh = D // num_heads

    q = hidden_states @ params["wq"] + params["bq"]
    k = context @ params["wk"] + params["bk"]
    v = context @ params["wv"] + params["bv"]

    def split(x, s_len):
        return x.reshape(B, s_len, num_heads, dh).transpose(0, 2, 1, 3)

    qh, kh, vh = split(q, Sq), split(k, Sk), split(v, Sk)
    s = jnp.einsum("bhqd,bhkd->bhqk", qh, kh) / math.sqrt(dh)
    p = jax.nn.softmax(s, axis=-1)
    ctx = jnp.einsum("bhqk,bhkd->bhqd", p, vh)
    return ctx.transpose(0, 2, 1, 3).reshape(B, Sq, D)


if __name__ == "__main__":
    B, SQ, SK, NHEAD = 4, 8, 16, 4
    HIDDEN = 32          # hidden_size == all_head_size
    CTX_DIM = 64         # exercises the ctx_dim != hidden_size path

    key = jax.random.PRNGKey(0)
    ks = jax.random.split(key, 8)

    hidden = jax.random.normal(ks[0], (B, SQ, HIDDEN), jnp.float32)
    context = jax.random.normal(ks[1], (B, SK, CTX_DIM), jnp.float32)

    params = {
        # kernel layout (in, out) == nn.Linear.weight.T
        "wq": (1.0 / math.sqrt(HIDDEN)) * jax.random.normal(ks[2], (HIDDEN, HIDDEN), jnp.float32),
        "bq": 0.1 * jax.random.normal(ks[3], (HIDDEN,), jnp.float32),
        "wk": (1.0 / math.sqrt(CTX_DIM)) * jax.random.normal(ks[4], (CTX_DIM, HIDDEN), jnp.float32),
        "bk": 0.1 * jax.random.normal(ks[5], (HIDDEN,), jnp.float32),
        "wv": (1.0 / math.sqrt(CTX_DIM)) * jax.random.normal(ks[6], (CTX_DIM, HIDDEN), jnp.float32),
        "bv": 0.1 * jax.random.normal(ks[7], (HIDDEN,), jnp.float32),
    }

    # One-time host-side weight preprocessing (scale folding, K|V fusion,
    # head-lane padding) shared by both calls below.
    prepared = prepare_attention_params(params, num_heads=NHEAD)

    # Fast (bf16 MXU) path -- the default.
    out_fast = attention_forward(hidden, context, prepared)
    out_fast = jax.block_until_ready(out_fast)

    # f32 path for tight numerical validation.
    out_f32 = attention_forward(hidden, context, prepared,
                                compute_dtype=jnp.float32)
    out_f32 = jax.block_until_ready(out_f32)

    ref = attention_reference(hidden, context, params, num_heads=NHEAD)

    assert out_fast.shape == (B, SQ, HIDDEN)
    assert jnp.allclose(out_f32, ref, atol=2e-3, rtol=2e-3), "f32 mismatch vs reference"
    assert jnp.allclose(out_fast, ref, atol=5e-2, rtol=5e-2), "bf16 mismatch vs reference"

    print("KERNEL_OK")
</pallas_src>

<mosaic_0001>
module attributes {stable_mosaic.version = 11 : i64} {
  func.func @_attention_kernel(%arg0: i32, %arg1: i32, %arg2: memref<16x32xf32, #tpu.memory_space<vmem>>, %arg3: memref<2x16x64xf32, #tpu.memory_space<vmem>>, %arg4: memref<32x128xbf16, #tpu.memory_space<vmem>>, %arg5: memref<1x128xf32, #tpu.memory_space<vmem>>, %arg6: memref<64x256xbf16, #tpu.memory_space<vmem>>, %arg7: memref<1x256xf32, #tpu.memory_space<vmem>>, %arg8: memref<16x128xf32, #tpu.memory_space<vmem>>, %arg9: memref<8x8x32xbf16, #tpu.memory_space<vmem>>, %arg10: memref<8x8x1xf32, #tpu.memory_space<vmem>>, %arg11: memref<8x8x1xf32, #tpu.memory_space<vmem>>, %arg12: memref<8x8x32xf32, #tpu.memory_space<vmem>>) attributes {dimension_semantics = [#tpu.dimension_semantics<parallel>, #tpu.dimension_semantics<arbitrary>], iteration_bounds = array<i64: 2, 1>, scalar_prefetch = 0 : i64, scratch_operands = 4 : i64, tpu.core_type = #tpu.core_type<tc>, window_params = [{transform_indices = @transform_0, window_bounds = array<i64: 16, 32>}, {transform_indices = @transform_1, window_bounds = array<i64: 2, 16, 64>}, {pipeline_mode = #tpu.pipeline_mode<synchronous>, transform_indices = @transform_2, window_bounds = array<i64: 32, 128>}, {pipeline_mode = #tpu.pipeline_mode<synchronous>, transform_indices = @transform_3, window_bounds = array<i64: 1, 128>}, {pipeline_mode = #tpu.pipeline_mode<synchronous>, transform_indices = @transform_4, window_bounds = array<i64: 64, 256>}, {pipeline_mode = #tpu.pipeline_mode<synchronous>, transform_indices = @transform_5, window_bounds = array<i64: 1, 256>}, {transform_indices = @transform_6, window_bounds = array<i64: 16, 128>}]} {
    %c0_i32 = arith.constant 0 : i32
    %0 = arith.cmpi eq, %arg1, %c0_i32 : i32
    %1 = arith.extui %0 : i1 to i32
    %c0_i32_0 = arith.constant 0 : i32
    %2 = arith.cmpi ne, %1, %c0_i32_0 : i32
    scf.if %2 {
      %c0_34 = arith.constant 0 : index
      %c0_35 = arith.constant 0 : index
      %49 = vector.load %arg2[%c0_34, %c0_35] : memref<16x32xf32, #tpu.memory_space<vmem>>, vector<16x32xf32>
      %50 = arith.truncf %49 : vector<16x32xf32> to vector<16x32xbf16>
      %c0_36 = arith.constant 0 : index
      %c0_37 = arith.constant 0 : index
      %51 = vector.load %arg4[%c0_36, %c0_37] : memref<32x128xbf16, #tpu.memory_space<vmem>>, vector<32x128xbf16>
      %cst_38 = arith.constant dense<0.000000e+00> : vector<16x128xf32>
      %52 = tpu.matmul %50, %51, %cst_38 {dimension_numbers = #tpu.dot_dimension_numbers<[1], [0], [0], [1], [0, 0, 1, 1], [], []>} : vector<16x32xbf16>, vector<32x128xbf16>, vector<16x128xf32> -> vector<16x128xf32>
      %c0_39 = arith.constant 0 : index
      %c0_40 = arith.constant 0 : index
      %53 = vector.load %arg5[%c0_39, %c0_40] : memref<1x128xf32, #tpu.memory_space<vmem>>, vector<1x128xf32>
      %54 = vector.broadcast %53 : vector<1x128xf32> to vector<16x128xf32>
      %55 = arith.addf %52, %54 : vector<16x128xf32>
      %56 = vector.shape_cast %55 : vector<16x128xf32> to vector<2x8x4x32xf32>
      %57 = tpu.transpose %56, [0, 2, 1, 3] : vector<2x8x4x32xf32> -> vector<2x4x8x32xf32>
      %58 = vector.shape_cast %57 : vector<2x4x8x32xf32> to vector<8x8x32xf32>
      %59 = arith.truncf %58 : vector<8x8x32xf32> to vector<8x8x32xbf16>
      %c0_41 = arith.constant 0 : index
      %c0_42 = arith.constant 0 : index
      %c0_43 = arith.constant 0 : index
      %60 = vector.load %arg9[%c0_41, %c0_42, %c0_43] : memref<8x8x32xbf16, #tpu.memory_space<vmem>>, vector<8x8x32xbf16>
      tpu.vector_store %arg9[%c0_41, %c0_42, %c0_43], %59 {strides = array<i32>} : memref<8x8x32xbf16, #tpu.memory_space<vmem>>, vector<8x8x32xbf16>,
      %cst_44 = arith.constant 0xFF800000 : f32
      %61 = vector.broadcast %cst_44 : f32 to vector<8x8x1xf32>
      %c0_45 = arith.constant 0 : index
      %c0_46 = arith.constant 0 : index
      %c0_47 = arith.constant 0 : index
      %62 = vector.load %arg10[%c0_45, %c0_46, %c0_47] : memref<8x8x1xf32, #tpu.memory_space<vmem>>, vector<8x8x1xf32>
      tpu.vector_store %arg10[%c0_45, %c0_46, %c0_47], %61 {strides = array<i32>} : memref<8x8x1xf32, #tpu.memory_space<vmem>>, vector<8x8x1xf32>,
      %cst_48 = arith.constant 0.000000e+00 : f32
      %63 = vector.broadcast %cst_48 : f32 to vector<8x8x1xf32>
      %c0_49 = arith.constant 0 : index
      %c0_50 = arith.constant 0 : index
      %c0_51 = arith.constant 0 : index
      %64 = vector.load %arg11[%c0_49, %c0_50, %c0_51] : memref<8x8x1xf32, #tpu.memory_space<vmem>>, vector<8x8x1xf32>
      tpu.vector_store %arg11[%c0_49, %c0_50, %c0_51], %63 {strides = array<i32>} : memref<8x8x1xf32, #tpu.memory_space<vmem>>, vector<8x8x1xf32>,
      %cst_52 = arith.constant 0.000000e+00 : f32
      %65 = vector.broadcast %cst_52 : f32 to vector<8x8x32xf32>
      %c0_53 = arith.constant 0 : index
      %c0_54 = arith.constant 0 : index
      %c0_55 = arith.constant 0 : index
      %66 = vector.load %arg12[%c0_53, %c0_54, %c0_55] : memref<8x8x32xf32, #tpu.memory_space<vmem>>, vector<8x8x32xf32>
      tpu.vector_store %arg12[%c0_53, %c0_54, %c0_55], %65 {strides = array<i32>} : memref<8x8x32xf32, #tpu.memory_space<vmem>>, vector<8x8x32xf32>,
    } else {
    }
    %c0 = arith.constant 0 : index
    %c0_1 = arith.constant 0 : index
    %c0_2 = arith.constant 0 : index
    %3 = vector.load %arg3[%c0, %c0_1, %c0_2] : memref<2x16x64xf32, #tpu.memory_space<vmem>>, vector<2x16x64xf32>
    %4 = vector.shape_cast %3 : vector<2x16x64xf32> to vector<32x64xf32>
    %5 = arith.truncf %4 : vector<32x64xf32> to vector<32x64xbf16>
    %c0_3 = arith.constant 0 : index
    %c0_4 = arith.constant 0 : index
    %6 = vector.load %arg6[%c0_3, %c0_4] : memref<64x256xbf16, #tpu.memory_space<vmem>>, vector<64x256xbf16>
    %cst = arith.constant dense<0.000000e+00> : vector<32x256xf32>
    %7 = tpu.matmul %5, %6, %cst {dimension_numbers = #tpu.dot_dimension_numbers<[1], [0], [0], [1], [0, 0, 1, 1], [], []>} : vector<32x64xbf16>, vector<64x256xbf16>, vector<32x256xf32> -> vector<32x256xf32>
    %c0_5 = arith.constant 0 : index
    %c0_6 = arith.constant 0 : index
    %8 = vector.load %arg7[%c0_5, %c0_6] : memref<1x256xf32, #tpu.memory_space<vmem>>, vector<1x256xf32>
    %9 = vector.broadcast %8 : vector<1x256xf32> to vector<32x256xf32>
    %10 = arith.addf %7, %9 : vector<32x256xf32>
    %11 = vector.extract_strided_slice %10 {offsets = [0, 0], sizes = [32, 128], strides = [1, 1]} : vector<32x256xf32> to vector<32x128xf32>
    %12 = vector.shape_cast %11 : vector<32x128xf32> to vector<2x16x4x32xf32>
    %13 = tpu.transpose %12, [0, 2, 1, 3] : vector<2x16x4x32xf32> -> vector<2x4x16x32xf32>
    %14 = vector.shape_cast %13 : vector<2x4x16x32xf32> to vector<8x16x32xf32>
    %15 = arith.truncf %14 : vector<8x16x32xf32> to vector<8x16x32xbf16>
    %16 = vector.extract_strided_slice %10 {offsets = [0, 128], sizes = [32, 128], strides = [1, 1]} : vector<32x256xf32> to vector<32x128xf32>
    %17 = vector.shape_cast %16 : vector<32x128xf32> to vector<2x16x4x32xf32>
    %18 = tpu.transpose %17, [0, 2, 1, 3] : vector<2x16x4x32xf32> -> vector<2x4x16x32xf32>
    %19 = vector.shape_cast %18 : vector<2x4x16x32xf32> to vector<8x16x32xf32>
    %20 = arith.truncf %19 : vector<8x16x32xf32> to vector<8x16x32xbf16>
    %c0_7 = arith.constant 0 : index
    %c0_8 = arith.constant 0 : index
    %c0_9 = arith.constant 0 : index
    %21 = vector.load %arg9[%c0_7, %c0_8, %c0_9] : memref<8x8x32xbf16, #tpu.memory_space<vmem>>, vector<8x8x32xbf16>
    "tpu.trace_start"() <{level = 10 : i32, message = "bqd,bkd->bqk"}> : () -> ()
    %cst_10 = arith.constant dense<0.000000e+00> : vector<8x8x16xf32>
    %22 = tpu.matmul %21, %15, %cst_10 {dimension_numbers = #tpu.dot_dimension_numbers<[2], [2], [1], [1], [0, 0, 0, 1, 1, 1], [0], [0]>} : vector<8x8x32xbf16>, vector<8x16x32xbf16>, vector<8x8x16xf32> -> vector<8x8x16xf32>
    "tpu.trace_stop"() : () -> ()
    %c0_11 = arith.constant 0 : index
    %c0_12 = arith.constant 0 : index
    %c0_13 = arith.constant 0 : index
    %23 = vector.load %arg10[%c0_11, %c0_12, %c0_13] : memref<8x8x1xf32, #tpu.memory_space<vmem>>, vector<8x8x1xf32>
    %cst_14 = arith.constant dense<0xFF800000> : vector<8x8xf32>
    %24 = vector.multi_reduction <maximumf>, %22, %cst_14 [2] : vector<8x8x16xf32> to vector<8x8xf32>
    %25 = vector.shape_cast %24 : vector<8x8xf32> to vector<8x8x1xf32>
    %26 = arith.maximumf %23, %25 : vector<8x8x1xf32>
    %27 = arith.subf %23, %26 : vector<8x8x1xf32>
    %28 = math.exp %27 : vector<8x8x1xf32>
    %29 = vector.broadcast %26 : vector<8x8x1xf32> to vector<8x8x16xf32>
    %30 = arith.subf %22, %29 : vector<8x8x16xf32>
    %31 = math.exp %30 : vector<8x8x16xf32>
    %c0_15 = arith.constant 0 : index
    %c0_16 = arith.constant 0 : index
    %c0_17 = arith.constant 0 : index
    %32 = vector.load %arg11[%c0_15, %c0_16, %c0_17] : memref<8x8x1xf32, #tpu.memory_space<vmem>>, vector<8x8x1xf32>
    %33 = arith.mulf %28, %32 : vector<8x8x1xf32>
    %cst_18 = arith.constant dense<0.000000e+00> : vector<8x8xf32>
    %34 = vector.multi_reduction <add>, %31, %cst_18 [2] : vector<8x8x16xf32> to vector<8x8xf32>
    %35 = vector.shape_cast %34 : vector<8x8xf32> to vector<8x8x1xf32>
    %36 = arith.addf %33, %35 : vector<8x8x1xf32>
    %c0_19 = arith.constant 0 : index
    %c0_20 = arith.constant 0 : index
    %c0_21 = arith.constant 0 : index
    %37 = vector.load %arg11[%c0_19, %c0_20, %c0_21] : memref<8x8x1xf32, #tpu.memory_space<vmem>>, vector<8x8x1xf32>
    tpu.vector_store %arg11[%c0_19, %c0_20, %c0_21], %36 {strides = array<i32>} : memref<8x8x1xf32, #tpu.memory_space<vmem>>, vector<8x8x1xf32>,
    %c0_22 = arith.constant 0 : index
    %c0_23 = arith.constant 0 : index
    %c0_24 = arith.constant 0 : index
    %38 = vector.load %arg12[%c0_22, %c0_23, %c0_24] : memref<8x8x32xf32, #tpu.memory_space<vmem>>, vector<8x8x32xf32>
    %39 = vector.broadcast %28 : vector<8x8x1xf32> to vector<8x8x32xf32>
    %40 = arith.mulf %39, %38 : vector<8x8x32xf32>
    %41 = arith.truncf %31 : vector<8x8x16xf32> to vector<8x8x16xbf16>
    "tpu.trace_start"() <{level = 10 : i32, message = "bqk,bkd->bqd"}> : () -> ()
    %cst_25 = arith.constant dense<0.000000e+00> : vector<8x8x32xf32>
    %42 = tpu.matmul %41, %20, %cst_25 {dimension_numbers = #tpu.dot_dimension_numbers<[2], [1], [1], [2], [0, 0, 0, 1, 1, 2], [0], [0]>} : vector<8x8x16xbf16>, vector<8x16x32xbf16>, vector<8x8x32xf32> -> vector<8x8x32xf32>
    "tpu.trace_stop"() : () -> ()
    %43 = arith.addf %40, %42 : vector<8x8x32xf32>
    %c0_26 = arith.constant 0 : index
    %c0_27 = arith.constant 0 : index
    %c0_28 = arith.constant 0 : index
    %44 = vector.load %arg12[%c0_26, %c0_27, %c0_28] : memref<8x8x32xf32, #tpu.memory_space<vmem>>, vector<8x8x32xf32>
    tpu.vector_store %arg12[%c0_26, %c0_27, %c0_28], %43 {strides = array<i32>} : memref<8x8x32xf32, #tpu.memory_space<vmem>>, vector<8x8x32xf32>,
    %c0_29 = arith.constant 0 : index
    %c0_30 = arith.constant 0 : index
    %c0_31 = arith.constant 0 : index
    %45 = vector.load %arg10[%c0_29, %c0_30, %c0_31] : memref<8x8x1xf32, #tpu.memory_space<vmem>>, vector<8x8x1xf32>
    tpu.vector_store %arg10[%c0_29, %c0_30, %c0_31], %26 {strides = array<i32>} : memref<8x8x1xf32, #tpu.memory_space<vmem>>, vector<8x8x1xf32>,
    %c0_i32_32 = arith.constant 0 : i32
    %46 = arith.cmpi eq, %arg1, %c0_i32_32 : i32
    %47 = arith.extui %46 : i1 to i32
    %c0_i32_33 = arith.constant 0 : i32
    %48 = arith.cmpi ne, %47, %c0_i32_33 : i32
    scf.if %48 {
      %c0_34 = arith.constant 0 : index
      %c0_35 = arith.constant 0 : index
      %c0_36 = arith.constant 0 : index
      %49 = vector.load %arg12[%c0_34, %c0_35, %c0_36] : memref<8x8x32xf32, #tpu.memory_space<vmem>>, vector<8x8x32xf32>
      %c0_37 = arith.constant 0 : index
      %c0_38 = arith.constant 0 : index
      %c0_39 = arith.constant 0 : index
      %50 = vector.load %arg11[%c0_37, %c0_38, %c0_39] : memref<8x8x1xf32, #tpu.memory_space<vmem>>, vector<8x8x1xf32>
      %51 = tpu.reciprocal %50 {approx = true} : vector<8x8x1xf32> -> vector<8x8x1xf32>
      %52 = vector.broadcast %51 : vector<8x8x1xf32> to vector<8x8x32xf32>
      %53 = arith.mulf %49, %52 : vector<8x8x32xf32>
      %54 = vector.shape_cast %53 : vector<8x8x32xf32> to vector<2x4x8x32xf32>
      %55 = tpu.transpose %54, [0, 2, 1, 3] : vector<2x4x8x32xf32> -> vector<2x8x4x32xf32>
      %56 = vector.shape_cast %55 : vector<2x8x4x32xf32> to vector<16x128xf32>
      %c0_40 = arith.constant 0 : index
      %c0_41 = arith.constant 0 : index
      %57 = vector.load %arg8[%c0_40, %c0_41] : memref<16x128xf32, #tpu.memory_space<vmem>>, vector<16x128xf32>
      tpu.vector_store %arg8[%c0_40, %c0_41], %56 {strides = array<i32>} : memref<16x128xf32, #tpu.memory_space<vmem>>, vector<16x128xf32>,
    } else {
    }
    return
  }
  func.func @transform_0(%arg0: i32, %arg1: i32) -> (i32, i32) {
    %c0_i32 = arith.constant 0 : i32
    %c0_i32_0 = arith.constant 0 : i32
    return %arg0, %c0_i32 : i32, i32
  }
  func.func @transform_1(%arg0: i32, %arg1: i32) -> (i32, i32, i32) {
    %c0_i32 = arith.constant 0 : i32
    %c0_i32_0 = arith.constant 0 : i32
    return %arg0, %arg1, %c0_i32 : i32, i32, i32
  }
  func.func @transform_2(%arg0: i32, %arg1: i32) -> (i32, i32) {
    %c0_i32 = arith.constant 0 : i32
    %c0_i32_0 = arith.constant 0 : i32
    %c0_i32_1 = arith.constant 0 : i32
    return %c0_i32, %c0_i32_0 : i32, i32
  }
  func.func @transform_3(%arg0: i32, %arg1: i32) -> (i32, i32) {
    %c0_i32 = arith.constant 0 : i32
    %c0_i32_0 = arith.constant 0 : i32
    %c0_i32_1 = arith.constant 0 : i32
    return %c0_i32, %c0_i32_0 : i32, i32
  }
  func.func @transform_4(%arg0: i32, %arg1: i32) -> (i32, i32) {
    %c0_i32 = arith.constant 0 : i32
    %c0_i32_0 = arith.constant 0 : i32
    %c0_i32_1 = arith.constant 0 : i32
    return %c0_i32, %c0_i32_0 : i32, i32
  }
  func.func @transform_5(%arg0: i32, %arg1: i32) -> (i32, i32) {
    %c0_i32 = arith.constant 0 : i32
    %c0_i32_0 = arith.constant 0 : i32
    %c0_i32_1 = arith.constant 0 : i32
    return %c0_i32, %c0_i32_0 : i32, i32
  }
  func.func @transform_6(%arg0: i32, %arg1: i32) -> (i32, i32) {
    %c0_i32 = arith.constant 0 : i32
    %c0_i32_0 = arith.constant 0 : i32
    return %arg0, %c0_i32 : i32, i32
  }
}

module attributes {stable_mosaic.version = 11 : i64} {
  func.func @_attention_kernel(%arg0: i32, %arg1: i32, %arg2: memref<16x32xf32, #tpu.memory_space<vmem>>, %arg3: memref<2x16x64xf32, #tpu.memory_space<vmem>>, %arg4: memref<32x128xbf16, #tpu.memory_space<vmem>>, %arg5: memref<1x128xf32, #tpu.memory_space<vmem>>, %arg6: memref<64x256xbf16, #tpu.memory_space<vmem>>, %arg7: memref<1x256xf32, #tpu.memory_space<vmem>>, %arg8: memref<16x128xf32, #tpu.memory_space<vmem>>, %arg9: memref<8x8x32xbf16, #tpu.memory_space<vmem>>, %arg10: memref<8x8x1xf32, #tpu.memory_space<vmem>>, %arg11: memref<8x8x1xf32, #tpu.memory_space<vmem>>, %arg12: memref<8x8x32xf32, #tpu.memory_space<vmem>>) attributes {dimension_semantics = [#tpu.dimension_semantics<parallel>, #tpu.dimension_semantics<arbitrary>], iteration_bounds = array<i64: 2, 1>, scalar_prefetch = 0 : i64, scratch_operands = 4 : i64, tpu.core_type = #tpu.core_type<tc>, window_params = [{transform_indices = @transform_0, window_bounds = array<i64: 16, 32>}, {transform_indices = @transform_1, window_bounds = array<i64: 2, 16, 64>}, {pipeline_mode = #tpu.pipeline_mode<synchronous>, transform_indices = @transform_2, window_bounds = array<i64: 32, 128>}, {pipeline_mode = #tpu.pipeline_mode<synchronous>, transform_indices = @transform_3, window_bounds = array<i64: 1, 128>}, {pipeline_mode = #tpu.pipeline_mode<synchronous>, transform_indices = @transform_4, window_bounds = array<i64: 64, 256>}, {pipeline_mode = #tpu.pipeline_mode<synchronous>, transform_indices = @transform_5, window_bounds = array<i64: 1, 256>}, {transform_indices = @transform_6, window_bounds = array<i64: 16, 128>}]} {
    %c0_i32 = arith.constant 0 : i32
    %0 = arith.cmpi eq, %arg1, %c0_i32 : i32
    %1 = arith.extui %0 : i1 to i32
    %c0_i32_0 = arith.constant 0 : i32
    %2 = arith.cmpi ne, %1, %c0_i32_0 : i32
    scf.if %2 {
      %c0_34 = arith.constant 0 : index
      %c0_35 = arith.constant 0 : index
      %49 = vector.load %arg2[%c0_34, %c0_35] : memref<16x32xf32, #tpu.memory_space<vmem>>, vector<16x32xf32>
      %50 = arith.truncf %49 : vector<16x32xf32> to vector<16x32xbf16>
      %c0_36 = arith.constant 0 : index
      %c0_37 = arith.constant 0 : index
      %51 = vector.load %arg4[%c0_36, %c0_37] : memref<32x128xbf16, #tpu.memory_space<vmem>>, vector<32x128xbf16>
      %cst_38 = arith.constant dense<0.000000e+00> : vector<16x128xf32>
      %52 = tpu.matmul %50, %51, %cst_38 {dimension_numbers = #tpu.dot_dimension_numbers<[1], [0], [0], [1], [0, 0, 1, 1], [], []>} : vector<16x32xbf16>, vector<32x128xbf16>, vector<16x128xf32> -> vector<16x128xf32>
      %c0_39 = arith.constant 0 : index
      %c0_40 = arith.constant 0 : index
      %53 = vector.load %arg5[%c0_39, %c0_40] : memref<1x128xf32, #tpu.memory_space<vmem>>, vector<1x128xf32>
      %54 = vector.broadcast %53 : vector<1x128xf32> to vector<16x128xf32>
      %55 = arith.addf %52, %54 : vector<16x128xf32>
      %56 = vector.shape_cast %55 : vector<16x128xf32> to vector<2x8x4x32xf32>
      %57 = tpu.transpose %56, [0, 2, 1, 3] : vector<2x8x4x32xf32> -> vector<2x4x8x32xf32>
      %58 = vector.shape_cast %57 : vector<2x4x8x32xf32> to vector<8x8x32xf32>
      %59 = arith.truncf %58 : vector<8x8x32xf32> to vector<8x8x32xbf16>
      %c0_41 = arith.constant 0 : index
      %c0_42 = arith.constant 0 : index
      %c0_43 = arith.constant 0 : index
      %60 = vector.load %arg9[%c0_41, %c0_42, %c0_43] : memref<8x8x32xbf16, #tpu.memory_space<vmem>>, vector<8x8x32xbf16>
      tpu.vector_store %arg9[%c0_41, %c0_42, %c0_43], %59 {strides = array<i32>} : memref<8x8x32xbf16, #tpu.memory_space<vmem>>, vector<8x8x32xbf16>,
      %cst_44 = arith.constant 0xFF800000 : f32
      %61 = vector.broadcast %cst_44 : f32 to vector<8x8x1xf32>
      %c0_45 = arith.constant 0 : index
      %c0_46 = arith.constant 0 : index
      %c0_47 = arith.constant 0 : index
      %62 = vector.load %arg10[%c0_45, %c0_46, %c0_47] : memref<8x8x1xf32, #tpu.memory_space<vmem>>, vector<8x8x1xf32>
      tpu.vector_store %arg10[%c0_45, %c0_46, %c0_47], %61 {strides = array<i32>} : memref<8x8x1xf32, #tpu.memory_space<vmem>>, vector<8x8x1xf32>,
      %cst_48 = arith.constant 0.000000e+00 : f32
      %63 = vector.broadcast %cst_48 : f32 to vector<8x8x1xf32>
      %c0_49 = arith.constant 0 : index
      %c0_50 = arith.constant 0 : index
      %c0_51 = arith.constant 0 : index
      %64 = vector.load %arg11[%c0_49, %c0_50, %c0_51] : memref<8x8x1xf32, #tpu.memory_space<vmem>>, vector<8x8x1xf32>
      tpu.vector_store %arg11[%c0_49, %c0_50, %c0_51], %63 {strides = array<i32>} : memref<8x8x1xf32, #tpu.memory_space<vmem>>, vector<8x8x1xf32>,
      %cst_52 = arith.constant 0.000000e+00 : f32
      %65 = vector.broadcast %cst_52 : f32 to vector<8x8x32xf32>
      %c0_53 = arith.constant 0 : index
      %c0_54 = arith.constant 0 : index
      %c0_55 = arith.constant 0 : index
      %66 = vector.load %arg12[%c0_53, %c0_54, %c0_55] : memref<8x8x32xf32, #tpu.memory_space<vmem>>, vector<8x8x32xf32>
      tpu.vector_store %arg12[%c0_53, %c0_54, %c0_55], %65 {strides = array<i32>} : memref<8x8x32xf32, #tpu.memory_space<vmem>>, vector<8x8x32xf32>,
    } else {
    }
    %c0 = arith.constant 0 : index
    %c0_1 = arith.constant 0 : index
    %c0_2 = arith.constant 0 : index
    %3 = vector.load %arg3[%c0, %c0_1, %c0_2] : memref<2x16x64xf32, #tpu.memory_space<vmem>>, vector<2x16x64xf32>
    %4 = vector.shape_cast %3 : vector<2x16x64xf32> to vector<32x64xf32>
    %5 = arith.truncf %4 : vector<32x64xf32> to vector<32x64xbf16>
    %c0_3 = arith.constant 0 : index
    %c0_4 = arith.constant 0 : index
    %6 = vector.load %arg6[%c0_3, %c0_4] : memref<64x256xbf16, #tpu.memory_space<vmem>>, vector<64x256xbf16>
    %cst = arith.constant dense<0.000000e+00> : vector<32x256xf32>
    %7 = tpu.matmul %5, %6, %cst {dimension_numbers = #tpu.dot_dimension_numbers<[1], [0], [0], [1], [0, 0, 1, 1], [], []>} : vector<32x64xbf16>, vector<64x256xbf16>, vector<32x256xf32> -> vector<32x256xf32>
    %c0_5 = arith.constant 0 : index
    %c0_6 = arith.constant 0 : index
    %8 = vector.load %arg7[%c0_5, %c0_6] : memref<1x256xf32, #tpu.memory_space<vmem>>, vector<1x256xf32>
    %9 = vector.broadcast %8 : vector<1x256xf32> to vector<32x256xf32>
    %10 = arith.addf %7, %9 : vector<32x256xf32>
    %11 = vector.extract_strided_slice %10 {offsets = [0, 0], sizes = [32, 128], strides = [1, 1]} : vector<32x256xf32> to vector<32x128xf32>
    %12 = vector.shape_cast %11 : vector<32x128xf32> to vector<2x16x4x32xf32>
    %13 = tpu.transpose %12, [0, 2, 1, 3] : vector<2x16x4x32xf32> -> vector<2x4x16x32xf32>
    %14 = vector.shape_cast %13 : vector<2x4x16x32xf32> to vector<8x16x32xf32>
    %15 = arith.truncf %14 : vector<8x16x32xf32> to vector<8x16x32xbf16>
    %16 = vector.extract_strided_slice %10 {offsets = [0, 128], sizes = [32, 128], strides = [1, 1]} : vector<32x256xf32> to vector<32x128xf32>
    %17 = vector.shape_cast %16 : vector<32x128xf32> to vector<2x16x4x32xf32>
    %18 = tpu.transpose %17, [0, 2, 1, 3] : vector<2x16x4x32xf32> -> vector<2x4x16x32xf32>
    %19 = vector.shape_cast %18 : vector<2x4x16x32xf32> to vector<8x16x32xf32>
    %20 = arith.truncf %19 : vector<8x16x32xf32> to vector<8x16x32xbf16>
    %c0_7 = arith.constant 0 : index
    %c0_8 = arith.constant 0 : index
    %c0_9 = arith.constant 0 : index
    %21 = vector.load %arg9[%c0_7, %c0_8, %c0_9] : memref<8x8x32xbf16, #tpu.memory_space<vmem>>, vector<8x8x32xbf16>
    "tpu.trace_start"() <{level = 10 : i32, message = "bqd,bkd->bqk"}> : () -> ()
    %cst_10 = arith.constant dense<0.000000e+00> : vector<8x8x16xf32>
    %22 = tpu.matmul %21, %15, %cst_10 {dimension_numbers = #tpu.dot_dimension_numbers<[2], [2], [1], [1], [0, 0, 0, 1, 1, 1], [0], [0]>} : vector<8x8x32xbf16>, vector<8x16x32xbf16>, vector<8x8x16xf32> -> vector<8x8x16xf32>
    "tpu.trace_stop"() : () -> ()
    %c0_11 = arith.constant 0 : index
    %c0_12 = arith.constant 0 : index
    %c0_13 = arith.constant 0 : index
    %23 = vector.load %arg10[%c0_11, %c0_12, %c0_13] : memref<8x8x1xf32, #tpu.memory_space<vmem>>, vector<8x8x1xf32>
    %cst_14 = arith.constant dense<0xFF800000> : vector<8x8xf32>
    %24 = vector.multi_reduction <maximumf>, %22, %cst_14 [2] : vector<8x8x16xf32> to vector<8x8xf32>
    %25 = vector.shape_cast %24 : vector<8x8xf32> to vector<8x8x1xf32>
    %26 = arith.maximumf %23, %25 : vector<8x8x1xf32>
    %27 = arith.subf %23, %26 : vector<8x8x1xf32>
    %28 = math.exp %27 : vector<8x8x1xf32>
    %29 = vector.broadcast %26 : vector<8x8x1xf32> to vector<8x8x16xf32>
    %30 = arith.subf %22, %29 : vector<8x8x16xf32>
    %31 = math.exp %30 : vector<8x8x16xf32>
    %c0_15 = arith.constant 0 : index
    %c0_16 = arith.constant 0 : index
    %c0_17 = arith.constant 0 : index
    %32 = vector.load %arg11[%c0_15, %c0_16, %c0_17] : memref<8x8x1xf32, #tpu.memory_space<vmem>>, vector<8x8x1xf32>
    %33 = arith.mulf %28, %32 : vector<8x8x1xf32>
    %cst_18 = arith.constant dense<0.000000e+00> : vector<8x8xf32>
    %34 = vector.multi_reduction <add>, %31, %cst_18 [2] : vector<8x8x16xf32> to vector<8x8xf32>
    %35 = vector.shape_cast %34 : vector<8x8xf32> to vector<8x8x1xf32>
    %36 = arith.addf %33, %35 : vector<8x8x1xf32>
    %c0_19 = arith.constant 0 : index
    %c0_20 = arith.constant 0 : index
    %c0_21 = arith.constant 0 : index
    %37 = vector.load %arg11[%c0_19, %c0_20, %c0_21] : memref<8x8x1xf32, #tpu.memory_space<vmem>>, vector<8x8x1xf32>
    tpu.vector_store %arg11[%c0_19, %c0_20, %c0_21], %36 {strides = array<i32>} : memref<8x8x1xf32, #tpu.memory_space<vmem>>, vector<8x8x1xf32>,
    %c0_22 = arith.constant 0 : index
    %c0_23 = arith.constant 0 : index
    %c0_24 = arith.constant 0 : index
    %38 = vector.load %arg12[%c0_22, %c0_23, %c0_24] : memref<8x8x32xf32, #tpu.memory_space<vmem>>, vector<8x8x32xf32>
    %39 = vector.broadcast %28 : vector<8x8x1xf32> to vector<8x8x32xf32>
    %40 = arith.mulf %39, %38 : vector<8x8x32xf32>
    %41 = arith.truncf %31 : vector<8x8x16xf32> to vector<8x8x16xbf16>
    "tpu.trace_start"() <{level = 10 : i32, message = "bqk,bkd->bqd"}> : () -> ()
    %cst_25 = arith.constant dense<0.000000e+00> : vector<8x8x32xf32>
    %42 = tpu.matmul %41, %20, %cst_25 {dimension_numbers = #tpu.dot_dimension_numbers<[2], [1], [1], [2], [0, 0, 0, 1, 1, 2], [0], [0]>} : vector<8x8x16xbf16>, vector<8x16x32xbf16>, vector<8x8x32xf32> -> vector<8x8x32xf32>
    "tpu.trace_stop"() : () -> ()
    %43 = arith.addf %40, %42 : vector<8x8x32xf32>
    %c0_26 = arith.constant 0 : index
    %c0_27 = arith.constant 0 : index
    %c0_28 = arith.constant 0 : index
    %44 = vector.load %arg12[%c0_26, %c0_27, %c0_28] : memref<8x8x32xf32, #tpu.memory_space<vmem>>, vector<8x8x32xf32>
    tpu.vector_store %arg12[%c0_26, %c0_27, %c0_28], %43 {strides = array<i32>} : memref<8x8x32xf32, #tpu.memory_space<vmem>>, vector<8x8x32xf32>,
    %c0_29 = arith.constant 0 : index
    %c0_30 = arith.constant 0 : index
    %c0_31 = arith.constant 0 : index
    %45 = vector.load %arg10[%c0_29, %c0_30, %c0_31] : memref<8x8x1xf32, #tpu.memory_space<vmem>>, vector<8x8x1xf32>
    tpu.vector_store %arg10[%c0_29, %c0_30, %c0_31], %26 {strides = array<i32>} : memref<8x8x1xf32, #tpu.memory_space<vmem>>, vector<8x8x1xf32>,
    %c0_i32_32 = arith.constant 0 : i32
    %46 = arith.cmpi eq, %arg1, %c0_i32_32 : i32
    %47 = arith.extui %46 : i1 to i32
    %c0_i32_33 = arith.constant 0 : i32
    %48 = arith.cmpi ne, %47, %c0_i32_33 : i32
    scf.if %48 {
      %c0_34 = arith.constant 0 : index
      %c0_35 = arith.constant 0 : index
      %c0_36 = arith.constant 0 : index
      %49 = vector.load %arg12[%c0_34, %c0_35, %c0_36] : memref<8x8x32xf32, #tpu.memory_space<vmem>>, vector<8x8x32xf32>
      %c0_37 = arith.constant 0 : index
      %c0_38 = arith.constant 0 : index
      %c0_39 = arith.constant 0 : index
      %50 = vector.load %arg11[%c0_37, %c0_38, %c0_39] : memref<8x8x1xf32, #tpu.memory_space<vmem>>, vector<8x8x1xf32>
      %51 = tpu.reciprocal %50 {approx = true} : vector<8x8x1xf32> -> vector<8x8x1xf32>
      %52 = vector.broadcast %51 : vector<8x8x1xf32> to vector<8x8x32xf32>
      %53 = arith.mulf %49, %52 : vector<8x8x32xf32>
      %54 = vector.shape_cast %53 : vector<8x8x32xf32> to vector<2x4x8x32xf32>
      %55 = tpu.transpose %54, [0, 2, 1, 3] : vector<2x4x8x32xf32> -> vector<2x8x4x32xf32>
      %56 = vector.shape_cast %55 : vector<2x8x4x32xf32> to vector<16x128xf32>
      %c0_40 = arith.constant 0 : index
      %c0_41 = arith.constant 0 : index
      %57 = vector.load %arg8[%c0_40, %c0_41] : memref<16x128xf32, #tpu.memory_space<vmem>>, vector<16x128xf32>
      tpu.vector_store %arg8[%c0_40, %c0_41], %56 {strides = array<i32>} : memref<16x128xf32, #tpu.memory_space<vmem>>, vector<16x128xf32>,
    } else {
    }
    return
  }
  func.func @transform_0(%arg0: i32, %arg1: i32) -> (i32, i32) {
    %c0_i32 = arith.constant 0 : i32
    %c0_i32_0 = arith.constant 0 : i32
    return %arg0, %c0_i32 : i32, i32
  }
  func.func @transform_1(%arg0: i32, %arg1: i32) -> (i32, i32, i32) {
    %c0_i32 = arith.constant 0 : i32
    %c0_i32_0 = arith.constant 0 : i32
    return %arg0, %arg1, %c0_i32 : i32, i32, i32
  }
  func.func @transform_2(%arg0: i32, %arg1: i32) -> (i32, i32) {
    %c0_i32 = arith.constant 0 : i32
    %c0_i32_0 = arith.constant 0 : i32
    %c0_i32_1 = arith.constant 0 : i32
    return %c0_i32, %c0_i32_0 : i32, i32
  }
  func.func @transform_3(%arg0: i32, %arg1: i32) -> (i32, i32) {
    %c0_i32 = arith.constant 0 : i32
    %c0_i32_0 = arith.constant 0 : i32
    %c0_i32_1 = arith.constant 0 : i32
    return %c0_i32, %c0_i32_0 : i32, i32
  }
  func.func @transform_4(%arg0: i32, %arg1: i32) -> (i32, i32) {
    %c0_i32 = arith.constant 0 : i32
    %c0_i32_0 = arith.constant 0 : i32
    %c0_i32_1 = arith.constant 0 : i32
    return %c0_i32, %c0_i32_0 : i32, i32
  }
  func.func @transform_5(%arg0: i32, %arg1: i32) -> (i32, i32) {
    %c0_i32 = arith.constant 0 : i32
    %c0_i32_0 = arith.constant 0 : i32
    %c0_i32_1 = arith.constant 0 : i32
    return %c0_i32, %c0_i32_0 : i32, i32
  }
  func.func @transform_6(%arg0: i32, %arg1: i32) -> (i32, i32) {
    %c0_i32 = arith.constant 0 : i32
    %c0_i32_0 = arith.constant 0 : i32
    return %arg0, %c0_i32 : i32, i32
  }
}

module attributes {stable_mosaic.version = 11 : i64} {
  func.func @_attention_kernel(%arg0: i32, %arg1: i32, %arg2: memref<16x32xf32, #tpu.memory_space<vmem>>, %arg3: memref<2x16x64xf32, #tpu.memory_space<vmem>>, %arg4: memref<32x128xbf16, #tpu.memory_space<vmem>>, %arg5: memref<1x128xf32, #tpu.memory_space<vmem>>, %arg6: memref<64x256xbf16, #tpu.memory_space<vmem>>, %arg7: memref<1x256xf32, #tpu.memory_space<vmem>>, %arg8: memref<16x128xf32, #tpu.memory_space<vmem>>, %arg9: memref<8x8x32xbf16, #tpu.memory_space<vmem>>, %arg10: memref<8x8x1xf32, #tpu.memory_space<vmem>>, %arg11: memref<8x8x1xf32, #tpu.memory_space<vmem>>, %arg12: memref<8x8x32xf32, #tpu.memory_space<vmem>>) attributes {dimension_semantics = [#tpu.dimension_semantics<parallel>, #tpu.dimension_semantics<arbitrary>], iteration_bounds = array<i64: 2, 1>, scalar_prefetch = 0 : i64, scratch_operands = 4 : i64, tpu.core_type = #tpu.core_type<tc>, window_params = [{transform_indices = @transform_0, window_bounds = array<i64: 16, 32>}, {transform_indices = @transform_1, window_bounds = array<i64: 2, 16, 64>}, {pipeline_mode = #tpu.pipeline_mode<synchronous>, transform_indices = @transform_2, window_bounds = array<i64: 32, 128>}, {pipeline_mode = #tpu.pipeline_mode<synchronous>, transform_indices = @transform_3, window_bounds = array<i64: 1, 128>}, {pipeline_mode = #tpu.pipeline_mode<synchronous>, transform_indices = @transform_4, window_bounds = array<i64: 64, 256>}, {pipeline_mode = #tpu.pipeline_mode<synchronous>, transform_indices = @transform_5, window_bounds = array<i64: 1, 256>}, {transform_indices = @transform_6, window_bounds = array<i64: 16, 128>}]} {
    %c0_i32 = arith.constant 0 : i32
    %0 = arith.cmpi eq, %arg1, %c0_i32 : i32
    %1 = arith.extui %0 : i1 to i32
    %c0_i32_0 = arith.constant 0 : i32
    %2 = arith.cmpi ne, %1, %c0_i32_0 : i32
    scf.if %2 {
      %c0_34 = arith.constant 0 : index
      %c0_35 = arith.constant 0 : index
      %81 = vector.load %arg2[%c0_34, %c0_35] : memref<16x32xf32, #tpu.memory_space<vmem>>, vector<16x32xf32>
      %82 = arith.truncf %81 : vector<16x32xf32> to vector<16x32xbf16>
      %c0_36 = arith.constant 0 : index
      %c0_37 = arith.constant 0 : index
      %83 = vector.load %arg4[%c0_36, %c0_37] : memref<32x128xbf16, #tpu.memory_space<vmem>>, vector<32x128xbf16>
      %cst_38 = arith.constant dense<0.000000e+00> : vector<16x128xf32>
      %84 = tpu.matmul %82, %83, %cst_38 {dimension_numbers = #tpu.dot_dimension_numbers<[1], [0], [0], [1], [0, 0, 1, 1], [], []>} : vector<16x32xbf16>, vector<32x128xbf16>, vector<16x128xf32> -> vector<16x128xf32>
      %c0_39 = arith.constant 0 : index
      %c0_40 = arith.constant 0 : index
      %85 = vector.load %arg5[%c0_39, %c0_40] : memref<1x128xf32, #tpu.memory_space<vmem>>, vector<1x128xf32>
      %86 = vector.broadcast %85 : vector<1x128xf32> to vector<16x128xf32>
      %87 = arith.addf %84, %86 : vector<16x128xf32>
      %88 = vector.extract_strided_slice %87 {offsets = [0, 0], sizes = [8, 128], strides = [1, 1]} : vector<16x128xf32> to vector<8x128xf32>
      %89 = vector.extract_strided_slice %88 {offsets = [0, 0], sizes = [8, 32], strides = [1, 1]} : vector<8x128xf32> to vector<8x32xf32>
      %90 = vector.extract_strided_slice %88 {offsets = [0, 32], sizes = [8, 32], strides = [1, 1]} : vector<8x128xf32> to vector<8x32xf32>
      %91 = vector.extract_strided_slice %88 {offsets = [0, 64], sizes = [8, 32], strides = [1, 1]} : vector<8x128xf32> to vector<8x32xf32>
      %92 = vector.extract_strided_slice %88 {offsets = [0, 96], sizes = [8, 32], strides = [1, 1]} : vector<8x128xf32> to vector<8x32xf32>
      %93 = vector.extract_strided_slice %87 {offsets = [8, 0], sizes = [8, 128], strides = [1, 1]} : vector<16x128xf32> to vector<8x128xf32>
      %94 = vector.extract_strided_slice %93 {offsets = [0, 0], sizes = [8, 32], strides = [1, 1]} : vector<8x128xf32> to vector<8x32xf32>
      %95 = vector.extract_strided_slice %93 {offsets = [0, 32], sizes = [8, 32], strides = [1, 1]} : vector<8x128xf32> to vector<8x32xf32>
      %96 = vector.extract_strided_slice %93 {offsets = [0, 64], sizes = [8, 32], strides = [1, 1]} : vector<8x128xf32> to vector<8x32xf32>
      %97 = vector.extract_strided_slice %93 {offsets = [0, 96], sizes = [8, 32], strides = [1, 1]} : vector<8x128xf32> to vector<8x32xf32>
      %98 = vector.shape_cast %89 : vector<8x32xf32> to vector<1x8x32xf32>
      %99 = vector.shape_cast %90 : vector<8x32xf32> to vector<1x8x32xf32>
      %100 = vector.shape_cast %91 : vector<8x32xf32> to vector<1x8x32xf32>
      %101 = vector.shape_cast %92 : vector<8x32xf32> to vector<1x8x32xf32>
      %102 = vector.shape_cast %94 : vector<8x32xf32> to vector<1x8x32xf32>
      %103 = vector.shape_cast %95 : vector<8x32xf32> to vector<1x8x32xf32>
      %104 = vector.shape_cast %96 : vector<8x32xf32> to vector<1x8x32xf32>
      %105 = vector.shape_cast %97 : vector<8x32xf32> to vector<1x8x32xf32>
      %106 = tpu.concatenate %98, %99, %100, %101, %102, %103, %104, %105 in 0 : vector<1x8x32xf32>, vector<1x8x32xf32>, vector<1x8x32xf32>, vector<1x8x32xf32>, vector<1x8x32xf32>, vector<1x8x32xf32>, vector<1x8x32xf32>, vector<1x8x32xf32> -> vector<8x8x32xf32>
      %107 = arith.truncf %106 : vector<8x8x32xf32> to vector<8x8x32xbf16>
      %c0_41 = arith.constant 0 : index
      %c0_42 = arith.constant 0 : index
      %c0_43 = arith.constant 0 : index
      %108 = vector.load %arg9[%c0_41, %c0_42, %c0_43] : memref<8x8x32xbf16, #tpu.memory_space<vmem>>, vector<8x8x32xbf16>
      tpu.vector_store %arg9[%c0_41, %c0_42, %c0_43], %107 {strides = array<i32>} : memref<8x8x32xbf16, #tpu.memory_space<vmem>>, vector<8x8x32xbf16>,
      %cst_44 = arith.constant 0xFF800000 : f32
      %109 = vector.broadcast %cst_44 : f32 to vector<8x8x1xf32>
      %c0_45 = arith.constant 0 : index
      %c0_46 = arith.constant 0 : index
      %c0_47 = arith.constant 0 : index
      %110 = vector.load %arg10[%c0_45, %c0_46, %c0_47] : memref<8x8x1xf32, #tpu.memory_space<vmem>>, vector<8x8x1xf32>
      tpu.vector_store %arg10[%c0_45, %c0_46, %c0_47], %109 {strides = array<i32>} : memref<8x8x1xf32, #tpu.memory_space<vmem>>, vector<8x8x1xf32>,
      %cst_48 = arith.constant 0.000000e+00 : f32
      %111 = vector.broadcast %cst_48 : f32 to vector<8x8x1xf32>
      %c0_49 = arith.constant 0 : index
      %c0_50 = arith.constant 0 : index
      %c0_51 = arith.constant 0 : index
      %112 = vector.load %arg11[%c0_49, %c0_50, %c0_51] : memref<8x8x1xf32, #tpu.memory_space<vmem>>, vector<8x8x1xf32>
      tpu.vector_store %arg11[%c0_49, %c0_50, %c0_51], %111 {strides = array<i32>} : memref<8x8x1xf32, #tpu.memory_space<vmem>>, vector<8x8x1xf32>,
      %cst_52 = arith.constant 0.000000e+00 : f32
      %113 = vector.broadcast %cst_52 : f32 to vector<8x8x32xf32>
      %c0_53 = arith.constant 0 : index
      %c0_54 = arith.constant 0 : index
      %c0_55 = arith.constant 0 : index
      %114 = vector.load %arg12[%c0_53, %c0_54, %c0_55] : memref<8x8x32xf32, #tpu.memory_space<vmem>>, vector<8x8x32xf32>
      tpu.vector_store %arg12[%c0_53, %c0_54, %c0_55], %113 {strides = array<i32>} : memref<8x8x32xf32, #tpu.memory_space<vmem>>, vector<8x8x32xf32>,
    } else {
    }
    %c0 = arith.constant 0 : index
    %c0_1 = arith.constant 0 : index
    %c0_2 = arith.constant 0 : index
    %3 = vector.load %arg3[%c0, %c0_1, %c0_2] : memref<2x16x64xf32, #tpu.memory_space<vmem>>, vector<2x16x64xf32>
    %4 = vector.shape_cast %3 : vector<2x16x64xf32> to vector<32x64xf32>
    %5 = arith.truncf %4 : vector<32x64xf32> to vector<32x64xbf16>
    %c0_3 = arith.constant 0 : index
    %c0_4 = arith.constant 0 : index
    %6 = vector.load %arg6[%c0_3, %c0_4] : memref<64x256xbf16, #tpu.memory_space<vmem>>, vector<64x256xbf16>
    %cst = arith.constant dense<0.000000e+00> : vector<32x256xf32>
    %7 = tpu.matmul %5, %6, %cst {dimension_numbers = #tpu.dot_dimension_numbers<[1], [0], [0], [1], [0, 0, 1, 1], [], []>} : vector<32x64xbf16>, vector<64x256xbf16>, vector<32x256xf32> -> vector<32x256xf32>
    %c0_5 = arith.constant 0 : index
    %c0_6 = arith.constant 0 : index
    %8 = vector.load %arg7[%c0_5, %c0_6] : memref<1x256xf32, #tpu.memory_space<vmem>>, vector<1x256xf32>
    %9 = vector.broadcast %8 : vector<1x256xf32> to vector<32x256xf32>
    %10 = arith.addf %7, %9 : vector<32x256xf32>
    %11 = vector.extract_strided_slice %10 {offsets = [0, 0], sizes = [32, 128], strides = [1, 1]} : vector<32x256xf32> to vector<32x128xf32>
    %12 = vector.extract_strided_slice %11 {offsets = [0, 0], sizes = [16, 128], strides = [1, 1]} : vector<32x128xf32> to vector<16x128xf32>
    %13 = vector.extract_strided_slice %12 {offsets = [0, 0], sizes = [16, 32], strides = [1, 1]} : vector<16x128xf32> to vector<16x32xf32>
    %14 = vector.extract_strided_slice %12 {offsets = [0, 32], sizes = [16, 32], strides = [1, 1]} : vector<16x128xf32> to vector<16x32xf32>
    %15 = vector.extract_strided_slice %12 {offsets = [0, 64], sizes = [16, 32], strides = [1, 1]} : vector<16x128xf32> to vector<16x32xf32>
    %16 = vector.extract_strided_slice %12 {offsets = [0, 96], sizes = [16, 32], strides = [1, 1]} : vector<16x128xf32> to vector<16x32xf32>
    %17 = vector.extract_strided_slice %11 {offsets = [16, 0], sizes = [16, 128], strides = [1, 1]} : vector<32x128xf32> to vector<16x128xf32>
    %18 = vector.extract_strided_slice %17 {offsets = [0, 0], sizes = [16, 32], strides = [1, 1]} : vector<16x128xf32> to vector<16x32xf32>
    %19 = vector.extract_strided_slice %17 {offsets = [0, 32], sizes = [16, 32], strides = [1, 1]} : vector<16x128xf32> to vector<16x32xf32>
    %20 = vector.extract_strided_slice %17 {offsets = [0, 64], sizes = [16, 32], strides = [1, 1]} : vector<16x128xf32> to vector<16x32xf32>
    %21 = vector.extract_strided_slice %17 {offsets = [0, 96], sizes = [16, 32], strides = [1, 1]} : vector<16x128xf32> to vector<16x32xf32>
    %22 = vector.shape_cast %13 : vector<16x32xf32> to vector<1x16x32xf32>
    %23 = vector.shape_cast %14 : vector<16x32xf32> to vector<1x16x32xf32>
    %24 = vector.shape_cast %15 : vector<16x32xf32> to vector<1x16x32xf32>
    %25 = vector.shape_cast %16 : vector<16x32xf32> to vector<1x16x32xf32>
    %26 = vector.shape_cast %18 : vector<16x32xf32> to vector<1x16x32xf32>
    %27 = vector.shape_cast %19 : vector<16x32xf32> to vector<1x16x32xf32>
    %28 = vector.shape_cast %20 : vector<16x32xf32> to vector<1x16x32xf32>
    %29 = vector.shape_cast %21 : vector<16x32xf32> to vector<1x16x32xf32>
    %30 = tpu.concatenate %22, %23, %24, %25, %26, %27, %28, %29 in 0 : vector<1x16x32xf32>, vector<1x16x32xf32>, vector<1x16x32xf32>, vector<1x16x32xf32>, vector<1x16x32xf32>, vector<1x16x32xf32>, vector<1x16x32xf32>, vector<1x16x32xf32> -> vector<8x16x32xf32>
    %31 = arith.truncf %30 : vector<8x16x32xf32> to vector<8x16x32xbf16>
    %32 = vector.extract_strided_slice %10 {offsets = [0, 128], sizes = [32, 128], strides = [1, 1]} : vector<32x256xf32> to vector<32x128xf32>
    %33 = vector.extract_strided_slice %32 {offsets = [0, 0], sizes = [16, 128], strides = [1, 1]} : vector<32x128xf32> to vector<16x128xf32>
    %34 = vector.extract_strided_slice %33 {offsets = [0, 0], sizes = [16, 32], strides = [1, 1]} : vector<16x128xf32> to vector<16x32xf32>
    %35 = vector.extract_strided_slice %33 {offsets = [0, 32], sizes = [16, 32], strides = [1, 1]} : vector<16x128xf32> to vector<16x32xf32>
    %36 = vector.extract_strided_slice %33 {offsets = [0, 64], sizes = [16, 32], strides = [1, 1]} : vector<16x128xf32> to vector<16x32xf32>
    %37 = vector.extract_strided_slice %33 {offsets = [0, 96], sizes = [16, 32], strides = [1, 1]} : vector<16x128xf32> to vector<16x32xf32>
    %38 = vector.extract_strided_slice %32 {offsets = [16, 0], sizes = [16, 128], strides = [1, 1]} : vector<32x128xf32> to vector<16x128xf32>
    %39 = vector.extract_strided_slice %38 {offsets = [0, 0], sizes = [16, 32], strides = [1, 1]} : vector<16x128xf32> to vector<16x32xf32>
    %40 = vector.extract_strided_slice %38 {offsets = [0, 32], sizes = [16, 32], strides = [1, 1]} : vector<16x128xf32> to vector<16x32xf32>
    %41 = vector.extract_strided_slice %38 {offsets = [0, 64], sizes = [16, 32], strides = [1, 1]} : vector<16x128xf32> to vector<16x32xf32>
    %42 = vector.extract_strided_slice %38 {offsets = [0, 96], sizes = [16, 32], strides = [1, 1]} : vector<16x128xf32> to vector<16x32xf32>
    %43 = vector.shape_cast %34 : vector<16x32xf32> to vector<1x16x32xf32>
    %44 = vector.shape_cast %35 : vector<16x32xf32> to vector<1x16x32xf32>
    %45 = vector.shape_cast %36 : vector<16x32xf32> to vector<1x16x32xf32>
    %46 = vector.shape_cast %37 : vector<16x32xf32> to vector<1x16x32xf32>
    %47 = vector.shape_cast %39 : vector<16x32xf32> to vector<1x16x32xf32>
    %48 = vector.shape_cast %40 : vector<16x32xf32> to vector<1x16x32xf32>
    %49 = vector.shape_cast %41 : vector<16x32xf32> to vector<1x16x32xf32>
    %50 = vector.shape_cast %42 : vector<16x32xf32> to vector<1x16x32xf32>
    %51 = tpu.concatenate %43, %44, %45, %46, %47, %48, %49, %50 in 0 : vector<1x16x32xf32>, vector<1x16x32xf32>, vector<1x16x32xf32>, vector<1x16x32xf32>, vector<1x16x32xf32>, vector<1x16x32xf32>, vector<1x16x32xf32>, vector<1x16x32xf32> -> vector<8x16x32xf32>
    %52 = arith.truncf %51 : vector<8x16x32xf32> to vector<8x16x32xbf16>
    %c0_7 = arith.constant 0 : index
    %c0_8 = arith.constant 0 : index
    %c0_9 = arith.constant 0 : index
    %53 = vector.load %arg9[%c0_7, %c0_8, %c0_9] : memref<8x8x32xbf16, #tpu.memory_space<vmem>>, vector<8x8x32xbf16>
    "tpu.trace_start"() <{level = 10 : i32, message = "bqd,bkd->bqk"}> : () -> ()
    %cst_10 = arith.constant dense<0.000000e+00> : vector<8x8x16xf32>
    %54 = tpu.matmul %53, %31, %cst_10 {dimension_numbers = #tpu.dot_dimension_numbers<[2], [2], [1], [1], [0, 0, 0, 1, 1, 1], [0], [0]>} : vector<8x8x32xbf16>, vector<8x16x32xbf16>, vector<8x8x16xf32> -> vector<8x8x16xf32>
    "tpu.trace_stop"() : () -> ()
    %c0_11 = arith.constant 0 : index
    %c0_12 = arith.constant 0 : index
    %c0_13 = arith.constant 0 : index
    %55 = vector.load %arg10[%c0_11, %c0_12, %c0_13] : memref<8x8x1xf32, #tpu.memory_space<vmem>>, vector<8x8x1xf32>
    %cst_14 = arith.constant dense<0xFF800000> : vector<8x8xf32>
    %56 = vector.multi_reduction <maximumf>, %54, %cst_14 [2] : vector<8x8x16xf32> to vector<8x8xf32>
    %57 = vector.shape_cast %56 : vector<8x8xf32> to vector<8x8x1xf32>
    %58 = arith.maximumf %55, %57 : vector<8x8x1xf32>
    %59 = arith.subf %55, %58 : vector<8x8x1xf32>
    %60 = math.exp %59 : vector<8x8x1xf32>
    %61 = vector.broadcast %58 : vector<8x8x1xf32> to vector<8x8x16xf32>
    %62 = arith.subf %54, %61 : vector<8x8x16xf32>
    %63 = math.exp %62 : vector<8x8x16xf32>
    %c0_15 = arith.constant 0 : index
    %c0_16 = arith.constant 0 : index
    %c0_17 = arith.constant 0 : index
    %64 = vector.load %arg11[%c0_15, %c0_16, %c0_17] : memref<8x8x1xf32, #tpu.memory_space<vmem>>, vector<8x8x1xf32>
    %65 = arith.mulf %60, %64 : vector<8x8x1xf32>
    %cst_18 = arith.constant dense<0.000000e+00> : vector<8x8xf32>
    %66 = vector.multi_reduction <add>, %63, %cst_18 [2] : vector<8x8x16xf32> to vector<8x8xf32>
    %67 = vector.shape_cast %66 : vector<8x8xf32> to vector<8x8x1xf32>
    %68 = arith.addf %65, %67 : vector<8x8x1xf32>
    %c0_19 = arith.constant 0 : index
    %c0_20 = arith.constant 0 : index
    %c0_21 = arith.constant 0 : index
    %69 = vector.load %arg11[%c0_19, %c0_20, %c0_21] : memref<8x8x1xf32, #tpu.memory_space<vmem>>, vector<8x8x1xf32>
    tpu.vector_store %arg11[%c0_19, %c0_20, %c0_21], %68 {strides = array<i32>} : memref<8x8x1xf32, #tpu.memory_space<vmem>>, vector<8x8x1xf32>,
    %c0_22 = arith.constant 0 : index
    %c0_23 = arith.constant 0 : index
    %c0_24 = arith.constant 0 : index
    %70 = vector.load %arg12[%c0_22, %c0_23, %c0_24] : memref<8x8x32xf32, #tpu.memory_space<vmem>>, vector<8x8x32xf32>
    %71 = vector.broadcast %60 : vector<8x8x1xf32> to vector<8x8x32xf32>
    %72 = arith.mulf %71, %70 : vector<8x8x32xf32>
    %73 = arith.truncf %63 : vector<8x8x16xf32> to vector<8x8x16xbf16>
    "tpu.trace_start"() <{level = 10 : i32, message = "bqk,bkd->bqd"}> : () -> ()
    %cst_25 = arith.constant dense<0.000000e+00> : vector<8x8x32xf32>
    %74 = tpu.matmul %73, %52, %cst_25 {dimension_numbers = #tpu.dot_dimension_numbers<[2], [1], [1], [2], [0, 0, 0, 1, 1, 2], [0], [0]>} : vector<8x8x16xbf16>, vector<8x16x32xbf16>, vector<8x8x32xf32> -> vector<8x8x32xf32>
    "tpu.trace_stop"() : () -> ()
    %75 = arith.addf %72, %74 : vector<8x8x32xf32>
    %c0_26 = arith.constant 0 : index
    %c0_27 = arith.constant 0 : index
    %c0_28 = arith.constant 0 : index
    %76 = vector.load %arg12[%c0_26, %c0_27, %c0_28] : memref<8x8x32xf32, #tpu.memory_space<vmem>>, vector<8x8x32xf32>
    tpu.vector_store %arg12[%c0_26, %c0_27, %c0_28], %75 {strides = array<i32>} : memref<8x8x32xf32, #tpu.memory_space<vmem>>, vector<8x8x32xf32>,
    %c0_29 = arith.constant 0 : index
    %c0_30 = arith.constant 0 : index
    %c0_31 = arith.constant 0 : index
    %77 = vector.load %arg10[%c0_29, %c0_30, %c0_31] : memref<8x8x1xf32, #tpu.memory_space<vmem>>, vector<8x8x1xf32>
    tpu.vector_store %arg10[%c0_29, %c0_30, %c0_31], %58 {strides = array<i32>} : memref<8x8x1xf32, #tpu.memory_space<vmem>>, vector<8x8x1xf32>,
    %c0_i32_32 = arith.constant 0 : i32
    %78 = arith.cmpi eq, %arg1, %c0_i32_32 : i32
    %79 = arith.extui %78 : i1 to i32
    %c0_i32_33 = arith.constant 0 : i32
    %80 = arith.cmpi ne, %79, %c0_i32_33 : i32
    scf.if %80 {
      %c0_34 = arith.constant 0 : index
      %c0_35 = arith.constant 0 : index
      %c0_36 = arith.constant 0 : index
      %81 = vector.load %arg12[%c0_34, %c0_35, %c0_36] : memref<8x8x32xf32, #tpu.memory_space<vmem>>, vector<8x8x32xf32>
      %c0_37 = arith.constant 0 : index
      %c0_38 = arith.constant 0 : index
      %c0_39 = arith.constant 0 : index
      %82 = vector.load %arg11[%c0_37, %c0_38, %c0_39] : memref<8x8x1xf32, #tpu.memory_space<vmem>>, vector<8x8x1xf32>
      %83 = tpu.reciprocal %82 {approx = true} : vector<8x8x1xf32> -> vector<8x8x1xf32>
      %84 = vector.broadcast %83 : vector<8x8x1xf32> to vector<8x8x32xf32>
      %85 = arith.mulf %81, %84 : vector<8x8x32xf32>
      %86 = vector.extract_strided_slice %85 {offsets = [0, 0, 0], sizes = [1, 8, 32], strides = [1, 1, 1]} : vector<8x8x32xf32> to vector<1x8x32xf32>
      %87 = vector.shape_cast %86 : vector<1x8x32xf32> to vector<8x32xf32>
      %88 = vector.extract_strided_slice %85 {offsets = [1, 0, 0], sizes = [1, 8, 32], strides = [1, 1, 1]} : vector<8x8x32xf32> to vector<1x8x32xf32>
      %89 = vector.shape_cast %88 : vector<1x8x32xf32> to vector<8x32xf32>
      %90 = vector.extract_strided_slice %85 {offsets = [2, 0, 0], sizes = [1, 8, 32], strides = [1, 1, 1]} : vector<8x8x32xf32> to vector<1x8x32xf32>
      %91 = vector.shape_cast %90 : vector<1x8x32xf32> to vector<8x32xf32>
      %92 = vector.extract_strided_slice %85 {offsets = [3, 0, 0], sizes = [1, 8, 32], strides = [1, 1, 1]} : vector<8x8x32xf32> to vector<1x8x32xf32>
      %93 = vector.shape_cast %92 : vector<1x8x32xf32> to vector<8x32xf32>
      %94 = tpu.concatenate %87, %89, %91, %93 in 1 : vector<8x32xf32>, vector<8x32xf32>, vector<8x32xf32>, vector<8x32xf32> -> vector<8x128xf32>
      %95 = vector.extract_strided_slice %85 {offsets = [4, 0, 0], sizes = [1, 8, 32], strides = [1, 1, 1]} : vector<8x8x32xf32> to vector<1x8x32xf32>
      %96 = vector.shape_cast %95 : vector<1x8x32xf32> to vector<8x32xf32>
      %97 = vector.extract_strided_slice %85 {offsets = [5, 0, 0], sizes = [1, 8, 32], strides = [1, 1, 1]} : vector<8x8x32xf32> to vector<1x8x32xf32>
      %98 = vector.shape_cast %97 : vector<1x8x32xf32> to vector<8x32xf32>
      %99 = vector.extract_strided_slice %85 {offsets = [6, 0, 0], sizes = [1, 8, 32], strides = [1, 1, 1]} : vector<8x8x32xf32> to vector<1x8x32xf32>
      %100 = vector.shape_cast %99 : vector<1x8x32xf32> to vector<8x32xf32>
      %101 = vector.extract_strided_slice %85 {offsets = [7, 0, 0], sizes = [1, 8, 32], strides = [1, 1, 1]} : vector<8x8x32xf32> to vector<1x8x32xf32>
      %102 = vector.shape_cast %101 : vector<1x8x32xf32> to vector<8x32xf32>
      %103 = tpu.concatenate %96, %98, %100, %102 in 1 : vector<8x32xf32>, vector<8x32xf32>, vector<8x32xf32>, vector<8x32xf32> -> vector<8x128xf32>
      %104 = tpu.concatenate %94, %103 in 0 : vector<8x128xf32>, vector<8x128xf32> -> vector<16x128xf32>
      %c0_40 = arith.constant 0 : index
      %c0_41 = arith.constant 0 : index
      %105 = vector.load %arg8[%c0_40, %c0_41] : memref<16x128xf32, #tpu.memory_space<vmem>>, vector<16x128xf32>
      tpu.vector_store %arg8[%c0_40, %c0_41], %104 {strides = array<i32>} : memref<16x128xf32, #tpu.memory_space<vmem>>, vector<16x128xf32>,
    } else {
    }
    return
  }
  func.func @transform_0(%arg0: i32, %arg1: i32) -> (i32, i32) {
    %c0_i32 = arith.constant 0 : i32
    %c0_i32_0 = arith.constant 0 : i32
    return %arg0, %c0_i32 : i32, i32
  }
  func.func @transform_1(%arg0: i32, %arg1: i32) -> (i32, i32, i32) {
    %c0_i32 = arith.constant 0 : i32
    %c0_i32_0 = arith.constant 0 : i32
    return %arg0, %arg1, %c0_i32 : i32, i32, i32
  }
  func.func @transform_2(%arg0: i32, %arg1: i32) -> (i32, i32) {
    %c0_i32 = arith.constant 0 : i32
    %c0_i32_0 = arith.constant 0 : i32
    %c0_i32_1 = arith.constant 0 : i32
    return %c0_i32, %c0_i32_0 : i32, i32
  }
  func.func @transform_3(%arg0: i32, %arg1: i32) -> (i32, i32) {
    %c0_i32 = arith.constant 0 : i32
    %c0_i32_0 = arith.constant 0 : i32
    %c0_i32_1 = arith.constant 0 : i32
    return %c0_i32, %c0_i32_0 : i32, i32
  }
  func.func @transform_4(%arg0: i32, %arg1: i32) -> (i32, i32) {
    %c0_i32 = arith.constant 0 : i32
    %c0_i32_0 = arith.constant 0 : i32
    %c0_i32_1 = arith.constant 0 : i32
    return %c0_i32, %c0_i32_0 : i32, i32
  }
  func.func @transform_5(%arg0: i32, %arg1: i32) -> (i32, i32) {
    %c0_i32 = arith.constant 0 : i32
    %c0_i32_0 = arith.constant 0 : i32
    %c0_i32_1 = arith.constant 0 : i32
    return %c0_i32, %c0_i32_0 : i32, i32
  }
  func.func @transform_6(%arg0: i32, %arg1: i32) -> (i32, i32) {
    %c0_i32 = arith.constant 0 : i32
    %c0_i32_0 = arith.constant 0 : i32
    return %arg0, %c0_i32 : i32, i32
  }
}

</mosaic_0001>

<bundles_post_ra>
// kernel: tpu_custom_call.1
= control target key start
LH: loop header
LB: loop body
LE: loop exit
PB: predicated region body
PF: predicated region fallthrough
CT: control target
= control target key end

     0   :  { %s5341_s0 = inlined_call_operand.hbm [shape: f32[32,32], index: 0, kind: input, shape index: {}]   ;;  %s5342_s1 = inlined_call_operand.hbm [shape: f32[4,16,64], index: 1, kind: input, shape index: {}]   ;;  %s5343_s2 = inlined_call_operand.hbm [shape: bf16[32,128], index: 2, kind: input, shape index: {}]   ;;  %s5344_s3 = inlined_call_operand.vmem [shape: f32[1,128], index: 3, kind: input, shape index: {}]   ;;  %s5345_s4 = inlined_call_operand.hbm [shape: bf16[64,256], index: 4, kind: input, shape index: {}]   ;;  %s5346_s5 = inlined_call_operand.vmem [shape: f32[1,256], index: 5, kind: input, shape index: {}]   ;;  %s5347_s6 = inlined_call_operand.hbm [shape: f32[32,128], index: 6, kind: output, shape index: {}]  }
   0x1   :  { %5357 = sst [smem:[#allocation23_spill]] %s5341_s0 }
   0x2   :  { %5358 = sst [smem:[#allocation24_spill]] %s5343_s2 }
   0x3   :  { %5359 = sst [smem:[#allocation25_spill]] %s5345_s4 }
   0x4   :  { %11 = vsyncpa [#allocation7], 0 }
   0x5   :  { %13 = vsyncpa [#allocation7 + $0x1], 0 }
   0x6   :  { %14 = vsyncpa [#allocation10], 0 }
   0x7   :  { %16 = vsyncpa [#allocation10 + $0x1], 0 }
   0x8   :  { %17 = vsyncpa [#allocation13], 0 }
   0x9   :  { %18 = vsyncpa [#allocation8], 0 }
   0xa   :  { %20 = vsyncpa [#allocation8 + $0x1], 0  ;;  %s4250_s21 = smov 0   ;;  %s4252_s22 = smov 0  }
   0xb   :  { %s4254_s23 = smov 0   ;;  %s4256_s24 = smov 0  }
   0xc   :  { %s4258_s25 = smov 0   ;;  %s4260_s26 = smov 0  }
   0xd LB: > { %5360 = sst [smem:[#allocation20_spill]] %s4181_s23  ;;  %s4281_s27 = sadd.s32 4294967295, %s4193_s26   ;;  %s4193_s26 = sphi %s4260_s26, %s26_s26   ;;  %s4189_s25 = sphi %s4258_s25, %s5390_s25   ;;  %s4185_s24 = sphi %s4256_s24, %s5389_s24   ;;  %s4181_s23 = sphi %s4254_s23, %s5385_s23   ;;  %s4177_s22 = sphi %s4252_s22, %s5388_s22   ;;  %s4173_s21 = sphi %s4250_s21, %s5387_s21  }
   0xe   : > { %s3596_s28 = sadd.s32 4294967294, %s4193_s26   ;;  %p58_p0 = scmp.ne.s32.totalorder %s4177_s22, %s4173_s21 }
   0xf   : > { %p5348_p1 = scmp.eq.s32.totalorder %s4281_s27, 0  ;;  %p200_p3 = scmp.eq.s32.totalorder %s3596_s28, 1 }
  0x10   : > { %p3597_p5 = scmp.ge.s32.totalorder %s4193_s26, 1  ;;  %p207_p7 = scmp.lt.s32.totalorder %s4193_s26, 3 }
  0x11   : > { %p4290_p4 = por %p5348_p1, %p58_p0  ;;  %p4295_p6 = por %p200_p3, %p58_p0 }
  0x12   : > { %p4300_p8 = pnand %p3597_p5, %p207_p7  ;;  %s4195_s8 = smov [#allocation11]  }
  0x13   : > { %s5361_s29 = scalar_select %p4290_p4, 1, 0 }
  0x14   : > { %s5362_s30 = scalar_select %p4295_p6, 1, 0 }
  0x15   : > { %s219_s9 = sshll.u32 %s4195_s8, 4  ;;  %p3830_p9 = pneg %p4300_p8  ;;  %s4304_s9 = int_to_ptr.vmem [resolvable:$true] %s219_s9 }
  0x16   : > { %s4196_s11 = smov [#allocation12]   ;;  %s5365_s2 = sld [smem:[#allocation24_spill]] }
  0x17   : > { %p4311_p11 = pnand %p3830_p9, %p5348_p1  ;;  %s235_s12 = sshll.u32 %s4196_s11, 4  ;;  %s4315_s12 = int_to_ptr.vmem [resolvable:$true] %s235_s12 }
  0x19   : > { %p3985_p13 = pneg %p4311_p11 }
  0x1c   : > { %s3983_s15 = scalar_lea.hbm %s5365_s2, 256 }
  0x1d   : > { %p3984_p12 = scmp.ne.s32.totalorder %s5365_s2, %s3983_s15  ;;  %p3990_p5 = scmp.lt.u32.totalorder %s3983_s15, %s5365_s2 }
  0x1f   : > { %p3986_p0 = pnand %p3985_p13, %p3984_p12 }
  0x21   : > { %p3987_p3 = pneg %p3986_p0 }
  0x23   : > { %p3992_p7 = pnand %p3990_p5, %p3987_p3 }
  0x25   : > { %3995 = shalt.err (!%p3992_p7)
}
  0x26   : > { %s3996_s20 = scalar_lea.vmem %s4304_s9, 256  ;;  %p4004_p2 = scmp.lt.s32.totalorder %s4304_s9, %s4304_s9 }
  0x27   : > { %p3997_p9 = scmp.ne.s32.totalorder %s4304_s9, %s3996_s20  ;;  %p4005_p12 = scmp.lt.s32.totalorder %s3996_s20, %s3996_s20 }
  0x29   : > { %p3999_p10 = pnand %p3997_p9, %p3985_p13  ;;  %p4006_p0 = por %p4005_p12, %p4004_p2 }
  0x2b   : > { %p4000_p1 = pneg %p3999_p10 }
  0x2d   : > { %p4007_p6 = pnand %p4006_p0, %p4000_p1 }
  0x2f   : > { %4010 = shalt.err (!%p4007_p6)
}
  0x30   : > { %s4197_s28 = smov 64   ;;  %s4198_s8 = smov 4  }
  0x31   : > { %3833 = dma.hbm_to_vmem [thread:$0]  (!%p4311_p11), %s5365_s2, 256, %s4304_s9, [#allocation10], %s4197_s28, %s4197_s28, %s4198_s8  }
  0x32   : > { %s5366_s4 = sld [smem:[#allocation25_spill]] }
  0x38   : > { %s4011_s16 = scalar_lea.hbm %s5366_s4, 1024 }
  0x39   : > { %p4012_p2 = scmp.ne.s32.totalorder %s5366_s4, %s4011_s16  ;;  %p4018_p10 = scmp.lt.u32.totalorder %s4011_s16, %s5366_s4 }
  0x3b   : > { %p4014_p1 = pnand %p4012_p2, %p3985_p13 }
  0x3d   : > { %p4015_p6 = pneg %p4014_p1 }
  0x3f   : > { %p4020_p3 = pnand %p4018_p10, %p4015_p6 }
  0x41   : > { %4023 = shalt.err (!%p4020_p3)
}
  0x42   : > { %s4024_s9 = scalar_lea.vmem %s4315_s12, 1024  ;;  %p4032_p12 = scmp.lt.s32.totalorder %s4315_s12, %s4315_s12 }
  0x43   : > { %p4025_p5 = scmp.ne.s32.totalorder %s4315_s12, %s4024_s9  ;;  %p4033_p0 = scmp.lt.s32.totalorder %s4024_s9, %s4024_s9 }
  0x45   : > { %p4027_p7 = pnand %p4025_p5, %p3985_p13  ;;  %p4034_p2 = por %p4033_p0, %p4032_p12 }
  0x47   : > { %p4028_p9 = pneg %p4027_p7 }
  0x49   : > { %p4035_p1 = pnand %p4034_p2, %p4028_p9 }
  0x4b   : > { %4038 = shalt.err (!%p4035_p1)
}
  0x4c   : > { %s5349_s28 = smov 128   ;;  %s5351_s8 = smov 8  }
  0x4d   : > { %3836 = dma.hbm_to_vmem [thread:$0]  (!%p4311_p11), %s5366_s4, 1024, %s4315_s12, [#allocation13], %s5349_s28, %s5349_s28, %s5351_s8  }
  0x4e   : > { %s38_s14 = sadd.s32 1, %s4189_s25  ;;  %s45_s15 = sadd.s32 1, %s4181_s23 }
  0x4f   : > { %p40_p13 = scmp.ge.s32.totalorder %s38_s14, 2  ;;  %p52_p6 = scmp.ne.s32.totalorder %s4181_s23, %s4177_s22 }
  0x50   : > { %p53_p10 = scmp.eq.s32.totalorder %s4193_s26, 0  ;;  %p3850_p3 = scmp.lt.s32.totalorder %s4193_s26, 2 }
  0x51   : > { %s5392_s14 = smov (%p40_p13, %s38_s14), 0  ;;  %p5368_p7 = scmp.eq.s32.totalorder %s4281_s27, 1 }
  0x52   : > { %5367 = sst [smem:[#allocation21_spill]] %s5392_s14  ;;  %p54_p5 = por %p53_p10, %p52_p6 }
  0x53   : > { %p4382_p9 = por %p5368_p7, %p52_p6  ;;  %s42_s16 = ssub.s32 %s4189_s25, %s5392_s14 }
  0x54   : > { %s4389_s17 = sand.u32 1, %s4181_s23   ;;  %p43_p11 = scmp.eq.s32.totalorder %s42_s16, 0 }
  0x55   : > { %s5369_s10 = scalar_select %p4382_p9, 1, 0 }
  0x56   : > { %s3601_s12 = sshll.u32 %s4389_s17, 4  ;;  %s3673_s18 = sshll.u32 %s4189_s25, 8 }
  0x57   : > { %s4394_s19 = scalar_select %p43_p11, %s4181_s23, %s45_s15  }
  0x58   : > { %s5371_s0 = sld [smem:[#allocation23_spill]]  ;;  %s256_s13 = scalar_lea.vmem [#allocation6], %s3601_s12 }
  0x59   : > { %5370 = sst [smem:[#allocation22_spill]] %s4394_s19  ;;  %s263_s28 = sshll.u32 %s256_s13, 4  ;;  %s4407_s28 = int_to_ptr.vmem [resolvable:$true] %s263_s28 }
  0x5a   : > { %p4403_p12 = pnand %p3850_p3, %p54_p5  ;;  %s253_s16 = scalar_lea.sflag [#allocation7], %s4389_s17 }
  0x5c   : > { %p4041_p2 = pneg %p4403_p12 }
  0x5e   : > { %s4399_s11 = scalar_lea.hbm %s5371_s0, %s3673_s18  ;;  %s4044_s9 = scalar_lea.hbm %s5371_s0, 512 }
  0x5f   : > { %s4039_s20 = scalar_lea.hbm %s4399_s11, 256  ;;  %p4045_p6 = scmp.lt.u32.totalorder %s4399_s11, %s5371_s0 }
  0x60   : > { %p4040_p0 = scmp.ne.s32.totalorder %s4399_s11, %s4039_s20  ;;  %p4046_p10 = scmp.lt.u32.totalorder %s4044_s9, %s4039_s20 }
  0x61   : > { %p4048_p5 = scmp.lt.u32.totalorder %s4039_s20, %s4399_s11 }
  0x62   : > { %p4042_p1 = pnand %p4041_p2, %p4040_p0  ;;  %p4047_p3 = por %p4046_p10, %p4045_p6 }
  0x64   : > { %p4043_p13 = pneg %p4042_p1  ;;  %p4049_p7 = por %p4048_p5, %p4047_p3 }
  0x66   : > { %p4050_p11 = pnand %p4049_p7, %p4043_p13 }
  0x68   : > { %4053 = shalt.err (!%p4050_p11)
}
  0x69   : > { %s4054_s15 = scalar_lea.vmem %s4407_s28, 256  ;;  %s4201_s12 = smov [#allocation6]  }
  0x6a   : > { %p4055_p0 = scmp.ne.s32.totalorder %s4407_s28, %s4054_s15  ;;  %s4059_s18 = sshll.u32 %s4201_s12, 4  ;;  %s4060_s18 = int_to_ptr.vmem [resolvable:$false] %s4059_s18 }
  0x6b   : > { %s4061_s2 = scalar_lea.vmem %s4060_s18, 512  ;;  %p4062_p4 = scmp.lt.s32.totalorder %s4407_s28, %s4060_s18 }
  0x6c   : > { %p4057_p1 = pnand %p4055_p0, %p4041_p2  ;;  %p4063_p6 = scmp.lt.s32.totalorder %s4061_s2, %s4054_s15 }
  0x6e   : > { %p4058_p9 = pneg %p4057_p1  ;;  %p4064_p10 = por %p4063_p6, %p4062_p4 }
  0x70   : > { %p4065_p3 = pnand %p4064_p10, %p4058_p9 }
  0x72   : > { %4068 = shalt.err (!%p4065_p3)
}
  0x73   : > { %s5373_s20 = smov 8   ;;  %s5374_s9 = smov 128  }
  0x74   : > { %3840 = dma.hbm_to_vmem [thread:$0]  (!%p4403_p12), %s4399_s11, 256, %s4407_s28, %s253_s16, %s5374_s9, %s5374_s9, %s5373_s20  }
  0x75   : > { %s3604_s13 = sshll.u32 %s4389_s17, 5  ;;  %s3675_s12 = sshll.u32 %s4189_s25, 9 }
  0x76   : > { %s4446_s2 = scalar_lea.hbm %s5342_s1, %s3675_s12  ;;  %s277_s0 = scalar_lea.vmem [#allocation9], %s3604_s13 }
  0x77   : > { %s287_s4 = sshll.u32 %s277_s0, 4  ;;  %s5375_s14 = sand.u32 1, %s4193_s26   ;;  %s4448_s4 = int_to_ptr.vmem [resolvable:$true] %s287_s4 }
  0x78   : > { %s4452_s19 = scalar_lea.sflag [#allocation10], %s5375_s14  ;;  %s4069_s23 = scalar_lea.hbm %s4446_s2, 512 }
  0x79   : > { %p4070_p4 = scmp.ne.s32.totalorder %s4446_s2, %s4069_s23  ;;  %s4074_s11 = scalar_lea.hbm %s5342_s1, 1024 }
  0x7a   : > { %p4075_p5 = scmp.lt.u32.totalorder %s4446_s2, %s5342_s1  ;;  %p4076_p7 = scmp.lt.u32.totalorder %s4074_s11, %s4069_s23 }
  0x7b   : > { %p4072_p9 = pnand %p4070_p4, %p4041_p2  ;;  %p4078_p0 = scmp.lt.u32.totalorder %s4069_s23, %s4446_s2 }
  0x7c   : > { %p4077_p11 = por %p4076_p7, %p4075_p5 }
  0x7d   : > { %p4073_p13 = pneg %p4072_p9 }
  0x7e   : > { %p4079_p1 = por %p4078_p0, %p4077_p11 }
  0x80   : > { %p4080_p6 = pnand %p4079_p1, %p4073_p13 }
  0x82   : > { %4083 = shalt.err (!%p4080_p6)
}
  0x83   : > { %s4084_s0 = scalar_lea.vmem %s4448_s4, 512  ;;  %s4202_s14 = smov [#allocation9]  }
  0x84   : > { %p4085_p10 = scmp.ne.s32.totalorder %s4448_s4, %s4084_s0  ;;  %s4089_s13 = sshll.u32 %s4202_s14, 4  ;;  %s4090_s13 = int_to_ptr.vmem [resolvable:$false] %s4089_s13 }
  0x85   : > { %s4091_s15 = scalar_lea.vmem %s4090_s13, 1024  ;;  %p4092_p9 = scmp.lt.s32.totalorder %s4448_s4, %s4090_s13 }
  0x86   : > { %p4087_p3 = pnand %p4085_p10, %p4041_p2  ;;  %p4093_p5 = scmp.lt.s32.totalorder %s4091_s15, %s4084_s0 }
  0x88   : > { %p4088_p4 = pneg %p4087_p3  ;;  %p4094_p7 = por %p4093_p5, %p4092_p9 }
  0x8a   : > { %p4095_p11 = pnand %p4094_p7, %p4088_p4 }
  0x8c   : > { %4098 = shalt.err (!%p4095_p11)
}
  0x8d   : > { %3843 = dma.hbm_to_vmem [thread:$0]  (!%p4403_p12), %s4446_s2, 512, %s4448_s4, %s4452_s19, %s5374_s9, %s5374_s9, %s5373_s20  }
  0x8e   : > { %299 = sbr.rel (%p4300_p8) target bundleno = 1572 (0x624), region = 44  ;;  %s4484_s23 = sand.u32 (!%p4300_p8), 1, %s4177_s22  }
  0x8f   : > { %s3609_s18 = sshll.u32 (!%p4300_p8), %s4484_s23, 4  ;;  %s302_s28 = scalar_lea.sflag (!%p4300_p8), [#allocation7], %s4484_s23 }
  0x90   : > { %s4490_s8 = scalar_lea.vmem (!%p4300_p8), [#allocation6], %s3609_s18  ;;  %p5376_p2 = scmp.ne.s32.totalorder (!%p4300_p8), %s5361_s29, 0 }
  0x95   : > { %4152 = dma.done.wait (%p5376_p2), %s302_s28, 256  }
  0x96   : > { %4154 = vsyncadd (%p5376_p2), %s302_s28, 4294967040  ;;  %s310_s4 = sand.u32 1, %s4281_s27   ;;  %s3610_s7 = sshll.u32 %s4484_s23, 5 }
  0x97   : > { %s311_s19 = scalar_lea.sflag [#allocation10], %s310_s4  ;;  %s4498_s20 = scalar_lea.vmem [#allocation9], %s3610_s7 }
  0x98   : > { %4156 = dma.done.wait (%p5376_p2), %s311_s19, 512  }
  0x99   : > { %4158 = vsyncadd (%p5376_p2), %s311_s19, 4294966784  ;;  %p5377_p8 = scmp.eq.s32.totalorder %s4281_s27, 0 }
  0x9b   : > { %4160 = dma.done.wait (%p5377_p8), [#allocation10], 256   ;;  %p5378_p12 = pmov %p5377_p8 }
  0x9c   : > { %p5379_p13 = pmov %p5377_p8 }
  0x9d   : > { %4162 = vsyncadd (%p5378_p12), [#allocation10], 4294967040 }
  0x9e   : > { %4164 = dma.done.wait (%p5379_p13), [#allocation13], 1024   ;;  %p5380_p0 = pmov %p5377_p8 }
  0x9f   : > { %vm391_vm0 = vcmask 261120   ;;  %v4203_v0 = vmov 0.0   ;;  %vm4204_vm1 = vmmov 0   ;;  %v4205_v1 = vmov 0   ;;  %v3921_v2 = vld [vmem:[#allocation11] sm:$0xff]   ;;  %v3925_v5 = vld [vmem:[#allocation11 + $0x8] sm:$0xff]  }
  0xa0   : > { %4166 = vsyncadd (%p5380_p0), [#allocation13], 4294966272  ;;  %3712 = vmatprep.subr.bf16.mxu0 %v4203_v0  ;;  %3716 = vmatprep.mubr.msk.bf16.mxu0 %vm4204_vm1, %v4203_v0  ;;  %762 = vst.msk [vmem:[#allocation5] sm:$0xff] %vm391_vm0, %v4203_v0  ;;  %v3922_v3 = vld [vmem:[#allocation12 + $0x4] ss:$8 sps:$4 sm:$0xff]   ;;  %v770_v15 = vld [vmem:[%s4498_s20] sm:$0xff]  ;;  %v461_v21 = vlaneseq }
  0xa1   : > { %763 = vst.msk [vmem:[#allocation5 + $0x8] sm:$0xff] %vm391_vm0, %v4203_v0  ;;  %764 = vst.msk [vmem:[#allocation5 + $0x10] sm:$0xff] %vm391_vm0, %v4203_v0  ;;  %875 = vmatprep.mubr.bf16.mxu1 %v4205_v1  ;;  %3919 = vset.pattern.permute.xlu1 %v4205_v1  ;;  %v3924_v4 = vld [vmem:[#allocation12] ss:$8 sps:$4 sm:$0xff]   ;;  %v3926_v6 = vld [vmem:[#allocation12 + $0x14] ss:$8 sps:$4 sm:$0xff]  }
  0xa2   : > { %765 = vst.msk [vmem:[#allocation5 + $0x18] sm:$0xff] %vm391_vm0, %v4203_v0  ;;  %766 = vst.msk [vmem:[#allocation5 + $0x20] sm:$0xff] %vm391_vm0, %v4203_v0  ;;  %3920 = vset.pattern.permute.xlu0 %v4205_v1  ;;  %3713 = vmatpush3.bf16.msra.mxu0 %v3921_v2  ;;  %v3928_v7 = vld [vmem:[#allocation12 + $0x10] ss:$8 sps:$4 sm:$0xff]   ;;  %v3929_v11 = vld [vmem:[#allocation12 + $0x24] ss:$8 sps:$4 sm:$0xff]  }
  0xa3   : > { %767 = vst.msk [vmem:[#allocation5 + $0x28] sm:$0xff] %vm391_vm0, %v4203_v0  ;;  %768 = vst.msk [vmem:[#allocation5 + $0x30] sm:$0xff] %vm391_vm0, %v4203_v0  ;;  %843 = vmatprep.subr.bf16.mxu1 %v3922_v3  ;;  %3714 = vmatprep.subr.bf16.mxu0 %v4203_v0  ;;  %v365_v8 = vld [vmem:[%s4490_s8] sm:$0xff]  ;;  %v366_v9 = vld [vmem:[%s4490_s8 + $0x8] sm:$0xff]  ;;  %vm836_vm2 = vcmask 523264   ;;  %v4547_v22 = vshrl.u32 %v461_v21, 7 }
  0xa4   : > { %769 = vst.msk [vmem:[#allocation5 + $0x38] sm:$0xff] %vm391_vm0, %v4203_v0  ;;  %844 = vmatpush1.bf16.msra.mxu1 %v3924_v4  ;;  %v367_v10 = vpack.c.bf16 %v366_v9, %v365_v8  ;;  %v3931_v12 = vld [vmem:[#allocation12 + $0x20] ss:$8 sps:$4 sm:$0xff]   ;;  %v3932_v13 = vld [vmem:[#allocation12 + $0x34] ss:$8 sps:$4 sm:$0xff]   ;;  %s4206_s17 = smov 96  }
  0xa5   : > { %845 = vmatprep.subr.bf16.mxu1 %v3926_v6  ;;  %v3934_v14 = vld [vmem:[#allocation12 + $0x30] ss:$8 sps:$4 sm:$0xff]   ;;  %v772_v18 = vld [vmem:[%s4498_s20 + $0x10] sm:$0xff]  ;;  %v773_v19 = vld [vmem:[%s4498_s20 + $0x18] sm:$0xff]  ;;  %v792_v24 = vsub.s32 1, %v4547_v22  ;;  %s4207_s11 = smov 32  }
  0xa6   : > { %3715 = vmatpush3.bf16.msra.mxu0 %v3925_v5  ;;  %v771_v16 = vld [vmem:[%s4498_s20 + $0x8] sm:$0xff]  ;;  %v775_v20 = vpack.c.bf16 %v773_v19, %v772_v18  ;;  %v784_v23 = vld [vmem:[%s5346_s5] sm:$0x3]  ;;  %v788_v32 = vsub.s32 0, %v4547_v22  ;;  %s4208_s16 = smov 64   ;;  %vm736_vm3 = vcmask 257024  }
  0xa7   : > { %3720 = vmatprep.subr.bf16.mxu0 %v4203_v0  ;;  %v774_v17 = vpack.c.bf16 %v771_v16, %v770_v15  ;;  %v793_v25 = vrot.slane %v784_v23, %v792_v24  ;;  %v3614_v26 = vld [vmem:[%s5344_s3] ss:$0 sm:$0xff]  ;;  %v4209_v51 = vmov 1983009808   ;;  %v4210_v54 = vmov 1934713408  }
  0xa8   : > { %846 = vmatpush1.bf16.msra.mxu1 %v3928_v7  ;;  %v789_v33 = vrot.slane %v784_v23, %v788_v32  ;;  %v459_v52 = vunpack.c.l.s4 %v4209_v51  ;;  %v491_v55 = vunpack.c.l.s4 %v4210_v54  ;;  %vm745_vm4 = vcmask 7168   ;;  %s355_s12 = scalar_lea.vmem [#allocation14], %s3609_s18  ;;  %s3676_s14 = sshll.u32 %s4185_s24, 8 }
  0xa9   : > { %3717 = vmatmul.mubr.msk.bf16.vlgmr.msra.gmra.mrb[0].mxu0 %vm391_vm0, %v367_v10  ;;  %847 = vmatprep.subr.bf16.mxu1 %v3929_v11  ;;  %754 = vst.msk [vmem:[#allocation4] sm:$0xff] %vm745_vm4, %v4203_v0  ;;  %755 = vst.msk [vmem:[#allocation4 + $0x8] sm:$0xff] %vm745_vm4, %v4203_v0  ;;  %vm2465_vm5 = vcmask 130048   ;;  %vm3450_vm6 = vcmask 785408   ;;  %s3469_s0 = sshll.u32 %s355_s12, 4  ;;  %s5290_s28 = scalar_lea.hbm %s5347_s6, %s3676_s14  ;;  %s5284_s0 = int_to_ptr.vmem [resolvable:$true] %s3469_s0 }
  0xaa   : > { %3722 = vmatprep.mubr.msk.bf16.mxu0 %vm4204_vm1, %v4203_v0  ;;  %v460_v53 = vunpack.c.0.s8 %v459_v52  ;;  %v492_v61 = vunpack.c.0.s8 %v491_v55  ;;  %756 = vst.msk [vmem:[#allocation4 + $0x10] sm:$0xff] %vm745_vm4, %v4203_v0  ;;  %757 = vst.msk [vmem:[#allocation4 + $0x18] sm:$0xff] %vm745_vm4, %v4203_v0  ;;  %s3456_s18 = scalar_lea.sflag [#allocation8], %s4484_s23  ;;  %s4099_s24 = scalar_lea.vmem %s5284_s0, 256 }
  0xab   : > { %758 = vst.msk [vmem:[#allocation4 + $0x20] sm:$0xff] %vm745_vm4, %v4203_v0  ;;  %759 = vst.msk [vmem:[#allocation4 + $0x28] sm:$0xff] %vm745_vm4, %v4203_v0  ;;  %p4100_p1 = scmp.ne.s32.totalorder %s5284_s0, %s4099_s24  ;;  %p5381_p6 = scmp.ne.s32.totalorder %s5369_s10, 0 }
  0xac   : > { %848 = vmatpush1.bf16.msra.mxu1 %v3931_v12  ;;  %v4614_v58 = vsub.s32 %v460_v53, %v4547_v22  ;;  %v4621_v4 = vsub.s32 %v492_v61, %v4547_v22  ;;  %760 = vst.msk [vmem:[#allocation4 + $0x30] sm:$0xff] %vm745_vm4, %v4203_v0  ;;  %761 = vst.msk [vmem:[#allocation4 + $0x38] sm:$0xff] %vm745_vm4, %v4203_v0  ;;  %s4212_s8 = smov [#allocation14]  }
  0xad   : > { %849 = vmatprep.subr.bf16.mxu1 %v3932_v13  ;;  %p4101_p10 = pnand %p4100_p1, %p5381_p6  ;;  %s4103_s4 = sshll.u32 %s4212_s8, 4  ;;  %s4104_s4 = int_to_ptr.vmem [resolvable:$false] %s4103_s4 }
  0xae   : > { %s4105_s7 = scalar_lea.vmem %s4104_s4, 512  ;;  %p4106_p4 = scmp.lt.s32.totalorder %s5284_s0, %s4104_s4 }
  0xaf   : > { %p4102_p3 = pneg %p4101_p10  ;;  %p4107_p9 = scmp.lt.s32.totalorder %s4105_s7, %s4099_s24 }
  0xb0   : > { %850 = vmatpush1.bf16.msra.mxu1 %v3934_v14 }
  0xb1   : > { %3738 = vmatprep.subr.bf16.mxu1 %v4203_v0  ;;  %p4108_p5 = por %p4107_p9, %p4106_p4 }
  0xb3   : > { %3630 = vmatmul.mubr.msk.bf16.vlgmr.msra.gmra.mrb[0].mxu1 %vm836_vm2, %v774_v17  ;;  %p4109_p7 = pnand %p4108_p5, %p4102_p3 }
  0xb4   : > { %885 = vmatprep.mubr.bf16.mxu1 %v4205_v1 }
  0xbb   : > { %3631 = vmatmul.mubr.msk.bf16.gmra.mrb[4].mxu1 %vm836_vm2, %v775_v20 }
  0xbc   : > { %3740 = vmatprep.mubr.msk.bf16.mxu1 %vm4204_vm1, %v4203_v0 }
 0x17c   : > { %v429_v27 = vpop.f32.mrb[0].mxu0 }
 0x17d   : > { %v4556_v28 = vadd.f32 %v3614_v26, %v429_v27  ;;  %v3718_v29 = vpop.f32.mrb[1].mxu0 }
 0x17e   : > { %v432_v30 = vpop.f32.mrb[2].mxu0 }
 0x17f   : > { %438 = vrot.lane.b32.xlu0 %v4556_v28, %s4206_s17  ;;  %v3719_v31 = vpop.f32.mrb[3].mxu0  ;;  %450 = vrot.lane.b32.xlu1 %v4556_v28, %s4207_s11  ;;  %v4587_v48 = vadd.f32 %v3614_v26, %v432_v30 }
 0x183   : > { %444 = vrot.lane.b32.xlu0 %v4556_v28, %s4208_s16 }
 0x186   : > { %v877_v34 = vpop.f32.mrb[0].mxu1 }
 0x187   : > { %v4565_v35 = vadd.f32 %v877_v34, %v789_v33  ;;  %v879_v36 = vpop.f32.mrb[1].mxu1 }
 0x188   : > { %v4567_v37 = vadd.f32 %v879_v36, %v793_v25  ;;  %v881_v38 = vpop.f32.mrb[2].mxu1 }
 0x189   : > { %v4569_v39 = vadd.f32 %v881_v38, %v789_v33  ;;  %v883_v40 = vpop.f32.mrb[3].mxu1  ;;  %900 = vrot.lane.b32.xlu1 %v4565_v35, %s4206_s17 }
 0x18a   : > { %v4573_v41 = vadd.f32 %v883_v40, %v793_v25 }
 0x18b   : > { %902 = vrot.lane.b32.xlu0 %v4569_v39, %s4206_s17 }
 0x18d   : > { %912 = vrot.lane.b32.xlu1 %v4565_v35, %s4208_s16 }
 0x18e   : > { %v887_v42 = vpop.f32.mrb[4].mxu1 }
 0x18f   : > { %914 = vrot.lane.b32.xlu0 %v4569_v39, %s4208_s16  ;;  %v889_v43 = vpop.f32.mrb[5].mxu1  ;;  %v4595_v49 = vadd.f32 %v887_v42, %v789_v33 }
 0x190   : > { %v4581_v44 = vadd.f32 %v889_v43, %v793_v25  ;;  %v891_v45 = vpop.f32.mrb[6].mxu1 }
 0x191   : > { %924 = vrot.lane.b32.xlu1 %v4565_v35, %s4207_s11  ;;  %v893_v46 = vpop.f32.mrb[7].mxu1  ;;  %v4599_v50 = vadd.f32 %v891_v45, %v789_v33 }
 0x192   : > { %v4585_v47 = vadd.f32 %v893_v46, %v793_v25 }
 0x193   : > { %926 = vrot.lane.b32.xlu0 %v4569_v39, %s4207_s11 }
 0x195   : > { %440 = vrot.lane.b32.xlu1 %v4587_v48, %s4206_s17 }
 0x197   : > { %446 = vrot.lane.b32.xlu0 %v4587_v48, %s4208_s16 }
 0x199   : > { %452 = vrot.lane.b32.xlu1 %v4587_v48, %s4207_s11 }
 0x19b   : > { %904 = vrot.lane.b32.xlu0 %v4595_v49, %s4206_s17 }
 0x19d   : > { %906 = vrot.lane.b32.xlu1 %v4599_v50, %s4206_s17 }
 0x19f   : > { %916 = vrot.lane.b32.xlu0 %v4595_v49, %s4208_s16 }
 0x1a1   : > { %918 = vrot.lane.b32.xlu1 %v4599_v50, %s4208_s16 }
 0x1a3   : > { %928 = vrot.lane.b32.xlu0 %v4595_v49, %s4207_s11 }
 0x1a5   : > { %930 = vrot.lane.b32.xlu1 %v4599_v50, %s4207_s11 }
 0x1f1   : > { %v439_v56 = vpop.permute.xlu0 %438  ;;  %v451_v57 = vpop.permute.xlu1 %450 }
 0x1f2   : > { %v472_v59 = vcombine.low %v439_v56, %v451_v57  ;;  %v473_v60 = vcombine.high %v439_v56, %v451_v57 }
 0x1f4   : > { %v480_v63 = vrot.slane %v472_v59, %v4614_v58  ;;  %v487_v1 = vrot.slane %v473_v60, %v4614_v58 }
 0x1f5   : > { %v445_v62 = vpop.permute.xlu0 %444 }
 0x1f6   : > { %v456_v2 = vcombine.low %v4556_v28, %v445_v62  ;;  %v457_v3 = vcombine.high %v4556_v28, %v445_v62 }
 0x1f8   : > { %v464_v5 = vrot.slane %v456_v2, %v4614_v58  ;;  %v471_v6 = vrot.slane %v457_v3, %v4614_v58 }
 0x1fa   : > { %v488_v7 = vcombine.low %v464_v5, %v480_v63  ;;  %v489_v8 = vcombine.high %v464_v5, %v480_v63  ;;  %v504_v9 = vcombine.low %v471_v6, %v487_v1  ;;  %v505_v10 = vcombine.high %v471_v6, %v487_v1 }
 0x1fb   : > { %v901_v11 = vpop.permute.xlu1 %900 }
 0x1fc   : > { %v496_v12 = vrot.slane %v488_v7, %v4621_v4  ;;  %v503_v13 = vrot.slane %v489_v8, %v4621_v4  ;;  %v512_v14 = vrot.slane %v504_v9, %v4621_v4  ;;  %v519_v15 = vrot.slane %v505_v10, %v4621_v4 }
 0x1fd   : > { %v903_v16 = vpop.permute.xlu0 %902 }
 0x1fe   : > { %v592_v17 = vcombine.low %v496_v12, %v503_v13  ;;  %v3618_v18 = vcombine.high %v496_v12, %v503_v13  ;;  %v608_v19 = vcombine.low %v512_v14, %v519_v15  ;;  %v3619_v20 = vcombine.high %v512_v14, %v519_v15 }
 0x1ff   : > { %v913_v21 = vpop.permute.xlu1 %912 }
 0x200   : > { %v599_v22 = vrot.slane %v592_v17, %v4614_v58  ;;  %v607_v23 = vrot.slane %v3618_v18, %v4614_v58  ;;  %v615_v24 = vrot.slane %v608_v19, %v4614_v58  ;;  %v623_v25 = vrot.slane %v3619_v20, %v4614_v58 }
 0x201   : > { %v936_v26 = vcombine.low %v4565_v35, %v913_v21  ;;  %v937_v27 = vcombine.high %v4565_v35, %v913_v21  ;;  %v915_v28 = vpop.permute.xlu0 %914 }
 0x202   : > { %v624_v29 = vcombine.low %v599_v22, %v607_v23  ;;  %v625_v30 = vcombine.high %v599_v22, %v607_v23  ;;  %v640_v31 = vcombine.low %v615_v24, %v623_v25  ;;  %v641_v32 = vcombine.high %v615_v24, %v623_v25 }
 0x203   : > { %v944_v33 = vrot.slane %v936_v26, %v4614_v58  ;;  %v951_v34 = vrot.slane %v937_v27, %v4614_v58  ;;  %v1004_v36 = vcombine.low %v4569_v39, %v915_v28  ;;  %v1005_v38 = vcombine.high %v4569_v39, %v915_v28  ;;  %v925_v40 = vpop.permute.xlu1 %924 }
 0x204   : > { %v632_v42 = vrot.slane %v624_v29, %v4621_v4  ;;  %v639_v43 = vrot.slane %v625_v30, %v4621_v4  ;;  %v648_v35 = vrot.slane %v640_v31, %v4621_v4  ;;  %v655_v45 = vrot.slane %v641_v32, %v4621_v4 }
 0x205   : > { %v1012_v46 = vrot.slane %v1004_v36, %v4614_v58  ;;  %v1019_v51 = vrot.slane %v1005_v38, %v4614_v58  ;;  %v952_v52 = vcombine.low %v901_v11, %v925_v40  ;;  %v953_v53 = vcombine.high %v901_v11, %v925_v40  ;;  %v927_v54 = vpop.permute.xlu0 %926 }
 0x206   : > { %v656_v55 = vcombine.low %v632_v42, %v648_v35  ;;  %v657_v56 = vcombine.high %v632_v42, %v648_v35  ;;  %v658_v57 = vcombine.low %v639_v43, %v655_v45  ;;  %v659_v39 = vcombine.high %v639_v43, %v655_v45 }
 0x207   : > { %v960_v59 = vrot.slane %v952_v52, %v4614_v58  ;;  %v967_v60 = vrot.slane %v953_v53, %v4614_v58  ;;  %v1020_v61 = vcombine.low %v903_v16, %v927_v54  ;;  %v1021_v62 = vcombine.high %v903_v16, %v927_v54  ;;  %v441_v63 = vpop.permute.xlu1 %440 }
 0x208   : > { %v728_v1 = vpack.c.bf16 %v656_v55, %v656_v55  ;;  %v729_v2 = vpack.c.bf16 %v657_v56, %v657_v56  ;;  %v730_v3 = vpack.c.bf16 %v658_v57, %v658_v57  ;;  %v731_v5 = vpack.c.bf16 %v659_v39, %v659_v39 }
 0x209   : > { %v968_v6 = vcombine.low %v944_v33, %v960_v59  ;;  %v969_v7 = vcombine.high %v944_v33, %v960_v59  ;;  %v984_v8 = vcombine.low %v951_v34, %v967_v60  ;;  %v985_v9 = vcombine.high %v951_v34, %v967_v60  ;;  %v447_v10 = vpop.permute.xlu0 %446 }
 0x20a   : > { %737 = vst.msk [vmem:[#allocation2] sm:$0xf] %vm736_vm3, %v728_v1  ;;  %738 = vst.msk [vmem:[#allocation2 + $0x4] sm:$0xf] %vm736_vm3, %v729_v2  ;;  %v1028_v11 = vrot.slane %v1020_v61, %v4614_v58  ;;  %v1035_v12 = vrot.slane %v1021_v62, %v4614_v58  ;;  %v524_v13 = vcombine.low %v4587_v48, %v447_v10 }
 0x20b   : > { %739 = vst.msk [vmem:[#allocation2 + $0x8] sm:$0xf] %vm736_vm3, %v730_v3  ;;  %740 = vst.msk [vmem:[#allocation2 + $0xc] sm:$0xf] %vm736_vm3, %v731_v5  ;;  %v525_v14 = vcombine.high %v4587_v48, %v447_v10  ;;  %v976_v15 = vrot.slane %v968_v6, %v4621_v4  ;;  %v983_v16 = vrot.slane %v969_v7, %v4621_v4  ;;  %v453_v19 = vpop.permute.xlu1 %452 }
 0x20c   : > { %v992_v17 = vrot.slane %v984_v8, %v4621_v4  ;;  %v999_v18 = vrot.slane %v985_v9, %v4621_v4  ;;  %v1036_v20 = vcombine.low %v1012_v46, %v1028_v11  ;;  %v1037_v21 = vcombine.high %v1012_v46, %v1028_v11 }
 0x20d   : > { %v1052_v22 = vcombine.low %v1019_v51, %v1035_v12  ;;  %v1053_v23 = vcombine.high %v1019_v51, %v1035_v12  ;;  %v1208_v24 = vcombine.low %v976_v15, %v983_v16  ;;  %v3632_v25 = vcombine.high %v976_v15, %v983_v16  ;;  %v905_v28 = vpop.permute.xlu0 %904 }
 0x20e   : > { %v1224_v26 = vcombine.low %v992_v17, %v999_v18  ;;  %v3633_v27 = vcombine.high %v992_v17, %v999_v18  ;;  %v1044_v48 = vrot.slane %v1036_v20, %v4621_v4  ;;  %v1051_v29 = vrot.slane %v1037_v21, %v4621_v4 }
 0x20f   : > { %v1060_v30 = vrot.slane %v1052_v22, %v4621_v4  ;;  %v1067_v31 = vrot.slane %v1053_v23, %v4621_v4  ;;  %v4664_v32 = vrot.slane %v1208_v24, %v4614_v58  ;;  %v4667_v33 = vrot.slane %v3632_v25, %v4614_v58  ;;  %v907_v38 = vpop.permute.xlu1 %906 }
 0x210   : > { %v4670_v34 = vrot.slane %v1224_v26, %v4614_v58  ;;  %v4673_v36 = vrot.slane %v3633_v27, %v4614_v58  ;;  %v1276_v40 = vcombine.low %v1044_v48, %v1051_v29  ;;  %v3634_v42 = vcombine.high %v1044_v48, %v1051_v29 }
 0x211   : > { %v1292_v43 = vcombine.low %v1060_v30, %v1067_v31  ;;  %v3635_v35 = vcombine.high %v1060_v30, %v1067_v31  ;;  %v532_v45 = vrot.slane %v524_v13, %v4614_v58  ;;  %v539_v46 = vrot.slane %v525_v14, %v4614_v58  ;;  %v917_v53 = vpop.permute.xlu0 %916 }
 0x212   : > { %v540_v51 = vcombine.low %v441_v63, %v453_v19  ;;  %v541_v52 = vcombine.high %v441_v63, %v453_v19  ;;  %v4678_v54 = vrot.slane %v1276_v40, %v4614_v58  ;;  %v4681_v55 = vrot.slane %v3634_v42, %v4614_v58 }
 0x213   : > { %v4684_v56 = vrot.slane %v1292_v43, %v4614_v58  ;;  %v4687_v57 = vrot.slane %v3635_v35, %v4614_v58  ;;  %v1072_v60 = vcombine.low %v4595_v49, %v917_v53  ;;  %v1073_v61 = vcombine.high %v4595_v49, %v917_v53  ;;  %v919_v62 = vpop.permute.xlu1 %918 }
 0x214   : > { %v548_v39 = vrot.slane %v540_v51, %v4614_v58  ;;  %v555_v59 = vrot.slane %v541_v52, %v4614_v58  ;;  %v1140_v63 = vcombine.low %v4599_v50, %v919_v62  ;;  %v1141_v1 = vcombine.high %v4599_v50, %v919_v62 }
 0x215   : > { %v1240_v2 = vcombine.low %v4664_v32, %v4667_v33  ;;  %v1256_v3 = vcombine.low %v4670_v34, %v4673_v36  ;;  %v929_v9 = vpop.permute.xlu0 %928  ;;  %v1080_v10 = vrot.slane %v1072_v60, %v4614_v58  ;;  %v1087_v49 = vrot.slane %v1073_v61, %v4614_v58 }
 0x216   : > { %v556_v5 = vcombine.low %v532_v45, %v548_v39  ;;  %v557_v6 = vcombine.high %v532_v45, %v548_v39  ;;  %v572_v7 = vcombine.low %v539_v46, %v555_v59  ;;  %v573_v8 = vcombine.high %v539_v46, %v555_v59 }
 0x217   : > { %v4702_v11 = vrot.slane %v1140_v63, %v4614_v58  ;;  %v4705_v50 = vrot.slane %v1141_v1, %v4614_v58  ;;  %v931_v16 = vpop.permute.xlu1 %930  ;;  %v1088_v17 = vcombine.low %v905_v28, %v929_v9  ;;  %v1089_v18 = vcombine.high %v905_v28, %v929_v9 }
 0x218   : > { %v564_v12 = vrot.slane %v556_v5, %v4621_v4  ;;  %v571_v13 = vrot.slane %v557_v6, %v4621_v4  ;;  %v580_v14 = vrot.slane %v572_v7, %v4621_v4  ;;  %v587_v15 = vrot.slane %v573_v8, %v4621_v4 }
 0x219   : > { %v1156_v19 = vcombine.low %v907_v38, %v931_v16  ;;  %v1157_v20 = vcombine.high %v907_v38, %v931_v16  ;;  %v1096_v25 = vrot.slane %v1088_v17, %v4614_v58  ;;  %v1103_v26 = vrot.slane %v1089_v18, %v4614_v58 }
 0x21a   : > { %v660_v21 = vcombine.low %v564_v12, %v571_v13  ;;  %v3620_v22 = vcombine.high %v564_v12, %v571_v13  ;;  %v676_v23 = vcombine.low %v580_v14, %v587_v15  ;;  %v3621_v24 = vcombine.high %v580_v14, %v587_v15 }
 0x21b   : > { %v1164_v27 = vrot.slane %v1156_v19, %v4614_v58  ;;  %v1171_v48 = vrot.slane %v1157_v20, %v4614_v58  ;;  %v1104_v38 = vcombine.low %v1080_v10, %v1096_v25  ;;  %v1105_v40 = vcombine.high %v1080_v10, %v1096_v25 }
 0x21c   : > { %v667_v29 = vrot.slane %v660_v21, %v4614_v58  ;;  %v675_v30 = vrot.slane %v3620_v22, %v4614_v58  ;;  %v683_v28 = vrot.slane %v676_v23, %v4614_v58  ;;  %v691_v31 = vrot.slane %v3621_v24, %v4614_v58 }
 0x21d   : > { %v1120_v42 = vcombine.low %v1087_v49, %v1103_v26  ;;  %v1121_v43 = vcombine.high %v1087_v49, %v1103_v26  ;;  %v1112_v52 = vrot.slane %v1104_v38, %v4621_v4  ;;  %v1119_v53 = vrot.slane %v1105_v40, %v4621_v4 }
 0x21e   : > { %v692_v35 = vcombine.low %v667_v29, %v675_v30  ;;  %v693_v45 = vcombine.high %v667_v29, %v675_v30  ;;  %v708_v46 = vcombine.low %v683_v28, %v691_v31  ;;  %v709_v51 = vcombine.high %v683_v28, %v691_v31 }
 0x21f   : > { %v1128_v39 = vrot.slane %v1120_v42, %v4621_v4  ;;  %v1135_v59 = vrot.slane %v1121_v43, %v4621_v4  ;;  %v1344_v1 = vcombine.low %v1112_v52, %v1119_v53  ;;  %v3636_v5 = vcombine.high %v1112_v52, %v1119_v53 }
 0x220   : > { %v700_v60 = vrot.slane %v692_v35, %v4621_v4  ;;  %v707_v61 = vrot.slane %v693_v45, %v4621_v4  ;;  %v716_v62 = vrot.slane %v708_v46, %v4621_v4  ;;  %v723_v63 = vrot.slane %v709_v51, %v4621_v4 }
 0x221   : > { %v1360_v6 = vcombine.low %v1128_v39, %v1135_v59  ;;  %v3637_v7 = vcombine.high %v1128_v39, %v1135_v59  ;;  %v4728_v12 = vrot.slane %v1344_v1, %v4614_v58  ;;  %v4731_v13 = vrot.slane %v3636_v5, %v4614_v58 }
 0x222   : > { %v724_v8 = vcombine.low %v700_v60, %v716_v62  ;;  %v725_v9 = vcombine.high %v700_v60, %v716_v62  ;;  %v726_v10 = vcombine.low %v707_v61, %v723_v63  ;;  %v727_v49 = vcombine.high %v707_v61, %v723_v63 }
 0x223   : > { %v4734_v14 = vrot.slane %v1360_v6, %v4614_v58  ;;  %v4737_v15 = vrot.slane %v3637_v7, %v4614_v58  ;;  %v1172_v20 = vcombine.low %v4702_v11, %v1164_v27  ;;  %v1173_v21 = vcombine.high %v4702_v11, %v1164_v27 }
 0x224   : > { %v732_v16 = vpack.c.bf16 %v724_v8, %v724_v8  ;;  %v733_v17 = vpack.c.bf16 %v725_v9, %v725_v9  ;;  %v734_v18 = vpack.c.bf16 %v726_v10, %v726_v10  ;;  %v735_v19 = vpack.c.bf16 %v727_v49, %v727_v49 }
 0x225   : > { %v1188_v22 = vcombine.low %v4705_v50, %v1171_v48  ;;  %v1189_v23 = vcombine.high %v4705_v50, %v1171_v48  ;;  %v1248_v24 = vrot.slane %v1240_v2, %v4621_v4  ;;  %v1264_v11 = vrot.slane %v1256_v3, %v4621_v4 }
 0x226   : > { %741 = vst.msk [vmem:[#allocation2 + $0x10] sm:$0xf] %vm736_vm3, %v732_v16  ;;  %742 = vst.msk [vmem:[#allocation2 + $0x14] sm:$0xf] %vm736_vm3, %v733_v17  ;;  %v1308_v50 = vcombine.low %v4678_v54, %v4681_v55  ;;  %v1324_v25 = vcombine.low %v4684_v56, %v4687_v57  ;;  %v1180_v26 = vrot.slane %v1172_v20, %v4621_v4  ;;  %v2080_v20 = vld [vmem:[#allocation2] sm:$0xf] }
 0x227   : > { %743 = vst.msk [vmem:[#allocation2 + $0x18] sm:$0xf] %vm736_vm3, %v734_v18  ;;  %744 = vst.msk [vmem:[#allocation2 + $0x1c] sm:$0xf] %vm736_vm3, %v735_v19  ;;  %v1187_v27 = vrot.slane %v1173_v21, %v4621_v4  ;;  %v1196_v48 = vrot.slane %v1188_v22, %v4621_v4  ;;  %v1203_v29 = vrot.slane %v1189_v23, %v4621_v4 }
 0x228   : > { %v1272_v2 = vcombine.low %v1248_v24, %v1264_v11  ;;  %v1316_v30 = vrot.slane %v1308_v50, %v4621_v4  ;;  %v1332_v28 = vrot.slane %v1324_v25, %v4621_v4  ;;  %v1241_v3 = vcombine.high %v4664_v32, %v4667_v33 }
 0x229   : > { %v1412_v31 = vcombine.low %v1180_v26, %v1187_v27  ;;  %v3638_v38 = vcombine.high %v1180_v26, %v1187_v27  ;;  %v1428_v40 = vcombine.low %v1196_v48, %v1203_v29  ;;  %v3639_v42 = vcombine.high %v1196_v48, %v1203_v29 }
 0x22a   : > { %v1340_v43 = vcombine.low %v1316_v30, %v1332_v28  ;;  %v1255_v35 = vrot.slane %v1241_v3, %v4621_v4  ;;  %v1257_v45 = vcombine.high %v4670_v34, %v4673_v36  ;;  %v1309_v46 = vcombine.high %v4678_v54, %v4681_v55 }
 0x22b   : > { %v1419_v51 = vrot.slane %v1412_v31, %v4614_v58  ;;  %v1427_v52 = vrot.slane %v3638_v38, %v4614_v58  ;;  %v1435_v53 = vrot.slane %v1428_v40, %v4614_v58  ;;  %v1443_v32 = vrot.slane %v3639_v42, %v4614_v58 }
 0x22c   : > { %v1480_v33 = vpack.c.bf16 %v1340_v43, %v1272_v2  ;;  %v1271_v39 = vrot.slane %v1257_v45, %v4621_v4  ;;  %v1323_v59 = vrot.slane %v1309_v46, %v4621_v4  ;;  %v1325_v60 = vcombine.high %v4684_v56, %v4687_v57  ;;  %v2082_v43 = vld [vmem:[#allocation2 + $0x8] sm:$0xf] }
 0x22d   : > { %v1376_v34 = vcombine.low %v4728_v12, %v4731_v13  ;;  %v1392_v36 = vcombine.low %v4734_v14, %v4737_v15  ;;  %v1341_v61 = vcombine.high %v1316_v30, %v1332_v28  ;;  %v1444_v1 = vcombine.low %v1419_v51, %v1427_v52  ;;  %v2085_v40 = vld [vmem:[#allocation2 + $0x14] sm:$0xf] }
 0x22e   : > { %v2093_v54 = vsel %vm391_vm0, %v1480_v33, 0  ;;  %v1339_v55 = vrot.slane %v1325_v60, %v4621_v4  ;;  %v1275_v5 = vcombine.high %v1255_v35, %v1271_v39  ;;  %v1273_v56 = vcombine.high %v1248_v24, %v1264_v11  ;;  %v2086_v33 = vld [vmem:[#allocation2 + $0x18] sm:$0xf] }
 0x22f   : > { %3721 = vmatpush3.bf16.xpose.msra.mxu0 %v2093_v54  ;;  %v1384_v62 = vrot.slane %v1376_v34, %v4621_v4  ;;  %v1400_v63 = vrot.slane %v1392_v36, %v4621_v4  ;;  %v1460_v57 = vcombine.low %v1435_v53, %v1443_v32  ;;  %v1452_v7 = vrot.slane %v1444_v1, %v4621_v4 }
 0x230   : > { %v1343_v6 = vcombine.high %v1323_v59, %v1339_v55  ;;  %3726 = vmatprep.subr.bf16.mxu0 %v4203_v0  ;;  %v1481_v9 = vpack.c.bf16 %v1341_v61, %v1273_v56  ;;  %v1445_v18 = vcombine.high %v1419_v51, %v1427_v52  ;;  %v1461_v19 = vcombine.high %v1435_v53, %v1443_v32  ;;  %v2087_v52 = vld [vmem:[#allocation2 + $0x1c] sm:$0xf]  ;;  %v2084_v53 = vld [vmem:[#allocation2 + $0x10] sm:$0xf] }
 0x231   : > { %v1468_v10 = vrot.slane %v1460_v57, %v4621_v4  ;;  %v1409_v49 = vcombine.high %v1384_v62, %v1400_v63  ;;  %v1342_v21 = vcombine.low %v1323_v59, %v1339_v55  ;;  %v1377_v24 = vcombine.high %v4728_v12, %v4731_v13  ;;  %v2083_v13 = vld [vmem:[#allocation2 + $0xc] sm:$0xf] }
 0x232   : > { %v1483_v8 = vpack.c.bf16 %v1343_v6, %v1275_v5  ;;  %v2139_v22 = vsel %vm391_vm0, %v1481_v9, 0  ;;  %v1393_v11 = vcombine.high %v4734_v14, %v4737_v15  ;;  %v1274_v50 = vcombine.low %v1255_v35, %v1271_v39  ;;  %v2081_v15 = vld [vmem:[#allocation2 + $0x4] sm:$0xf] }
 0x233   : > { %v1477_v17 = vcombine.high %v1452_v7, %v1468_v10  ;;  %v1459_v25 = vrot.slane %v1445_v18, %v4621_v4  ;;  %v1475_v26 = vrot.slane %v1461_v19, %v4621_v4  ;;  %v1391_v29 = vrot.slane %v1377_v24, %v4621_v4 }
 0x234   : > { %v2231_v16 = vsel %vm391_vm0, %v1483_v8, 0  ;;  %v1482_v27 = vpack.c.bf16 %v1342_v21, %v1274_v50  ;;  %v1407_v12 = vrot.slane %v1393_v11, %v4621_v4  ;;  %v1476_v30 = vcombine.low %v1452_v7, %v1468_v10 }
 0x235   : > { %3739 = vmatpush3.bf16.xpose.msra.mxu1 %v2231_v16  ;;  %v1485_v23 = vpack.c.bf16 %v1477_v17, %v1409_v49  ;;  %v1479_v14 = vcombine.high %v1459_v25, %v1475_v26  ;;  %v1408_v3 = vcombine.low %v1384_v62, %v1400_v63  ;;  %v1478_v45 = vcombine.low %v1459_v25, %v1475_v26 }
 0x236   : > { %3723 = vmatmul.mubr.msk.bf16.vlgmr.msra.gmra.mrb[4].mxu0 %vm391_vm0, %v2080_v20  ;;  %3750 = vmatprep.subr.bf16.mxu1 %v4203_v0  ;;  %v2185_v2 = vsel %vm391_vm0, %v1482_v27, 0  ;;  %v1411_v28 = vcombine.high %v1391_v29, %v1407_v12  ;;  %v1410_v46 = vcombine.low %v1391_v29, %v1407_v12  ;;  %v4211_v39 = vmov -inf  }
 0x237   : > { %3727 = vmatpush3.bf16.xpose.msra.mxu0 %v2139_v22  ;;  %3728 = vmatprep.mubr.msk.bf16.mxu0 %vm4204_vm1, %v4203_v0  ;;  %v2323_v48 = vsel %vm391_vm0, %v1485_v23, 0  ;;  %v1484_v38 = vpack.c.bf16 %v1476_v30, %v1408_v3  ;;  %746 = vst.msk [vmem:[#allocation3] sm:$0xff] %vm745_vm4, %v4211_v39  ;;  %747 = vst.msk [vmem:[#allocation3 + $0x8] sm:$0xff] %vm745_vm4, %v4211_v39 }
 0x238   : > { %3732 = vmatprep.subr.bf16.mxu0 %v4203_v0  ;;  %v1487_v31 = vpack.c.bf16 %v1479_v14, %v1411_v28  ;;  %v1486_v51 = vpack.c.bf16 %v1478_v45, %v1410_v46  ;;  %748 = vst.msk [vmem:[#allocation3 + $0x10] sm:$0xff] %vm745_vm4, %v4211_v39  ;;  %749 = vst.msk [vmem:[#allocation3 + $0x18] sm:$0xff] %vm745_vm4, %v4211_v39 }
 0x239   : > { %v2277_v35 = vsel %vm391_vm0, %v1484_v38, 0  ;;  %750 = vst.msk [vmem:[#allocation3 + $0x20] sm:$0xff] %vm745_vm4, %v4211_v39  ;;  %751 = vst.msk [vmem:[#allocation3 + $0x28] sm:$0xff] %vm745_vm4, %v4211_v39 }
 0x23a   : > { %v2415_v42 = vsel %vm391_vm0, %v1487_v31, 0  ;;  %v2369_v32 = vsel %vm391_vm0, %v1486_v51, 0  ;;  %752 = vst.msk [vmem:[#allocation3 + $0x30] sm:$0xff] %vm745_vm4, %v4211_v39  ;;  %753 = vst.msk [vmem:[#allocation3 + $0x38] sm:$0xff] %vm745_vm4, %v4211_v39 }
 0x23c   : > { %3741 = vmatmul.mubr.msk.bf16.vlgmr.msra.gmra.mrb[8].mxu1 %vm391_vm0, %v2083_v13 }
 0x23d   : > { %3751 = vmatpush3.bf16.xpose.msra.mxu1 %v2323_v48  ;;  %3752 = vmatprep.mubr.msk.bf16.mxu1 %vm4204_vm1, %v4203_v0 }
 0x23e   : > { %3729 = vmatmul.mubr.msk.bf16.vlgmr.msra.gmra.mrb[8].mxu0 %vm391_vm0, %v2081_v15  ;;  %3762 = vmatprep.subr.bf16.mxu1 %v4203_v0  ;;  %v4893_v30 = vld [vmem:[#allocation3] sm:$0xff]  ;;  %v4903_v38 = vld [vmem:[#allocation3 + $0x8] sm:$0xff] }
 0x23f   : > { %3733 = vmatpush3.bf16.xpose.msra.mxu0 %v2185_v2  ;;  %3734 = vmatprep.mubr.msk.bf16.mxu0 %vm4204_vm1, %v4203_v0  ;;  %v4926_v51 = vld [vmem:[#allocation3 + $0x18] sm:$0xff] }
 0x240   : > { %3744 = vmatprep.subr.bf16.mxu0 %v4203_v0  ;;  %v4941_v39 = vld [vmem:[#allocation3 + $0x20] sm:$0xff] }
 0x244   : > { %3753 = vmatmul.mubr.msk.bf16.vlgmr.msra.gmra.mrb[12].mxu1 %vm391_vm0, %v2085_v40 }
 0x245   : > { %3763 = vmatpush3.bf16.xpose.msra.mxu1 %v2415_v42  ;;  %3764 = vmatprep.mubr.msk.bf16.mxu1 %vm4204_vm1, %v4203_v0 }
 0x246   : > { %3735 = vmatmul.mubr.msk.bf16.vlgmr.msra.gmra.mrb[12].mxu0 %vm391_vm0, %v2082_v43  ;;  %3774 = vmatprep.subr.bf16.mxu1 %v4203_v0 }
 0x247   : > { %3745 = vmatpush3.bf16.xpose.msra.mxu0 %v2277_v35  ;;  %3746 = vmatprep.mubr.msk.bf16.mxu0 %vm4204_vm1, %v4203_v0  ;;  %v4917_v35 = vld [vmem:[#allocation3 + $0x10] sm:$0xff] }
 0x248   : > { %3756 = vmatprep.subr.bf16.mxu0 %v4203_v0 }
 0x24c   : > { %3765 = vmatmul.mubr.msk.bf16.vlgmr.msra.gmra.mrb[16].mxu1 %vm391_vm0, %v2087_v52 }
 0x24d   : > { %3776 = vmatprep.mubr.msk.bf16.mxu1 %vm4204_vm1, %v4203_v0 }
 0x24e   : > { %3747 = vmatmul.mubr.msk.bf16.vlgmr.msra.gmra.mrb[16].mxu0 %vm391_vm0, %v2084_v53 }
 0x24f   : > { %3757 = vmatpush3.bf16.xpose.msra.mxu0 %v2369_v32  ;;  %3758 = vmatprep.mubr.msk.bf16.mxu0 %vm4204_vm1, %v4203_v0 }
 0x250   : > { %3768 = vmatprep.subr.bf16.mxu0 %v4203_v0 }
 0x256   : > { %3759 = vmatmul.mubr.msk.bf16.vlgmr.msra.gmra.mrb[20].mxu0 %vm391_vm0, %v2086_v33  ;;  %v4939_v33 = vld [vmem:[#allocation3 + $0x28] sm:$0xff] }
 0x257   : > { %3770 = vmatprep.mubr.msk.bf16.mxu0 %vm4204_vm1, %v4203_v0 }
 0x309   : > { %v4861_v59 = vpop.f32.mrb[4].mxu0 }
 0x30a   : > { %v3724_v60 = vpop.f32.mrb[5].mxu0  ;;  %v2466_v34 = vsel %vm2465_vm5, %v4861_v59, -inf }
 0x30b   : > { %2467 = vmax.xlane.f32.xlu0 %v2466_v34  ;;  %v2132_v36 = vpop.f32.mrb[6].mxu0 }
 0x30c   : > { %v3725_v54 = vpop.f32.mrb[7].mxu0 }
 0x30f   : > { %v4865_v55 = vpop.f32.mrb[8].mxu1 }
 0x310   : > { %v3742_v61 = vpop.f32.mrb[9].mxu1  ;;  %v2475_v20 = vsel %vm2465_vm5, %v4865_v55, -inf }
 0x311   : > { %v2270_v62 = vpop.f32.mrb[10].mxu1  ;;  %v4867_v63 = vpop.f32.mrb[8].mxu0 }
 0x312   : > { %v3743_v1 = vpop.f32.mrb[11].mxu1  ;;  %v3730_v5 = vpop.f32.mrb[9].mxu0  ;;  %v2469_v6 = vsel %vm2465_vm5, %v4867_v63, -inf  ;;  %v4955_v62 = vld [vmem:[#allocation3 + $0x38] sm:$0xff] }
 0x313   : > { %2470 = vmax.xlane.f32.xlu1 %v2469_v6  ;;  %v2178_v56 = vpop.f32.mrb[10].mxu0 }
 0x314   : > { %v3731_v57 = vpop.f32.mrb[11].mxu0 }
 0x315   : > { %v4971_v57 = vld [vmem:[#allocation3 + $0x30] sm:$0xff] }
 0x317   : > { %v4871_v7 = vpop.f32.mrb[12].mxu1 }
 0x318   : > { %v3754_v8 = vpop.f32.mrb[13].mxu1  ;;  %v2481_v50 = vsel %vm2465_vm5, %v4871_v7, -inf }
 0x319   : > { %v4873_v9 = vpop.f32.mrb[12].mxu0  ;;  %v2362_v10 = vpop.f32.mrb[14].mxu1 }
 0x31a   : > { %v3736_v49 = vpop.f32.mrb[13].mxu0  ;;  %v2472_v16 = vsel %vm2465_vm5, %v4873_v9, -inf  ;;  %v3755_v17 = vpop.f32.mrb[15].mxu1 }
 0x31b   : > { %2473 = vmax.xlane.f32.xlu0 %v2472_v16  ;;  %v2224_v18 = vpop.f32.mrb[14].mxu0 }
 0x31c   : > { %v3737_v19 = vpop.f32.mrb[15].mxu0 }
 0x31f   : > { %2476 = vmax.xlane.f32.xlu0 %v2475_v20  ;;  %v4879_v21 = vpop.f32.mrb[16].mxu1 }
 0x320   : > { %v3766_v22 = vpop.f32.mrb[17].mxu1  ;;  %v2487_v29 = vsel %vm2465_vm5, %v4879_v21, -inf }
 0x321   : > { %v4881_v23 = vpop.f32.mrb[16].mxu0  ;;  %v2454_v24 = vpop.f32.mrb[18].mxu1 }
 0x322   : > { %v3748_v11 = vpop.f32.mrb[17].mxu0  ;;  %v2478_v25 = vsel %vm2465_vm5, %v4881_v23, -inf  ;;  %v3767_v26 = vpop.f32.mrb[19].mxu1 }
 0x323   : > { %2482 = vmax.xlane.f32.xlu0 %v2481_v50  ;;  %2479 = vmax.xlane.f32.xlu1 %v2478_v25  ;;  %v2316_v27 = vpop.f32.mrb[18].mxu0 }
 0x324   : > { %v3749_v48 = vpop.f32.mrb[19].mxu0 }
 0x327   : > { %2488 = vmax.xlane.f32.xlu0 %v2487_v29 }
 0x329   : > { %v4889_v12 = vpop.f32.mrb[20].mxu0 }
 0x32a   : > { %v3760_v13 = vpop.f32.mrb[21].mxu0  ;;  %v2484_v14 = vsel %vm2465_vm5, %v4889_v12, -inf }
 0x32b   : > { %2485 = vmax.xlane.f32.xlu1 %v2484_v14  ;;  %v2408_v15 = vpop.f32.mrb[22].mxu0 }
 0x32c   : > { %v3761_v2 = vpop.f32.mrb[23].mxu0 }
 0x398   : > { %v2468_v28 = vpop.xlane.xlu0 %2467 }
 0x399   : > { %v4896_v3 = vmax.f32 %v4893_v30, %v2468_v28 }
 0x39b   : > { %v2498_v31 = vsub.f32 %v4893_v30, %v4896_v3  ;;  %3067 = vst.msk [vmem:[#allocation3] sm:$0xff] %vm745_vm4, %v4896_v3  ;;  %2524 = vperm.xlu1 %3919, %v4896_v3  }
 0x39f   : > { %1492 = vrot.lane.b32.xlu1 %v4567_v37, %s4206_s17 }
 0x3a0   : > { %v2471_v40 = vpop.xlane.xlu1 %2470 }
 0x3a1   : > { %v4908_v42 = vmax.f32 %v4903_v38, %v2471_v40 }
 0x3a3   : > { %v2499_v43 = vsub.f32 %v4903_v38, %v4908_v42  ;;  %3068 = vst.msk [vmem:[#allocation3 + $0x8] sm:$0xff] %vm745_vm4, %v4908_v42  ;;  %2529 = vperm.xlu0 %3920, %v4908_v42   ;;  %1494 = vrot.lane.b32.xlu1 %v4573_v41, %s4206_s17 }
 0x3a7   : > { %1496 = vrot.lane.b32.xlu0 %v4581_v44, %s4206_s17  ;;  %1504 = vrot.lane.b32.xlu1 %v4567_v37, %s4208_s16 }
 0x3a8   : > { %v2474_v45 = vpop.xlane.xlu0 %2473 }
 0x3a9   : > { %v4924_v46 = vmax.f32 %v4917_v35, %v2474_v45 }
 0x3ab   : > { %v2500_v52 = vsub.f32 %v4917_v35, %v4924_v46  ;;  %3069 = vst.msk [vmem:[#allocation3 + $0x10] sm:$0xff] %vm745_vm4, %v4924_v46  ;;  %1508 = vrot.lane.b32.xlu0 %v4581_v44, %s4208_s16  ;;  %1506 = vrot.lane.b32.xlu1 %v4573_v41, %s4208_s16 }
 0x3ac   : > { %v2477_v53 = vpop.xlane.xlu0 %2476 }
 0x3ad   : > { %v4937_v32 = vmax.f32 %v4926_v51, %v2477_v53 }
 0x3af   : > { %v2501_v60 = vsub.f32 %v4926_v51, %v4937_v32  ;;  %3070 = vst.msk [vmem:[#allocation3 + $0x18] sm:$0xff] %vm745_vm4, %v4937_v32  ;;  %1516 = vrot.lane.b32.xlu1 %v4567_v37, %s4207_s11 }
 0x3b0   : > { %v2483_v34 = vpop.xlane.xlu0 %2482  ;;  %v2480_v36 = vpop.xlane.xlu1 %2479 }
 0x3b1   : > { %v4950_v54 = vmax.f32 %v4939_v33, %v2483_v34  ;;  %v4953_v61 = vmax.f32 %v4941_v39, %v2480_v36 }
 0x3b3   : > { %v2503_v1 = vsub.f32 %v4939_v33, %v4950_v54  ;;  %3072 = vst.msk [vmem:[#allocation3 + $0x28] sm:$0xff] %vm745_vm4, %v4950_v54  ;;  %v2502_v5 = vsub.f32 %v4941_v39, %v4953_v61  ;;  %3071 = vst.msk [vmem:[#allocation3 + $0x20] sm:$0xff] %vm745_vm4, %v4953_v61  ;;  %2544 = vperm.xlu0 %3920, %v4953_v61   ;;  %1518 = vrot.lane.b32.xlu1 %v4573_v41, %s4207_s11  ;;  %v2587_v61 = vld [vmem:[#allocation4 + $0x8] sm:$0xff] }
 0x3b4   : > { %v2489_v6 = vpop.xlane.xlu0 %2488 }
 0x3b5   : > { %v4969_v56 = vmax.f32 %v4955_v62, %v2489_v6 }
 0x3b7   : > { %v2505_v8 = vsub.f32 %v4955_v62, %v4969_v56  ;;  %3074 = vst.msk [vmem:[#allocation3 + $0x38] sm:$0xff] %vm745_vm4, %v4969_v56  ;;  %1520 = vrot.lane.b32.xlu0 %v4581_v44, %s4207_s11  ;;  %2539 = vperm.xlu1 %3919, %v4937_v32  }
 0x3b8   : > { %v2486_v10 = vpop.xlane.xlu1 %2485 }
 0x3b9   : > { %v4981_v49 = vmax.f32 %v4971_v57, %v2486_v10  ;;  %v2520_v33 = vmul.f32 1.442695, %v2505_v8 }
 0x3bb   : > { %v2504_v16 = vsub.f32 %v4971_v57, %v4981_v49  ;;  %3073 = vst.msk [vmem:[#allocation3 + $0x30] sm:$0xff] %vm745_vm4, %v4981_v49  ;;  %2549 = vperm.xlu1 %3919, %v4950_v54   ;;  %2554 = vperm.xlu0 %3920, %v4981_v49  }
 0x3bd   : > { %v2518_v38 = vmul.f32 1.442695, %v2504_v16  ;;  %v2590_v16 = vld [vmem:[#allocation4 + $0x20] sm:$0xff] }
 0x3bf   : > { %2534 = vperm.xlu1 %3919, %v4924_v46  }
 0x3c3   : > { %1498 = vrot.lane.b32.xlu1 %v4585_v47, %s4206_s17 }
 0x3c7   : > { %1510 = vrot.lane.b32.xlu1 %v4585_v47, %s4208_s16 }
 0x3cb   : > { %1522 = vrot.lane.b32.xlu1 %v4585_v47, %s4207_s11 }
 0x3cf   : > { %2559 = vperm.xlu1 %3919, %v4969_v56   ;;  %v2508_v56 = vmul.f32 1.442695, %v2499_v43 }
 0x41a   : > { %v2525_v17 = vpop.permute.xlu1 %2524 }
 0x41b   : > { %v2562_v18 = vsub.f32 %v4861_v59, %v2525_v17 }
 0x41d   : > { %v2570_v19 = vmul.f32 1.442695, %v2562_v18 }
 0x41e   : > { %v1493_v20 = vpop.permute.xlu1 %1492 }
 0x41f   : > { %3935 = vpow2.f32 %v2570_v19 }
 0x422   : > { %v2530_v22 = vpop.permute.xlu0 %2529  ;;  %v1495_v24 = vpop.permute.xlu1 %1494 }
 0x423   : > { %v2563_v11 = vsub.f32 %v4867_v63, %v2530_v22 }
 0x425   : > { %v2572_v50 = vmul.f32 1.442695, %v2563_v11 }
 0x426   : > { %v4999_v25 = vpop.permute.xlu0 %1496  ;;  %v1505_v26 = vpop.permute.xlu1 %1504 }
 0x427   : > { %3937 = vpow2.f32 %v2572_v50  ;;  %v1528_v59 = vcombine.low %v4567_v37, %v1505_v26  ;;  %v1529_v14 = vcombine.high %v4567_v37, %v1505_v26 }
 0x429   : > { %v5001_v27 = vpop.eup %3935  ;;  %v1536_v45 = vrot.slane %v1528_v59, %v4614_v58  ;;  %v1543_v36 = vrot.slane %v1529_v14, %v4614_v58 }
 0x42a   : > { %v1507_v48 = vpop.permute.xlu1 %1506  ;;  %v2602_v29 = vsel %vm2465_vm5, %v5001_v27, 0.0  ;;  %v1509_v13 = vpop.permute.xlu0 %1508  ;;  %v2699_v37 = vpack.c.bf16 %v5001_v27, %v5001_v27 }
 0x42b   : > { %2603 = vadd.xlane.f32.xlu0 %v2602_v29  ;;  %v1664_v15 = vcombine.low %v4581_v44, %v1509_v13  ;;  %v1665_v63 = vcombine.high %v4581_v44, %v1509_v13  ;;  %v1596_v53 = vcombine.low %v4573_v41, %v1507_v48  ;;  %v1597_v18 = vcombine.high %v4573_v41, %v1507_v48 }
 0x42d   : > { %v5019_v44 = vrot.slane %v1664_v15, %v4614_v58  ;;  %v5022_v17 = vrot.slane %v1665_v63, %v4614_v58  ;;  %v1604_v13 = vrot.slane %v1596_v53, %v4614_v58 }
 0x42e   : > { %v1517_v2 = vpop.permute.xlu1 %1516 }
 0x42f   : > { %v1544_v28 = vcombine.low %v1493_v20, %v1517_v2  ;;  %v1545_v40 = vcombine.high %v1493_v20, %v1517_v2 }
 0x431   : > { %v5011_v34 = vpop.eup %3937  ;;  %v1552_v6 = vrot.slane %v1544_v28, %v4614_v58  ;;  %v1559_v10 = vrot.slane %v1545_v40, %v4614_v58  ;;  %v1611_v28 = vrot.slane %v1597_v18, %v4614_v58 }
 0x432   : > { %v2545_v19 = vpop.permute.xlu0 %2544  ;;  %v1519_v20 = vpop.permute.xlu1 %1518  ;;  %v2605_v22 = vsel %vm2465_vm5, %v5011_v34, 0.0 }
 0x433   : > { %v1560_v11 = vcombine.low %v1536_v45, %v1552_v6  ;;  %v1561_v50 = vcombine.high %v1536_v45, %v1552_v6  ;;  %v1576_v26 = vcombine.low %v1543_v36, %v1559_v10  ;;  %v1577_v29 = vcombine.high %v1543_v36, %v1559_v10  ;;  %2606 = vadd.xlane.f32.xlu1 %v2605_v22 }
 0x434   : > { %v2566_v59 = vsub.f32 %v4881_v23, %v2545_v19  ;;  %v1612_v14 = vcombine.low %v1495_v24, %v1519_v20  ;;  %v1613_v15 = vcombine.high %v1495_v24, %v1519_v20 }
 0x435   : > { %v1568_v63 = vrot.slane %v1560_v11, %v4621_v4  ;;  %v1575_v41 = vrot.slane %v1561_v50, %v4621_v4  ;;  %v1584_v48 = vrot.slane %v1576_v26, %v4621_v4  ;;  %v1591_v2 = vrot.slane %v1577_v29, %v4621_v4 }
 0x436   : > { %v2578_v40 = vmul.f32 1.442695, %v2566_v59  ;;  %v1620_v45 = vrot.slane %v1612_v14, %v4614_v58  ;;  %v1627_v36 = vrot.slane %v1613_v15, %v4614_v58  ;;  %v1521_v53 = vpop.permute.xlu0 %1520  ;;  %v2540_v6 = vpop.permute.xlu1 %2539 }
 0x437   : > { %v1800_v23 = vcombine.low %v1568_v63, %v1575_v41  ;;  %v3640_v10 = vcombine.high %v1568_v63, %v1575_v41  ;;  %v1816_v24 = vcombine.low %v1584_v48, %v1591_v2  ;;  %v3641_v19 = vcombine.high %v1584_v48, %v1591_v2 }
 0x438   : > { %3939 = vpow2.f32 %v2578_v40  ;;  %v1628_v20 = vcombine.low %v1604_v13, %v1620_v45  ;;  %v1629_v22 = vcombine.high %v1604_v13, %v1620_v45  ;;  %v1644_v11 = vcombine.low %v1611_v28, %v1627_v36 }
 0x439   : > { %v5037_v50 = vrot.slane %v1800_v23, %v4614_v58  ;;  %v5040_v18 = vrot.slane %v3640_v10, %v4614_v58  ;;  %v5043_v26 = vrot.slane %v1816_v24, %v4614_v58  ;;  %v5046_v29 = vrot.slane %v3641_v19, %v4614_v58 }
 0x43a   : > { %v1636_v59 = vrot.slane %v1628_v20, %v4621_v4  ;;  %v1643_v14 = vrot.slane %v1629_v22, %v4621_v4  ;;  %v1645_v15 = vcombine.high %v1611_v28, %v1627_v36  ;;  %v1652_v13 = vrot.slane %v1644_v11, %v4621_v4  ;;  %v2555_v63 = vpop.permute.xlu0 %2554  ;;  %v2550_v41 = vpop.permute.xlu1 %2549 }
 0x43b   : > { %v1680_v48 = vcombine.low %v4999_v25, %v1521_v53  ;;  %v1681_v2 = vcombine.high %v4999_v25, %v1521_v53  ;;  %v2565_v40 = vsub.f32 %v4865_v55, %v2540_v6  ;;  %v2568_v45 = vsub.f32 %v4889_v12, %v2555_v63 }
 0x43c   : > { %v1659_v23 = vrot.slane %v1645_v15, %v4621_v4  ;;  %v1868_v10 = vcombine.low %v1636_v59, %v1643_v14  ;;  %v3642_v24 = vcombine.high %v1636_v59, %v1643_v14  ;;  %v2567_v19 = vsub.f32 %v4871_v7, %v2550_v41 }
 0x43d   : > { %v1688_v28 = vrot.slane %v1680_v48, %v4614_v58  ;;  %v1695_v36 = vrot.slane %v1681_v2, %v4614_v58  ;;  %v2576_v20 = vmul.f32 1.442695, %v2565_v40  ;;  %v2582_v22 = vmul.f32 1.442695, %v2568_v45 }
 0x43e   : > { %v5060_v11 = vrot.slane %v1868_v10, %v4614_v58  ;;  %v5063_v25 = vrot.slane %v3642_v24, %v4614_v58  ;;  %v1884_v55 = vcombine.low %v1652_v13, %v1659_v23  ;;  %v3643_v12 = vcombine.high %v1652_v13, %v1659_v23  ;;  %v2535_v53 = vpop.permute.xlu1 %2534 }
 0x43f   : > { %v1696_v6 = vcombine.low %v5019_v44, %v1688_v28  ;;  %v1697_v59 = vcombine.high %v5019_v44, %v1688_v28  ;;  %v1712_v7 = vcombine.low %v5022_v17, %v1695_v36  ;;  %v1713_v14 = vcombine.high %v5022_v17, %v1695_v36 }
 0x440   : > { %v1891_v15 = vrot.slane %v1884_v55, %v4614_v58  ;;  %v1899_v63 = vrot.slane %v3643_v12, %v4614_v58  ;;  %3941 = vpow2.f32 %v2576_v20  ;;  %v2580_v41 = vmul.f32 1.442695, %v2567_v19 }
 0x441   : > { %v1704_v48 = vrot.slane %v1696_v6, %v4621_v4  ;;  %v1711_v2 = vrot.slane %v1697_v59, %v4621_v4  ;;  %v1720_v13 = vrot.slane %v1712_v7, %v4621_v4  ;;  %v1727_v40 = vrot.slane %v1713_v14, %v4621_v4 }
 0x442   : > { %v5075_v45 = vpop.eup %3939  ;;  %3943 = vpow2.f32 %v2582_v22  ;;  %v2564_v44 = vsub.f32 %v4873_v9, %v2535_v53  ;;  %v1499_v17 = vpop.permute.xlu1 %1498  ;;  %v1832_v23 = vcombine.low %v5037_v50, %v5040_v18  ;;  %v1848_v10 = vcombine.low %v5043_v26, %v5046_v29 }
 0x443   : > { %v1936_v24 = vcombine.low %v1704_v48, %v1711_v2  ;;  %v3644_v19 = vcombine.high %v1704_v48, %v1711_v2  ;;  %v1952_v28 = vcombine.low %v1720_v13, %v1727_v40  ;;  %v3645_v36 = vcombine.high %v1720_v13, %v1727_v40 }
 0x444   : > { %3945 = vpow2.f32 %v2580_v41  ;;  %v2574_v20 = vmul.f32 1.442695, %v2564_v44  ;;  %v2614_v55 = vsel %vm2465_vm5, %v5075_v45, 0.0  ;;  %v1840_v22 = vrot.slane %v1832_v23, %v4621_v4 }
 0x445   : > { %v5086_v9 = vrot.slane %v1936_v24, %v4614_v58  ;;  %v5089_v12 = vrot.slane %v3644_v19, %v4614_v58  ;;  %v5092_v53 = vrot.slane %v1952_v28, %v4614_v58  ;;  %2615 = vadd.xlane.f32.xlu1 %v2614_v55  ;;  %v2700_v6 = vpack.c.bf16 %v5011_v34, %v5011_v34 }
 0x446   : > { %3947 = vpow2.f32 %v2574_v20  ;;  %v1511_v59 = vpop.permute.xlu1 %1510  ;;  %v1856_v7 = vrot.slane %v1848_v10, %v4621_v4  ;;  %v1900_v14 = vcombine.low %v5060_v11, %v5063_v25  ;;  %v1916_v41 = vcombine.low %v1891_v15, %v1899_v63 }
 0x447   : > { %v1732_v48 = vcombine.low %v4585_v47, %v1511_v59  ;;  %v1733_v2 = vcombine.high %v4585_v47, %v1511_v59  ;;  %v1833_v13 = vcombine.high %v5037_v50, %v5040_v18  ;;  %v1849_v40 = vcombine.high %v5043_v26, %v5046_v29 }
 0x448   : > { %v5106_v34 = vrot.slane %v3645_v36, %v4614_v58  ;;  %v1864_v44 = vcombine.low %v1840_v22, %v1856_v7  ;;  %v1908_v23 = vrot.slane %v1900_v14, %v4621_v4  ;;  %v1924_v10 = vrot.slane %v1916_v41, %v4621_v4 }
 0x449   : > { %v1740_v24 = vrot.slane %v1732_v48, %v4614_v58  ;;  %v1865_v19 = vcombine.high %v1840_v22, %v1856_v7  ;;  %v1847_v28 = vrot.slane %v1833_v13, %v4621_v4  ;;  %v1863_v47 = vrot.slane %v1849_v40, %v4621_v4 }
 0x44a   : > { %v5113_v20 = vpop.eup %3941  ;;  %v1932_v50 = vcombine.low %v1908_v23, %v1924_v10  ;;  %v1933_v18 = vcombine.high %v1908_v23, %v1924_v10  ;;  %v1523_v26 = vpop.permute.xlu1 %1522  ;;  %v1901_v29 = vcombine.high %v5060_v11, %v5063_v25  ;;  %v1917_v36 = vcombine.high %v1891_v15, %v1899_v63 }
 0x44b   : > { %v1747_v55 = vrot.slane %v1733_v2, %v4614_v58  ;;  %v2611_v59 = vsel %vm2465_vm5, %v5113_v20, 0.0  ;;  %v1748_v14 = vcombine.low %v1499_v17, %v1523_v26  ;;  %v1749_v22 = vcombine.high %v1499_v17, %v1523_v26 }
 0x44c   : > { %v5120_v7 = vpop.eup %3943  ;;  %v2072_v41 = vpack.c.bf16 %v1932_v50, %v1864_v44  ;;  %v2073_v48 = vpack.c.bf16 %v1933_v18, %v1865_v19  ;;  %2612 = vadd.xlane.f32.xlu0 %v2611_v59  ;;  %v1915_v13 = vrot.slane %v1901_v29, %v4621_v4  ;;  %v1931_v40 = vrot.slane %v1917_v36, %v4621_v4 }
 0x44d   : > { %v1756_v23 = vrot.slane %v1748_v14, %v4614_v58  ;;  %v1763_v11 = vrot.slane %v1749_v22, %v4614_v58  ;;  %v2620_v25 = vsel %vm2465_vm5, %v5120_v7, 0.0  ;;  %v1866_v15 = vcombine.low %v1847_v28, %v1863_v47 }
 0x44e   : > { %v5128_v63 = vpop.eup %3945  ;;  %v2506_v17 = vmul.f32 1.442695, %v2498_v31  ;;  %3769 = vmatpush3.bf16.msra.mxu0 %v2072_v41  ;;  %3775 = vmatpush3.bf16.msra.mxu1 %v2073_v48  ;;  %v1934_v2 = vcombine.low %v1915_v13, %v1931_v40  ;;  %v1867_v44 = vcombine.high %v1847_v28, %v1863_v47  ;;  %v1935_v10 = vcombine.high %v1915_v13, %v1931_v40  ;;  %v2560_v29 = vpop.permute.xlu1 %2559 }
 0x44f   : > { %3780 = vmatprep.subr.bf16.mxu0 %v4203_v0  ;;  %3786 = vmatprep.subr.bf16.mxu1 %v4203_v0  ;;  %v1764_v19 = vcombine.low %v1740_v24, %v1756_v23  ;;  %v1765_v50 = vcombine.high %v1740_v24, %v1756_v23  ;;  %v1780_v18 = vcombine.low %v1747_v55, %v1763_v11  ;;  %v2617_v26 = vsel %vm2465_vm5, %v5128_v63, 0.0 }
 0x450   : > { %v3948_v36 = vpop.eup %3947  ;;  %v1781_v59 = vcombine.high %v1747_v55, %v1763_v11  ;;  %2621 = vadd.xlane.f32.xlu1 %v2620_v25  ;;  %v2074_v30 = vpack.c.bf16 %v1934_v2, %v1866_v15  ;;  %v2075_v3 = vpack.c.bf16 %v1935_v10, %v1867_v44  ;;  %2618 = vadd.xlane.f32.xlu0 %v2617_v26  ;;  %3949 = vpow2.f32 %v2506_v17 }
 0x451   : > { %3771 = vmatmul.mubr.msk.bf16.vlgmr.msra.gmra.mrb[24].mxu0 %vm2465_vm5, %v2699_v37  ;;  %3777 = vmatmul.mubr.msk.bf16.vlgmr.msra.gmra.mrb[20].mxu1 %vm2465_vm5, %v2700_v6  ;;  %v1772_v31 = vrot.slane %v1764_v19, %v4621_v4  ;;  %v1779_v24 = vrot.slane %v1765_v50, %v4621_v4  ;;  %v1788_v28 = vrot.slane %v1780_v18, %v4621_v4  ;;  %v2608_v47 = vsel %vm2465_vm5, %v3948_v36, 0.0 }
 0x452   : > { %v1795_v55 = vrot.slane %v1781_v59, %v4621_v4  ;;  %3781 = vmatpush3.bf16.msra.mxu0 %v2074_v30  ;;  %3787 = vmatpush3.bf16.msra.mxu1 %v2075_v3  ;;  %v2569_v14 = vsub.f32 %v4879_v21, %v2560_v29  ;;  %v1968_v37 = vcombine.low %v5086_v9, %v5089_v12  ;;  %v2510_v13 = vmul.f32 1.442695, %v2500_v52 }
 0x453   : > { %v2004_v27 = vcombine.low %v1772_v31, %v1779_v24  ;;  %v3646_v22 = vcombine.high %v1772_v31, %v1779_v24  ;;  %3782 = vmatprep.mubr.msk.bf16.mxu0 %vm4204_vm1, %v4203_v0  ;;  %3788 = vmatprep.mubr.msk.bf16.mxu1 %vm4204_vm1, %v4203_v0  ;;  %v1984_v21 = vcombine.low %v5092_v53, %v5106_v34  ;;  %v2512_v19 = vmul.f32 1.442695, %v2501_v60 }
 0x454   : > { %v2020_v6 = vcombine.low %v1788_v28, %v1795_v55  ;;  %v3647_v41 = vcombine.high %v1788_v28, %v1795_v55  ;;  %v2584_v48 = vmul.f32 1.442695, %v2569_v14  ;;  %2609 = vadd.xlane.f32.xlu0 %v2608_v47  ;;  %3792 = vmatprep.subr.bf16.mxu0 %v4203_v0  ;;  %v2702_v11 = vpack.c.bf16 %v5113_v20, %v5113_v20 }
 0x455   : > { %v2011_v40 = vrot.slane %v2004_v27, %v4614_v58  ;;  %v2019_v23 = vrot.slane %v3646_v22, %v4614_v58  ;;  %3798 = vmatprep.subr.bf16.mxu1 %v4203_v0  ;;  %v2701_v17 = vpack.c.bf16 %v3948_v36, %v3948_v36  ;;  %v1976_v2 = vrot.slane %v1968_v37, %v4621_v4 }
 0x456   : > { %v2027_v25 = vrot.slane %v2020_v6, %v4614_v58  ;;  %v2035_v15 = vrot.slane %v3647_v41, %v4614_v58  ;;  %3951 = vpow2.f32 %v2584_v48  ;;  %v1992_v35 = vrot.slane %v1984_v21, %v4621_v4  ;;  %v2586_v41 = vld [vmem:[#allocation4] sm:$0xff] }
 0x457   : > { %v2036_v46 = vcombine.low %v2011_v40, %v2019_v23  ;;  %v1969_v52 = vcombine.high %v5086_v9, %v5089_v12  ;;  %v1985_v20 = vcombine.high %v5092_v53, %v5106_v34  ;;  %v2037_v10 = vcombine.high %v2011_v40, %v2019_v23 }
 0x458   : > { %v2052_v44 = vcombine.low %v2027_v25, %v2035_v15  ;;  %3953 = vpow2.f32 %v2510_v13  ;;  %v2053_v12 = vcombine.high %v2027_v25, %v2035_v15  ;;  %v2000_v51 = vcombine.low %v1976_v2, %v1992_v35  ;;  %v2589_v15 = vld [vmem:[#allocation4 + $0x18] sm:$0xff] }
 0x459   : > { %3783 = vmatmul.mubr.msk.bf16.vlgmr.msra.gmra.mrb[28].mxu0 %vm2465_vm5, %v2701_v17  ;;  %3789 = vmatmul.mubr.msk.bf16.vlgmr.msra.gmra.mrb[24].mxu1 %vm2465_vm5, %v2702_v11  ;;  %v2044_v50 = vrot.slane %v2036_v46, %v4621_v4  ;;  %v2051_v9 = vrot.slane %v2037_v10, %v4621_v4  ;;  %v2001_v32 = vcombine.high %v1976_v2, %v1992_v35  ;;  %3955 = vpow2.f32 %v2512_v19  ;;  %v2591_v35 = vld [vmem:[#allocation4 + $0x28] sm:$0xff]  ;;  %v2592_v46 = vld [vmem:[#allocation4 + $0x30] sm:$0xff] }
 0x45a   : > { %v2060_v18 = vrot.slane %v2052_v44, %v4621_v4  ;;  %3794 = vmatprep.mubr.msk.bf16.mxu0 %vm4204_vm1, %v4203_v0  ;;  %3800 = vmatprep.mubr.msk.bf16.mxu1 %vm4204_vm1, %v4203_v0  ;;  %v1983_v60 = vrot.slane %v1969_v52, %v4621_v4  ;;  %v1999_v26 = vrot.slane %v1985_v20, %v4621_v4  ;;  %v3950_v36 = vpop.eup %3949  ;;  %v2516_v59 = vmul.f32 1.442695, %v2503_v1 }
 0x45b   : > { %v2067_v29 = vrot.slane %v2053_v12, %v4621_v4  ;;  %v2703_v27 = vpack.c.bf16 %v5075_v45, %v5075_v45  ;;  %v2704_v22 = vpack.c.bf16 %v5128_v63, %v5128_v63  ;;  %v2705_v8 = vpack.c.bf16 %v5120_v7, %v5120_v7 }
 0x45c   : > { %v2068_v53 = vcombine.low %v2044_v50, %v2060_v18  ;;  %v2069_v34 = vcombine.high %v2044_v50, %v2060_v18  ;;  %v2002_v47 = vcombine.low %v1983_v60, %v1999_v26  ;;  %v2003_v55 = vcombine.high %v1983_v60, %v1999_v26  ;;  %v2588_v50 = vld [vmem:[#allocation4 + $0x10] sm:$0xff]  ;;  %v2593_v26 = vld [vmem:[#allocation4 + $0x38] sm:$0xff] }
 0x45d   : > { %v2070_v31 = vcombine.low %v2051_v9, %v2067_v29  ;;  %v2071_v24 = vcombine.high %v2051_v9, %v2067_v29  ;;  %3957 = vpow2.f32 %v2516_v59  ;;  %v2594_v48 = vmul.f32 %v3950_v36, %v2586_v41 }
 0x45e   : > { %v2076_v30 = vpack.c.bf16 %v2068_v53, %v2000_v51  ;;  %v2077_v3 = vpack.c.bf16 %v2069_v34, %v2001_v32  ;;  %3959 = vpow2.f32 %v2520_v33 }
 0x45f   : > { %v2078_v54 = vpack.c.bf16 %v2070_v31, %v2002_v47  ;;  %v2079_v1 = vpack.c.bf16 %v2071_v24, %v2003_v55  ;;  %3961 = vpow2.f32 %v2508_v56 }
 0x460   : > { %v3952_v28 = vpop.eup %3951  ;;  %3793 = vmatpush3.bf16.msra.mxu0 %v2076_v30  ;;  %3799 = vmatpush3.bf16.msra.mxu1 %v2077_v3 }
 0x461   : > { %2653 = vperm.xlu1 %3919, %v3950_v36   ;;  %v2623_v14 = vsel %vm2465_vm5, %v3952_v28, 0.0  ;;  %3804 = vmatprep.subr.bf16.mxu0 %v4203_v0  ;;  %v2706_v63 = vpack.c.bf16 %v3952_v28, %v3952_v28 }
 0x462   : > { %2624 = vadd.xlane.f32.xlu0 %v2623_v14  ;;  %3810 = vmatprep.subr.bf16.mxu1 %v4203_v0  ;;  %v5203_v45 = vpop.eup %3953 }
 0x463   : > { %3795 = vmatmul.mubr.msk.bf16.vlgmr.msra.gmra.mrb[32].mxu0 %vm2465_vm5, %v2703_v27  ;;  %3801 = vmatmul.mubr.msk.bf16.vlgmr.msra.gmra.mrb[28].mxu1 %vm2465_vm5, %v2704_v22  ;;  %v3956_v62 = vpop.eup %3955  ;;  %v2596_v12 = vmul.f32 %v5203_v45, %v2588_v50 }
 0x464   : > { %3805 = vmatpush3.bf16.msra.mxu0 %v2078_v54  ;;  %3811 = vmatpush3.bf16.msra.mxu1 %v2079_v1  ;;  %v2597_v17 = vmul.f32 %v3956_v62, %v2589_v15  ;;  %v2643_v1 = vld [vmem:[#allocation5] sm:$0xff] }
 0x465   : > { %2663 = vperm.xlu1 %3919, %v5203_v45   ;;  %3806 = vmatprep.mubr.msk.bf16.mxu0 %vm4204_vm1, %v4203_v0  ;;  %v2644_v45 = vld [vmem:[#allocation5 + $0x8] sm:$0xff] }
 0x466   : > { %3812 = vmatprep.mubr.msk.bf16.mxu1 %vm4204_vm1, %v4203_v0  ;;  %v2514_v0 = vmul.f32 1.442695, %v2502_v5 }
 0x467   : > { %v3958_v37 = vpop.eup %3957 }
 0x468   : > { %v3960_v6 = vpop.eup %3959  ;;  %3963 = vpow2.f32 %v2514_v0  ;;  %v2599_v44 = vmul.f32 %v3958_v37, %v2591_v35 }
 0x469   : > { %2668 = vperm.xlu1 %3919, %v3956_v62   ;;  %3965 = vpow2.f32 %v2518_v38  ;;  %v3962_v42 = vpop.eup %3961  ;;  %v2601_v30 = vmul.f32 %v3960_v6, %v2593_v26 }
 0x46a   : > { %v2595_v5 = vmul.f32 %v3962_v42, %v2587_v61  ;;  %v2646_v61 = vld [vmem:[#allocation5 + $0x18] sm:$0xff] }
 0x46b   : > { %3807 = vmatmul.mubr.msk.bf16.vlgmr.msra.gmra.mrb[36].mxu0 %vm2465_vm5, %v2705_v8  ;;  %3813 = vmatmul.mubr.msk.bf16.vlgmr.msra.gmra.mrb[32].mxu1 %vm2465_vm5, %v2706_v63 }
 0x46d   : > { %2678 = vperm.xlu1 %3919, %v3958_v37  }
 0x471   : > { %2688 = vperm.xlu1 %3919, %v3960_v6  }
 0x472   : > { %v3964_v43 = vpop.eup %3963 }
 0x473   : > { %v3966_v7 = vpop.eup %3965  ;;  %v2598_v23 = vmul.f32 %v3964_v43, %v2590_v16 }
 0x474   : > { %v2600_v20 = vmul.f32 %v3966_v7, %v2592_v46  ;;  %v2648_v46 = vld [vmem:[#allocation5 + $0x28] sm:$0xff] }
 0x478   : > { %2658 = vperm.xlu0 %3920, %v3962_v42  }
 0x47c   : > { %2673 = vperm.xlu0 %3920, %v3964_v43  }
 0x480   : > { %2683 = vperm.xlu0 %3920, %v3966_v7  }
 0x4b8   : > { %v2604_v21 = vpop.xlane.xlu0 %2603 }
 0x4b9   : > { %v2626_v39 = vadd.f32 %v2604_v21, %v2594_v48 }
 0x4bb   : > { %2635 = vst.msk [vmem:[#allocation4] sm:$0xff] %vm745_vm4, %v2626_v39  ;;  %v2645_v39 = vld [vmem:[#allocation5 + $0x10] sm:$0xff] }
 0x4c0   : > { %v2607_v13 = vpop.xlane.xlu1 %2606 }
 0x4c1   : > { %v2627_v40 = vadd.f32 %v2607_v13, %v2595_v5 }
 0x4c2   : > { %v3086_v57 = vld [vmem:[#allocation4] sm:$0xff] }
 0x4c3   : > { %2636 = vst.msk [vmem:[#allocation4 + $0x8] sm:$0xff] %vm745_vm4, %v2627_v40  ;;  %3967 = vrcp.f32 %v3086_v57 }
 0x4ca   : > { %v3087_v53 = vld [vmem:[#allocation4 + $0x8] sm:$0xff] }
 0x4cd   : > { %v3968_v49 = vpop.eup %3967 }
 0x4ce   : > { %3104 = vperm.xlu0 %3920, %v3968_v49  }
 0x4d2   : > { %v2616_v11 = vpop.xlane.xlu1 %2615 }
 0x4d3   : > { %v2630_v25 = vadd.f32 %v2616_v11, %v2598_v23 }
 0x4d5   : > { %2639 = vst.msk [vmem:[#allocation4 + $0x20] sm:$0xff] %vm745_vm4, %v2630_v25 }
 0x4d9   : > { %v2613_v2 = vpop.xlane.xlu0 %2612 }
 0x4da   : > { %v2629_v52 = vadd.f32 %v2613_v2, %v2597_v17 }
 0x4dc   : > { %2638 = vst.msk [vmem:[#allocation4 + $0x18] sm:$0xff] %vm745_vm4, %v2629_v52  ;;  %v3090_v36 = vld [vmem:[#allocation4 + $0x20] sm:$0xff] }
 0x4dd   : > { %v2619_v10 = vpop.xlane.xlu0 %2618  ;;  %v2622_v19 = vpop.xlane.xlu1 %2621 }
 0x4de   : > { %v2631_v18 = vadd.f32 %v2619_v10, %v2599_v44  ;;  %v2632_v9 = vadd.f32 %v2622_v19, %v2600_v20  ;;  %v2647_v44 = vld [vmem:[#allocation5 + $0x20] sm:$0xff] }
 0x4e0   : > { %2640 = vst.msk [vmem:[#allocation4 + $0x28] sm:$0xff] %vm745_vm4, %v2631_v18  ;;  %2641 = vst.msk [vmem:[#allocation4 + $0x30] sm:$0xff] %vm745_vm4, %v2632_v9 }
 0x4e1   : > { %v2610_v51 = vpop.xlane.xlu0 %2609  ;;  %v2654_v54 = vpop.permute.xlu1 %2653 }
 0x4e2   : > { %v2628_v32 = vadd.f32 %v2610_v51, %v2596_v12  ;;  %v2691_v8 = vmul.f32 %v2654_v54, %v2643_v1 }
 0x4e3   : > { %v3089_v60 = vld [vmem:[#allocation4 + $0x18] sm:$0xff] }
 0x4e4   : > { %2637 = vst.msk [vmem:[#allocation4 + $0x10] sm:$0xff] %vm745_vm4, %v2628_v32  ;;  %3969 = vrcp.f32 %v3089_v60 }
 0x4e5   : > { %3971 = vrcp.f32 %v3087_v53  ;;  %v2664_v56 = vpop.permute.xlu1 %2663 }
 0x4e6   : > { %v2693_v13 = vmul.f32 %v2664_v56, %v2645_v39 }
 0x4e7   : > { %v3091_v34 = vld [vmem:[#allocation4 + $0x28] sm:$0xff]  ;;  %v3092_v24 = vld [vmem:[#allocation4 + $0x30] sm:$0xff] }
 0x4e8   : > { %3973 = vrcp.f32 %v3091_v34 }
 0x4e9   : > { %v2669_v5 = vpop.permute.xlu1 %2668 }
 0x4ea   : > { %v2694_v40 = vmul.f32 %v2669_v5, %v2646_v61 }
 0x4eb   : > { %v3088_v29 = vld [vmem:[#allocation4 + $0x10] sm:$0xff] }
 0x4ec   : > { %3975 = vrcp.f32 %v3088_v29  ;;  %v2650_v29 = vld [vmem:[#allocation5 + $0x38] sm:$0xff] }
 0x4ed   : > { %3977 = vrcp.f32 %v3090_v36  ;;  %v2679_v52 = vpop.permute.xlu1 %2678 }
 0x4ee   : > { %v3970_v59 = vpop.eup %3969  ;;  %3979 = vrcp.f32 %v3092_v24  ;;  %v2696_v10 = vmul.f32 %v2679_v52, %v2648_v46 }
 0x4ef   : > { %3119 = vperm.xlu1 %3919, %v3970_v59   ;;  %v2625_v3 = vpop.xlane.xlu0 %2624  ;;  %v3972_v28 = vpop.eup %3971  ;;  %v2649_v59 = vld [vmem:[#allocation5 + $0x30] sm:$0xff] }
 0x4f0   : > { %v2633_v31 = vadd.f32 %v2625_v3, %v2601_v30 }
 0x4f1   : > { %v2689_v36 = vpop.permute.xlu1 %2688 }
 0x4f2   : > { %2642 = vst.msk [vmem:[#allocation4 + $0x38] sm:$0xff] %vm745_vm4, %v2633_v31  ;;  %v3974_v47 = vpop.eup %3973  ;;  %v2698_v3 = vmul.f32 %v2689_v36, %v2650_v29 }
 0x4f3   : > { %3109 = vperm.xlu1 %3919, %v3972_v28  }
 0x4f6   : > { %v3976_v55 = vpop.eup %3975 }
 0x4f7   : > { %3114 = vperm.xlu0 %3920, %v3976_v55   ;;  %3129 = vperm.xlu1 %3919, %v3974_v47   ;;  %v3978_v27 = vpop.eup %3977  ;;  %v2659_v62 = vpop.permute.xlu0 %2658 }
 0x4f8   : > { %v3980_v22 = vpop.eup %3979  ;;  %v2692_v63 = vmul.f32 %v2659_v62, %v2644_v45 }
 0x4f9   : > { %v3093_v14 = vld [vmem:[#allocation4 + $0x38] sm:$0xff] }
 0x4fa   : > { %3981 = vrcp.f32 %v3093_v14 }
 0x4fb   : > { %3124 = vperm.xlu0 %3920, %v3978_v27   ;;  %v2674_v20 = vpop.permute.xlu0 %2673 }
 0x4fc   : > { %v2695_v19 = vmul.f32 %v2674_v20, %v2647_v44 }
 0x4ff   : > { %3134 = vperm.xlu0 %3920, %v3980_v22   ;;  %v2684_v30 = vpop.permute.xlu0 %2683 }
 0x500   : > { %v2697_v31 = vmul.f32 %v2684_v30, %v2649_v59 }
 0x504   : > { %v3982_v33 = vpop.eup %3981 }
 0x505   : > { %3139 = vperm.xlu1 %3919, %v3982_v33  }
 0x524   : > { %v2744_v37 = vpop.f32.mrb[24].mxu0  ;;  %v2787_v0 = vpop.f32.mrb[20].mxu1 }
 0x525   : > { %v3051_v6 = vadd.f32 %v2744_v37, %v2691_v8  ;;  %v3052_v38 = vadd.f32 %v2787_v0, %v2692_v63  ;;  %v3772_v42 = vpop.f32.mrb[25].mxu0  ;;  %v3778_v43 = vpop.f32.mrb[21].mxu1 }
 0x526   : > { %v2747_v7 = vpop.f32.mrb[26].mxu0  ;;  %v2790_v41 = vpop.f32.mrb[22].mxu1 }
 0x527   : > { %3059 = vst.msk [vmem:[#allocation5] sm:$0xff] %vm391_vm0, %v3051_v6  ;;  %3060 = vst.msk [vmem:[#allocation5 + $0x8] sm:$0xff] %vm391_vm0, %v3052_v38  ;;  %v3773_v48 = vpop.f32.mrb[27].mxu0  ;;  %v3779_v21 = vpop.f32.mrb[23].mxu1 }
 0x52c   : > { %v2830_v57 = vpop.f32.mrb[28].mxu0  ;;  %v2873_v49 = vpop.f32.mrb[24].mxu1 }
 0x52d   : > { %v3053_v16 = vadd.f32 %v2830_v57, %v2693_v13  ;;  %v3054_v23 = vadd.f32 %v2873_v49, %v2694_v40  ;;  %v3784_v11 = vpop.f32.mrb[29].mxu0  ;;  %v3790_v25 = vpop.f32.mrb[25].mxu1 }
 0x52e   : > { %v2833_v15 = vpop.f32.mrb[30].mxu0  ;;  %v2876_v17 = vpop.f32.mrb[26].mxu1  ;;  %v3079_v56 = vld [vmem:[#allocation5 + $0x8] sm:$0xff]  ;;  %v3078_v6 = vld [vmem:[#allocation5] sm:$0xff] }
 0x52f   : > { %3061 = vst.msk [vmem:[#allocation5 + $0x10] sm:$0xff] %vm391_vm0, %v3053_v16  ;;  %3062 = vst.msk [vmem:[#allocation5 + $0x18] sm:$0xff] %vm391_vm0, %v3054_v23  ;;  %v3785_v2 = vpop.f32.mrb[31].mxu0  ;;  %v3791_v35 = vpop.f32.mrb[27].mxu1 }
 0x536   : > { %v2916_v50 = vpop.f32.mrb[32].mxu0  ;;  %v2959_v18 = vpop.f32.mrb[28].mxu1  ;;  %v3081_v37 = vld [vmem:[#allocation5 + $0x18] sm:$0xff]  ;;  %v3080_v42 = vld [vmem:[#allocation5 + $0x10] sm:$0xff] }
 0x537   : > { %v3055_v9 = vadd.f32 %v2916_v50, %v2695_v19  ;;  %v3056_v12 = vadd.f32 %v2959_v18, %v2696_v10  ;;  %v3796_v51 = vpop.f32.mrb[33].mxu0  ;;  %v3802_v32 = vpop.f32.mrb[29].mxu1 }
 0x538   : > { %v2919_v60 = vpop.f32.mrb[34].mxu0  ;;  %v2962_v53 = vpop.f32.mrb[30].mxu1 }
 0x539   : > { %3063 = vst.msk [vmem:[#allocation5 + $0x20] sm:$0xff] %vm391_vm0, %v3055_v9  ;;  %3064 = vst.msk [vmem:[#allocation5 + $0x28] sm:$0xff] %vm391_vm0, %v3056_v12  ;;  %v3797_v34 = vpop.f32.mrb[35].mxu0  ;;  %v3803_v26 = vpop.f32.mrb[31].mxu1 }
 0x53e   : > { %v3002_v24 = vpop.f32.mrb[36].mxu0  ;;  %v3045_v28 = vpop.f32.mrb[32].mxu1 }
 0x53f   : > { %v3057_v47 = vadd.f32 %v3002_v24, %v2697_v31  ;;  %v3058_v55 = vadd.f32 %v3045_v28, %v2698_v3  ;;  %v3808_v14 = vpop.f32.mrb[37].mxu0  ;;  %v3814_v27 = vpop.f32.mrb[33].mxu1 }
 0x540   : > { %v3005_v22 = vpop.f32.mrb[38].mxu0  ;;  %v3048_v33 = vpop.f32.mrb[34].mxu1  ;;  %v3082_v18 = vld [vmem:[#allocation5 + $0x20] sm:$0xff]  ;;  %v3083_v12 = vld [vmem:[#allocation5 + $0x28] sm:$0xff] }
 0x541   : > { %3065 = vst.msk [vmem:[#allocation5 + $0x30] sm:$0xff] %vm391_vm0, %v3057_v47  ;;  %3066 = vst.msk [vmem:[#allocation5 + $0x38] sm:$0xff] %vm391_vm0, %v3058_v55  ;;  %v3809_v54 = vpop.f32.mrb[39].mxu0  ;;  %v3815_v1 = vpop.f32.mrb[35].mxu1 }
 0x548   : > { %v3084_v46 = vld [vmem:[#allocation5 + $0x30] sm:$0xff]  ;;  %v3085_v36 = vld [vmem:[#allocation5 + $0x38] sm:$0xff] }
 0x54d   : > { %v3105_v62 = vpop.permute.xlu0 %3104 }
 0x54e   : > { %v3142_v43 = vmul.f32 %v3105_v62, %v3078_v6 }
 0x56e   : > { %v3120_v45 = vpop.permute.xlu1 %3119 }
 0x56f   : > { %v3145_v0 = vmul.f32 %v3120_v45, %v3081_v37 }
 0x572   : > { %v3110_v8 = vpop.permute.xlu1 %3109 }
 0x573   : > { %v3143_v63 = vmul.f32 %v3110_v8, %v3079_v56 }
 0x575   : > { %v3166_v7 = vcombine.low %v3143_v63, %v3145_v0  ;;  %v3167_v41 = vcombine.high %v3143_v63, %v3145_v0 }
 0x576   : > { %v3115_v38 = vpop.permute.xlu0 %3114  ;;  %v3130_v52 = vpop.permute.xlu1 %3129 }
 0x577   : > { %v3144_v48 = vmul.f32 %v3115_v38, %v3080_v42  ;;  %v3174_v5 = vrot.slane %v3166_v7, %v4614_v58  ;;  %v3181_v13 = vrot.slane %v3167_v41, %v4614_v58  ;;  %v3147_v34 = vmul.f32 %v3130_v52, %v3083_v12 }
 0x579   : > { %v3150_v21 = vcombine.low %v3142_v43, %v3144_v48  ;;  %v3151_v39 = vcombine.high %v3142_v43, %v3144_v48 }
 0x57a   : > { %v3125_v61 = vpop.permute.xlu0 %3124 }
 0x57b   : > { %v3158_v40 = vrot.slane %v3150_v21, %v4614_v58  ;;  %v3165_v57 = vrot.slane %v3151_v39, %v4614_v58  ;;  %v3146_v9 = vmul.f32 %v3125_v61, %v3082_v18 }
 0x57d   : > { %v3182_v49 = vcombine.low %v3158_v40, %v3174_v5  ;;  %v3183_v16 = vcombine.high %v3158_v40, %v3174_v5  ;;  %v3198_v23 = vcombine.low %v3165_v57, %v3181_v13  ;;  %v3199_v11 = vcombine.high %v3165_v57, %v3181_v13 }
 0x57e   : > { %v3135_v25 = vpop.permute.xlu0 %3134 }
 0x57f   : > { %v3190_v15 = vrot.slane %v3182_v49, %v4621_v4  ;;  %v3197_v17 = vrot.slane %v3183_v16, %v4621_v4  ;;  %v3206_v2 = vrot.slane %v3198_v23, %v4621_v4  ;;  %v3213_v35 = vrot.slane %v3199_v11, %v4621_v4 }
 0x580   : > { %v3148_v44 = vmul.f32 %v3135_v25, %v3084_v46 }
 0x581   : > { %v3286_v20 = vcombine.low %v3190_v15, %v3197_v17  ;;  %v3664_v10 = vcombine.high %v3190_v15, %v3197_v17  ;;  %v3302_v19 = vcombine.low %v3206_v2, %v3213_v35  ;;  %v3665_v50 = vcombine.high %v3206_v2, %v3213_v35 }
 0x582   : > { %v3218_v26 = vcombine.low %v3146_v9, %v3148_v44  ;;  %v3219_v29 = vcombine.high %v3146_v9, %v3148_v44 }
 0x583   : > { %v3293_v51 = vrot.slane %v3286_v20, %v4614_v58  ;;  %v3301_v32 = vrot.slane %v3664_v10, %v4614_v58  ;;  %v3309_v60 = vrot.slane %v3302_v19, %v4614_v58  ;;  %v3317_v53 = vrot.slane %v3665_v50, %v4614_v58 }
 0x584   : > { %v3140_v59 = vpop.permute.xlu1 %3139  ;;  %v3226_v22 = vrot.slane %v3218_v26, %v4614_v58  ;;  %v3233_v33 = vrot.slane %v3219_v29, %v4614_v58 }
 0x585   : > { %v3149_v30 = vmul.f32 %v3140_v59, %v3085_v36  ;;  %v3318_v3 = vcombine.low %v3293_v51, %v3301_v32  ;;  %v3334_v31 = vcombine.low %v3309_v60, %v3317_v53  ;;  %v3319_v24 = vcombine.high %v3293_v51, %v3301_v32 }
 0x586   : > { %v3335_v28 = vcombine.high %v3309_v60, %v3317_v53 }
 0x587   : > { %v3234_v47 = vcombine.low %v3147_v34, %v3149_v30  ;;  %v3235_v55 = vcombine.high %v3147_v34, %v3149_v30  ;;  %v3326_v14 = vrot.slane %v3318_v3, %v4621_v4  ;;  %v3342_v27 = vrot.slane %v3334_v31, %v4621_v4 }
 0x588   : > { %v3333_v54 = vrot.slane %v3319_v24, %v4621_v4  ;;  %v3349_v1 = vrot.slane %v3335_v28, %v4621_v4 }
 0x589   : > { %v3242_v45 = vrot.slane %v3234_v47, %v4614_v58  ;;  %v3249_v62 = vrot.slane %v3235_v55, %v4614_v58  ;;  %v3351_v56 = vcombine.high %v3326_v14, %v3342_v27  ;;  %v3350_v8 = vcombine.low %v3326_v14, %v3342_v27 }
 0x58a   : > { %v3352_v38 = vcombine.low %v3333_v54, %v3349_v1  ;;  %v3353_v5 = vcombine.high %v3333_v54, %v3349_v1 }
 0x58b   : > { %v3250_v63 = vcombine.low %v3226_v22, %v3242_v45  ;;  %v3251_v37 = vcombine.high %v3226_v22, %v3242_v45  ;;  %v3266_v0 = vcombine.low %v3233_v33, %v3249_v62  ;;  %v3267_v6 = vcombine.high %v3233_v33, %v3249_v62  ;;  %3424 = vrot.lane.b32.xlu0 %v3351_v56, %s4207_s11 }
 0x58d   : > { %v3258_v42 = vrot.slane %v3250_v63, %v4621_v4  ;;  %v3265_v43 = vrot.slane %v3251_v37, %v4621_v4  ;;  %v3274_v7 = vrot.slane %v3266_v0, %v4621_v4  ;;  %v3281_v41 = vrot.slane %v3267_v6, %v4621_v4 }
 0x58f   : > { %v3354_v48 = vcombine.low %v3258_v42, %v3265_v43  ;;  %v3666_v21 = vcombine.high %v3258_v42, %v3265_v43  ;;  %v3370_v39 = vcombine.low %v3274_v7, %v3281_v41  ;;  %v3667_v61 = vcombine.high %v3274_v7, %v3281_v41  ;;  %3432 = vrot.lane.b32.xlu0 %v3352_v38, %s4208_s16 }
 0x591   : > { %v3361_v13 = vrot.slane %v3354_v48, %v4614_v58  ;;  %v3369_v40 = vrot.slane %v3666_v21, %v4614_v58  ;;  %v3377_v57 = vrot.slane %v3370_v39, %v4614_v58  ;;  %v3385_v49 = vrot.slane %v3667_v61, %v4614_v58 }
 0x593   : > { %3440 = vrot.lane.b32.xlu0 %v3353_v5, %s4206_s17  ;;  %v3386_v16 = vcombine.low %v3361_v13, %v3369_v40  ;;  %v3402_v23 = vcombine.low %v3377_v57, %v3385_v49  ;;  %v3387_v11 = vcombine.high %v3361_v13, %v3369_v40  ;;  %v3403_v25 = vcombine.high %v3377_v57, %v3385_v49 }
 0x595   : > { %v3394_v15 = vrot.slane %v3386_v16, %v4621_v4  ;;  %v3410_v17 = vrot.slane %v3402_v23, %v4621_v4  ;;  %v3401_v35 = vrot.slane %v3387_v11, %v4621_v4  ;;  %v3417_v46 = vrot.slane %v3403_v25, %v4621_v4 }
 0x597   : > { %v3419_v2 = vcombine.high %v3394_v15, %v3410_v17  ;;  %v3418_v52 = vcombine.low %v3394_v15, %v3410_v17  ;;  %v3420_v58 = vcombine.low %v3401_v35, %v3417_v46  ;;  %v3421_v44 = vcombine.high %v3401_v35, %v3417_v46 }
 0x599   : > { %3426 = vrot.lane.b32.xlu1 %v3419_v2, %s4207_s11 }
 0x59d   : > { %3434 = vrot.lane.b32.xlu1 %v3420_v58, %s4208_s16 }
 0x5a1   : > { %3442 = vrot.lane.b32.xlu1 %v3421_v44, %s4206_s17 }
 0x5fd   : > { %v3425_v20 = vpop.permute.xlu0 %3424 }
 0x5fe   : > { %v3446_v19 = vsel %vm391_vm0, %v3350_v8, %v3425_v20 }
 0x601   : > { %v3433_v10 = vpop.permute.xlu0 %3432 }
 0x602   : > { %v3448_v50 = vsel %vm836_vm2, %v3446_v19, %v3433_v10 }
 0x605   : > { %v3441_v18 = vpop.permute.xlu0 %3440 }
 0x606   : > { %v3451_v4 = vsel %vm3450_vm6, %v3448_v50, %v3441_v18 }
 0x607   : > { %3453 = vst [vmem:[%s355_s12] sm:$0xff] %v3451_v4 }
 0x60b   : > { %v3427_v9 = vpop.permute.xlu1 %3426 }
 0x60c   : > { %v3447_v51 = vsel %vm391_vm0, %v3418_v52, %v3427_v9 }
 0x60f   : > { %v3435_v12 = vpop.permute.xlu1 %3434 }
 0x610   : > { %v3449_v32 = vsel %vm836_vm2, %v3447_v51, %v3435_v12 }
 0x613   : > { %v3443_v60 = vpop.permute.xlu1 %3442 }
 0x614   : > { %v3452_v53 = vsel %vm3450_vm6, %v3449_v32, %v3443_v60 }
 0x615   : > { %3454 = vst [vmem:[%s355_s12 + $0x8] sm:$0xff] %v3452_v53 }
 0x616   : > { %4112 = shalt.err (!%p4109_p7)
}
 0x617   : > { %s4113_s19 = scalar_lea.hbm %s5290_s28, 256  ;;  %s4117_s29 = scalar_lea.hbm %s5347_s6, 512 }
 0x618   : > { %p4114_p11 = scmp.ne.s32.totalorder %s5290_s28, %s4113_s19  ;;  %p4118_p12 = scmp.lt.u32.totalorder %s5290_s28, %s5347_s6 }
 0x619   : > { %p4119_p13 = scmp.lt.u32.totalorder %s4117_s29, %s4113_s19  ;;  %p4121_p1 = scmp.lt.u32.totalorder %s4113_s19, %s5290_s28 }
 0x61a   : > { %p4115_p2 = pnand %p4114_p11, %p5381_p6 }
 0x61b   : > { %p4120_p0 = por %p4119_p13, %p4118_p12 }
 0x61c   : > { %p4116_p8 = pneg %p4115_p2 }
 0x61d   : > { %p4122_p10 = por %p4121_p1, %p4120_p0 }
 0x61f   : > { %p4123_p3 = pnand %p4122_p10, %p4116_p8 }
 0x621   : > { %4126 = shalt.err (!%p4123_p3)
}
 0x622   : > { %s4213_s17 = smov 128   ;;  %s4214_s11 = smov 8  }
 0x623   : > { %3828 = dma.vmem_to_hbm [thread:$0]  (%p5381_p6), %s5284_s0, 256, %s5290_s28, %s3456_s18, %s4213_s17, %s4213_s17, %s4214_s11  }
 0x624 PF: > { %s3484_s16 = sand.u32 1, %s4173_s21   ;;  %p5382_p4 = scmp.ne.s32.totalorder %s5362_s30, 0 }
 0x625   : > { %p5383_p9 = scmp.ge.s32.totalorder %s4193_s26, 2  ;;  %s3485_s12 = scalar_lea.sflag [#allocation8], %s3484_s16 }
 0x627   : > { %p3845_p5 = pnand %p5383_p9, %p5382_p4 }
 0x629   : > { %4168 = dma.done.wait (!%p3845_p5), %s3485_s12, 256  }
 0x62a   : > { %4170 = vsyncadd (!%p3845_p5), %s3485_s12, 4294967040  ;;  %s26_s26 = sadd.s32 1, %s4193_s26   ;;  %s5384_s14 = sld [smem:[#allocation20_spill]] }
 0x62b   : > { %p23_p7 = scmp.ge.s32.totalorder %s26_s26, 4   ;;  %s5385_s23 = sld [smem:[#allocation22_spill]] }
 0x62c   : > { %s5386_s10 = sld [smem:[#allocation21_spill]]  ;;  %s5387_s21 = smov %s4177_s22 }
 0x62d   : > { %s5389_s24 = smov %s4189_s25  ;;  %25 = sbr.rel (!%p23_p7) target bundleno = 13 (0xd), region = 118 }
 0x630   : > { %s5388_s22 = smov %s5384_s14 }
 0x632   : > { %s5390_s25 = smov %s5386_s10 }
 0x634   :  { %3490 = vsyncpa [#allocation7], 1 }
 0x635   :  { %3492 = vsyncpa [#allocation7 + $0x1], 1 }
 0x636   :  { %3493 = vsyncpa [#allocation10], 1 }
 0x637   :  { %3495 = vsyncpa [#allocation10 + $0x1], 1 }
 0x638   :  { %3496 = vsyncpa [#allocation13], 1 }
 0x639   :  { %3497 = vsyncpa [#allocation8], 1 }
 0x63a   :  { %3499 = vsyncpa [#allocation8 + $0x1], 1 }

// kernel: tpu_custom_call.1
= control target key start
LH: loop header
LB: loop body
LE: loop exit
PB: predicated region body
PF: predicated region fallthrough
CT: control target
= control target key end

     0   :  { %s5341_s0 = inlined_call_operand.hbm [shape: f32[32,32], index: 0, kind: input, shape index: {}]   ;;  %s5342_s1 = inlined_call_operand.hbm [shape: f32[4,16,64], index: 1, kind: input, shape index: {}]   ;;  %s5343_s2 = inlined_call_operand.hbm [shape: bf16[32,128], index: 2, kind: input, shape index: {}]   ;;  %s5344_s3 = inlined_call_operand.vmem [shape: f32[1,128], index: 3, kind: input, shape index: {}]   ;;  %s5345_s4 = inlined_call_operand.hbm [shape: bf16[64,256], index: 4, kind: input, shape index: {}]   ;;  %s5346_s5 = inlined_call_operand.vmem [shape: f32[1,256], index: 5, kind: input, shape index: {}]   ;;  %s5347_s6 = inlined_call_operand.hbm [shape: f32[32,128], index: 6, kind: output, shape index: {}]  }
   0x1   :  { %5357 = sst [smem:[#allocation23_spill]] %s5341_s0 }
   0x2   :  { %5358 = sst [smem:[#allocation24_spill]] %s5343_s2 }
   0x3   :  { %5359 = sst [smem:[#allocation25_spill]] %s5345_s4 }
   0x4   :  { %11 = vsyncpa [#allocation7], 0 }
   0x5   :  { %13 = vsyncpa [#allocation7 + $0x1], 0 }
   0x6   :  { %14 = vsyncpa [#allocation10], 0 }
   0x7   :  { %16 = vsyncpa [#allocation10 + $0x1], 0 }
   0x8   :  { %17 = vsyncpa [#allocation13], 0 }
   0x9   :  { %18 = vsyncpa [#allocation8], 0 }
   0xa   :  { %20 = vsyncpa [#allocation8 + $0x1], 0  ;;  %s4250_s21 = smov 0   ;;  %s4252_s22 = smov 0  }
   0xb   :  { %s4254_s23 = smov 0   ;;  %s4256_s24 = smov 0  }
   0xc   :  { %s4258_s25 = smov 0   ;;  %s4260_s26 = smov 0  }
   0xd LB: > { %5360 = sst [smem:[#allocation20_spill]] %s4181_s23  ;;  %s4281_s27 = sadd.s32 4294967295, %s4193_s26   ;;  %s4193_s26 = sphi %s4260_s26, %s26_s26   ;;  %s4189_s25 = sphi %s4258_s25, %s5390_s25   ;;  %s4185_s24 = sphi %s4256_s24, %s5389_s24   ;;  %s4181_s23 = sphi %s4254_s23, %s5385_s23   ;;  %s4177_s22 = sphi %s4252_s22, %s5388_s22   ;;  %s4173_s21 = sphi %s4250_s21, %s5387_s21  }
   0xe   : > { %s3596_s28 = sadd.s32 4294967294, %s4193_s26   ;;  %p58_p0 = scmp.ne.s32.totalorder %s4177_s22, %s4173_s21 }
   0xf   : > { %p5348_p1 = scmp.eq.s32.totalorder %s4281_s27, 0  ;;  %p200_p3 = scmp.eq.s32.totalorder %s3596_s28, 1 }
  0x10   : > { %p3597_p5 = scmp.ge.s32.totalorder %s4193_s26, 1  ;;  %p207_p7 = scmp.lt.s32.totalorder %s4193_s26, 3 }
  0x11   : > { %p4290_p4 = por %p5348_p1, %p58_p0  ;;  %p4295_p6 = por %p200_p3, %p58_p0 }
  0x12   : > { %p4300_p8 = pnand %p3597_p5, %p207_p7  ;;  %s4195_s8 = smov [#allocation11]  }
  0x13   : > { %s5361_s29 = scalar_select %p4290_p4, 1, 0 }
  0x14   : > { %s5362_s30 = scalar_select %p4295_p6, 1, 0 }
  0x15   : > { %s219_s9 = sshll.u32 %s4195_s8, 4  ;;  %p3830_p9 = pneg %p4300_p8  ;;  %s4304_s9 = int_to_ptr.vmem [resolvable:$true] %s219_s9 }
  0x16   : > { %s4196_s11 = smov [#allocation12]   ;;  %s5365_s2 = sld [smem:[#allocation24_spill]] }
  0x17   : > { %p4311_p11 = pnand %p3830_p9, %p5348_p1  ;;  %s235_s12 = sshll.u32 %s4196_s11, 4  ;;  %s4315_s12 = int_to_ptr.vmem [resolvable:$true] %s235_s12 }
  0x19   : > { %p3985_p13 = pneg %p4311_p11 }
  0x1c   : > { %s3983_s15 = scalar_lea.hbm %s5365_s2, 256 }
  0x1d   : > { %p3984_p12 = scmp.ne.s32.totalorder %s5365_s2, %s3983_s15  ;;  %p3990_p5 = scmp.lt.u32.totalorder %s3983_s15, %s5365_s2 }
  0x1f   : > { %p3986_p0 = pnand %p3985_p13, %p3984_p12 }
  0x21   : > { %p3987_p3 = pneg %p3986_p0 }
  0x23   : > { %p3992_p7 = pnand %p3990_p5, %p3987_p3 }
  0x25   : > { %3995 = shalt.err (!%p3992_p7)
}
  0x26   : > { %s3996_s20 = scalar_lea.vmem %s4304_s9, 256  ;;  %p4004_p2 = scmp.lt.s32.totalorder %s4304_s9, %s4304_s9 }
  0x27   : > { %p3997_p9 = scmp.ne.s32.totalorder %s4304_s9, %s3996_s20  ;;  %p4005_p12 = scmp.lt.s32.totalorder %s3996_s20, %s3996_s20 }
  0x29   : > { %p3999_p10 = pnand %p3997_p9, %p3985_p13  ;;  %p4006_p0 = por %p4005_p12, %p4004_p2 }
  0x2b   : > { %p4000_p1 = pneg %p3999_p10 }
  0x2d   : > { %p4007_p6 = pnand %p4006_p0, %p4000_p1 }
  0x2f   : > { %4010 = shalt.err (!%p4007_p6)
}
  0x30   : > { %s4197_s28 = smov 64   ;;  %s4198_s8 = smov 4  }
  0x31   : > { %3833 = dma.hbm_to_vmem [thread:$0]  (!%p4311_p11), %s5365_s2, 256, %s4304_s9, [#allocation10], %s4197_s28, %s4197_s28, %s4198_s8  }
  0x32   : > { %s5366_s4 = sld [smem:[#allocation25_spill]] }
  0x38   : > { %s4011_s16 = scalar_lea.hbm %s5366_s4, 1024 }
  0x39   : > { %p4012_p2 = scmp.ne.s32.totalorder %s5366_s4, %s4011_s16  ;;  %p4018_p10 = scmp.lt.u32.totalorder %s4011_s16, %s5366_s4 }
  0x3b   : > { %p4014_p1 = pnand %p4012_p2, %p3985_p13 }
  0x3d   : > { %p4015_p6 = pneg %p4014_p1 }
  0x3f   : > { %p4020_p3 = pnand %p4018_p10, %p4015_p6 }
  0x41   : > { %4023 = shalt.err (!%p4020_p3)
}
  0x42   : > { %s4024_s9 = scalar_lea.vmem %s4315_s12, 1024  ;;  %p4032_p12 = scmp.lt.s32.totalorder %s4315_s12, %s4315_s12 }
  0x43   : > { %p4025_p5 = scmp.ne.s32.totalorder %s4315_s12, %s4024_s9  ;;  %p4033_p0 = scmp.lt.s32.totalorder %s4024_s9, %s4024_s9 }
  0x45   : > { %p4027_p7 = pnand %p4025_p5, %p3985_p13  ;;  %p4034_p2 = por %p4033_p0, %p4032_p12 }
  0x47   : > { %p4028_p9 = pneg %p4027_p7 }
  0x49   : > { %p4035_p1 = pnand %p4034_p2, %p4028_p9 }
  0x4b   : > { %4038 = shalt.err (!%p4035_p1)
}
  0x4c   : > { %s5349_s28 = smov 128   ;;  %s5351_s8 = smov 8  }
  0x4d   : > { %3836 = dma.hbm_to_vmem [thread:$0]  (!%p4311_p11), %s5366_s4, 1024, %s4315_s12, [#allocation13], %s5349_s28, %s5349_s28, %s5351_s8  }
  0x4e   : > { %s38_s14 = sadd.s32 1, %s4189_s25  ;;  %s45_s15 = sadd.s32 1, %s4181_s23 }
  0x4f   : > { %p40_p13 = scmp.ge.s32.totalorder %s38_s14, 2  ;;  %p52_p6 = scmp.ne.s32.totalorder %s4181_s23, %s4177_s22 }
  0x50   : > { %p53_p10 = scmp.eq.s32.totalorder %s4193_s26, 0  ;;  %p3850_p3 = scmp.lt.s32.totalorder %s4193_s26, 2 }
  0x51   : > { %s5392_s14 = smov (%p40_p13, %s38_s14), 0  ;;  %p5368_p7 = scmp.eq.s32.totalorder %s4281_s27, 1 }
  0x52   : > { %5367 = sst [smem:[#allocation21_spill]] %s5392_s14  ;;  %p54_p5 = por %p53_p10, %p52_p6 }
  0x53   : > { %p4382_p9 = por %p5368_p7, %p52_p6  ;;  %s42_s16 = ssub.s32 %s4189_s25, %s5392_s14 }
  0x54   : > { %s4389_s17 = sand.u32 1, %s4181_s23   ;;  %p43_p11 = scmp.eq.s32.totalorder %s42_s16, 0 }
  0x55   : > { %s5369_s10 = scalar_select %p4382_p9, 1, 0 }
  0x56   : > { %s3601_s12 = sshll.u32 %s4389_s17, 4  ;;  %s3673_s18 = sshll.u32 %s4189_s25, 8 }
  0x57   : > { %s4394_s19 = scalar_select %p43_p11, %s4181_s23, %s45_s15  }
  0x58   : > { %s5371_s0 = sld [smem:[#allocation23_spill]]  ;;  %s256_s13 = scalar_lea.vmem [#allocation6], %s3601_s12 }
  0x59   : > { %5370 = sst [smem:[#allocation22_spill]] %s4394_s19  ;;  %s263_s28 = sshll.u32 %s256_s13, 4  ;;  %s4407_s28 = int_to_ptr.vmem [resolvable:$true] %s263_s28 }
  0x5a   : > { %p4403_p12 = pnand %p3850_p3, %p54_p5  ;;  %s253_s16 = scalar_lea.sflag [#allocation7], %s4389_s17 }
  0x5c   : > { %p4041_p2 = pneg %p4403_p12 }
  0x5e   : > { %s4399_s11 = scalar_lea.hbm %s5371_s0, %s3673_s18  ;;  %s4044_s9 = scalar_lea.hbm %s5371_s0, 512 }
  0x5f   : > { %s4039_s20 = scalar_lea.hbm %s4399_s11, 256  ;;  %p4045_p6 = scmp.lt.u32.totalorder %s4399_s11, %s5371_s0 }
  0x60   : > { %p4040_p0 = scmp.ne.s32.totalorder %s4399_s11, %s4039_s20  ;;  %p4046_p10 = scmp.lt.u32.totalorder %s4044_s9, %s4039_s20 }
  0x61   : > { %p4048_p5 = scmp.lt.u32.totalorder %s4039_s20, %s4399_s11 }
  0x62   : > { %p4042_p1 = pnand %p4041_p2, %p4040_p0  ;;  %p4047_p3 = por %p4046_p10, %p4045_p6 }
  0x64   : > { %p4043_p13 = pneg %p4042_p1  ;;  %p4049_p7 = por %p4048_p5, %p4047_p3 }
  0x66   : > { %p4050_p11 = pnand %p4049_p7, %p4043_p13 }
  0x68   : > { %4053 = shalt.err (!%p4050_p11)
}
  0x69   : > { %s4054_s15 = scalar_lea.vmem %s4407_s28, 256  ;;  %s4201_s12 = smov [#allocation6]  }
  0x6a   : > { %p4055_p0 = scmp.ne.s32.totalorder %s4407_s28, %s4054_s15  ;;  %s4059_s18 = sshll.u32 %s4201_s12, 4  ;;  %s4060_s18 = int_to_ptr.vmem [resolvable:$false] %s4059_s18 }
  0x6b   : > { %s4061_s2 = scalar_lea.vmem %s4060_s18, 512  ;;  %p4062_p4 = scmp.lt.s32.totalorder %s4407_s28, %s4060_s18 }
  0x6c   : > { %p4057_p1 = pnand %p4055_p0, %p4041_p2  ;;  %p4063_p6 = scmp.lt.s32.totalorder %s4061_s2, %s4054_s15 }
  0x6e   : > { %p4058_p9 = pneg %p4057_p1  ;;  %p4064_p10 = por %p4063_p6, %p4062_p4 }
  0x70   : > { %p4065_p3 = pnand %p4064_p10, %p4058_p9 }
  0x72   : > { %4068 = shalt.err (!%p4065_p3)
}
  0x73   : > { %s5373_s20 = smov 8   ;;  %s5374_s9 = smov 128  }
  0x74   : > { %3840 = dma.hbm_to_vmem [thread:$0]  (!%p4403_p12), %s4399_s11, 256, %s4407_s28, %s253_s16, %s5374_s9, %s5374_s9, %s5373_s20  }
  0x75   : > { %s3604_s13 = sshll.u32 %s4389_s17, 5  ;;  %s3675_s12 = sshll.u32 %s4189_s25, 9 }
  0x76   : > { %s4446_s2 = scalar_lea.hbm %s5342_s1, %s3675_s12  ;;  %s277_s0 = scalar_lea.vmem [#allocation9], %s3604_s13 }
  0x77   : > { %s287_s4 = sshll.u32 %s277_s0, 4  ;;  %s5375_s14 = sand.u32 1, %s4193_s26   ;;  %s4448_s4 = int_to_ptr.vmem [resolvable:$true] %s287_s4 }
  0x78   : > { %s4452_s19 = scalar_lea.sflag [#allocation10], %s5375_s14  ;;  %s4069_s23 = scalar_lea.hbm %s4446_s2, 512 }
  0x79   : > { %p4070_p4 = scmp.ne.s32.totalorder %s4446_s2, %s4069_s23  ;;  %s4074_s11 = scalar_lea.hbm %s5342_s1, 1024 }
  0x7a   : > { %p4075_p5 = scmp.lt.u32.totalorder %s4446_s2, %s5342_s1  ;;  %p4076_p7 = scmp.lt.u32.totalorder %s4074_s11, %s4069_s23 }
  0x7b   : > { %p4072_p9 = pnand %p4070_p4, %p4041_p2  ;;  %p4078_p0 = scmp.lt.u32.totalorder %s4069_s23, %s4446_s2 }
  0x7c   : > { %p4077_p11 = por %p4076_p7, %p4075_p5 }
  0x7d   : > { %p4073_p13 = pneg %p4072_p9 }
  0x7e   : > { %p4079_p1 = por %p4078_p0, %p4077_p11 }
  0x80   : > { %p4080_p6 = pnand %p4079_p1, %p4073_p13 }
  0x82   : > { %4083 = shalt.err (!%p4080_p6)
}
  0x83   : > { %s4084_s0 = scalar_lea.vmem %s4448_s4, 512  ;;  %s4202_s14 = smov [#allocation9]  }
  0x84   : > { %p4085_p10 = scmp.ne.s32.totalorder %s4448_s4, %s4084_s0  ;;  %s4089_s13 = sshll.u32 %s4202_s14, 4  ;;  %s4090_s13 = int_to_ptr.vmem [resolvable:$false] %s4089_s13 }
  0x85   : > { %s4091_s15 = scalar_lea.vmem %s4090_s13, 1024  ;;  %p4092_p9 = scmp.lt.s32.totalorder %s4448_s4, %s4090_s13 }
  0x86   : > { %p4087_p3 = pnand %p4085_p10, %p4041_p2  ;;  %p4093_p5 = scmp.lt.s32.totalorder %s4091_s15, %s4084_s0 }
  0x88   : > { %p4088_p4 = pneg %p4087_p3  ;;  %p4094_p7 = por %p4093_p5, %p4092_p9 }
  0x8a   : > { %p4095_p11 = pnand %p4094_p7, %p4088_p4 }
  0x8c   : > { %4098 = shalt.err (!%p4095_p11)
}
  0x8d   : > { %3843 = dma.hbm_to_vmem [thread:$0]  (!%p4403_p12), %s4446_s2, 512, %s4448_s4, %s4452_s19, %s5374_s9, %s5374_s9, %s5373_s20  }
  0x8e   : > { %299 = sbr.rel (%p4300_p8) target bundleno = 1572 (0x624), region = 44  ;;  %s4484_s23 = sand.u32 (!%p4300_p8), 1, %s4177_s22  }
  0x8f   : > { %s3609_s18 = sshll.u32 (!%p4300_p8), %s4484_s23, 4  ;;  %s302_s28 = scalar_lea.sflag (!%p4300_p8), [#allocation7], %s4484_s23 }
  0x90   : > { %s4490_s8 = scalar_lea.vmem (!%p4300_p8), [#allocation6], %s3609_s18  ;;  %p5376_p2 = scmp.ne.s32.totalorder (!%p4300_p8), %s5361_s29, 0 }
  0x95   : > { %4152 = dma.done.wait (%p5376_p2), %s302_s28, 256  }
  0x96   : > { %4154 = vsyncadd (%p5376_p2), %s302_s28, 4294967040  ;;  %s310_s4 = sand.u32 1, %s4281_s27   ;;  %s3610_s7 = sshll.u32 %s4484_s23, 5 }
  0x97   : > { %s311_s19 = scalar_lea.sflag [#allocation10], %s310_s4  ;;  %s4498_s20 = scalar_lea.vmem [#allocation9], %s3610_s7 }
  0x98   : > { %4156 = dma.done.wait (%p5376_p2), %s311_s19, 512  }
  0x99   : > { %4158 = vsyncadd (%p5376_p2), %s311_s19, 4294966784  ;;  %p5377_p8 = scmp.eq.s32.totalorder %s4281_s27, 0 }
  0x9b   : > { %4160 = dma.done.wait (%p5377_p8), [#allocation10], 256   ;;  %p5378_p12 = pmov %p5377_p8 }
  0x9c   : > { %p5379_p13 = pmov %p5377_p8 }
  0x9d   : > { %4162 = vsyncadd (%p5378_p12), [#allocation10], 4294967040 }
  0x9e   : > { %4164 = dma.done.wait (%p5379_p13), [#allocation13], 1024   ;;  %p5380_p0 = pmov %p5377_p8 }
  0x9f   : > { %vm391_vm0 = vcmask 261120   ;;  %v4203_v0 = vmov 0.0   ;;  %vm4204_vm1 = vmmov 0   ;;  %v4205_v1 = vmov 0   ;;  %v3921_v2 = vld [vmem:[#allocation11] sm:$0xff]   ;;  %v3925_v5 = vld [vmem:[#allocation11 + $0x8] sm:$0xff]  }
  0xa0   : > { %4166 = vsyncadd (%p5380_p0), [#allocation13], 4294966272  ;;  %3712 = vmatprep.subr.bf16.mxu0 %v4203_v0  ;;  %3716 = vmatprep.mubr.msk.bf16.mxu0 %vm4204_vm1, %v4203_v0  ;;  %762 = vst.msk [vmem:[#allocation5] sm:$0xff] %vm391_vm0, %v4203_v0  ;;  %v3922_v3 = vld [vmem:[#allocation12 + $0x4] ss:$8 sps:$4 sm:$0xff]   ;;  %v770_v15 = vld [vmem:[%s4498_s20] sm:$0xff]  ;;  %v461_v21 = vlaneseq }
  0xa1   : > { %763 = vst.msk [vmem:[#allocation5 + $0x8] sm:$0xff] %vm391_vm0, %v4203_v0  ;;  %764 = vst.msk [vmem:[#allocation5 + $0x10] sm:$0xff] %vm391_vm0, %v4203_v0  ;;  %875 = vmatprep.mubr.bf16.mxu1 %v4205_v1  ;;  %3919 = vset.pattern.permute.xlu1 %v4205_v1  ;;  %v3924_v4 = vld [vmem:[#allocation12] ss:$8 sps:$4 sm:$0xff]   ;;  %v3926_v6 = vld [vmem:[#allocation12 + $0x14] ss:$8 sps:$4 sm:$0xff]  }
  0xa2   : > { %765 = vst.msk [vmem:[#allocation5 + $0x18] sm:$0xff] %vm391_vm0, %v4203_v0  ;;  %766 = vst.msk [vmem:[#allocation5 + $0x20] sm:$0xff] %vm391_vm0, %v4203_v0  ;;  %3920 = vset.pattern.permute.xlu0 %v4205_v1  ;;  %3713 = vmatpush3.bf16.msra.mxu0 %v3921_v2  ;;  %v3928_v7 = vld [vmem:[#allocation12 + $0x10] ss:$8 sps:$4 sm:$0xff]   ;;  %v3929_v11 = vld [vmem:[#allocation12 + $0x24] ss:$8 sps:$4 sm:$0xff]  }
  0xa3   : > { %767 = vst.msk [vmem:[#allocation5 + $0x28] sm:$0xff] %vm391_vm0, %v4203_v0  ;;  %768 = vst.msk [vmem:[#allocation5 + $0x30] sm:$0xff] %vm391_vm0, %v4203_v0  ;;  %843 = vmatprep.subr.bf16.mxu1 %v3922_v3  ;;  %3714 = vmatprep.subr.bf16.mxu0 %v4203_v0  ;;  %v365_v8 = vld [vmem:[%s4490_s8] sm:$0xff]  ;;  %v366_v9 = vld [vmem:[%s4490_s8 + $0x8] sm:$0xff]  ;;  %vm836_vm2 = vcmask 523264   ;;  %v4547_v22 = vshrl.u32 %v461_v21, 7 }
  0xa4   : > { %769 = vst.msk [vmem:[#allocation5 + $0x38] sm:$0xff] %vm391_vm0, %v4203_v0  ;;  %844 = vmatpush1.bf16.msra.mxu1 %v3924_v4  ;;  %v367_v10 = vpack.c.bf16 %v366_v9, %v365_v8  ;;  %v3931_v12 = vld [vmem:[#allocation12 + $0x20] ss:$8 sps:$4 sm:$0xff]   ;;  %v3932_v13 = vld [vmem:[#allocation12 + $0x34] ss:$8 sps:$4 sm:$0xff]   ;;  %s4206_s17 = smov 96  }
  0xa5   : > { %845 = vmatprep.subr.bf16.mxu1 %v3926_v6  ;;  %v3934_v14 = vld [vmem:[#allocation12 + $0x30] ss:$8 sps:$4 sm:$0xff]   ;;  %v772_v18 = vld [vmem:[%s4498_s20 + $0x10] sm:$0xff]  ;;  %v773_v19 = vld [vmem:[%s4498_s20 + $0x18] sm:$0xff]  ;;  %v792_v24 = vsub.s32 1, %v4547_v22  ;;  %s4207_s11 = smov 32  }
  0xa6   : > { %3715 = vmatpush3.bf16.msra.mxu0 %v3925_v5  ;;  %v771_v16 = vld [vmem:[%s4498_s20 + $0x8] sm:$0xff]  ;;  %v775_v20 = vpack.c.bf16 %v773_v19, %v772_v18  ;;  %v784_v23 = vld [vmem:[%s5346_s5] sm:$0x3]  ;;  %v788_v32 = vsub.s32 0, %v4547_v22  ;;  %s4208_s16 = smov 64   ;;  %vm736_vm3 = vcmask 257024  }
  0xa7   : > { %3720 = vmatprep.subr.bf16.mxu0 %v4203_v0  ;;  %v774_v17 = vpack.c.bf16 %v771_v16, %v770_v15  ;;  %v793_v25 = vrot.slane %v784_v23, %v792_v24  ;;  %v3614_v26 = vld [vmem:[%s5344_s3] ss:$0 sm:$0xff]  ;;  %v4209_v51 = vmov 1983009808   ;;  %v4210_v54 = vmov 1934713408  }
  0xa8   : > { %846 = vmatpush1.bf16.msra.mxu1 %v3928_v7  ;;  %v789_v33 = vrot.slane %v784_v23, %v788_v32  ;;  %v459_v52 = vunpack.c.l.s4 %v4209_v51  ;;  %v491_v55 = vunpack.c.l.s4 %v4210_v54  ;;  %vm745_vm4 = vcmask 7168   ;;  %s355_s12 = scalar_lea.vmem [#allocation14], %s3609_s18  ;;  %s3676_s14 = sshll.u32 %s4185_s24, 8 }
  0xa9   : > { %3717 = vmatmul.mubr.msk.bf16.vlgmr.msra.gmra.mrb[0].mxu0 %vm391_vm0, %v367_v10  ;;  %847 = vmatprep.subr.bf16.mxu1 %v3929_v11  ;;  %754 = vst.msk [vmem:[#allocation4] sm:$0xff] %vm745_vm4, %v4203_v0  ;;  %755 = vst.msk [vmem:[#allocation4 + $0x8] sm:$0xff] %vm745_vm4, %v4203_v0  ;;  %vm2465_vm5 = vcmask 130048   ;;  %vm3450_vm6 = vcmask 785408   ;;  %s3469_s0 = sshll.u32 %s355_s12, 4  ;;  %s5290_s28 = scalar_lea.hbm %s5347_s6, %s3676_s14  ;;  %s5284_s0 = int_to_ptr.vmem [resolvable:$true] %s3469_s0 }
  0xaa   : > { %3722 = vmatprep.mubr.msk.bf16.mxu0 %vm4204_vm1, %v4203_v0  ;;  %v460_v53 = vunpack.c.0.s8 %v459_v52  ;;  %v492_v61 = vunpack.c.0.s8 %v491_v55  ;;  %756 = vst.msk [vmem:[#allocation4 + $0x10] sm:$0xff] %vm745_vm4, %v4203_v0  ;;  %757 = vst.msk [vmem:[#allocation4 + $0x18] sm:$0xff] %vm745_vm4, %v4203_v0  ;;  %s3456_s18 = scalar_lea.sflag [#allocation8], %s4484_s23  ;;  %s4099_s24 = scalar_lea.vmem %s5284_s0, 256 }
  0xab   : > { %758 = vst.msk [vmem:[#allocation4 + $0x20] sm:$0xff] %vm745_vm4, %v4203_v0  ;;  %759 = vst.msk [vmem:[#allocation4 + $0x28] sm:$0xff] %vm745_vm4, %v4203_v0  ;;  %p4100_p1 = scmp.ne.s32.totalorder %s5284_s0, %s4099_s24  ;;  %p5381_p6 = scmp.ne.s32.totalorder %s5369_s10, 0 }
  0xac   : > { %848 = vmatpush1.bf16.msra.mxu1 %v3931_v12  ;;  %v4614_v58 = vsub.s32 %v460_v53, %v4547_v22  ;;  %v4621_v4 = vsub.s32 %v492_v61, %v4547_v22  ;;  %760 = vst.msk [vmem:[#allocation4 + $0x30] sm:$0xff] %vm745_vm4, %v4203_v0  ;;  %761 = vst.msk [vmem:[#allocation4 + $0x38] sm:$0xff] %vm745_vm4, %v4203_v0  ;;  %s4212_s8 = smov [#allocation14]  }
  0xad   : > { %849 = vmatprep.subr.bf16.mxu1 %v3932_v13  ;;  %p4101_p10 = pnand %p4100_p1, %p5381_p6  ;;  %s4103_s4 = sshll.u32 %s4212_s8, 4  ;;  %s4104_s4 = int_to_ptr.vmem [resolvable:$false] %s4103_s4 }
  0xae   : > { %s4105_s7 = scalar_lea.vmem %s4104_s4, 512  ;;  %p4106_p4 = scmp.lt.s32.totalorder %s5284_s0, %s4104_s4 }
  0xaf   : > { %p4102_p3 = pneg %p4101_p10  ;;  %p4107_p9 = scmp.lt.s32.totalorder %s4105_s7, %s4099_s24 }
  0xb0   : > { %850 = vmatpush1.bf16.msra.mxu1 %v3934_v14 }
  0xb1   : > { %3738 = vmatprep.subr.bf16.mxu1 %v4203_v0  ;;  %p4108_p5 = por %p4107_p9, %p4106_p4 }
  0xb3   : > { %3630 = vmatmul.mubr.msk.bf16.vlgmr.msra.gmra.mrb[0].mxu1 %vm836_vm2, %v774_v17  ;;  %p4109_p7 = pnand %p4108_p5, %p4102_p3 }
  0xb4   : > { %885 = vmatprep.mubr.bf16.mxu1 %v4205_v1 }
  0xbb   : > { %3631 = vmatmul.mubr.msk.bf16.gmra.mrb[4].mxu1 %vm836_vm2, %v775_v20 }
  0xbc   : > { %3740 = vmatprep.mubr.msk.bf16.mxu1 %vm4204_vm1, %v4203_v0 }
 0x17c   : > { %v429_v27 = vpop.f32.mrb[0].mxu0 }
 0x17d   : > { %v4556_v28 = vadd.f32 %v3614_v26, %v429_v27  ;;  %v3718_v29 = vpop.f32.mrb[1].mxu0 }
 0x17e   : > { %v432_v30 = vpop.f32.mrb[2].mxu0 }
 0x17f   : > { %438 = vrot.lane.b32.xlu0 %v4556_v28, %s4206_s17  ;;  %v3719_v31 = vpop.f32.mrb[3].mxu0  ;;  %450 = vrot.lane.b32.xlu1 %v4556_v28, %s4207_s11  ;;  %v4587_v48 = vadd.f32 %v3614_v26, %v432_v30 }
 0x183   : > { %444 = vrot.lane.b32.xlu0 %v4556_v28, %s4208_s16 }
 0x186   : > { %v877_v34 = vpop.f32.mrb[0].mxu1 }
 0x187   : > { %v4565_v35 = vadd.f32 %v877_v34, %v789_v33  ;;  %v879_v36 = vpop.f32.mrb[1].mxu1 }
 0x188   : > { %v4567_v37 = vadd.f32 %v879_v36, %v793_v25  ;;  %v881_v38 = vpop.f32.mrb[2].mxu1 }
 0x189   : > { %v4569_v39 = vadd.f32 %v881_v38, %v789_v33  ;;  %v883_v40 = vpop.f32.mrb[3].mxu1  ;;  %900 = vrot.lane.b32.xlu1 %v4565_v35, %s4206_s17 }
 0x18a   : > { %v4573_v41 = vadd.f32 %v883_v40, %v793_v25 }
 0x18b   : > { %902 = vrot.lane.b32.xlu0 %v4569_v39, %s4206_s17 }
 0x18d   : > { %912 = vrot.lane.b32.xlu1 %v4565_v35, %s4208_s16 }
 0x18e   : > { %v887_v42 = vpop.f32.mrb[4].mxu1 }
 0x18f   : > { %914 = vrot.lane.b32.xlu0 %v4569_v39, %s4208_s16  ;;  %v889_v43 = vpop.f32.mrb[5].mxu1  ;;  %v4595_v49 = vadd.f32 %v887_v42, %v789_v33 }
 0x190   : > { %v4581_v44 = vadd.f32 %v889_v43, %v793_v25  ;;  %v891_v45 = vpop.f32.mrb[6].mxu1 }
 0x191   : > { %924 = vrot.lane.b32.xlu1 %v4565_v35, %s4207_s11  ;;  %v893_v46 = vpop.f32.mrb[7].mxu1  ;;  %v4599_v50 = vadd.f32 %v891_v45, %v789_v33 }
 0x192   : > { %v4585_v47 = vadd.f32 %v893_v46, %v793_v25 }
 0x193   : > { %926 = vrot.lane.b32.xlu0 %v4569_v39, %s4207_s11 }
 0x195   : > { %440 = vrot.lane.b32.xlu1 %v4587_v48, %s4206_s17 }
 0x197   : > { %446 = vrot.lane.b32.xlu0 %v4587_v48, %s4208_s16 }
 0x199   : > { %452 = vrot.lane.b32.xlu1 %v4587_v48, %s4207_s11 }
 0x19b   : > { %904 = vrot.lane.b32.xlu0 %v4595_v49, %s4206_s17 }
 0x19d   : > { %906 = vrot.lane.b32.xlu1 %v4599_v50, %s4206_s17 }
 0x19f   : > { %916 = vrot.lane.b32.xlu0 %v4595_v49, %s4208_s16 }
 0x1a1   : > { %918 = vrot.lane.b32.xlu1 %v4599_v50, %s4208_s16 }
 0x1a3   : > { %928 = vrot.lane.b32.xlu0 %v4595_v49, %s4207_s11 }
 0x1a5   : > { %930 = vrot.lane.b32.xlu1 %v4599_v50, %s4207_s11 }
 0x1f1   : > { %v439_v56 = vpop.permute.xlu0 %438  ;;  %v451_v57 = vpop.permute.xlu1 %450 }
 0x1f2   : > { %v472_v59 = vcombine.low %v439_v56, %v451_v57  ;;  %v473_v60 = vcombine.high %v439_v56, %v451_v57 }
 0x1f4   : > { %v480_v63 = vrot.slane %v472_v59, %v4614_v58  ;;  %v487_v1 = vrot.slane %v473_v60, %v4614_v58 }
 0x1f5   : > { %v445_v62 = vpop.permute.xlu0 %444 }
 0x1f6   : > { %v456_v2 = vcombine.low %v4556_v28, %v445_v62  ;;  %v457_v3 = vcombine.high %v4556_v28, %v445_v62 }
 0x1f8   : > { %v464_v5 = vrot.slane %v456_v2, %v4614_v58  ;;  %v471_v6 = vrot.slane %v457_v3, %v4614_v58 }
 0x1fa   : > { %v488_v7 = vcombine.low %v464_v5, %v480_v63  ;;  %v489_v8 = vcombine.high %v464_v5, %v480_v63  ;;  %v504_v9 = vcombine.low %v471_v6, %v487_v1  ;;  %v505_v10 = vcombine.high %v471_v6, %v487_v1 }
 0x1fb   : > { %v901_v11 = vpop.permute.xlu1 %900 }
 0x1fc   : > { %v496_v12 = vrot.slane %v488_v7, %v4621_v4  ;;  %v503_v13 = vrot.slane %v489_v8, %v4621_v4  ;;  %v512_v14 = vrot.slane %v504_v9, %v4621_v4  ;;  %v519_v15 = vrot.slane %v505_v10, %v4621_v4 }
 0x1fd   : > { %v903_v16 = vpop.permute.xlu0 %902 }
 0x1fe   : > { %v592_v17 = vcombine.low %v496_v12, %v503_v13  ;;  %v3618_v18 = vcombine.high %v496_v12, %v503_v13  ;;  %v608_v19 = vcombine.low %v512_v14, %v519_v15  ;;  %v3619_v20 = vcombine.high %v512_v14, %v519_v15 }
 0x1ff   : > { %v913_v21 = vpop.permute.xlu1 %912 }
 0x200   : > { %v599_v22 = vrot.slane %v592_v17, %v4614_v58  ;;  %v607_v23 = vrot.slane %v3618_v18, %v4614_v58  ;;  %v615_v24 = vrot.slane %v608_v19, %v4614_v58  ;;  %v623_v25 = vrot.slane %v3619_v20, %v4614_v58 }
 0x201   : > { %v936_v26 = vcombine.low %v4565_v35, %v913_v21  ;;  %v937_v27 = vcombine.high %v4565_v35, %v913_v21  ;;  %v915_v28 = vpop.permute.xlu0 %914 }
 0x202   : > { %v624_v29 = vcombine.low %v599_v22, %v607_v23  ;;  %v625_v30 = vcombine.high %v599_v22, %v607_v23  ;;  %v640_v31 = vcombine.low %v615_v24, %v623_v25  ;;  %v641_v32 = vcombine.high %v615_v24, %v623_v25 }
 0x203   : > { %v944_v33 = vrot.slane %v936_v26, %v4614_v58  ;;  %v951_v34 = vrot.slane %v937_v27, %v4614_v58  ;;  %v1004_v36 = vcombine.low %v4569_v39, %v915_v28  ;;  %v1005_v38 = vcombine.high %v4569_v39, %v915_v28  ;;  %v925_v40 = vpop.permute.xlu1 %924 }
 0x204   : > { %v632_v42 = vrot.slane %v624_v29, %v4621_v4  ;;  %v639_v43 = vrot.slane %v625_v30, %v4621_v4  ;;  %v648_v35 = vrot.slane %v640_v31, %v4621_v4  ;;  %v655_v45 = vrot.slane %v641_v32, %v4621_v4 }
 0x205   : > { %v1012_v46 = vrot.slane %v1004_v36, %v4614_v58  ;;  %v1019_v51 = vrot.slane %v1005_v38, %v4614_v58  ;;  %v952_v52 = vcombine.low %v901_v11, %v925_v40  ;;  %v953_v53 = vcombine.high %v901_v11, %v925_v40  ;;  %v927_v54 = vpop.permute.xlu0 %926 }
 0x206   : > { %v656_v55 = vcombine.low %v632_v42, %v648_v35  ;;  %v657_v56 = vcombine.high %v632_v42, %v648_v35  ;;  %v658_v57 = vcombine.low %v639_v43, %v655_v45  ;;  %v659_v39 = vcombine.high %v639_v43, %v655_v45 }
 0x207   : > { %v960_v59 = vrot.slane %v952_v52, %v4614_v58  ;;  %v967_v60 = vrot.slane %v953_v53, %v4614_v58  ;;  %v1020_v61 = vcombine.low %v903_v16, %v927_v54  ;;  %v1021_v62 = vcombine.high %v903_v16, %v927_v54  ;;  %v441_v63 = vpop.permute.xlu1 %440 }
 0x208   : > { %v728_v1 = vpack.c.bf16 %v656_v55, %v656_v55  ;;  %v729_v2 = vpack.c.bf16 %v657_v56, %v657_v56  ;;  %v730_v3 = vpack.c.bf16 %v658_v57, %v658_v57  ;;  %v731_v5 = vpack.c.bf16 %v659_v39, %v659_v39 }
 0x209   : > { %v968_v6 = vcombine.low %v944_v33, %v960_v59  ;;  %v969_v7 = vcombine.high %v944_v33, %v960_v59  ;;  %v984_v8 = vcombine.low %v951_v34, %v967_v60  ;;  %v985_v9 = vcombine.high %v951_v34, %v967_v60  ;;  %v447_v10 = vpop.permute.xlu0 %446 }
 0x20a   : > { %737 = vst.msk [vmem:[#allocation2] sm:$0xf] %vm736_vm3, %v728_v1  ;;  %738 = vst.msk [vmem:[#allocation2 + $0x4] sm:$0xf] %vm736_vm3, %v729_v2  ;;  %v1028_v11 = vrot.slane %v1020_v61, %v4614_v58  ;;  %v1035_v12 = vrot.slane %v1021_v62, %v4614_v58  ;;  %v524_v13 = vcombine.low %v4587_v48, %v447_v10 }
 0x20b   : > { %739 = vst.msk [vmem:[#allocation2 + $0x8] sm:$0xf] %vm736_vm3, %v730_v3  ;;  %740 = vst.msk [vmem:[#allocation2 + $0xc] sm:$0xf] %vm736_vm3, %v731_v5  ;;  %v525_v14 = vcombine.high %v4587_v48, %v447_v10  ;;  %v976_v15 = vrot.slane %v968_v6, %v4621_v4  ;;  %v983_v16 = vrot.slane %v969_v7, %v4621_v4  ;;  %v453_v19 = vpop.permute.xlu1 %452 }
 0x20c   : > { %v992_v17 = vrot.slane %v984_v8, %v4621_v4  ;;  %v999_v18 = vrot.slane %v985_v9, %v4621_v4  ;;  %v1036_v20 = vcombine.low %v1012_v46, %v1028_v11  ;;  %v1037_v21 = vcombine.high %v1012_v46, %v1028_v11 }
 0x20d   : > { %v1052_v22 = vcombine.low %v1019_v51, %v1035_v12  ;;  %v1053_v23 = vcombine.high %v1019_v51, %v1035_v12  ;;  %v1208_v24 = vcombine.low %v976_v15, %v983_v16  ;;  %v3632_v25 = vcombine.high %v976_v15, %v983_v16  ;;  %v905_v28 = vpop.permute.xlu0 %904 }
 0x20e   : > { %v1224_v26 = vcombine.low %v992_v17, %v999_v18  ;;  %v3633_v27 = vcombine.high %v992_v17, %v999_v18  ;;  %v1044_v48 = vrot.slane %v1036_v20, %v4621_v4  ;;  %v1051_v29 = vrot.slane %v1037_v21, %v4621_v4 }
 0x20f   : > { %v1060_v30 = vrot.slane %v1052_v22, %v4621_v4  ;;  %v1067_v31 = vrot.slane %v1053_v23, %v4621_v4  ;;  %v4664_v32 = vrot.slane %v1208_v24, %v4614_v58  ;;  %v4667_v33 = vrot.slane %v3632_v25, %v4614_v58  ;;  %v907_v38 = vpop.permute.xlu1 %906 }
 0x210   : > { %v4670_v34 = vrot.slane %v1224_v26, %v4614_v58  ;;  %v4673_v36 = vrot.slane %v3633_v27, %v4614_v58  ;;  %v1276_v40 = vcombine.low %v1044_v48, %v1051_v29  ;;  %v3634_v42 = vcombine.high %v1044_v48, %v1051_v29 }
 0x211   : > { %v1292_v43 = vcombine.low %v1060_v30, %v1067_v31  ;;  %v3635_v35 = vcombine.high %v1060_v30, %v1067_v31  ;;  %v532_v45 = vrot.slane %v524_v13, %v4614_v58  ;;  %v539_v46 = vrot.slane %v525_v14, %v4614_v58  ;;  %v917_v53 = vpop.permute.xlu0 %916 }
 0x212   : > { %v540_v51 = vcombine.low %v441_v63, %v453_v19  ;;  %v541_v52 = vcombine.high %v441_v63, %v453_v19  ;;  %v4678_v54 = vrot.slane %v1276_v40, %v4614_v58  ;;  %v4681_v55 = vrot.slane %v3634_v42, %v4614_v58 }
 0x213   : > { %v4684_v56 = vrot.slane %v1292_v43, %v4614_v58  ;;  %v4687_v57 = vrot.slane %v3635_v35, %v4614_v58  ;;  %v1072_v60 = vcombine.low %v4595_v49, %v917_v53  ;;  %v1073_v61 = vcombine.high %v4595_v49, %v917_v53  ;;  %v919_v62 = vpop.permute.xlu1 %918 }
 0x214   : > { %v548_v39 = vrot.slane %v540_v51, %v4614_v58  ;;  %v555_v59 = vrot.slane %v541_v52, %v4614_v58  ;;  %v1140_v63 = vcombine.low %v4599_v50, %v919_v62  ;;  %v1141_v1 = vcombine.high %v4599_v50, %v919_v62 }
 0x215   : > { %v1240_v2 = vcombine.low %v4664_v32, %v4667_v33  ;;  %v1256_v3 = vcombine.low %v4670_v34, %v4673_v36  ;;  %v929_v9 = vpop.permute.xlu0 %928  ;;  %v1080_v10 = vrot.slane %v1072_v60, %v4614_v58  ;;  %v1087_v49 = vrot.slane %v1073_v61, %v4614_v58 }
 0x216   : > { %v556_v5 = vcombine.low %v532_v45, %v548_v39  ;;  %v557_v6 = vcombine.high %v532_v45, %v548_v39  ;;  %v572_v7 = vcombine.low %v539_v46, %v555_v59  ;;  %v573_v8 = vcombine.high %v539_v46, %v555_v59 }
 0x217   : > { %v4702_v11 = vrot.slane %v1140_v63, %v4614_v58  ;;  %v4705_v50 = vrot.slane %v1141_v1, %v4614_v58  ;;  %v931_v16 = vpop.permute.xlu1 %930  ;;  %v1088_v17 = vcombine.low %v905_v28, %v929_v9  ;;  %v1089_v18 = vcombine.high %v905_v28, %v929_v9 }
 0x218   : > { %v564_v12 = vrot.slane %v556_v5, %v4621_v4  ;;  %v571_v13 = vrot.slane %v557_v6, %v4621_v4  ;;  %v580_v14 = vrot.slane %v572_v7, %v4621_v4  ;;  %v587_v15 = vrot.slane %v573_v8, %v4621_v4 }
 0x219   : > { %v1156_v19 = vcombine.low %v907_v38, %v931_v16  ;;  %v1157_v20 = vcombine.high %v907_v38, %v931_v16  ;;  %v1096_v25 = vrot.slane %v1088_v17, %v4614_v58  ;;  %v1103_v26 = vrot.slane %v1089_v18, %v4614_v58 }
 0x21a   : > { %v660_v21 = vcombine.low %v564_v12, %v571_v13  ;;  %v3620_v22 = vcombine.high %v564_v12, %v571_v13  ;;  %v676_v23 = vcombine.low %v580_v14, %v587_v15  ;;  %v3621_v24 = vcombine.high %v580_v14, %v587_v15 }
 0x21b   : > { %v1164_v27 = vrot.slane %v1156_v19, %v4614_v58  ;;  %v1171_v48 = vrot.slane %v1157_v20, %v4614_v58  ;;  %v1104_v38 = vcombine.low %v1080_v10, %v1096_v25  ;;  %v1105_v40 = vcombine.high %v1080_v10, %v1096_v25 }
 0x21c   : > { %v667_v29 = vrot.slane %v660_v21, %v4614_v58  ;;  %v675_v30 = vrot.slane %v3620_v22, %v4614_v58  ;;  %v683_v28 = vrot.slane %v676_v23, %v4614_v58  ;;  %v691_v31 = vrot.slane %v3621_v24, %v4614_v58 }
 0x21d   : > { %v1120_v42 = vcombine.low %v1087_v49, %v1103_v26  ;;  %v1121_v43 = vcombine.high %v1087_v49, %v1103_v26  ;;  %v1112_v52 = vrot.slane %v1104_v38, %v4621_v4  ;;  %v1119_v53 = vrot.slane %v1105_v40, %v4621_v4 }
 0x21e   : > { %v692_v35 = vcombine.low %v667_v29, %v675_v30  ;;  %v693_v45 = vcombine.high %v667_v29, %v675_v30  ;;  %v708_v46 = vcombine.low %v683_v28, %v691_v31  ;;  %v709_v51 = vcombine.high %v683_v28, %v691_v31 }
 0x21f   : > { %v1128_v39 = vrot.slane %v1120_v42, %v4621_v4  ;;  %v1135_v59 = vrot.slane %v1121_v43, %v4621_v4  ;;  %v1344_v1 = vcombine.low %v1112_v52, %v1119_v53  ;;  %v3636_v5 = vcombine.high %v1112_v52, %v1119_v53 }
 0x220   : > { %v700_v60 = vrot.slane %v692_v35, %v4621_v4  ;;  %v707_v61 = vrot.slane %v693_v45, %v4621_v4  ;;  %v716_v62 = vrot.slane %v708_v46, %v4621_v4  ;;  %v723_v63 = vrot.slane %v709_v51, %v4621_v4 }
 0x221   : > { %v1360_v6 = vcombine.low %v1128_v39, %v1135_v59  ;;  %v3637_v7 = vcombine.high %v1128_v39, %v1135_v59  ;;  %v4728_v12 = vrot.slane %v1344_v1, %v4614_v58  ;;  %v4731_v13 = vrot.slane %v3636_v5, %v4614_v58 }
 0x222   : > { %v724_v8 = vcombine.low %v700_v60, %v716_v62  ;;  %v725_v9 = vcombine.high %v700_v60, %v716_v62  ;;  %v726_v10 = vcombine.low %v707_v61, %v723_v63  ;;  %v727_v49 = vcombine.high %v707_v61, %v723_v63 }
 0x223   : > { %v4734_v14 = vrot.slane %v1360_v6, %v4614_v58  ;;  %v4737_v15 = vrot.slane %v3637_v7, %v4614_v58  ;;  %v1172_v20 = vcombine.low %v4702_v11, %v1164_v27  ;;  %v1173_v21 = vcombine.high %v4702_v11, %v1164_v27 }
 0x224   : > { %v732_v16 = vpack.c.bf16 %v724_v8, %v724_v8  ;;  %v733_v17 = vpack.c.bf16 %v725_v9, %v725_v9  ;;  %v734_v18 = vpack.c.bf16 %v726_v10, %v726_v10  ;;  %v735_v19 = vpack.c.bf16 %v727_v49, %v727_v49 }
 0x225   : > { %v1188_v22 = vcombine.low %v4705_v50, %v1171_v48  ;;  %v1189_v23 = vcombine.high %v4705_v50, %v1171_v48  ;;  %v1248_v24 = vrot.slane %v1240_v2, %v4621_v4  ;;  %v1264_v11 = vrot.slane %v1256_v3, %v4621_v4 }
 0x226   : > { %741 = vst.msk [vmem:[#allocation2 + $0x10] sm:$0xf] %vm736_vm3, %v732_v16  ;;  %742 = vst.msk [vmem:[#allocation2 + $0x14] sm:$0xf] %vm736_vm3, %v733_v17  ;;  %v1308_v50 = vcombine.low %v4678_v54, %v4681_v55  ;;  %v1324_v25 = vcombine.low %v4684_v56, %v4687_v57  ;;  %v1180_v26 = vrot.slane %v1172_v20, %v4621_v4  ;;  %v2080_v20 = vld [vmem:[#allocation2] sm:$0xf] }
 0x227   : > { %743 = vst.msk [vmem:[#allocation2 + $0x18] sm:$0xf] %vm736_vm3, %v734_v18  ;;  %744 = vst.msk [vmem:[#allocation2 + $0x1c] sm:$0xf] %vm736_vm3, %v735_v19  ;;  %v1187_v27 = vrot.slane %v1173_v21, %v4621_v4  ;;  %v1196_v48 = vrot.slane %v1188_v22, %v4621_v4  ;;  %v1203_v29 = vrot.slane %v1189_v23, %v4621_v4 }
 0x228   : > { %v1272_v2 = vcombine.low %v1248_v24, %v1264_v11  ;;  %v1316_v30 = vrot.slane %v1308_v50, %v4621_v4  ;;  %v1332_v28 = vrot.slane %v1324_v25, %v4621_v4  ;;  %v1241_v3 = vcombine.high %v4664_v32, %v4667_v33 }
 0x229   : > { %v1412_v31 = vcombine.low %v1180_v26, %v1187_v27  ;;  %v3638_v38 = vcombine.high %v1180_v26, %v1187_v27  ;;  %v1428_v40 = vcombine.low %v1196_v48, %v1203_v29  ;;  %v3639_v42 = vcombine.high %v1196_v48, %v1203_v29 }
 0x22a   : > { %v1340_v43 = vcombine.low %v1316_v30, %v1332_v28  ;;  %v1255_v35 = vrot.slane %v1241_v3, %v4621_v4  ;;  %v1257_v45 = vcombine.high %v4670_v34, %v4673_v36  ;;  %v1309_v46 = vcombine.high %v4678_v54, %v4681_v55 }
 0x22b   : > { %v1419_v51 = vrot.slane %v1412_v31, %v4614_v58  ;;  %v1427_v52 = vrot.slane %v3638_v38, %v4614_v58  ;;  %v1435_v53 = vrot.slane %v1428_v40, %v4614_v58  ;;  %v1443_v32 = vrot.slane %v3639_v42, %v4614_v58 }
 0x22c   : > { %v1480_v33 = vpack.c.bf16 %v1340_v43, %v1272_v2  ;;  %v1271_v39 = vrot.slane %v1257_v45, %v4621_v4  ;;  %v1323_v59 = vrot.slane %v1309_v46, %v4621_v4  ;;  %v1325_v60 = vcombine.high %v4684_v56, %v4687_v57  ;;  %v2082_v43 = vld [vmem:[#allocation2 + $0x8] sm:$0xf] }
 0x22d   : > { %v1376_v34 = vcombine.low %v4728_v12, %v4731_v13  ;;  %v1392_v36 = vcombine.low %v4734_v14, %v4737_v15  ;;  %v1341_v61 = vcombine.high %v1316_v30, %v1332_v28  ;;  %v1444_v1 = vcombine.low %v1419_v51, %v1427_v52  ;;  %v2085_v40 = vld [vmem:[#allocation2 + $0x14] sm:$0xf] }
 0x22e   : > { %v2093_v54 = vsel %vm391_vm0, %v1480_v33, 0  ;;  %v1339_v55 = vrot.slane %v1325_v60, %v4621_v4  ;;  %v1275_v5 = vcombine.high %v1255_v35, %v1271_v39  ;;  %v1273_v56 = vcombine.high %v1248_v24, %v1264_v11  ;;  %v2086_v33 = vld [vmem:[#allocation2 + $0x18] sm:$0xf] }
 0x22f   : > { %3721 = vmatpush3.bf16.xpose.msra.mxu0 %v2093_v54  ;;  %v1384_v62 = vrot.slane %v1376_v34, %v4621_v4  ;;  %v1400_v63 = vrot.slane %v1392_v36, %v4621_v4  ;;  %v1460_v57 = vcombine.low %v1435_v53, %v1443_v32  ;;  %v1452_v7 = vrot.slane %v1444_v1, %v4621_v4 }
 0x230   : > { %v1343_v6 = vcombine.high %v1323_v59, %v1339_v55  ;;  %3726 = vmatprep.subr.bf16.mxu0 %v4203_v0  ;;  %v1481_v9 = vpack.c.bf16 %v1341_v61, %v1273_v56  ;;  %v1445_v18 = vcombine.high %v1419_v51, %v1427_v52  ;;  %v1461_v19 = vcombine.high %v1435_v53, %v1443_v32  ;;  %v2087_v52 = vld [vmem:[#allocation2 + $0x1c] sm:$0xf]  ;;  %v2084_v53 = vld [vmem:[#allocation2 + $0x10] sm:$0xf] }
 0x231   : > { %v1468_v10 = vrot.slane %v1460_v57, %v4621_v4  ;;  %v1409_v49 = vcombine.high %v1384_v62, %v1400_v63  ;;  %v1342_v21 = vcombine.low %v1323_v59, %v1339_v55  ;;  %v1377_v24 = vcombine.high %v4728_v12, %v4731_v13  ;;  %v2083_v13 = vld [vmem:[#allocation2 + $0xc] sm:$0xf] }
 0x232   : > { %v1483_v8 = vpack.c.bf16 %v1343_v6, %v1275_v5  ;;  %v2139_v22 = vsel %vm391_vm0, %v1481_v9, 0  ;;  %v1393_v11 = vcombine.high %v4734_v14, %v4737_v15  ;;  %v1274_v50 = vcombine.low %v1255_v35, %v1271_v39  ;;  %v2081_v15 = vld [vmem:[#allocation2 + $0x4] sm:$0xf] }
 0x233   : > { %v1477_v17 = vcombine.high %v1452_v7, %v1468_v10  ;;  %v1459_v25 = vrot.slane %v1445_v18, %v4621_v4  ;;  %v1475_v26 = vrot.slane %v1461_v19, %v4621_v4  ;;  %v1391_v29 = vrot.slane %v1377_v24, %v4621_v4 }
 0x234   : > { %v2231_v16 = vsel %vm391_vm0, %v1483_v8, 0  ;;  %v1482_v27 = vpack.c.bf16 %v1342_v21, %v1274_v50  ;;  %v1407_v12 = vrot.slane %v1393_v11, %v4621_v4  ;;  %v1476_v30 = vcombine.low %v1452_v7, %v1468_v10 }
 0x235   : > { %3739 = vmatpush3.bf16.xpose.msra.mxu1 %v2231_v16  ;;  %v1485_v23 = vpack.c.bf16 %v1477_v17, %v1409_v49  ;;  %v1479_v14 = vcombine.high %v1459_v25, %v1475_v26  ;;  %v1408_v3 = vcombine.low %v1384_v62, %v1400_v63  ;;  %v1478_v45 = vcombine.low %v1459_v25, %v1475_v26 }
 0x236   : > { %3723 = vmatmul.mubr.msk.bf16.vlgmr.msra.gmra.mrb[4].mxu0 %vm391_vm0, %v2080_v20  ;;  %3750 = vmatprep.subr.bf16.mxu1 %v4203_v0  ;;  %v2185_v2 = vsel %vm391_vm0, %v1482_v27, 0  ;;  %v1411_v28 = vcombine.high %v1391_v29, %v1407_v12  ;;  %v1410_v46 = vcombine.low %v1391_v29, %v1407_v12  ;;  %v4211_v39 = vmov -inf  }
 0x237   : > { %3727 = vmatpush3.bf16.xpose.msra.mxu0 %v2139_v22  ;;  %3728 = vmatprep.mubr.msk.bf16.mxu0 %vm4204_vm1, %v4203_v0  ;;  %v2323_v48 = vsel %vm391_vm0, %v1485_v23, 0  ;;  %v1484_v38 = vpack.c.bf16 %v1476_v30, %v1408_v3  ;;  %746 = vst.msk [vmem:[#allocation3] sm:$0xff] %vm745_vm4, %v4211_v39  ;;  %747 = vst.msk [vmem:[#allocation3 + $0x8] sm:$0xff] %vm745_vm4, %v4211_v39 }
 0x238   : > { %3732 = vmatprep.subr.bf16.mxu0 %v4203_v0  ;;  %v1487_v31 = vpack.c.bf16 %v1479_v14, %v1411_v28  ;;  %v1486_v51 = vpack.c.bf16 %v1478_v45, %v1410_v46  ;;  %748 = vst.msk [vmem:[#allocation3 + $0x10] sm:$0xff] %vm745_vm4, %v4211_v39  ;;  %749 = vst.msk [vmem:[#allocation3 + $0x18] sm:$0xff] %vm745_vm4, %v4211_v39 }
 0x239   : > { %v2277_v35 = vsel %vm391_vm0, %v1484_v38, 0  ;;  %750 = vst.msk [vmem:[#allocation3 + $0x20] sm:$0xff] %vm745_vm4, %v4211_v39  ;;  %751 = vst.msk [vmem:[#allocation3 + $0x28] sm:$0xff] %vm745_vm4, %v4211_v39 }
 0x23a   : > { %v2415_v42 = vsel %vm391_vm0, %v1487_v31, 0  ;;  %v2369_v32 = vsel %vm391_vm0, %v1486_v51, 0  ;;  %752 = vst.msk [vmem:[#allocation3 + $0x30] sm:$0xff] %vm745_vm4, %v4211_v39  ;;  %753 = vst.msk [vmem:[#allocation3 + $0x38] sm:$0xff] %vm745_vm4, %v4211_v39 }
 0x23c   : > { %3741 = vmatmul.mubr.msk.bf16.vlgmr.msra.gmra.mrb[8].mxu1 %vm391_vm0, %v2083_v13 }
 0x23d   : > { %3751 = vmatpush3.bf16.xpose.msra.mxu1 %v2323_v48  ;;  %3752 = vmatprep.mubr.msk.bf16.mxu1 %vm4204_vm1, %v4203_v0 }
 0x23e   : > { %3729 = vmatmul.mubr.msk.bf16.vlgmr.msra.gmra.mrb[8].mxu0 %vm391_vm0, %v2081_v15  ;;  %3762 = vmatprep.subr.bf16.mxu1 %v4203_v0  ;;  %v4893_v30 = vld [vmem:[#allocation3] sm:$0xff]  ;;  %v4903_v38 = vld [vmem:[#allocation3 + $0x8] sm:$0xff] }
 0x23f   : > { %3733 = vmatpush3.bf16.xpose.msra.mxu0 %v2185_v2  ;;  %3734 = vmatprep.mubr.msk.bf16.mxu0 %vm4204_vm1, %v4203_v0  ;;  %v4926_v51 = vld [vmem:[#allocation3 + $0x18] sm:$0xff] }
 0x240   : > { %3744 = vmatprep.subr.bf16.mxu0 %v4203_v0  ;;  %v4941_v39 = vld [vmem:[#allocation3 + $0x20] sm:$0xff] }
 0x244   : > { %3753 = vmatmul.mubr.msk.bf16.vlgmr.msra.gmra.mrb[12].mxu1 %vm391_vm0, %v2085_v40 }
 0x245   : > { %3763 = vmatpush3.bf16.xpose.msra.mxu1 %v2415_v42  ;;  %3764 = vmatprep.mubr.msk.bf16.mxu1 %vm4204_vm1, %v4203_v0 }
 0x246   : > { %3735 = vmatmul.mubr.msk.bf16.vlgmr.msra.gmra.mrb[12].mxu0 %vm391_vm0, %v2082_v43  ;;  %3774 = vmatprep.subr.bf16.mxu1 %v4203_v0 }
 0x247   : > { %3745 = vmatpush3.bf16.xpose.msra.mxu0 %v2277_v35  ;;  %3746 = vmatprep.mubr.msk.bf16.mxu0 %vm4204_vm1, %v4203_v0  ;;  %v4917_v35 = vld [vmem:[#allocation3 + $0x10] sm:$0xff] }
 0x248   : > { %3756 = vmatprep.subr.bf16.mxu0 %v4203_v0 }
 0x24c   : > { %3765 = vmatmul.mubr.msk.bf16.vlgmr.msra.gmra.mrb[16].mxu1 %vm391_vm0, %v2087_v52 }
 0x24d   : > { %3776 = vmatprep.mubr.msk.bf16.mxu1 %vm4204_vm1, %v4203_v0 }
 0x24e   : > { %3747 = vmatmul.mubr.msk.bf16.vlgmr.msra.gmra.mrb[16].mxu0 %vm391_vm0, %v2084_v53 }
 0x24f   : > { %3757 = vmatpush3.bf16.xpose.msra.mxu0 %v2369_v32  ;;  %3758 = vmatprep.mubr.msk.bf16.mxu0 %vm4204_vm1, %v4203_v0 }
 0x250   : > { %3768 = vmatprep.subr.bf16.mxu0 %v4203_v0 }
 0x256   : > { %3759 = vmatmul.mubr.msk.bf16.vlgmr.msra.gmra.mrb[20].mxu0 %vm391_vm0, %v2086_v33  ;;  %v4939_v33 = vld [vmem:[#allocation3 + $0x28] sm:$0xff] }
 0x257   : > { %3770 = vmatprep.mubr.msk.bf16.mxu0 %vm4204_vm1, %v4203_v0 }
 0x309   : > { %v4861_v59 = vpop.f32.mrb[4].mxu0 }
 0x30a   : > { %v3724_v60 = vpop.f32.mrb[5].mxu0  ;;  %v2466_v34 = vsel %vm2465_vm5, %v4861_v59, -inf }
 0x30b   : > { %2467 = vmax.xlane.f32.xlu0 %v2466_v34  ;;  %v2132_v36 = vpop.f32.mrb[6].mxu0 }
 0x30c   : > { %v3725_v54 = vpop.f32.mrb[7].mxu0 }
 0x30f   : > { %v4865_v55 = vpop.f32.mrb[8].mxu1 }
 0x310   : > { %v3742_v61 = vpop.f32.mrb[9].mxu1  ;;  %v2475_v20 = vsel %vm2465_vm5, %v4865_v55, -inf }
 0x311   : > { %v2270_v62 = vpop.f32.mrb[10].mxu1  ;;  %v4867_v63 = vpop.f32.mrb[8].mxu0 }
 0x312   : > { %v3743_v1 = vpop.f32.mrb[11].mxu1  ;;  %v3730_v5 = vpop.f32.mrb[9].mxu0  ;;  %v2469_v6 = vsel %vm2465_vm5, %v4867_v63, -inf  ;;  %v4955_v62 = vld [vmem:[#allocation3 + $0x38] sm:$0xff] }
 0x313   : > { %2470 = vmax.xlane.f32.xlu1 %v2469_v6  ;;  %v2178_v56 = vpop.f32.mrb[10].mxu0 }
 0x314   : > { %v3731_v57 = vpop.f32.mrb[11].mxu0 }
 0x315   : > { %v4971_v57 = vld [vmem:[#allocation3 + $0x30] sm:$0xff] }
 0x317   : > { %v4871_v7 = vpop.f32.mrb[12].mxu1 }
 0x318   : > { %v3754_v8 = vpop.f32.mrb[13].mxu1  ;;  %v2481_v50 = vsel %vm2465_vm5, %v4871_v7, -inf }
 0x319   : > { %v4873_v9 = vpop.f32.mrb[12].mxu0  ;;  %v2362_v10 = vpop.f32.mrb[14].mxu1 }
 0x31a   : > { %v3736_v49 = vpop.f32.mrb[13].mxu0  ;;  %v2472_v16 = vsel %vm2465_vm5, %v4873_v9, -inf  ;;  %v3755_v17 = vpop.f32.mrb[15].mxu1 }
 0x31b   : > { %2473 = vmax.xlane.f32.xlu0 %v2472_v16  ;;  %v2224_v18 = vpop.f32.mrb[14].mxu0 }
 0x31c   : > { %v3737_v19 = vpop.f32.mrb[15].mxu0 }
 0x31f   : > { %2476 = vmax.xlane.f32.xlu0 %v2475_v20  ;;  %v4879_v21 = vpop.f32.mrb[16].mxu1 }
 0x320   : > { %v3766_v22 = vpop.f32.mrb[17].mxu1  ;;  %v2487_v29 = vsel %vm2465_vm5, %v4879_v21, -inf }
 0x321   : > { %v4881_v23 = vpop.f32.mrb[16].mxu0  ;;  %v2454_v24 = vpop.f32.mrb[18].mxu1 }
 0x322   : > { %v3748_v11 = vpop.f32.mrb[17].mxu0  ;;  %v2478_v25 = vsel %vm2465_vm5, %v4881_v23, -inf  ;;  %v3767_v26 = vpop.f32.mrb[19].mxu1 }
 0x323   : > { %2482 = vmax.xlane.f32.xlu0 %v2481_v50  ;;  %2479 = vmax.xlane.f32.xlu1 %v2478_v25  ;;  %v2316_v27 = vpop.f32.mrb[18].mxu0 }
 0x324   : > { %v3749_v48 = vpop.f32.mrb[19].mxu0 }
 0x327   : > { %2488 = vmax.xlane.f32.xlu0 %v2487_v29 }
 0x329   : > { %v4889_v12 = vpop.f32.mrb[20].mxu0 }
 0x32a   : > { %v3760_v13 = vpop.f32.mrb[21].mxu0  ;;  %v2484_v14 = vsel %vm2465_vm5, %v4889_v12, -inf }
 0x32b   : > { %2485 = vmax.xlane.f32.xlu1 %v2484_v14  ;;  %v2408_v15 = vpop.f32.mrb[22].mxu0 }
 0x32c   : > { %v3761_v2 = vpop.f32.mrb[23].mxu0 }
 0x398   : > { %v2468_v28 = vpop.xlane.xlu0 %2467 }
 0x399   : > { %v4896_v3 = vmax.f32 %v4893_v30, %v2468_v28 }
 0x39b   : > { %v2498_v31 = vsub.f32 %v4893_v30, %v4896_v3  ;;  %3067 = vst.msk [vmem:[#allocation3] sm:$0xff] %vm745_vm4, %v4896_v3  ;;  %2524 = vperm.xlu1 %3919, %v4896_v3  }
 0x39f   : > { %1492 = vrot.lane.b32.xlu1 %v4567_v37, %s4206_s17 }
 0x3a0   : > { %v2471_v40 = vpop.xlane.xlu1 %2470 }
 0x3a1   : > { %v4908_v42 = vmax.f32 %v4903_v38, %v2471_v40 }
 0x3a3   : > { %v2499_v43 = vsub.f32 %v4903_v38, %v4908_v42  ;;  %3068 = vst.msk [vmem:[#allocation3 + $0x8] sm:$0xff] %vm745_vm4, %v4908_v42  ;;  %2529 = vperm.xlu0 %3920, %v4908_v42   ;;  %1494 = vrot.lane.b32.xlu1 %v4573_v41, %s4206_s17 }
 0x3a7   : > { %1496 = vrot.lane.b32.xlu0 %v4581_v44, %s4206_s17  ;;  %1504 = vrot.lane.b32.xlu1 %v4567_v37, %s4208_s16 }
 0x3a8   : > { %v2474_v45 = vpop.xlane.xlu0 %2473 }
 0x3a9   : > { %v4924_v46 = vmax.f32 %v4917_v35, %v2474_v45 }
 0x3ab   : > { %v2500_v52 = vsub.f32 %v4917_v35, %v4924_v46  ;;  %3069 = vst.msk [vmem:[#allocation3 + $0x10] sm:$0xff] %vm745_vm4, %v4924_v46  ;;  %1508 = vrot.lane.b32.xlu0 %v4581_v44, %s4208_s16  ;;  %1506 = vrot.lane.b32.xlu1 %v4573_v41, %s4208_s16 }
 0x3ac   : > { %v2477_v53 = vpop.xlane.xlu0 %2476 }
 0x3ad   : > { %v4937_v32 = vmax.f32 %v4926_v51, %v2477_v53 }
 0x3af   : > { %v2501_v60 = vsub.f32 %v4926_v51, %v4937_v32  ;;  %3070 = vst.msk [vmem:[#allocation3 + $0x18] sm:$0xff] %vm745_vm4, %v4937_v32  ;;  %1516 = vrot.lane.b32.xlu1 %v4567_v37, %s4207_s11 }
 0x3b0   : > { %v2483_v34 = vpop.xlane.xlu0 %2482  ;;  %v2480_v36 = vpop.xlane.xlu1 %2479 }
 0x3b1   : > { %v4950_v54 = vmax.f32 %v4939_v33, %v2483_v34  ;;  %v4953_v61 = vmax.f32 %v4941_v39, %v2480_v36 }
 0x3b3   : > { %v2503_v1 = vsub.f32 %v4939_v33, %v4950_v54  ;;  %3072 = vst.msk [vmem:[#allocation3 + $0x28] sm:$0xff] %vm745_vm4, %v4950_v54  ;;  %v2502_v5 = vsub.f32 %v4941_v39, %v4953_v61  ;;  %3071 = vst.msk [vmem:[#allocation3 + $0x20] sm:$0xff] %vm745_vm4, %v4953_v61  ;;  %2544 = vperm.xlu0 %3920, %v4953_v61   ;;  %1518 = vrot.lane.b32.xlu1 %v4573_v41, %s4207_s11  ;;  %v2587_v61 = vld [vmem:[#allocation4 + $0x8] sm:$0xff] }
 0x3b4   : > { %v2489_v6 = vpop.xlane.xlu0 %2488 }
 0x3b5   : > { %v4969_v56 = vmax.f32 %v4955_v62, %v2489_v6 }
 0x3b7   : > { %v2505_v8 = vsub.f32 %v4955_v62, %v4969_v56  ;;  %3074 = vst.msk [vmem:[#allocation3 + $0x38] sm:$0xff] %vm745_vm4, %v4969_v56  ;;  %1520 = vrot.lane.b32.xlu0 %v4581_v44, %s4207_s11  ;;  %2539 = vperm.xlu1 %3919, %v4937_v32  }
 0x3b8   : > { %v2486_v10 = vpop.xlane.xlu1 %2485 }
 0x3b9   : > { %v4981_v49 = vmax.f32 %v4971_v57, %v2486_v10  ;;  %v2520_v33 = vmul.f32 1.442695, %v2505_v8 }
 0x3bb   : > { %v2504_v16 = vsub.f32 %v4971_v57, %v4981_v49  ;;  %3073 = vst.msk [vmem:[#allocation3 + $0x30] sm:$0xff] %vm745_vm4, %v4981_v49  ;;  %2549 = vperm.xlu1 %3919, %v4950_v54   ;;  %2554 = vperm.xlu0 %3920, %v4981_v49  }
 0x3bd   : > { %v2518_v38 = vmul.f32 1.442695, %v2504_v16  ;;  %v2590_v16 = vld [vmem:[#allocation4 + $0x20] sm:$0xff] }
 0x3bf   : > { %2534 = vperm.xlu1 %3919, %v4924_v46  }
 0x3c3   : > { %1498 = vrot.lane.b32.xlu1 %v4585_v47, %s4206_s17 }
 0x3c7   : > { %1510 = vrot.lane.b32.xlu1 %v4585_v47, %s4208_s16 }
 0x3cb   : > { %1522 = vrot.lane.b32.xlu1 %v4585_v47, %s4207_s11 }
 0x3cf   : > { %2559 = vperm.xlu1 %3919, %v4969_v56   ;;  %v2508_v56 = vmul.f32 1.442695, %v2499_v43 }
 0x41a   : > { %v2525_v17 = vpop.permute.xlu1 %2524 }
 0x41b   : > { %v2562_v18 = vsub.f32 %v4861_v59, %v2525_v17 }
 0x41d   : > { %v2570_v19 = vmul.f32 1.442695, %v2562_v18 }
 0x41e   : > { %v1493_v20 = vpop.permute.xlu1 %1492 }
 0x41f   : > { %3935 = vpow2.f32 %v2570_v19 }
 0x422   : > { %v2530_v22 = vpop.permute.xlu0 %2529  ;;  %v1495_v24 = vpop.permute.xlu1 %1494 }
 0x423   : > { %v2563_v11 = vsub.f32 %v4867_v63, %v2530_v22 }
 0x425   : > { %v2572_v50 = vmul.f32 1.442695, %v2563_v11 }
 0x426   : > { %v4999_v25 = vpop.permute.xlu0 %1496  ;;  %v1505_v26 = vpop.permute.xlu1 %1504 }
 0x427   : > { %3937 = vpow2.f32 %v2572_v50  ;;  %v1528_v59 = vcombine.low %v4567_v37, %v1505_v26  ;;  %v1529_v14 = vcombine.high %v4567_v37, %v1505_v26 }
 0x429   : > { %v5001_v27 = vpop.eup %3935  ;;  %v1536_v45 = vrot.slane %v1528_v59, %v4614_v58  ;;  %v1543_v36 = vrot.slane %v1529_v14, %v4614_v58 }
 0x42a   : > { %v1507_v48 = vpop.permute.xlu1 %1506  ;;  %v2602_v29 = vsel %vm2465_vm5, %v5001_v27, 0.0  ;;  %v1509_v13 = vpop.permute.xlu0 %1508  ;;  %v2699_v37 = vpack.c.bf16 %v5001_v27, %v5001_v27 }
 0x42b   : > { %2603 = vadd.xlane.f32.xlu0 %v2602_v29  ;;  %v1664_v15 = vcombine.low %v4581_v44, %v1509_v13  ;;  %v1665_v63 = vcombine.high %v4581_v44, %v1509_v13  ;;  %v1596_v53 = vcombine.low %v4573_v41, %v1507_v48  ;;  %v1597_v18 = vcombine.high %v4573_v41, %v1507_v48 }
 0x42d   : > { %v5019_v44 = vrot.slane %v1664_v15, %v4614_v58  ;;  %v5022_v17 = vrot.slane %v1665_v63, %v4614_v58  ;;  %v1604_v13 = vrot.slane %v1596_v53, %v4614_v58 }
 0x42e   : > { %v1517_v2 = vpop.permute.xlu1 %1516 }
 0x42f   : > { %v1544_v28 = vcombine.low %v1493_v20, %v1517_v2  ;;  %v1545_v40 = vcombine.high %v1493_v20, %v1517_v2 }
 0x431   : > { %v5011_v34 = vpop.eup %3937  ;;  %v1552_v6 = vrot.slane %v1544_v28, %v4614_v58  ;;  %v1559_v10 = vrot.slane %v1545_v40, %v4614_v58  ;;  %v1611_v28 = vrot.slane %v1597_v18, %v4614_v58 }
 0x432   : > { %v2545_v19 = vpop.permute.xlu0 %2544  ;;  %v1519_v20 = vpop.permute.xlu1 %1518  ;;  %v2605_v22 = vsel %vm2465_vm5, %v5011_v34, 0.0 }
 0x433   : > { %v1560_v11 = vcombine.low %v1536_v45, %v1552_v6  ;;  %v1561_v50 = vcombine.high %v1536_v45, %v1552_v6  ;;  %v1576_v26 = vcombine.low %v1543_v36, %v1559_v10  ;;  %v1577_v29 = vcombine.high %v1543_v36, %v1559_v10  ;;  %2606 = vadd.xlane.f32.xlu1 %v2605_v22 }
 0x434   : > { %v2566_v59 = vsub.f32 %v4881_v23, %v2545_v19  ;;  %v1612_v14 = vcombine.low %v1495_v24, %v1519_v20  ;;  %v1613_v15 = vcombine.high %v1495_v24, %v1519_v20 }
 0x435   : > { %v1568_v63 = vrot.slane %v1560_v11, %v4621_v4  ;;  %v1575_v41 = vrot.slane %v1561_v50, %v4621_v4  ;;  %v1584_v48 = vrot.slane %v1576_v26, %v4621_v4  ;;  %v1591_v2 = vrot.slane %v1577_v29, %v4621_v4 }
 0x436   : > { %v2578_v40 = vmul.f32 1.442695, %v2566_v59  ;;  %v1620_v45 = vrot.slane %v1612_v14, %v4614_v58  ;;  %v1627_v36 = vrot.slane %v1613_v15, %v4614_v58  ;;  %v1521_v53 = vpop.permute.xlu0 %1520  ;;  %v2540_v6 = vpop.permute.xlu1 %2539 }
 0x437   : > { %v1800_v23 = vcombine.low %v1568_v63, %v1575_v41  ;;  %v3640_v10 = vcombine.high %v1568_v63, %v1575_v41  ;;  %v1816_v24 = vcombine.low %v1584_v48, %v1591_v2  ;;  %v3641_v19 = vcombine.high %v1584_v48, %v1591_v2 }
 0x438   : > { %3939 = vpow2.f32 %v2578_v40  ;;  %v1628_v20 = vcombine.low %v1604_v13, %v1620_v45  ;;  %v1629_v22 = vcombine.high %v1604_v13, %v1620_v45  ;;  %v1644_v11 = vcombine.low %v1611_v28, %v1627_v36 }
 0x439   : > { %v5037_v50 = vrot.slane %v1800_v23, %v4614_v58  ;;  %v5040_v18 = vrot.slane %v3640_v10, %v4614_v58  ;;  %v5043_v26 = vrot.slane %v1816_v24, %v4614_v58  ;;  %v5046_v29 = vrot.slane %v3641_v19, %v4614_v58 }
 0x43a   : > { %v1636_v59 = vrot.slane %v1628_v20, %v4621_v4  ;;  %v1643_v14 = vrot.slane %v1629_v22, %v4621_v4  ;;  %v1645_v15 = vcombine.high %v1611_v28, %v1627_v36  ;;  %v1652_v13 = vrot.slane %v1644_v11, %v4621_v4  ;;  %v2555_v63 = vpop.permute.xlu0 %2554  ;;  %v2550_v41 = vpop.permute.xlu1 %2549 }
 0x43b   : > { %v1680_v48 = vcombine.low %v4999_v25, %v1521_v53  ;;  %v1681_v2 = vcombine.high %v4999_v25, %v1521_v53  ;;  %v2565_v40 = vsub.f32 %v4865_v55, %v2540_v6  ;;  %v2568_v45 = vsub.f32 %v4889_v12, %v2555_v63 }
 0x43c   : > { %v1659_v23 = vrot.slane %v1645_v15, %v4621_v4  ;;  %v1868_v10 = vcombine.low %v1636_v59, %v1643_v14  ;;  %v3642_v24 = vcombine.high %v1636_v59, %v1643_v14  ;;  %v2567_v19 = vsub.f32 %v4871_v7, %v2550_v41 }
 0x43d   : > { %v1688_v28 = vrot.slane %v1680_v48, %v4614_v58  ;;  %v1695_v36 = vrot.slane %v1681_v2, %v4614_v58  ;;  %v2576_v20 = vmul.f32 1.442695, %v2565_v40  ;;  %v2582_v22 = vmul.f32 1.442695, %v2568_v45 }
 0x43e   : > { %v5060_v11 = vrot.slane %v1868_v10, %v4614_v58  ;;  %v5063_v25 = vrot.slane %v3642_v24, %v4614_v58  ;;  %v1884_v55 = vcombine.low %v1652_v13, %v1659_v23  ;;  %v3643_v12 = vcombine.high %v1652_v13, %v1659_v23  ;;  %v2535_v53 = vpop.permute.xlu1 %2534 }
 0x43f   : > { %v1696_v6 = vcombine.low %v5019_v44, %v1688_v28  ;;  %v1697_v59 = vcombine.high %v5019_v44, %v1688_v28  ;;  %v1712_v7 = vcombine.low %v5022_v17, %v1695_v36  ;;  %v1713_v14 = vcombine.high %v5022_v17, %v1695_v36 }
 0x440   : > { %v1891_v15 = vrot.slane %v1884_v55, %v4614_v58  ;;  %v1899_v63 = vrot.slane %v3643_v12, %v4614_v58  ;;  %3941 = vpow2.f32 %v2576_v20  ;;  %v2580_v41 = vmul.f32 1.442695, %v2567_v19 }
 0x441   : > { %v1704_v48 = vrot.slane %v1696_v6, %v4621_v4  ;;  %v1711_v2 = vrot.slane %v1697_v59, %v4621_v4  ;;  %v1720_v13 = vrot.slane %v1712_v7, %v4621_v4  ;;  %v1727_v40 = vrot.slane %v1713_v14, %v4621_v4 }
 0x442   : > { %v5075_v45 = vpop.eup %3939  ;;  %3943 = vpow2.f32 %v2582_v22  ;;  %v2564_v44 = vsub.f32 %v4873_v9, %v2535_v53  ;;  %v1499_v17 = vpop.permute.xlu1 %1498  ;;  %v1832_v23 = vcombine.low %v5037_v50, %v5040_v18  ;;  %v1848_v10 = vcombine.low %v5043_v26, %v5046_v29 }
 0x443   : > { %v1936_v24 = vcombine.low %v1704_v48, %v1711_v2  ;;  %v3644_v19 = vcombine.high %v1704_v48, %v1711_v2  ;;  %v1952_v28 = vcombine.low %v1720_v13, %v1727_v40  ;;  %v3645_v36 = vcombine.high %v1720_v13, %v1727_v40 }
 0x444   : > { %3945 = vpow2.f32 %v2580_v41  ;;  %v2574_v20 = vmul.f32 1.442695, %v2564_v44  ;;  %v2614_v55 = vsel %vm2465_vm5, %v5075_v45, 0.0  ;;  %v1840_v22 = vrot.slane %v1832_v23, %v4621_v4 }
 0x445   : > { %v5086_v9 = vrot.slane %v1936_v24, %v4614_v58  ;;  %v5089_v12 = vrot.slane %v3644_v19, %v4614_v58  ;;  %v5092_v53 = vrot.slane %v1952_v28, %v4614_v58  ;;  %2615 = vadd.xlane.f32.xlu1 %v2614_v55  ;;  %v2700_v6 = vpack.c.bf16 %v5011_v34, %v5011_v34 }
 0x446   : > { %3947 = vpow2.f32 %v2574_v20  ;;  %v1511_v59 = vpop.permute.xlu1 %1510  ;;  %v1856_v7 = vrot.slane %v1848_v10, %v4621_v4  ;;  %v1900_v14 = vcombine.low %v5060_v11, %v5063_v25  ;;  %v1916_v41 = vcombine.low %v1891_v15, %v1899_v63 }
 0x447   : > { %v1732_v48 = vcombine.low %v4585_v47, %v1511_v59  ;;  %v1733_v2 = vcombine.high %v4585_v47, %v1511_v59  ;;  %v1833_v13 = vcombine.high %v5037_v50, %v5040_v18  ;;  %v1849_v40 = vcombine.high %v5043_v26, %v5046_v29 }
 0x448   : > { %v5106_v34 = vrot.slane %v3645_v36, %v4614_v58  ;;  %v1864_v44 = vcombine.low %v1840_v22, %v1856_v7  ;;  %v1908_v23 = vrot.slane %v1900_v14, %v4621_v4  ;;  %v1924_v10 = vrot.slane %v1916_v41, %v4621_v4 }
 0x449   : > { %v1740_v24 = vrot.slane %v1732_v48, %v4614_v58  ;;  %v1865_v19 = vcombine.high %v1840_v22, %v1856_v7  ;;  %v1847_v28 = vrot.slane %v1833_v13, %v4621_v4  ;;  %v1863_v47 = vrot.slane %v1849_v40, %v4621_v4 }
 0x44a   : > { %v5113_v20 = vpop.eup %3941  ;;  %v1932_v50 = vcombine.low %v1908_v23, %v1924_v10  ;;  %v1933_v18 = vcombine.high %v1908_v23, %v1924_v10  ;;  %v1523_v26 = vpop.permute.xlu1 %1522  ;;  %v1901_v29 = vcombine.high %v5060_v11, %v5063_v25  ;;  %v1917_v36 = vcombine.high %v1891_v15, %v1899_v63 }
 0x44b   : > { %v1747_v55 = vrot.slane %v1733_v2, %v4614_v58  ;;  %v2611_v59 = vsel %vm2465_vm5, %v5113_v20, 0.0  ;;  %v1748_v14 = vcombine.low %v1499_v17, %v1523_v26  ;;  %v1749_v22 = vcombine.high %v1499_v17, %v1523_v26 }
 0x44c   : > { %v5120_v7 = vpop.eup %3943  ;;  %v2072_v41 = vpack.c.bf16 %v1932_v50, %v1864_v44  ;;  %v2073_v48 = vpack.c.bf16 %v1933_v18, %v1865_v19  ;;  %2612 = vadd.xlane.f32.xlu0 %v2611_v59  ;;  %v1915_v13 = vrot.slane %v1901_v29, %v4621_v4  ;;  %v1931_v40 = vrot.slane %v1917_v36, %v4621_v4 }
 0x44d   : > { %v1756_v23 = vrot.slane %v1748_v14, %v4614_v58  ;;  %v1763_v11 = vrot.slane %v1749_v22, %v4614_v58  ;;  %v2620_v25 = vsel %vm2465_vm5, %v5120_v7, 0.0  ;;  %v1866_v15 = vcombine.low %v1847_v28, %v1863_v47 }
 0x44e   : > { %v5128_v63 = vpop.eup %3945  ;;  %v2506_v17 = vmul.f32 1.442695, %v2498_v31  ;;  %3769 = vmatpush3.bf16.msra.mxu0 %v2072_v41  ;;  %3775 = vmatpush3.bf16.msra.mxu1 %v2073_v48  ;;  %v1934_v2 = vcombine.low %v1915_v13, %v1931_v40  ;;  %v1867_v44 = vcombine.high %v1847_v28, %v1863_v47  ;;  %v1935_v10 = vcombine.high %v1915_v13, %v1931_v40  ;;  %v2560_v29 = vpop.permute.xlu1 %2559 }
 0x44f   : > { %3780 = vmatprep.subr.bf16.mxu0 %v4203_v0  ;;  %3786 = vmatprep.subr.bf16.mxu1 %v4203_v0  ;;  %v1764_v19 = vcombine.low %v1740_v24, %v1756_v23  ;;  %v1765_v50 = vcombine.high %v1740_v24, %v1756_v23  ;;  %v1780_v18 = vcombine.low %v1747_v55, %v1763_v11  ;;  %v2617_v26 = vsel %vm2465_vm5, %v5128_v63, 0.0 }
 0x450   : > { %v3948_v36 = vpop.eup %3947  ;;  %v1781_v59 = vcombine.high %v1747_v55, %v1763_v11  ;;  %2621 = vadd.xlane.f32.xlu1 %v2620_v25  ;;  %v2074_v30 = vpack.c.bf16 %v1934_v2, %v1866_v15  ;;  %v2075_v3 = vpack.c.bf16 %v1935_v10, %v1867_v44  ;;  %2618 = vadd.xlane.f32.xlu0 %v2617_v26  ;;  %3949 = vpow2.f32 %v2506_v17 }
 0x451   : > { %3771 = vmatmul.mubr.msk.bf16.vlgmr.msra.gmra.mrb[24].mxu0 %vm2465_vm5, %v2699_v37  ;;  %3777 = vmatmul.mubr.msk.bf16.vlgmr.msra.gmra.mrb[20].mxu1 %vm2465_vm5, %v2700_v6  ;;  %v1772_v31 = vrot.slane %v1764_v19, %v4621_v4  ;;  %v1779_v24 = vrot.slane %v1765_v50, %v4621_v4  ;;  %v1788_v28 = vrot.slane %v1780_v18, %v4621_v4  ;;  %v2608_v47 = vsel %vm2465_vm5, %v3948_v36, 0.0 }
 0x452   : > { %v1795_v55 = vrot.slane %v1781_v59, %v4621_v4  ;;  %3781 = vmatpush3.bf16.msra.mxu0 %v2074_v30  ;;  %3787 = vmatpush3.bf16.msra.mxu1 %v2075_v3  ;;  %v2569_v14 = vsub.f32 %v4879_v21, %v2560_v29  ;;  %v1968_v37 = vcombine.low %v5086_v9, %v5089_v12  ;;  %v2510_v13 = vmul.f32 1.442695, %v2500_v52 }
 0x453   : > { %v2004_v27 = vcombine.low %v1772_v31, %v1779_v24  ;;  %v3646_v22 = vcombine.high %v1772_v31, %v1779_v24  ;;  %3782 = vmatprep.mubr.msk.bf16.mxu0 %vm4204_vm1, %v4203_v0  ;;  %3788 = vmatprep.mubr.msk.bf16.mxu1 %vm4204_vm1, %v4203_v0  ;;  %v1984_v21 = vcombine.low %v5092_v53, %v5106_v34  ;;  %v2512_v19 = vmul.f32 1.442695, %v2501_v60 }
 0x454   : > { %v2020_v6 = vcombine.low %v1788_v28, %v1795_v55  ;;  %v3647_v41 = vcombine.high %v1788_v28, %v1795_v55  ;;  %v2584_v48 = vmul.f32 1.442695, %v2569_v14  ;;  %2609 = vadd.xlane.f32.xlu0 %v2608_v47  ;;  %3792 = vmatprep.subr.bf16.mxu0 %v4203_v0  ;;  %v2702_v11 = vpack.c.bf16 %v5113_v20, %v5113_v20 }
 0x455   : > { %v2011_v40 = vrot.slane %v2004_v27, %v4614_v58  ;;  %v2019_v23 = vrot.slane %v3646_v22, %v4614_v58  ;;  %3798 = vmatprep.subr.bf16.mxu1 %v4203_v0  ;;  %v2701_v17 = vpack.c.bf16 %v3948_v36, %v3948_v36  ;;  %v1976_v2 = vrot.slane %v1968_v37, %v4621_v4 }
 0x456   : > { %v2027_v25 = vrot.slane %v2020_v6, %v4614_v58  ;;  %v2035_v15 = vrot.slane %v3647_v41, %v4614_v58  ;;  %3951 = vpow2.f32 %v2584_v48  ;;  %v1992_v35 = vrot.slane %v1984_v21, %v4621_v4  ;;  %v2586_v41 = vld [vmem:[#allocation4] sm:$0xff] }
 0x457   : > { %v2036_v46 = vcombine.low %v2011_v40, %v2019_v23  ;;  %v1969_v52 = vcombine.high %v5086_v9, %v5089_v12  ;;  %v1985_v20 = vcombine.high %v5092_v53, %v5106_v34  ;;  %v2037_v10 = vcombine.high %v2011_v40, %v2019_v23 }
 0x458   : > { %v2052_v44 = vcombine.low %v2027_v25, %v2035_v15  ;;  %3953 = vpow2.f32 %v2510_v13  ;;  %v2053_v12 = vcombine.high %v2027_v25, %v2035_v15  ;;  %v2000_v51 = vcombine.low %v1976_v2, %v1992_v35  ;;  %v2589_v15 = vld [vmem:[#allocation4 + $0x18] sm:$0xff] }
 0x459   : > { %3783 = vmatmul.mubr.msk.bf16.vlgmr.msra.gmra.mrb[28].mxu0 %vm2465_vm5, %v2701_v17  ;;  %3789 = vmatmul.mubr.msk.bf16.vlgmr.msra.gmra.mrb[24].mxu1 %vm2465_vm5, %v2702_v11  ;;  %v2044_v50 = vrot.slane %v2036_v46, %v4621_v4  ;;  %v2051_v9 = vrot.slane %v2037_v10, %v4621_v4  ;;  %v2001_v32 = vcombine.high %v1976_v2, %v1992_v35  ;;  %3955 = vpow2.f32 %v2512_v19  ;;  %v2591_v35 = vld [vmem:[#allocation4 + $0x28] sm:$0xff]  ;;  %v2592_v46 = vld [vmem:[#allocation4 + $0x30] sm:$0xff] }
 0x45a   : > { %v2060_v18 = vrot.slane %v2052_v44, %v4621_v4  ;;  %3794 = vmatprep.mubr.msk.bf16.mxu0 %vm4204_vm1, %v4203_v0  ;;  %3800 = vmatprep.mubr.msk.bf16.mxu1 %vm4204_vm1, %v4203_v0  ;;  %v1983_v60 = vrot.slane %v1969_v52, %v4621_v4  ;;  %v1999_v26 = vrot.slane %v1985_v20, %v4621_v4  ;;  %v3950_v36 = vpop.eup %3949  ;;  %v2516_v59 = vmul.f32 1.442695, %v2503_v1 }
 0x45b   : > { %v2067_v29 = vrot.slane %v2053_v12, %v4621_v4  ;;  %v2703_v27 = vpack.c.bf16 %v5075_v45, %v5075_v45  ;;  %v2704_v22 = vpack.c.bf16 %v5128_v63, %v5128_v63  ;;  %v2705_v8 = vpack.c.bf16 %v5120_v7, %v5120_v7 }
 0x45c   : > { %v2068_v53 = vcombine.low %v2044_v50, %v2060_v18  ;;  %v2069_v34 = vcombine.high %v2044_v50, %v2060_v18  ;;  %v2002_v47 = vcombine.low %v1983_v60, %v1999_v26  ;;  %v2003_v55 = vcombine.high %v1983_v60, %v1999_v26  ;;  %v2588_v50 = vld [vmem:[#allocation4 + $0x10] sm:$0xff]  ;;  %v2593_v26 = vld [vmem:[#allocation4 + $0x38] sm:$0xff] }
 0x45d   : > { %v2070_v31 = vcombine.low %v2051_v9, %v2067_v29  ;;  %v2071_v24 = vcombine.high %v2051_v9, %v2067_v29  ;;  %3957 = vpow2.f32 %v2516_v59  ;;  %v2594_v48 = vmul.f32 %v3950_v36, %v2586_v41 }
 0x45e   : > { %v2076_v30 = vpack.c.bf16 %v2068_v53, %v2000_v51  ;;  %v2077_v3 = vpack.c.bf16 %v2069_v34, %v2001_v32  ;;  %3959 = vpow2.f32 %v2520_v33 }
 0x45f   : > { %v2078_v54 = vpack.c.bf16 %v2070_v31, %v2002_v47  ;;  %v2079_v1 = vpack.c.bf16 %v2071_v24, %v2003_v55  ;;  %3961 = vpow2.f32 %v2508_v56 }
 0x460   : > { %v3952_v28 = vpop.eup %3951  ;;  %3793 = vmatpush3.bf16.msra.mxu0 %v2076_v30  ;;  %3799 = vmatpush3.bf16.msra.mxu1 %v2077_v3 }
 0x461   : > { %2653 = vperm.xlu1 %3919, %v3950_v36   ;;  %v2623_v14 = vsel %vm2465_vm5, %v3952_v28, 0.0  ;;  %3804 = vmatprep.subr.bf16.mxu0 %v4203_v0  ;;  %v2706_v63 = vpack.c.bf16 %v3952_v28, %v3952_v28 }
 0x462   : > { %2624 = vadd.xlane.f32.xlu0 %v2623_v14  ;;  %3810 = vmatprep.subr.bf16.mxu1 %v4203_v0  ;;  %v5203_v45 = vpop.eup %3953 }
 0x463   : > { %3795 = vmatmul.mubr.msk.bf16.vlgmr.msra.gmra.mrb[32].mxu0 %vm2465_vm5, %v2703_v27  ;;  %3801 = vmatmul.mubr.msk.bf16.vlgmr.msra.gmra.mrb[28].mxu1 %vm2465_vm5, %v2704_v22  ;;  %v3956_v62 = vpop.eup %3955  ;;  %v2596_v12 = vmul.f32 %v5203_v45, %v2588_v50 }
 0x464   : > { %3805 = vmatpush3.bf16.msra.mxu0 %v2078_v54  ;;  %3811 = vmatpush3.bf16.msra.mxu1 %v2079_v1  ;;  %v2597_v17 = vmul.f32 %v3956_v62, %v2589_v15  ;;  %v2643_v1 = vld [vmem:[#allocation5] sm:$0xff] }
 0x465   : > { %2663 = vperm.xlu1 %3919, %v5203_v45   ;;  %3806 = vmatprep.mubr.msk.bf16.mxu0 %vm4204_vm1, %v4203_v0  ;;  %v2644_v45 = vld [vmem:[#allocation5 + $0x8] sm:$0xff] }
 0x466   : > { %3812 = vmatprep.mubr.msk.bf16.mxu1 %vm4204_vm1, %v4203_v0  ;;  %v2514_v0 = vmul.f32 1.442695, %v2502_v5 }
 0x467   : > { %v3958_v37 = vpop.eup %3957 }
 0x468   : > { %v3960_v6 = vpop.eup %3959  ;;  %3963 = vpow2.f32 %v2514_v0  ;;  %v2599_v44 = vmul.f32 %v3958_v37, %v2591_v35 }
 0x469   : > { %2668 = vperm.xlu1 %3919, %v3956_v62   ;;  %3965 = vpow2.f32 %v2518_v38  ;;  %v3962_v42 = vpop.eup %3961  ;;  %v2601_v30 = vmul.f32 %v3960_v6, %v2593_v26 }
 0x46a   : > { %v2595_v5 = vmul.f32 %v3962_v42, %v2587_v61  ;;  %v2646_v61 = vld [vmem:[#allocation5 + $0x18] sm:$0xff] }
 0x46b   : > { %3807 = vmatmul.mubr.msk.bf16.vlgmr.msra.gmra.mrb[36].mxu0 %vm2465_vm5, %v2705_v8  ;;  %3813 = vmatmul.mubr.msk.bf16.vlgmr.msra.gmra.mrb[32].mxu1 %vm2465_vm5, %v2706_v63 }
 0x46d   : > { %2678 = vperm.xlu1 %3919, %v3958_v37  }
 0x471   : > { %2688 = vperm.xlu1 %3919, %v3960_v6  }
 0x472   : > { %v3964_v43 = vpop.eup %3963 }
 0x473   : > { %v3966_v7 = vpop.eup %3965  ;;  %v2598_v23 = vmul.f32 %v3964_v43, %v2590_v16 }
 0x474   : > { %v2600_v20 = vmul.f32 %v3966_v7, %v2592_v46  ;;  %v2648_v46 = vld [vmem:[#allocation5 + $0x28] sm:$0xff] }
 0x478   : > { %2658 = vperm.xlu0 %3920, %v3962_v42  }
 0x47c   : > { %2673 = vperm.xlu0 %3920, %v3964_v43  }
 0x480   : > { %2683 = vperm.xlu0 %3920, %v3966_v7  }
 0x4b8   : > { %v2604_v21 = vpop.xlane.xlu0 %2603 }
 0x4b9   : > { %v2626_v39 = vadd.f32 %v2604_v21, %v2594_v48 }
 0x4bb   : > { %2635 = vst.msk [vmem:[#allocation4] sm:$0xff] %vm745_vm4, %v2626_v39  ;;  %v2645_v39 = vld [vmem:[#allocation5 + $0x10] sm:$0xff] }
 0x4c0   : > { %v2607_v13 = vpop.xlane.xlu1 %2606 }
 0x4c1   : > { %v2627_v40 = vadd.f32 %v2607_v13, %v2595_v5 }
 0x4c2   : > { %v3086_v57 = vld [vmem:[#allocation4] sm:$0xff] }
 0x4c3   : > { %2636 = vst.msk [vmem:[#allocation4 + $0x8] sm:$0xff] %vm745_vm4, %v2627_v40  ;;  %3967 = vrcp.f32 %v3086_v57 }
 0x4ca   : > { %v3087_v53 = vld [vmem:[#allocation4 + $0x8] sm:$0xff] }
 0x4cd   : > { %v3968_v49 = vpop.eup %3967 }
 0x4ce   : > { %3104 = vperm.xlu0 %3920, %v3968_v49  }
 0x4d2   : > { %v2616_v11 = vpop.xlane.xlu1 %2615 }
 0x4d3   : > { %v2630_v25 = vadd.f32 %v2616_v11, %v2598_v23 }
 0x4d5   : > { %2639 = vst.msk [vmem:[#allocation4 + $0x20] sm:$0xff] %vm745_vm4, %v2630_v25 }
 0x4d9   : > { %v2613_v2 = vpop.xlane.xlu0 %2612 }
 0x4da   : > { %v2629_v52 = vadd.f32 %v2613_v2, %v2597_v17 }
 0x4dc   : > { %2638 = vst.msk [vmem:[#allocation4 + $0x18] sm:$0xff] %vm745_vm4, %v2629_v52  ;;  %v3090_v36 = vld [vmem:[#allocation4 + $0x20] sm:$0xff] }
 0x4dd   : > { %v2619_v10 = vpop.xlane.xlu0 %2618  ;;  %v2622_v19 = vpop.xlane.xlu1 %2621 }
 0x4de   : > { %v2631_v18 = vadd.f32 %v2619_v10, %v2599_v44  ;;  %v2632_v9 = vadd.f32 %v2622_v19, %v2600_v20  ;;  %v2647_v44 = vld [vmem:[#allocation5 + $0x20] sm:$0xff] }
 0x4e0   : > { %2640 = vst.msk [vmem:[#allocation4 + $0x28] sm:$0xff] %vm745_vm4, %v2631_v18  ;;  %2641 = vst.msk [vmem:[#allocation4 + $0x30] sm:$0xff] %vm745_vm4, %v2632_v9 }
 0x4e1   : > { %v2610_v51 = vpop.xlane.xlu0 %2609  ;;  %v2654_v54 = vpop.permute.xlu1 %2653 }
 0x4e2   : > { %v2628_v32 = vadd.f32 %v2610_v51, %v2596_v12  ;;  %v2691_v8 = vmul.f32 %v2654_v54, %v2643_v1 }
 0x4e3   : > { %v3089_v60 = vld [vmem:[#allocation4 + $0x18] sm:$0xff] }
 0x4e4   : > { %2637 = vst.msk [vmem:[#allocation4 + $0x10] sm:$0xff] %vm745_vm4, %v2628_v32  ;;  %3969 = vrcp.f32 %v3089_v60 }
 0x4e5   : > { %3971 = vrcp.f32 %v3087_v53  ;;  %v2664_v56 = vpop.permute.xlu1 %2663 }
 0x4e6   : > { %v2693_v13 = vmul.f32 %v2664_v56, %v2645_v39 }
 0x4e7   : > { %v3091_v34 = vld [vmem:[#allocation4 + $0x28] sm:$0xff]  ;;  %v3092_v24 = vld [vmem:[#allocation4 + $0x30] sm:$0xff] }
 0x4e8   : > { %3973 = vrcp.f32 %v3091_v34 }
 0x4e9   : > { %v2669_v5 = vpop.permute.xlu1 %2668 }
 0x4ea   : > { %v2694_v40 = vmul.f32 %v2669_v5, %v2646_v61 }
 0x4eb   : > { %v3088_v29 = vld [vmem:[#allocation4 + $0x10] sm:$0xff] }
 0x4ec   : > { %3975 = vrcp.f32 %v3088_v29  ;;  %v2650_v29 = vld [vmem:[#allocation5 + $0x38] sm:$0xff] }
 0x4ed   : > { %3977 = vrcp.f32 %v3090_v36  ;;  %v2679_v52 = vpop.permute.xlu1 %2678 }
 0x4ee   : > { %v3970_v59 = vpop.eup %3969  ;;  %3979 = vrcp.f32 %v3092_v24  ;;  %v2696_v10 = vmul.f32 %v2679_v52, %v2648_v46 }
 0x4ef   : > { %3119 = vperm.xlu1 %3919, %v3970_v59   ;;  %v2625_v3 = vpop.xlane.xlu0 %2624  ;;  %v3972_v28 = vpop.eup %3971  ;;  %v2649_v59 = vld [vmem:[#allocation5 + $0x30] sm:$0xff] }
 0x4f0   : > { %v2633_v31 = vadd.f32 %v2625_v3, %v2601_v30 }
 0x4f1   : > { %v2689_v36 = vpop.permute.xlu1 %2688 }
 0x4f2   : > { %2642 = vst.msk [vmem:[#allocation4 + $0x38] sm:$0xff] %vm745_vm4, %v2633_v31  ;;  %v3974_v47 = vpop.eup %3973  ;;  %v2698_v3 = vmul.f32 %v2689_v36, %v2650_v29 }
 0x4f3   : > { %3109 = vperm.xlu1 %3919, %v3972_v28  }
 0x4f6   : > { %v3976_v55 = vpop.eup %3975 }
 0x4f7   : > { %3114 = vperm.xlu0 %3920, %v3976_v55   ;;  %3129 = vperm.xlu1 %3919, %v3974_v47   ;;  %v3978_v27 = vpop.eup %3977  ;;  %v2659_v62 = vpop.permute.xlu0 %2658 }
 0x4f8   : > { %v3980_v22 = vpop.eup %3979  ;;  %v2692_v63 = vmul.f32 %v2659_v62, %v2644_v45 }
 0x4f9   : > { %v3093_v14 = vld [vmem:[#allocation4 + $0x38] sm:$0xff] }
 0x4fa   : > { %3981 = vrcp.f32 %v3093_v14 }
 0x4fb   : > { %3124 = vperm.xlu0 %3920, %v3978_v27   ;;  %v2674_v20 = vpop.permute.xlu0 %2673 }
 0x4fc   : > { %v2695_v19 = vmul.f32 %v2674_v20, %v2647_v44 }
 0x4ff   : > { %3134 = vperm.xlu0 %3920, %v3980_v22   ;;  %v2684_v30 = vpop.permute.xlu0 %2683 }
 0x500   : > { %v2697_v31 = vmul.f32 %v2684_v30, %v2649_v59 }
 0x504   : > { %v3982_v33 = vpop.eup %3981 }
 0x505   : > { %3139 = vperm.xlu1 %3919, %v3982_v33  }
 0x524   : > { %v2744_v37 = vpop.f32.mrb[24].mxu0  ;;  %v2787_v0 = vpop.f32.mrb[20].mxu1 }
 0x525   : > { %v3051_v6 = vadd.f32 %v2744_v37, %v2691_v8  ;;  %v3052_v38 = vadd.f32 %v2787_v0, %v2692_v63  ;;  %v3772_v42 = vpop.f32.mrb[25].mxu0  ;;  %v3778_v43 = vpop.f32.mrb[21].mxu1 }
 0x526   : > { %v2747_v7 = vpop.f32.mrb[26].mxu0  ;;  %v2790_v41 = vpop.f32.mrb[22].mxu1 }
 0x527   : > { %3059 = vst.msk [vmem:[#allocation5] sm:$0xff] %vm391_vm0, %v3051_v6  ;;  %3060 = vst.msk [vmem:[#allocation5 + $0x8] sm:$0xff] %vm391_vm0, %v3052_v38  ;;  %v3773_v48 = vpop.f32.mrb[27].mxu0  ;;  %v3779_v21 = vpop.f32.mrb[23].mxu1 }
 0x52c   : > { %v2830_v57 = vpop.f32.mrb[28].mxu0  ;;  %v2873_v49 = vpop.f32.mrb[24].mxu1 }
 0x52d   : > { %v3053_v16 = vadd.f32 %v2830_v57, %v2693_v13  ;;  %v3054_v23 = vadd.f32 %v2873_v49, %v2694_v40  ;;  %v3784_v11 = vpop.f32.mrb[29].mxu0  ;;  %v3790_v25 = vpop.f32.mrb[25].mxu1 }
 0x52e   : > { %v2833_v15 = vpop.f32.mrb[30].mxu0  ;;  %v2876_v17 = vpop.f32.mrb[26].mxu1  ;;  %v3079_v56 = vld [vmem:[#allocation5 + $0x8] sm:$0xff]  ;;  %v3078_v6 = vld [vmem:[#allocation5] sm:$0xff] }
 0x52f   : > { %3061 = vst.msk [vmem:[#allocation5 + $0x10] sm:$0xff] %vm391_vm0, %v3053_v16  ;;  %3062 = vst.msk [vmem:[#allocation5 + $0x18] sm:$0xff] %vm391_vm0, %v3054_v23  ;;  %v3785_v2 = vpop.f32.mrb[31].mxu0  ;;  %v3791_v35 = vpop.f32.mrb[27].mxu1 }
 0x536   : > { %v2916_v50 = vpop.f32.mrb[32].mxu0  ;;  %v2959_v18 = vpop.f32.mrb[28].mxu1  ;;  %v3081_v37 = vld [vmem:[#allocation5 + $0x18] sm:$0xff]  ;;  %v3080_v42 = vld [vmem:[#allocation5 + $0x10] sm:$0xff] }
 0x537   : > { %v3055_v9 = vadd.f32 %v2916_v50, %v2695_v19  ;;  %v3056_v12 = vadd.f32 %v2959_v18, %v2696_v10  ;;  %v3796_v51 = vpop.f32.mrb[33].mxu0  ;;  %v3802_v32 = vpop.f32.mrb[29].mxu1 }
 0x538   : > { %v2919_v60 = vpop.f32.mrb[34].mxu0  ;;  %v2962_v53 = vpop.f32.mrb[30].mxu1 }
 0x539   : > { %3063 = vst.msk [vmem:[#allocation5 + $0x20] sm:$0xff] %vm391_vm0, %v3055_v9  ;;  %3064 = vst.msk [vmem:[#allocation5 + $0x28] sm:$0xff] %vm391_vm0, %v3056_v12  ;;  %v3797_v34 = vpop.f32.mrb[35].mxu0  ;;  %v3803_v26 = vpop.f32.mrb[31].mxu1 }
 0x53e   : > { %v3002_v24 = vpop.f32.mrb[36].mxu0  ;;  %v3045_v28 = vpop.f32.mrb[32].mxu1 }
 0x53f   : > { %v3057_v47 = vadd.f32 %v3002_v24, %v2697_v31  ;;  %v3058_v55 = vadd.f32 %v3045_v28, %v2698_v3  ;;  %v3808_v14 = vpop.f32.mrb[37].mxu0  ;;  %v3814_v27 = vpop.f32.mrb[33].mxu1 }
 0x540   : > { %v3005_v22 = vpop.f32.mrb[38].mxu0  ;;  %v3048_v33 = vpop.f32.mrb[34].mxu1  ;;  %v3082_v18 = vld [vmem:[#allocation5 + $0x20] sm:$0xff]  ;;  %v3083_v12 = vld [vmem:[#allocation5 + $0x28] sm:$0xff] }
 0x541   : > { %3065 = vst.msk [vmem:[#allocation5 + $0x30] sm:$0xff] %vm391_vm0, %v3057_v47  ;;  %3066 = vst.msk [vmem:[#allocation5 + $0x38] sm:$0xff] %vm391_vm0, %v3058_v55  ;;  %v3809_v54 = vpop.f32.mrb[39].mxu0  ;;  %v3815_v1 = vpop.f32.mrb[35].mxu1 }
 0x548   : > { %v3084_v46 = vld [vmem:[#allocation5 + $0x30] sm:$0xff]  ;;  %v3085_v36 = vld [vmem:[#allocation5 + $0x38] sm:$0xff] }
 0x54d   : > { %v3105_v62 = vpop.permute.xlu0 %3104 }
 0x54e   : > { %v3142_v43 = vmul.f32 %v3105_v62, %v3078_v6 }
 0x56e   : > { %v3120_v45 = vpop.permute.xlu1 %3119 }
 0x56f   : > { %v3145_v0 = vmul.f32 %v3120_v45, %v3081_v37 }
 0x572   : > { %v3110_v8 = vpop.permute.xlu1 %3109 }
 0x573   : > { %v3143_v63 = vmul.f32 %v3110_v8, %v3079_v56 }
 0x575   : > { %v3166_v7 = vcombine.low %v3143_v63, %v3145_v0  ;;  %v3167_v41 = vcombine.high %v3143_v63, %v3145_v0 }
 0x576   : > { %v3115_v38 = vpop.permute.xlu0 %3114  ;;  %v3130_v52 = vpop.permute.xlu1 %3129 }
 0x577   : > { %v3144_v48 = vmul.f32 %v3115_v38, %v3080_v42  ;;  %v3174_v5 = vrot.slane %v3166_v7, %v4614_v58  ;;  %v3181_v13 = vrot.slane %v3167_v41, %v4614_v58  ;;  %v3147_v34 = vmul.f32 %v3130_v52, %v3083_v12 }
 0x579   : > { %v3150_v21 = vcombine.low %v3142_v43, %v3144_v48  ;;  %v3151_v39 = vcombine.high %v3142_v43, %v3144_v48 }
 0x57a   : > { %v3125_v61 = vpop.permute.xlu0 %3124 }
 0x57b   : > { %v3158_v40 = vrot.slane %v3150_v21, %v4614_v58  ;;  %v3165_v57 = vrot.slane %v3151_v39, %v4614_v58  ;;  %v3146_v9 = vmul.f32 %v3125_v61, %v3082_v18 }
 0x57d   : > { %v3182_v49 = vcombine.low %v3158_v40, %v3174_v5  ;;  %v3183_v16 = vcombine.high %v3158_v40, %v3174_v5  ;;  %v3198_v23 = vcombine.low %v3165_v57, %v3181_v13  ;;  %v3199_v11 = vcombine.high %v3165_v57, %v3181_v13 }
 0x57e   : > { %v3135_v25 = vpop.permute.xlu0 %3134 }
 0x57f   : > { %v3190_v15 = vrot.slane %v3182_v49, %v4621_v4  ;;  %v3197_v17 = vrot.slane %v3183_v16, %v4621_v4  ;;  %v3206_v2 = vrot.slane %v3198_v23, %v4621_v4  ;;  %v3213_v35 = vrot.slane %v3199_v11, %v4621_v4 }
 0x580   : > { %v3148_v44 = vmul.f32 %v3135_v25, %v3084_v46 }
 0x581   : > { %v3286_v20 = vcombine.low %v3190_v15, %v3197_v17  ;;  %v3664_v10 = vcombine.high %v3190_v15, %v3197_v17  ;;  %v3302_v19 = vcombine.low %v3206_v2, %v3213_v35  ;;  %v3665_v50 = vcombine.high %v3206_v2, %v3213_v35 }
 0x582   : > { %v3218_v26 = vcombine.low %v3146_v9, %v3148_v44  ;;  %v3219_v29 = vcombine.high %v3146_v9, %v3148_v44 }
 0x583   : > { %v3293_v51 = vrot.slane %v3286_v20, %v4614_v58  ;;  %v3301_v32 = vrot.slane %v3664_v10, %v4614_v58  ;;  %v3309_v60 = vrot.slane %v3302_v19, %v4614_v58  ;;  %v3317_v53 = vrot.slane %v3665_v50, %v4614_v58 }
 0x584   : > { %v3140_v59 = vpop.permute.xlu1 %3139  ;;  %v3226_v22 = vrot.slane %v3218_v26, %v4614_v58  ;;  %v3233_v33 = vrot.slane %v3219_v29, %v4614_v58 }
 0x585   : > { %v3149_v30 = vmul.f32 %v3140_v59, %v3085_v36  ;;  %v3318_v3 = vcombine.low %v3293_v51, %v3301_v32  ;;  %v3334_v31 = vcombine.low %v3309_v60, %v3317_v53  ;;  %v3319_v24 = vcombine.high %v3293_v51, %v3301_v32 }
 0x586   : > { %v3335_v28 = vcombine.high %v3309_v60, %v3317_v53 }
 0x587   : > { %v3234_v47 = vcombine.low %v3147_v34, %v3149_v30  ;;  %v3235_v55 = vcombine.high %v3147_v34, %v3149_v30  ;;  %v3326_v14 = vrot.slane %v3318_v3, %v4621_v4  ;;  %v3342_v27 = vrot.slane %v3334_v31, %v4621_v4 }
 0x588   : > { %v3333_v54 = vrot.slane %v3319_v24, %v4621_v4  ;;  %v3349_v1 = vrot.slane %v3335_v28, %v4621_v4 }
 0x589   : > { %v3242_v45 = vrot.slane %v3234_v47, %v4614_v58  ;;  %v3249_v62 = vrot.slane %v3235_v55, %v4614_v58  ;;  %v3351_v56 = vcombine.high %v3326_v14, %v3342_v27  ;;  %v3350_v8 = vcombine.low %v3326_v14, %v3342_v27 }
 0x58a   : > { %v3352_v38 = vcombine.low %v3333_v54, %v3349_v1  ;;  %v3353_v5 = vcombine.high %v3333_v54, %v3349_v1 }
 0x58b   : > { %v3250_v63 = vcombine.low %v3226_v22, %v3242_v45  ;;  %v3251_v37 = vcombine.high %v3226_v22, %v3242_v45  ;;  %v3266_v0 = vcombine.low %v3233_v33, %v3249_v62  ;;  %v3267_v6 = vcombine.high %v3233_v33, %v3249_v62  ;;  %3424 = vrot.lane.b32.xlu0 %v3351_v56, %s4207_s11 }
 0x58d   : > { %v3258_v42 = vrot.slane %v3250_v63, %v4621_v4  ;;  %v3265_v43 = vrot.slane %v3251_v37, %v4621_v4  ;;  %v3274_v7 = vrot.slane %v3266_v0, %v4621_v4  ;;  %v3281_v41 = vrot.slane %v3267_v6, %v4621_v4 }
 0x58f   : > { %v3354_v48 = vcombine.low %v3258_v42, %v3265_v43  ;;  %v3666_v21 = vcombine.high %v3258_v42, %v3265_v43  ;;  %v3370_v39 = vcombine.low %v3274_v7, %v3281_v41  ;;  %v3667_v61 = vcombine.high %v3274_v7, %v3281_v41  ;;  %3432 = vrot.lane.b32.xlu0 %v3352_v38, %s4208_s16 }
 0x591   : > { %v3361_v13 = vrot.slane %v3354_v48, %v4614_v58  ;;  %v3369_v40 = vrot.slane %v3666_v21, %v4614_v58  ;;  %v3377_v57 = vrot.slane %v3370_v39, %v4614_v58  ;;  %v3385_v49 = vrot.slane %v3667_v61, %v4614_v58 }
 0x593   : > { %3440 = vrot.lane.b32.xlu0 %v3353_v5, %s4206_s17  ;;  %v3386_v16 = vcombine.low %v3361_v13, %v3369_v40  ;;  %v3402_v23 = vcombine.low %v3377_v57, %v3385_v49  ;;  %v3387_v11 = vcombine.high %v3361_v13, %v3369_v40  ;;  %v3403_v25 = vcombine.high %v3377_v57, %v3385_v49 }
 0x595   : > { %v3394_v15 = vrot.slane %v3386_v16, %v4621_v4  ;;  %v3410_v17 = vrot.slane %v3402_v23, %v4621_v4  ;;  %v3401_v35 = vrot.slane %v3387_v11, %v4621_v4  ;;  %v3417_v46 = vrot.slane %v3403_v25, %v4621_v4 }
 0x597   : > { %v3419_v2 = vcombine.high %v3394_v15, %v3410_v17  ;;  %v3418_v52 = vcombine.low %v3394_v15, %v3410_v17  ;;  %v3420_v58 = vcombine.low %v3401_v35, %v3417_v46  ;;  %v3421_v44 = vcombine.high %v3401_v35, %v3417_v46 }
 0x599   : > { %3426 = vrot.lane.b32.xlu1 %v3419_v2, %s4207_s11 }
 0x59d   : > { %3434 = vrot.lane.b32.xlu1 %v3420_v58, %s4208_s16 }
 0x5a1   : > { %3442 = vrot.lane.b32.xlu1 %v3421_v44, %s4206_s17 }
 0x5fd   : > { %v3425_v20 = vpop.permute.xlu0 %3424 }
 0x5fe   : > { %v3446_v19 = vsel %vm391_vm0, %v3350_v8, %v3425_v20 }
 0x601   : > { %v3433_v10 = vpop.permute.xlu0 %3432 }
 0x602   : > { %v3448_v50 = vsel %vm836_vm2, %v3446_v19, %v3433_v10 }
 0x605   : > { %v3441_v18 = vpop.permute.xlu0 %3440 }
 0x606   : > { %v3451_v4 = vsel %vm3450_vm6, %v3448_v50, %v3441_v18 }
 0x607   : > { %3453 = vst [vmem:[%s355_s12] sm:$0xff] %v3451_v4 }
 0x60b   : > { %v3427_v9 = vpop.permute.xlu1 %3426 }
 0x60c   : > { %v3447_v51 = vsel %vm391_vm0, %v3418_v52, %v3427_v9 }
 0x60f   : > { %v3435_v12 = vpop.permute.xlu1 %3434 }
 0x610   : > { %v3449_v32 = vsel %vm836_vm2, %v3447_v51, %v3435_v12 }
 0x613   : > { %v3443_v60 = vpop.permute.xlu1 %3442 }
 0x614   : > { %v3452_v53 = vsel %vm3450_vm6, %v3449_v32, %v3443_v60 }
 0x615   : > { %3454 = vst [vmem:[%s355_s12 + $0x8] sm:$0xff] %v3452_v53 }
 0x616   : > { %4112 = shalt.err (!%p4109_p7)
}
 0x617   : > { %s4113_s19 = scalar_lea.hbm %s5290_s28, 256  ;;  %s4117_s29 = scalar_lea.hbm %s5347_s6, 512 }
 0x618   : > { %p4114_p11 = scmp.ne.s32.totalorder %s5290_s28, %s4113_s19  ;;  %p4118_p12 = scmp.lt.u32.totalorder %s5290_s28, %s5347_s6 }
 0x619   : > { %p4119_p13 = scmp.lt.u32.totalorder %s4117_s29, %s4113_s19  ;;  %p4121_p1 = scmp.lt.u32.totalorder %s4113_s19, %s5290_s28 }
 0x61a   : > { %p4115_p2 = pnand %p4114_p11, %p5381_p6 }
 0x61b   : > { %p4120_p0 = por %p4119_p13, %p4118_p12 }
 0x61c   : > { %p4116_p8 = pneg %p4115_p2 }
 0x61d   : > { %p4122_p10 = por %p4121_p1, %p4120_p0 }
 0x61f   : > { %p4123_p3 = pnand %p4122_p10, %p4116_p8 }
 0x621   : > { %4126 = shalt.err (!%p4123_p3)
}
 0x622   : > { %s4213_s17 = smov 128   ;;  %s4214_s11 = smov 8  }
 0x623   : > { %3828 = dma.vmem_to_hbm [thread:$0]  (%p5381_p6), %s5284_s0, 256, %s5290_s28, %s3456_s18, %s4213_s17, %s4213_s17, %s4214_s11  }
 0x624 PF: > { %s3484_s16 = sand.u32 1, %s4173_s21   ;;  %p5382_p4 = scmp.ne.s32.totalorder %s5362_s30, 0 }
 0x625   : > { %p5383_p9 = scmp.ge.s32.totalorder %s4193_s26, 2  ;;  %s3485_s12 = scalar_lea.sflag [#allocation8], %s3484_s16 }
 0x627   : > { %p3845_p5 = pnand %p5383_p9, %p5382_p4 }
 0x629   : > { %4168 = dma.done.wait (!%p3845_p5), %s3485_s12, 256  }
 0x62a   : > { %4170 = vsyncadd (!%p3845_p5), %s3485_s12, 4294967040  ;;  %s26_s26 = sadd.s32 1, %s4193_s26   ;;  %s5384_s14 = sld [smem:[#allocation20_spill]] }
 0x62b   : > { %p23_p7 = scmp.ge.s32.totalorder %s26_s26, 4   ;;  %s5385_s23 = sld [smem:[#allocation22_spill]] }
 0x62c   : > { %s5386_s10 = sld [smem:[#allocation21_spill]]  ;;  %s5387_s21 = smov %s4177_s22 }
 0x62d   : > { %s5389_s24 = smov %s4189_s25  ;;  %25 = sbr.rel (!%p23_p7) target bundleno = 13 (0xd), region = 118 }
 0x630   : > { %s5388_s22 = smov %s5384_s14 }
 0x632   : > { %s5390_s25 = smov %s5386_s10 }
 0x634   :  { %3490 = vsyncpa [#allocation7], 1 }
 0x635   :  { %3492 = vsyncpa [#allocation7 + $0x1], 1 }
 0x636   :  { %3493 = vsyncpa [#allocation10], 1 }
 0x637   :  { %3495 = vsyncpa [#allocation10 + $0x1], 1 }
 0x638   :  { %3496 = vsyncpa [#allocation13], 1 }
 0x639   :  { %3497 = vsyncpa [#allocation8], 1 }
 0x63a   :  { %3499 = vsyncpa [#allocation8 + $0x1], 1 }

// kernel: tpu_custom_call.1
= control target key start
LH: loop header
LB: loop body
LE: loop exit
PB: predicated region body
PF: predicated region fallthrough
CT: control target
= control target key end

     0   :  { %s3358_s0 = inlined_call_operand.hbm [shape: f32[32,32], index: 0, kind: input, shape index: {}]   ;;  %s3359_s1 = inlined_call_operand.hbm [shape: f32[4,16,64], index: 1, kind: input, shape index: {}]   ;;  %s3360_s2 = inlined_call_operand.hbm [shape: bf16[32,128], index: 2, kind: input, shape index: {}]   ;;  %s3361_s3 = inlined_call_operand.vmem [shape: f32[1,128], index: 3, kind: input, shape index: {}]   ;;  %s3362_s4 = inlined_call_operand.hbm [shape: bf16[64,256], index: 4, kind: input, shape index: {}]   ;;  %s3363_s5 = inlined_call_operand.vmem [shape: f32[1,256], index: 5, kind: input, shape index: {}]   ;;  %s3364_s6 = inlined_call_operand.hbm [shape: f32[32,128], index: 6, kind: output, shape index: {}]  }
   0x1   :  { %3374 = sst [smem:[#allocation23_spill]] %s3358_s0 }
   0x2   :  { %3375 = sst [smem:[#allocation24_spill]] %s3360_s2 }
   0x3   :  { %3376 = sst [smem:[#allocation25_spill]] %s3362_s4 }
   0x4   :  { %11 = vsyncpa [#allocation7], 0 }
   0x5   :  { %13 = vsyncpa [#allocation7 + $0x1], 0 }
   0x6   :  { %14 = vsyncpa [#allocation10], 0 }
   0x7   :  { %16 = vsyncpa [#allocation10 + $0x1], 0 }
   0x8   :  { %17 = vsyncpa [#allocation13], 0 }
   0x9   :  { %18 = vsyncpa [#allocation8], 0 }
   0xa   :  { %20 = vsyncpa [#allocation8 + $0x1], 0  ;;  %s2649_s21 = smov 0   ;;  %s2651_s22 = smov 0  }
   0xb   :  { %s2653_s23 = smov 0   ;;  %s2655_s24 = smov 0  }
   0xc   :  { %s2657_s25 = smov 0   ;;  %s2659_s26 = smov 0  }
   0xd LB: > { %3377 = sst [smem:[#allocation20_spill]] %s2582_s23  ;;  %s2680_s27 = sadd.s32 4294967295, %s2594_s26   ;;  %s2594_s26 = sphi %s2659_s26, %s26_s26   ;;  %s2590_s25 = sphi %s2657_s25, %s3407_s25   ;;  %s2586_s24 = sphi %s2655_s24, %s3406_s24   ;;  %s2582_s23 = sphi %s2653_s23, %s3402_s23   ;;  %s2578_s22 = sphi %s2651_s22, %s3405_s22   ;;  %s2574_s21 = sphi %s2649_s21, %s3404_s21  }
   0xe   : > { %s1964_s28 = sadd.s32 4294967294, %s2594_s26   ;;  %p58_p0 = scmp.ne.s32.totalorder %s2578_s22, %s2574_s21 }
   0xf   : > { %p3365_p1 = scmp.eq.s32.totalorder %s2680_s27, 0  ;;  %p200_p3 = scmp.eq.s32.totalorder %s1964_s28, 1 }
  0x10   : > { %p1965_p5 = scmp.ge.s32.totalorder %s2594_s26, 1  ;;  %p207_p7 = scmp.lt.s32.totalorder %s2594_s26, 3 }
  0x11   : > { %p2689_p4 = por %p3365_p1, %p58_p0  ;;  %p2694_p6 = por %p200_p3, %p58_p0 }
  0x12   : > { %p2699_p8 = pnand %p1965_p5, %p207_p7  ;;  %s2596_s8 = smov [#allocation11]  }
  0x13   : > { %s3378_s29 = scalar_select %p2689_p4, 1, 0 }
  0x14   : > { %s3379_s30 = scalar_select %p2694_p6, 1, 0 }
  0x15   : > { %s219_s9 = sshll.u32 %s2596_s8, 4  ;;  %p2174_p9 = pneg %p2699_p8  ;;  %s2703_s9 = int_to_ptr.vmem [resolvable:$true] %s219_s9 }
  0x16   : > { %s2597_s11 = smov [#allocation12]   ;;  %s3382_s2 = sld [smem:[#allocation24_spill]] }
  0x17   : > { %p2710_p11 = pnand %p2174_p9, %p3365_p1  ;;  %s235_s12 = sshll.u32 %s2597_s11, 4  ;;  %s2714_s12 = int_to_ptr.vmem [resolvable:$true] %s235_s12 }
  0x19   : > { %p2386_p13 = pneg %p2710_p11 }
  0x1c   : > { %s2384_s15 = scalar_lea.hbm %s3382_s2, 256 }
  0x1d   : > { %p2385_p12 = scmp.ne.s32.totalorder %s3382_s2, %s2384_s15  ;;  %p2391_p5 = scmp.lt.u32.totalorder %s2384_s15, %s3382_s2 }
  0x1f   : > { %p2387_p0 = pnand %p2386_p13, %p2385_p12 }
  0x21   : > { %p2388_p3 = pneg %p2387_p0 }
  0x23   : > { %p2393_p7 = pnand %p2391_p5, %p2388_p3 }
  0x25   : > { %2396 = shalt.err (!%p2393_p7)
}
  0x26   : > { %s2397_s20 = scalar_lea.vmem %s2703_s9, 256  ;;  %p2405_p2 = scmp.lt.s32.totalorder %s2703_s9, %s2703_s9 }
  0x27   : > { %p2398_p9 = scmp.ne.s32.totalorder %s2703_s9, %s2397_s20  ;;  %p2406_p12 = scmp.lt.s32.totalorder %s2397_s20, %s2397_s20 }
  0x29   : > { %p2400_p10 = pnand %p2398_p9, %p2386_p13  ;;  %p2407_p0 = por %p2406_p12, %p2405_p2 }
  0x2b   : > { %p2401_p1 = pneg %p2400_p10 }
  0x2d   : > { %p2408_p6 = pnand %p2407_p0, %p2401_p1 }
  0x2f   : > { %2411 = shalt.err (!%p2408_p6)
}
  0x30   : > { %s2598_s28 = smov 64   ;;  %s2599_s8 = smov 4  }
  0x31   : > { %2177 = dma.hbm_to_vmem [thread:$0]  (!%p2710_p11), %s3382_s2, 256, %s2703_s9, [#allocation10], %s2598_s28, %s2598_s28, %s2599_s8  }
  0x32   : > { %s3383_s4 = sld [smem:[#allocation25_spill]] }
  0x38   : > { %s2412_s16 = scalar_lea.hbm %s3383_s4, 1024 }
  0x39   : > { %p2413_p2 = scmp.ne.s32.totalorder %s3383_s4, %s2412_s16  ;;  %p2419_p10 = scmp.lt.u32.totalorder %s2412_s16, %s3383_s4 }
  0x3b   : > { %p2415_p1 = pnand %p2413_p2, %p2386_p13 }
  0x3d   : > { %p2416_p6 = pneg %p2415_p1 }
  0x3f   : > { %p2421_p3 = pnand %p2419_p10, %p2416_p6 }
  0x41   : > { %2424 = shalt.err (!%p2421_p3)
}
  0x42   : > { %s2425_s9 = scalar_lea.vmem %s2714_s12, 1024  ;;  %p2433_p12 = scmp.lt.s32.totalorder %s2714_s12, %s2714_s12 }
  0x43   : > { %p2426_p5 = scmp.ne.s32.totalorder %s2714_s12, %s2425_s9  ;;  %p2434_p0 = scmp.lt.s32.totalorder %s2425_s9, %s2425_s9 }
  0x45   : > { %p2428_p7 = pnand %p2426_p5, %p2386_p13  ;;  %p2435_p2 = por %p2434_p0, %p2433_p12 }
  0x47   : > { %p2429_p9 = pneg %p2428_p7 }
  0x49   : > { %p2436_p1 = pnand %p2435_p2, %p2429_p9 }
  0x4b   : > { %2439 = shalt.err (!%p2436_p1)
}
  0x4c   : > { %s3366_s28 = smov 128   ;;  %s3368_s8 = smov 8  }
  0x4d   : > { %2180 = dma.hbm_to_vmem [thread:$0]  (!%p2710_p11), %s3383_s4, 1024, %s2714_s12, [#allocation13], %s3366_s28, %s3366_s28, %s3368_s8  }
  0x4e   : > { %s38_s14 = sadd.s32 1, %s2590_s25  ;;  %s45_s15 = sadd.s32 1, %s2582_s23 }
  0x4f   : > { %p40_p13 = scmp.ge.s32.totalorder %s38_s14, 2  ;;  %p52_p6 = scmp.ne.s32.totalorder %s2582_s23, %s2578_s22 }
  0x50   : > { %p53_p10 = scmp.eq.s32.totalorder %s2594_s26, 0  ;;  %p2194_p3 = scmp.lt.s32.totalorder %s2594_s26, 2 }
  0x51   : > { %s3409_s14 = smov (%p40_p13, %s38_s14), 0  ;;  %p3385_p7 = scmp.eq.s32.totalorder %s2680_s27, 1 }
  0x52   : > { %3384 = sst [smem:[#allocation21_spill]] %s3409_s14  ;;  %p54_p5 = por %p53_p10, %p52_p6 }
  0x53   : > { %p2781_p9 = por %p3385_p7, %p52_p6  ;;  %s42_s16 = ssub.s32 %s2590_s25, %s3409_s14 }
  0x54   : > { %s2788_s17 = sand.u32 1, %s2582_s23   ;;  %p43_p11 = scmp.eq.s32.totalorder %s42_s16, 0 }
  0x55   : > { %s3386_s10 = scalar_select %p2781_p9, 1, 0 }
  0x56   : > { %s1969_s12 = sshll.u32 %s2788_s17, 4  ;;  %s2017_s18 = sshll.u32 %s2590_s25, 8 }
  0x57   : > { %s2793_s19 = scalar_select %p43_p11, %s2582_s23, %s45_s15  }
  0x58   : > { %s3388_s0 = sld [smem:[#allocation23_spill]]  ;;  %s256_s13 = scalar_lea.vmem [#allocation6], %s1969_s12 }
  0x59   : > { %3387 = sst [smem:[#allocation22_spill]] %s2793_s19  ;;  %s263_s28 = sshll.u32 %s256_s13, 4  ;;  %s2806_s28 = int_to_ptr.vmem [resolvable:$true] %s263_s28 }
  0x5a   : > { %p2802_p12 = pnand %p2194_p3, %p54_p5  ;;  %s253_s16 = scalar_lea.sflag [#allocation7], %s2788_s17 }
  0x5c   : > { %p2442_p2 = pneg %p2802_p12 }
  0x5e   : > { %s2798_s11 = scalar_lea.hbm %s3388_s0, %s2017_s18  ;;  %s2445_s9 = scalar_lea.hbm %s3388_s0, 512 }
  0x5f   : > { %s2440_s20 = scalar_lea.hbm %s2798_s11, 256  ;;  %p2446_p6 = scmp.lt.u32.totalorder %s2798_s11, %s3388_s0 }
  0x60   : > { %p2441_p0 = scmp.ne.s32.totalorder %s2798_s11, %s2440_s20  ;;  %p2447_p10 = scmp.lt.u32.totalorder %s2445_s9, %s2440_s20 }
  0x61   : > { %p2449_p5 = scmp.lt.u32.totalorder %s2440_s20, %s2798_s11 }
  0x62   : > { %p2443_p1 = pnand %p2442_p2, %p2441_p0  ;;  %p2448_p3 = por %p2447_p10, %p2446_p6 }
  0x64   : > { %p2444_p13 = pneg %p2443_p1  ;;  %p2450_p7 = por %p2449_p5, %p2448_p3 }
  0x66   : > { %p2451_p11 = pnand %p2450_p7, %p2444_p13 }
  0x68   : > { %2454 = shalt.err (!%p2451_p11)
}
  0x69   : > { %s2455_s15 = scalar_lea.vmem %s2806_s28, 256  ;;  %s2602_s12 = smov [#allocation6]  }
  0x6a   : > { %p2456_p0 = scmp.ne.s32.totalorder %s2806_s28, %s2455_s15  ;;  %s2460_s18 = sshll.u32 %s2602_s12, 4  ;;  %s2461_s18 = int_to_ptr.vmem [resolvable:$false] %s2460_s18 }
  0x6b   : > { %s2462_s2 = scalar_lea.vmem %s2461_s18, 512  ;;  %p2463_p4 = scmp.lt.s32.totalorder %s2806_s28, %s2461_s18 }
  0x6c   : > { %p2458_p1 = pnand %p2456_p0, %p2442_p2  ;;  %p2464_p6 = scmp.lt.s32.totalorder %s2462_s2, %s2455_s15 }
  0x6e   : > { %p2459_p9 = pneg %p2458_p1  ;;  %p2465_p10 = por %p2464_p6, %p2463_p4 }
  0x70   : > { %p2466_p3 = pnand %p2465_p10, %p2459_p9 }
  0x72   : > { %2469 = shalt.err (!%p2466_p3)
}
  0x73   : > { %s3390_s20 = smov 8   ;;  %s3391_s9 = smov 128  }
  0x74   : > { %2184 = dma.hbm_to_vmem [thread:$0]  (!%p2802_p12), %s2798_s11, 256, %s2806_s28, %s253_s16, %s3391_s9, %s3391_s9, %s3390_s20  }
  0x75   : > { %s1972_s13 = sshll.u32 %s2788_s17, 5  ;;  %s2019_s12 = sshll.u32 %s2590_s25, 9 }
  0x76   : > { %s2845_s2 = scalar_lea.hbm %s3359_s1, %s2019_s12  ;;  %s277_s0 = scalar_lea.vmem [#allocation9], %s1972_s13 }
  0x77   : > { %s287_s4 = sshll.u32 %s277_s0, 4  ;;  %s3392_s14 = sand.u32 1, %s2594_s26   ;;  %s2847_s4 = int_to_ptr.vmem [resolvable:$true] %s287_s4 }
  0x78   : > { %s2851_s19 = scalar_lea.sflag [#allocation10], %s3392_s14  ;;  %s2470_s23 = scalar_lea.hbm %s2845_s2, 512 }
  0x79   : > { %p2471_p4 = scmp.ne.s32.totalorder %s2845_s2, %s2470_s23  ;;  %s2475_s11 = scalar_lea.hbm %s3359_s1, 1024 }
  0x7a   : > { %p2476_p5 = scmp.lt.u32.totalorder %s2845_s2, %s3359_s1  ;;  %p2477_p7 = scmp.lt.u32.totalorder %s2475_s11, %s2470_s23 }
  0x7b   : > { %p2473_p9 = pnand %p2471_p4, %p2442_p2  ;;  %p2479_p0 = scmp.lt.u32.totalorder %s2470_s23, %s2845_s2 }
  0x7c   : > { %p2478_p11 = por %p2477_p7, %p2476_p5 }
  0x7d   : > { %p2474_p13 = pneg %p2473_p9 }
  0x7e   : > { %p2480_p1 = por %p2479_p0, %p2478_p11 }
  0x80   : > { %p2481_p6 = pnand %p2480_p1, %p2474_p13 }
  0x82   : > { %2484 = shalt.err (!%p2481_p6)
}
  0x83   : > { %s2485_s0 = scalar_lea.vmem %s2847_s4, 512  ;;  %s2603_s14 = smov [#allocation9]  }
  0x84   : > { %p2486_p10 = scmp.ne.s32.totalorder %s2847_s4, %s2485_s0  ;;  %s2490_s13 = sshll.u32 %s2603_s14, 4  ;;  %s2491_s13 = int_to_ptr.vmem [resolvable:$false] %s2490_s13 }
  0x85   : > { %s2492_s15 = scalar_lea.vmem %s2491_s13, 1024  ;;  %p2493_p9 = scmp.lt.s32.totalorder %s2847_s4, %s2491_s13 }
  0x86   : > { %p2488_p3 = pnand %p2486_p10, %p2442_p2  ;;  %p2494_p5 = scmp.lt.s32.totalorder %s2492_s15, %s2485_s0 }
  0x88   : > { %p2489_p4 = pneg %p2488_p3  ;;  %p2495_p7 = por %p2494_p5, %p2493_p9 }
  0x8a   : > { %p2496_p11 = pnand %p2495_p7, %p2489_p4 }
  0x8c   : > { %2499 = shalt.err (!%p2496_p11)
}
  0x8d   : > { %2187 = dma.hbm_to_vmem [thread:$0]  (!%p2802_p12), %s2845_s2, 512, %s2847_s4, %s2851_s19, %s3391_s9, %s3391_s9, %s3390_s20  }
  0x8e   : > { %299 = sbr.rel (%p2699_p8) target bundleno = 1484 (0x5cc), region = 44  ;;  %s2883_s23 = sand.u32 (!%p2699_p8), 1, %s2578_s22  }
  0x8f   : > { %s1977_s18 = sshll.u32 (!%p2699_p8), %s2883_s23, 4  ;;  %s302_s28 = scalar_lea.sflag (!%p2699_p8), [#allocation7], %s2883_s23 }
  0x90   : > { %s2889_s8 = scalar_lea.vmem (!%p2699_p8), [#allocation6], %s1977_s18  ;;  %p3393_p2 = scmp.ne.s32.totalorder (!%p2699_p8), %s3378_s29, 0 }
  0x95   : > { %2553 = dma.done.wait (%p3393_p2), %s302_s28, 256  }
  0x96   : > { %2555 = vsyncadd (%p3393_p2), %s302_s28, 4294967040  ;;  %s310_s4 = sand.u32 1, %s2680_s27   ;;  %s1978_s7 = sshll.u32 %s2883_s23, 5 }
  0x97   : > { %s311_s19 = scalar_lea.sflag [#allocation10], %s310_s4  ;;  %s2897_s20 = scalar_lea.vmem [#allocation9], %s1978_s7 }
  0x98   : > { %2557 = dma.done.wait (%p3393_p2), %s311_s19, 512  }
  0x99   : > { %2559 = vsyncadd (%p3393_p2), %s311_s19, 4294966784  ;;  %p3394_p8 = scmp.eq.s32.totalorder %s2680_s27, 0 }
  0x9b   : > { %2561 = dma.done.wait (%p3394_p8), [#allocation10], 256   ;;  %p3395_p12 = pmov %p3394_p8 }
  0x9c   : > { %p3396_p13 = pmov %p3394_p8 }
  0x9d   : > { %2563 = vsyncadd (%p3395_p12), [#allocation10], 4294967040 }
  0x9e   : > { %2565 = dma.done.wait (%p3396_p13), [#allocation13], 1024   ;;  %p3397_p0 = pmov %p3394_p8 }
  0x9f   : > { %vm391_vm0 = vcmask 261120   ;;  %v2604_v0 = vmov 0.0   ;;  %vm2605_vm1 = vmmov 0   ;;  %v2606_v1 = vmov 0   ;;  %v2323_v2 = vld [vmem:[#allocation12 + $0x4] ss:$8 sps:$4 sm:$0xff]  }
  0xa0   : > { %2567 = vsyncadd (%p3397_p0), [#allocation13], 4294966272  ;;  %2056 = vmatprep.subr.bf16.mxu0 %v2604_v0  ;;  %2060 = vmatprep.mubr.msk.bf16.mxu0 %vm2605_vm1, %v2604_v0  ;;  %490 = vst.msk [vmem:[#allocation5] sm:$0xff] %vm391_vm0, %v2604_v0  ;;  %v2325_v3 = vld [vmem:[#allocation12] ss:$8 sps:$4 sm:$0xff]   ;;  %v2329_v6 = vld [vmem:[#allocation11] sm:$0xff]   ;;  %v514_v23 = vlaneseq }
  0xa1   : > { %491 = vst.msk [vmem:[#allocation5 + $0x8] sm:$0xff] %vm391_vm0, %v2604_v0  ;;  %492 = vst.msk [vmem:[#allocation5 + $0x10] sm:$0xff] %vm391_vm0, %v2604_v0  ;;  %603 = vmatprep.mubr.bf16.mxu1 %v2606_v1  ;;  %2291 = vset.pattern.permute.xlu1 %v2606_v1  ;;  %v2326_v4 = vld [vmem:[#allocation12 + $0x14] ss:$8 sps:$4 sm:$0xff]   ;;  %v2328_v5 = vld [vmem:[#allocation12 + $0x10] ss:$8 sps:$4 sm:$0xff]  }
  0xa2   : > { %493 = vst.msk [vmem:[#allocation5 + $0x18] sm:$0xff] %vm391_vm0, %v2604_v0  ;;  %494 = vst.msk [vmem:[#allocation5 + $0x20] sm:$0xff] %vm391_vm0, %v2604_v0  ;;  %2292 = vset.pattern.permute.xlu0 %v2606_v1  ;;  %571 = vmatprep.subr.bf16.mxu1 %v2323_v2  ;;  %v2330_v7 = vld [vmem:[#allocation12 + $0x24] ss:$8 sps:$4 sm:$0xff]   ;;  %v2333_v8 = vld [vmem:[#allocation11 + $0x8] sm:$0xff]   ;;  %vm564_vm2 = vcmask 523264  }
  0xa3   : > { %495 = vst.msk [vmem:[#allocation5 + $0x28] sm:$0xff] %vm391_vm0, %v2604_v0  ;;  %496 = vst.msk [vmem:[#allocation5 + $0x30] sm:$0xff] %vm391_vm0, %v2604_v0  ;;  %572 = vmatpush1.bf16.msra.mxu1 %v2325_v3  ;;  %2057 = vmatpush3.bf16.msra.mxu0 %v2329_v6  ;;  %v2332_v9 = vld [vmem:[#allocation12 + $0x20] ss:$8 sps:$4 sm:$0xff]   ;;  %v510_v12 = vld [vmem:[#allocation12 + $0x30] sm:$0xff]  ;;  %v515_v24 = vshrl.u32 %v514_v23, 7 }
  0xa4   : > { %497 = vst.msk [vmem:[#allocation5 + $0x38] sm:$0xff] %vm391_vm0, %v2604_v0  ;;  %573 = vmatprep.subr.bf16.mxu1 %v2326_v4  ;;  %2058 = vmatprep.subr.bf16.mxu0 %v2604_v0  ;;  %v365_v10 = vld [vmem:[%s2889_s8] sm:$0xff]  ;;  %v366_v11 = vld [vmem:[%s2889_s8 + $0x8] sm:$0xff]  ;;  %vm464_vm3 = vcmask 257024   ;;  %s2607_s17 = smov 64   ;;  %s2608_s11 = smov 96  }
  0xa5   : > { %v511_v13 = vld [vmem:[#allocation12 + $0x38] sm:$0xff]  ;;  %v367_v15 = vpack.c.bf16 %v366_v11, %v365_v10  ;;  %v498_v17 = vld [vmem:[%s2897_s20] sm:$0xff]  ;;  %v500_v20 = vld [vmem:[%s2897_s20 + $0x10] sm:$0xff]  ;;  %v520_v26 = vsub.s32 1, %v515_v24  ;;  %v516_v29 = vsub.s32 0, %v515_v24  ;;  %s2609_s16 = smov 32  }
  0xa6   : > { %v2334_v14 = vld [vmem:[#allocation12 + $0x34] ss:$8 sps:$4 sm:$0xff]   ;;  %v1992_v16 = vcombine.low %v510_v12, %v511_v13  ;;  %v501_v21 = vld [vmem:[%s2897_s20 + $0x18] sm:$0xff]  ;;  %v512_v25 = vld [vmem:[%s3363_s5] sm:$0x3]  ;;  %vm1105_vm4 = vcmask 130048  }
  0xa7   : > { %574 = vmatpush1.bf16.msra.mxu1 %v2328_v5  ;;  %2059 = vmatpush3.bf16.msra.mxu0 %v2333_v8  ;;  %v499_v18 = vld [vmem:[%s2897_s20 + $0x8] sm:$0xff]  ;;  %v503_v22 = vpack.c.bf16 %v501_v21, %v500_v20  ;;  %v521_v27 = vrot.slane %v512_v25, %v520_v26  ;;  %v1982_v28 = vld [vmem:[%s3361_s3] ss:$0 sm:$0xff]  ;;  %v517_v37 = vrot.slane %v512_v25, %v516_v29  ;;  %vm473_vm5 = vcmask 7168   ;;  %s355_s12 = scalar_lea.vmem [#allocation14], %s1977_s18  ;;  %s2020_s14 = sshll.u32 %s2586_s24, 8 }
  0xa8   : > { %575 = vmatprep.subr.bf16.mxu1 %v2330_v7  ;;  %2064 = vmatprep.subr.bf16.mxu0 %v2604_v0  ;;  %v502_v19 = vpack.c.bf16 %v499_v18, %v498_v17  ;;  %482 = vst.msk [vmem:[#allocation4] sm:$0xff] %vm473_vm5, %v2604_v0  ;;  %483 = vst.msk [vmem:[#allocation4 + $0x8] sm:$0xff] %vm473_vm5, %v2604_v0  ;;  %vm1804_vm6 = vcmask 785408   ;;  %s1837_s0 = sshll.u32 %s355_s12, 4  ;;  %s3307_s28 = scalar_lea.hbm %s3364_s6, %s2020_s14  ;;  %s3301_s0 = int_to_ptr.vmem [resolvable:$true] %s1837_s0 }
  0xa9   : > { %484 = vst.msk [vmem:[#allocation4 + $0x10] sm:$0xff] %vm473_vm5, %v2604_v0  ;;  %485 = vst.msk [vmem:[#allocation4 + $0x18] sm:$0xff] %vm473_vm5, %v2604_v0  ;;  %s1824_s24 = scalar_lea.sflag [#allocation8], %s2883_s23  ;;  %s2500_s18 = scalar_lea.vmem %s3301_s0, 256 }
  0xaa   : > { %2061 = vmatmul.mubr.msk.bf16.vlgmr.msra.gmra.mrb[0].mxu0 %vm391_vm0, %v367_v15  ;;  %486 = vst.msk [vmem:[#allocation4 + $0x20] sm:$0xff] %vm473_vm5, %v2604_v0  ;;  %487 = vst.msk [vmem:[#allocation4 + $0x28] sm:$0xff] %vm473_vm5, %v2604_v0  ;;  %p2501_p1 = scmp.ne.s32.totalorder %s3301_s0, %s2500_s18  ;;  %p3398_p6 = scmp.ne.s32.totalorder %s3386_s10, 0 }
  0xab   : > { %576 = vmatpush1.bf16.msra.mxu1 %v2332_v9  ;;  %2066 = vmatprep.mubr.msk.bf16.mxu0 %vm2605_vm1, %v2604_v0  ;;  %488 = vst.msk [vmem:[#allocation4 + $0x30] sm:$0xff] %vm473_vm5, %v2604_v0  ;;  %489 = vst.msk [vmem:[#allocation4 + $0x38] sm:$0xff] %vm473_vm5, %v2604_v0  ;;  %s2611_s8 = smov [#allocation14]  }
  0xac   : > { %577 = vmatprep.subr.bf16.mxu1 %v2334_v14  ;;  %p2502_p10 = pnand %p2501_p1, %p3398_p6  ;;  %s2504_s4 = sshll.u32 %s2611_s8, 4  ;;  %s2505_s4 = int_to_ptr.vmem [resolvable:$false] %s2504_s4 }
  0xad   : > { %s2506_s7 = scalar_lea.vmem %s2505_s4, 512  ;;  %p2507_p4 = scmp.lt.s32.totalorder %s3301_s0, %s2505_s4 }
  0xae   : > { %p2503_p3 = pneg %p2502_p10  ;;  %p2508_p9 = scmp.lt.s32.totalorder %s2506_s7, %s2500_s18 }
  0xaf   : > { %578 = vmatpush1.bf16.msra.mxu1 %v1992_v16 }
  0xb0   : > { %2082 = vmatprep.subr.bf16.mxu1 %v2604_v0  ;;  %p2509_p5 = por %p2508_p9, %p2507_p4 }
  0xb2   : > { %1994 = vmatmul.mubr.msk.bf16.vlgmr.msra.gmra.mrb[0].mxu1 %vm564_vm2, %v502_v19  ;;  %p2510_p7 = pnand %p2509_p5, %p2503_p3 }
  0xb3   : > { %613 = vmatprep.mubr.bf16.mxu1 %v2606_v1 }
  0xba   : > { %1995 = vmatmul.mubr.msk.bf16.gmra.mrb[4].mxu1 %vm564_vm2, %v503_v22 }
  0xbb   : > { %2084 = vmatprep.mubr.msk.bf16.mxu1 %vm2605_vm1, %v2604_v0 }
 0x17d   : > { %v429_v30 = vpop.f32.mrb[0].mxu0 }
 0x17e   : > { %v430_v31 = vadd.f32 %v1982_v28, %v429_v30  ;;  %v2062_v32 = vpop.f32.mrb[1].mxu0 }
 0x17f   : > { %v432_v33 = vpop.f32.mrb[2].mxu0 }
 0x180   : > { %v456_v34 = vpack.c.bf16 %v430_v31, %v430_v31  ;;  %v433_v35 = vadd.f32 %v1982_v28, %v432_v33  ;;  %v2063_v36 = vpop.f32.mrb[3].mxu0 }
 0x182   : > { %465 = vst.msk [vmem:[#allocation2] sm:$0xf] %vm464_vm3, %v456_v34  ;;  %v460_v38 = vpack.c.bf16 %v433_v35, %v433_v35 }
 0x184   : > { %469 = vst.msk [vmem:[#allocation2 + $0x10] sm:$0xf] %vm464_vm3, %v460_v38 }
 0x185   : > { %v605_v39 = vpop.f32.mrb[0].mxu1 }
 0x186   : > { %v606_v40 = vadd.f32 %v605_v39, %v517_v37  ;;  %v607_v41 = vpop.f32.mrb[1].mxu1 }
 0x187   : > { %v2954_v42 = vadd.f32 %v607_v41, %v521_v27  ;;  %v609_v43 = vpop.f32.mrb[2].mxu1 }
 0x188   : > { %v610_v44 = vadd.f32 %v609_v43, %v517_v37  ;;  %v611_v45 = vpop.f32.mrb[3].mxu1  ;;  %v2266_v46 = vpack.i.bf16 %v606_v40, %v430_v31 }
 0x189   : > { %v2956_v47 = vadd.f32 %v611_v45, %v521_v27  ;;  %v720_v62 = vld [vmem:[#allocation2] sm:$0xf] }
 0x18a   : > { %2267 = vrot.lane.b32.xlu1 %v2266_v46, %s2607_s17  ;;  %2262 = vrot.lane.b32.xlu0 %v2266_v46, %s2608_s11  ;;  %v664_v48 = vpack.c.bf16 %v610_v44, %v606_v40 }
 0x18b   : > { %v712_v49 = vpack.c.bf16 %v2956_v47, %v2954_v42  ;;  %v2964_v50 = vpack.i.bf16 %v2956_v47, %v2954_v42 }
 0x18c   : > { %v733_v51 = vsel %vm391_vm0, %v664_v48, 0 }
 0x18d   : > { %v615_v52 = vpop.f32.mrb[4].mxu1  ;;  %2065 = vmatpush3.bf16.xpose.msra.mxu0 %v733_v51 }
 0x18e   : > { %v2967_v53 = vadd.f32 %v615_v52, %v517_v37  ;;  %634 = vrot.lane.b32.xlu1 %v610_v44, %s2607_s17  ;;  %628 = vrot.lane.b32.xlu0 %v610_v44, %s2608_s11  ;;  %v617_v54 = vpop.f32.mrb[5].mxu1  ;;  %v724_v52 = vld [vmem:[#allocation2 + $0x10] sm:$0xf] }
 0x18f   : > { %v2971_v55 = vadd.f32 %v617_v54, %v521_v27  ;;  %v619_v56 = vpop.f32.mrb[6].mxu1  ;;  %2070 = vmatprep.subr.bf16.mxu0 %v2604_v0 }
 0x190   : > { %v2974_v57 = vadd.f32 %v619_v56, %v517_v37  ;;  %v2276_v58 = vpack.i.bf16 %v2967_v53, %v433_v35  ;;  %v621_v59 = vpop.f32.mrb[7].mxu1 }
 0x191   : > { %v2977_v60 = vadd.f32 %v621_v59, %v521_v27 }
 0x192   : > { %640 = vrot.lane.b32.xlu1 %v610_v44, %s2609_s16  ;;  %2272 = vrot.lane.b32.xlu0 %v2266_v46, %s2609_s16  ;;  %v668_v61 = vpack.c.bf16 %v2974_v57, %v2967_v53 }
 0x193   : > { %v2985_v63 = vpack.i.bf16 %v2977_v60, %v2971_v55  ;;  %v716_v1 = vpack.c.bf16 %v2977_v60, %v2971_v55 }
 0x194   : > { %2067 = vmatmul.mubr.msk.bf16.vlgmr.msra.gmra.mrb[4].mxu0 %vm391_vm0, %v720_v62  ;;  %v917_v43 = vsel %vm391_vm0, %v668_v61, 0 }
 0x195   : > { %2072 = vmatprep.mubr.msk.bf16.mxu0 %vm2605_vm1, %v2604_v0 }
 0x196   : > { %2277 = vrot.lane.b32.xlu0 %v2276_v58, %s2608_s11  ;;  %648 = vrot.lane.b32.xlu1 %v2974_v57, %s2608_s11 }
 0x19a   : > { %2282 = vrot.lane.b32.xlu0 %v2276_v58, %s2607_s17  ;;  %654 = vrot.lane.b32.xlu1 %v2974_v57, %s2607_s17 }
 0x19e   : > { %2287 = vrot.lane.b32.xlu0 %v2276_v58, %s2609_s16  ;;  %660 = vrot.lane.b32.xlu1 %v2974_v57, %s2609_s16 }
 0x1fc   : > { %v2268_v2 = vpop.permute.xlu1 %2267  ;;  %v2263_v3 = vpop.permute.xlu0 %2262 }
 0x1fd   : > { %v2269_v4 = vunpack.i.l.bf16 %v2268_v2  ;;  %v2264_v5 = vunpack.i.l.bf16 %v2263_v3  ;;  %v2265_v7 = vunpack.i.h.bf16 %v2263_v3  ;;  %v2270_v15 = vunpack.i.h.bf16 %v2268_v2 }
 0x1fe   : > { %v2610_v2 = vmov -inf  }
 0x1ff   : > { %v458_v6 = vpack.c.bf16 %v2269_v4, %v2269_v4  ;;  %v457_v8 = vpack.c.bf16 %v2264_v5, %v2264_v5  ;;  %474 = vst.msk [vmem:[#allocation3] sm:$0xff] %vm473_vm5, %v2610_v2  ;;  %475 = vst.msk [vmem:[#allocation3 + $0x8] sm:$0xff] %vm473_vm5, %v2610_v2 }
 0x200   : > { %v635_v9 = vpop.permute.xlu1 %634  ;;  %v629_v10 = vpop.permute.xlu0 %628  ;;  %476 = vst.msk [vmem:[#allocation3 + $0x10] sm:$0xff] %vm473_vm5, %v2610_v2  ;;  %477 = vst.msk [vmem:[#allocation3 + $0x18] sm:$0xff] %vm473_vm5, %v2610_v2 }
 0x201   : > { %467 = vst.msk [vmem:[#allocation2 + $0x8] sm:$0xf] %vm464_vm3, %v458_v6  ;;  %466 = vst.msk [vmem:[#allocation2 + $0x4] sm:$0xf] %vm464_vm3, %v457_v8  ;;  %v665_v11 = vpack.c.bf16 %v629_v10, %v2265_v7  ;;  %v666_v18 = vpack.c.bf16 %v635_v9, %v2270_v15 }
 0x202   : > { %478 = vst.msk [vmem:[#allocation3 + $0x20] sm:$0xff] %vm473_vm5, %v2610_v2  ;;  %479 = vst.msk [vmem:[#allocation3 + $0x28] sm:$0xff] %vm473_vm5, %v2610_v2 }
 0x203   : > { %v779_v12 = vsel %vm391_vm0, %v665_v11, 0  ;;  %v825_v27 = vsel %vm391_vm0, %v666_v18, 0  ;;  %480 = vst.msk [vmem:[#allocation3 + $0x30] sm:$0xff] %vm473_vm5, %v2610_v2  ;;  %481 = vst.msk [vmem:[#allocation3 + $0x38] sm:$0xff] %vm473_vm5, %v2610_v2 }
 0x204   : > { %v641_v13 = vpop.permute.xlu1 %640  ;;  %v2273_v14 = vpop.permute.xlu0 %2272  ;;  %2071 = vmatpush3.bf16.xpose.msra.mxu0 %v779_v12 }
 0x205   : > { %v2275_v16 = vunpack.i.h.bf16 %v2273_v14  ;;  %v2274_v17 = vunpack.i.l.bf16 %v2273_v14  ;;  %2076 = vmatprep.subr.bf16.mxu0 %v2604_v0 }
 0x207   : > { %v667_v19 = vpack.c.bf16 %v641_v13, %v2275_v16  ;;  %v459_v20 = vpack.c.bf16 %v2274_v17, %v2274_v17 }
 0x208   : > { %v2278_v21 = vpop.permute.xlu0 %2277  ;;  %v649_v22 = vpop.permute.xlu1 %648  ;;  %v721_v26 = vld [vmem:[#allocation2 + $0x4] sm:$0xf]  ;;  %v722_v39 = vld [vmem:[#allocation2 + $0x8] sm:$0xf] }
 0x209   : > { %468 = vst.msk [vmem:[#allocation2 + $0xc] sm:$0xf] %vm464_vm3, %v459_v20  ;;  %v2280_v23 = vunpack.i.h.bf16 %v2278_v21  ;;  %v2279_v24 = vunpack.i.l.bf16 %v2278_v21  ;;  %v871_v25 = vsel %vm391_vm0, %v667_v19, 0 }
 0x20a   : > { %2083 = vmatpush3.bf16.xpose.msra.mxu1 %v871_v25 }
 0x20b   : > { %v461_v28 = vpack.c.bf16 %v2279_v24, %v2279_v24  ;;  %2073 = vmatmul.mubr.msk.bf16.vlgmr.msra.gmra.mrb[8].mxu0 %vm391_vm0, %v721_v26  ;;  %2094 = vmatprep.subr.bf16.mxu1 %v2604_v0  ;;  %v669_v30 = vpack.c.bf16 %v649_v22, %v2280_v23  ;;  %v3099_v26 = vld [vmem:[#allocation3] sm:$0xff] }
 0x20c   : > { %2077 = vmatpush3.bf16.xpose.msra.mxu0 %v825_v27  ;;  %v2283_v29 = vpop.permute.xlu0 %2282  ;;  %2078 = vmatprep.mubr.msk.bf16.mxu0 %vm2605_vm1, %v2604_v0  ;;  %v655_v32 = vpop.permute.xlu1 %654 }
 0x20d   : > { %470 = vst.msk [vmem:[#allocation2 + $0x14] sm:$0xf] %vm464_vm3, %v461_v28  ;;  %v2284_v31 = vunpack.i.l.bf16 %v2283_v29  ;;  %2088 = vmatprep.subr.bf16.mxu0 %v2604_v0  ;;  %v963_v36 = vsel %vm391_vm0, %v669_v30, 0  ;;  %v2285_v40 = vunpack.i.h.bf16 %v2283_v29 }
 0x20f   : > { %v462_v33 = vpack.c.bf16 %v2284_v31, %v2284_v31  ;;  %v670_v46 = vpack.c.bf16 %v655_v32, %v2285_v40 }
 0x210   : > { %v2288_v34 = vpop.permute.xlu0 %2287  ;;  %v723_v35 = vld [vmem:[#allocation2 + $0xc] sm:$0xf]  ;;  %v661_v44 = vpop.permute.xlu1 %660 }
 0x211   : > { %471 = vst.msk [vmem:[#allocation2 + $0x18] sm:$0xf] %vm464_vm3, %v462_v33  ;;  %v2290_v37 = vunpack.i.h.bf16 %v2288_v34  ;;  %v2289_v38 = vunpack.i.l.bf16 %v2288_v34  ;;  %2085 = vmatmul.mubr.msk.bf16.vlgmr.msra.gmra.mrb[8].mxu1 %vm391_vm0, %v723_v35  ;;  %v1009_v53 = vsel %vm391_vm0, %v670_v46, 0 }
 0x212   : > { %2095 = vmatpush3.bf16.xpose.msra.mxu1 %v963_v36  ;;  %2096 = vmatprep.mubr.msk.bf16.mxu1 %vm2605_vm1, %v2604_v0 }
 0x213   : > { %v463_v41 = vpack.c.bf16 %v2289_v38, %v2289_v38  ;;  %2079 = vmatmul.mubr.msk.bf16.vlgmr.msra.gmra.mrb[12].mxu0 %vm391_vm0, %v722_v39  ;;  %2106 = vmatprep.subr.bf16.mxu1 %v2604_v0  ;;  %v671_v45 = vpack.c.bf16 %v661_v44, %v2290_v37  ;;  %v3117_v39 = vld [vmem:[#allocation3 + $0x8] sm:$0xff]  ;;  %v3127_v44 = vld [vmem:[#allocation3 + $0x10] sm:$0xff] }
 0x214   : > { %2089 = vmatpush3.bf16.xpose.msra.mxu0 %v917_v43  ;;  %2090 = vmatprep.mubr.msk.bf16.mxu0 %vm2605_vm1, %v2604_v0  ;;  %v725_v48 = vld [vmem:[#allocation2 + $0x14] sm:$0xf] }
 0x215   : > { %472 = vst.msk [vmem:[#allocation2 + $0x1c] sm:$0xf] %vm464_vm3, %v463_v41  ;;  %2100 = vmatprep.subr.bf16.mxu0 %v2604_v0  ;;  %v1055_v51 = vsel %vm391_vm0, %v671_v45, 0 }
 0x218   : > { %v726_v56 = vld [vmem:[#allocation2 + $0x18] sm:$0xf] }
 0x219   : > { %2097 = vmatmul.mubr.msk.bf16.vlgmr.msra.gmra.mrb[12].mxu1 %vm391_vm0, %v725_v48  ;;  %v3134_v48 = vld [vmem:[#allocation3 + $0x18] sm:$0xff] }
 0x21a   : > { %2107 = vmatpush3.bf16.xpose.msra.mxu1 %v1055_v51  ;;  %2108 = vmatprep.mubr.msk.bf16.mxu1 %vm2605_vm1, %v2604_v0 }
 0x21b   : > { %2091 = vmatmul.mubr.msk.bf16.vlgmr.msra.gmra.mrb[16].mxu0 %vm391_vm0, %v724_v52  ;;  %2118 = vmatprep.subr.bf16.mxu1 %v2604_v0 }
 0x21c   : > { %2101 = vmatpush3.bf16.xpose.msra.mxu0 %v1009_v53  ;;  %2102 = vmatprep.mubr.msk.bf16.mxu0 %vm2605_vm1, %v2604_v0  ;;  %v727_v54 = vld [vmem:[#allocation2 + $0x1c] sm:$0xf] }
 0x21d   : > { %2112 = vmatprep.subr.bf16.mxu0 %v2604_v0 }
 0x221   : > { %2109 = vmatmul.mubr.msk.bf16.vlgmr.msra.gmra.mrb[16].mxu1 %vm391_vm0, %v727_v54  ;;  %v3145_v54 = vld [vmem:[#allocation3 + $0x28] sm:$0xff] }
 0x222   : > { %2120 = vmatprep.mubr.msk.bf16.mxu1 %vm2605_vm1, %v2604_v0 }
 0x223   : > { %2103 = vmatmul.mubr.msk.bf16.vlgmr.msra.gmra.mrb[20].mxu0 %vm391_vm0, %v726_v56  ;;  %v3147_v56 = vld [vmem:[#allocation3 + $0x20] sm:$0xff] }
 0x224   : > { %2113 = vmatpush3.bf16.msra.mxu0 %v712_v49  ;;  %2114 = vmatprep.mubr.msk.bf16.mxu0 %vm2605_vm1, %v2604_v0 }
 0x225   : > { %2124 = vmatprep.subr.bf16.mxu0 %v2604_v0 }
 0x267   : > { %v3049_v57 = vpop.f32.mrb[4].mxu0 }
 0x268   : > { %v2068_v58 = vpop.f32.mrb[5].mxu0  ;;  %v1106_v59 = vsel %vm1105_vm4, %v3049_v57, -inf }
 0x269   : > { %1107 = vmax.xlane.f32.xlu0 %v1106_v59  ;;  %v772_v61 = vpop.f32.mrb[6].mxu0 }
 0x26a   : > { %v2069_v62 = vpop.f32.mrb[7].mxu0 }
 0x2de   : > { %v3077_v42 = vpop.f32.mrb[8].mxu0 }
 0x2df   : > { %v2074_v47 = vpop.f32.mrb[9].mxu0  ;;  %v1109_v49 = vsel %vm1105_vm4, %v3077_v42, -inf }
 0x2e0   : > { %1110 = vmax.xlane.f32.xlu1 %v1109_v49  ;;  %v818_v3 = vpop.f32.mrb[10].mxu0 }
 0x2e1   : > { %v2075_v4 = vpop.f32.mrb[11].mxu0  ;;  %v3169_v3 = vld [vmem:[#allocation3 + $0x38] sm:$0xff] }
 0x2e4   : > { %v3081_v5 = vpop.f32.mrb[8].mxu1 }
 0x2e5   : > { %v2086_v6 = vpop.f32.mrb[9].mxu1  ;;  %v1115_v14 = vsel %vm1105_vm4, %v3081_v5, -inf }
 0x2e6   : > { %v3083_v7 = vpop.f32.mrb[12].mxu0  ;;  %v910_v8 = vpop.f32.mrb[10].mxu1 }
 0x2e7   : > { %v2080_v9 = vpop.f32.mrb[13].mxu0  ;;  %v2087_v10 = vpop.f32.mrb[11].mxu1  ;;  %v1112_v11 = vsel %vm1105_vm4, %v3083_v7, -inf  ;;  %v3175_v8 = vld [vmem:[#allocation3 + $0x30] sm:$0xff] }
 0x2e8   : > { %1113 = vmax.xlane.f32.xlu0 %v1112_v11  ;;  %v864_v12 = vpop.f32.mrb[14].mxu0 }
 0x2e9   : > { %v2081_v13 = vpop.f32.mrb[15].mxu0 }
 0x2ec   : > { %v3089_v15 = vpop.f32.mrb[12].mxu1  ;;  %1116 = vmax.xlane.f32.xlu0 %v1115_v14 }
 0x2ed   : > { %v2098_v16 = vpop.f32.mrb[13].mxu1  ;;  %v1121_v21 = vsel %vm1105_vm4, %v3089_v15, -inf }
 0x2ee   : > { %v3091_v17 = vpop.f32.mrb[16].mxu0  ;;  %v1002_v18 = vpop.f32.mrb[14].mxu1 }
 0x2ef   : > { %v2092_v19 = vpop.f32.mrb[17].mxu0  ;;  %v2099_v20 = vpop.f32.mrb[15].mxu1  ;;  %v1118_v22 = vsel %vm1105_vm4, %v3091_v17, -inf }
 0x2f0   : > { %1122 = vmax.xlane.f32.xlu0 %v1121_v21  ;;  %1119 = vmax.xlane.f32.xlu1 %v1118_v22  ;;  %v956_v23 = vpop.f32.mrb[18].mxu0 }
 0x2f1   : > { %v2093_v24 = vpop.f32.mrb[19].mxu0 }
 0x2f4   : > { %v3097_v25 = vpop.f32.mrb[16].mxu1 }
 0x2f5   : > { %v2110_v27 = vpop.f32.mrb[17].mxu1  ;;  %v1127_v28 = vsel %vm1105_vm4, %v3097_v25, -inf }
 0x2f6   : > { %v1094_v29 = vpop.f32.mrb[18].mxu1  ;;  %v1108_v30 = vpop.xlane.xlu0 %1107  ;;  %1128 = vmax.xlane.f32.xlu0 %v1127_v28 }
 0x2f7   : > { %v3104_v31 = vmax.f32 %v3099_v26, %v1108_v30  ;;  %v3106_v32 = vpop.f32.mrb[20].mxu0  ;;  %v2111_v33 = vpop.f32.mrb[19].mxu1 }
 0x2f8   : > { %v2104_v34 = vpop.f32.mrb[21].mxu0  ;;  %v1124_v35 = vsel %vm1105_vm4, %v3106_v32, -inf }
 0x2f9   : > { %v1138_v36 = vsub.f32 %v3099_v26, %v3104_v31  ;;  %1707 = vst.msk [vmem:[#allocation3] sm:$0xff] %vm473_vm5, %v3104_v31  ;;  %1125 = vmax.xlane.f32.xlu1 %v1124_v35  ;;  %v1048_v37 = vpop.f32.mrb[22].mxu0 }
 0x2fa   : > { %v2105_v38 = vpop.f32.mrb[23].mxu0 }
 0x30a   : > { %1164 = vperm.xlu1 %2291, %v3104_v31  }
 0x30e   : > { %2294 = vrot.lane.b32.xlu1 %v2964_v50, %s2608_s11 }
 0x36d   : > { %v1111_v40 = vpop.xlane.xlu1 %1110 }
 0x36e   : > { %v3120_v41 = vmax.f32 %v3117_v39, %v1111_v40 }
 0x370   : > { %v1139_v43 = vsub.f32 %v3117_v39, %v3120_v41  ;;  %1708 = vst.msk [vmem:[#allocation3 + $0x8] sm:$0xff] %vm473_vm5, %v3120_v41  ;;  %1169 = vperm.xlu0 %2292, %v3120_v41  }
 0x374   : > { %2304 = vrot.lane.b32.xlu0 %v2964_v50, %s2609_s16 }
 0x375   : > { %v1114_v45 = vpop.xlane.xlu0 %1113 }
 0x376   : > { %v3132_v46 = vmax.f32 %v3127_v44, %v1114_v45 }
 0x378   : > { %v1140_v51 = vsub.f32 %v3127_v44, %v3132_v46  ;;  %1709 = vst.msk [vmem:[#allocation3 + $0x10] sm:$0xff] %vm473_vm5, %v3132_v46  ;;  %2314 = vrot.lane.b32.xlu0 %v2985_v63, %s2607_s17 }
 0x379   : > { %v1117_v52 = vpop.xlane.xlu0 %1116 }
 0x37a   : > { %v3143_v53 = vmax.f32 %v3134_v48, %v1117_v52  ;;  %v1150_v39 = vmul.f32 1.442695, %v1140_v51 }
 0x37c   : > { %v1141_v58 = vsub.f32 %v3134_v48, %v3143_v53  ;;  %1710 = vst.msk [vmem:[#allocation3 + $0x18] sm:$0xff] %vm473_vm5, %v3143_v53  ;;  %1179 = vperm.xlu1 %2291, %v3143_v53   ;;  %v1146_v53 = vmul.f32 1.442695, %v1138_v36 }
 0x37d   : > { %v1123_v59 = vpop.xlane.xlu0 %1122  ;;  %v1120_v61 = vpop.xlane.xlu1 %1119 }
 0x37e   : > { %v3155_v62 = vmax.f32 %v3145_v54, %v1123_v59  ;;  %v3158_v2 = vmax.f32 %v3147_v56, %v1120_v61 }
 0x380   : > { %v1143_v47 = vsub.f32 %v3145_v54, %v3155_v62  ;;  %1712 = vst.msk [vmem:[#allocation3 + $0x28] sm:$0xff] %vm473_vm5, %v3155_v62  ;;  %v1142_v49 = vsub.f32 %v3147_v56, %v3158_v2  ;;  %1711 = vst.msk [vmem:[#allocation3 + $0x20] sm:$0xff] %vm473_vm5, %v3158_v2  ;;  %1174 = vperm.xlu1 %2291, %v3132_v46  }
 0x382   : > { %v1156_v51 = vmul.f32 1.442695, %v1143_v47  ;;  %v1154_v26 = vmul.f32 1.442695, %v1142_v49  ;;  %v1233_v49 = vld [vmem:[#allocation4 + $0x38] sm:$0xff] }
 0x383   : > { %v1129_v4 = vpop.xlane.xlu0 %1128 }
 0x384   : > { %v3172_v6 = vmax.f32 %v3169_v3, %v1129_v4  ;;  %1189 = vperm.xlu1 %2291, %v3155_v62  }
 0x386   : > { %v1145_v9 = vsub.f32 %v3169_v3, %v3172_v6  ;;  %1714 = vst.msk [vmem:[#allocation3 + $0x38] sm:$0xff] %vm473_vm5, %v3172_v6  ;;  %v1126_v10 = vpop.xlane.xlu1 %1125 }
 0x387   : > { %v3182_v11 = vmax.f32 %v3175_v8, %v1126_v10 }
 0x388   : > { %1184 = vperm.xlu1 %2291, %v3158_v2   ;;  %v1160_v46 = vmul.f32 1.442695, %v1145_v9 }
 0x389   : > { %v1144_v12 = vsub.f32 %v3175_v8, %v3182_v11  ;;  %1713 = vst.msk [vmem:[#allocation3 + $0x30] sm:$0xff] %vm473_vm5, %v3182_v11 }
 0x38a   : > { %v1165_v13 = vpop.permute.xlu1 %1164 }
 0x38b   : > { %v1202_v14 = vsub.f32 %v3049_v57, %v1165_v13 }
 0x38c   : > { %1199 = vperm.xlu1 %2291, %v3172_v6  }
 0x38d   : > { %v1210_v16 = vmul.f32 1.442695, %v1202_v14 }
 0x38e   : > { %v2295_v18 = vpop.permute.xlu1 %2294 }
 0x38f   : > { %2336 = vpow2.f32 %v1210_v16  ;;  %v2297_v19 = vunpack.i.h.bf16 %v2295_v18  ;;  %v2296_v20 = vunpack.i.l.bf16 %v2295_v18 }
 0x390   : > { %1194 = vperm.xlu1 %2291, %v3182_v11   ;;  %v1152_v11 = vmul.f32 1.442695, %v1141_v58 }
 0x391   : > { %v713_v21 = vpack.c.bf16 %v2297_v19, %v2296_v20 }
 0x393   : > { %2119 = vmatpush3.bf16.msra.mxu1 %v713_v21 }
 0x394   : > { %2299 = vrot.lane.b32.xlu1 %v2964_v50, %s2607_s17  ;;  %2130 = vmatprep.subr.bf16.mxu1 %v2604_v0 }
 0x398   : > { %2309 = vrot.lane.b32.xlu1 %v2985_v63, %s2608_s11 }
 0x399   : > { %v3197_v57 = vpop.eup %2336 }
 0x39a   : > { %v1339_v22 = vpack.c.bf16 %v3197_v57, %v3197_v57 }
 0x39c   : > { %2115 = vmatmul.mubr.msk.bf16.vlgmr.msra.gmra.mrb[24].mxu0 %vm1105_vm4, %v1339_v22  ;;  %2319 = vrot.lane.b32.xlu1 %v2985_v63, %s2609_s16 }
 0x39d   : > { %2126 = vmatprep.mubr.msk.bf16.mxu0 %vm2605_vm1, %v2604_v0 }
 0x3ef   : > { %v1170_v23 = vpop.permute.xlu0 %1169 }
 0x3f0   : > { %v1203_v50 = vsub.f32 %v3077_v42, %v1170_v23 }
 0x3f2   : > { %v1212_v24 = vmul.f32 1.442695, %v1203_v50 }
 0x3f3   : > { %v2305_v27 = vpop.permute.xlu0 %2304 }
 0x3f4   : > { %2338 = vpow2.f32 %v1212_v24  ;;  %v2307_v29 = vunpack.i.h.bf16 %v2305_v27  ;;  %v2306_v30 = vunpack.i.l.bf16 %v2305_v27 }
 0x3f6   : > { %v715_v40 = vpack.c.bf16 %v2307_v29, %v2306_v30 }
 0x3fb   : > { %v1180_v28 = vpop.permute.xlu1 %1179 }
 0x3fc   : > { %v1205_v33 = vsub.f32 %v3081_v5, %v1180_v28 }
 0x3fe   : > { %v2339_v34 = vpop.eup %2338  ;;  %v1216_v35 = vmul.f32 1.442695, %v1205_v33 }
 0x3ff   : > { %v1175_v37 = vpop.permute.xlu1 %1174  ;;  %v1245_v38 = vsel %vm1105_vm4, %v2339_v34, 0.0  ;;  %v1340_v63 = vpack.c.bf16 %v2339_v34, %v2339_v34 }
 0x400   : > { %2340 = vpow2.f32 %v1216_v35  ;;  %v1204_v45 = vsub.f32 %v3083_v7, %v1175_v37  ;;  %1246 = vadd.xlane.f32.xlu0 %v1245_v38  ;;  %v2315_v35 = vpop.permute.xlu0 %2314  ;;  %v1242_v38 = vsel %vm1105_vm4, %v3197_v57, 0.0 }
 0x401   : > { %2121 = vmatmul.mubr.msk.bf16.vlgmr.msra.gmra.mrb[20].mxu1 %vm1105_vm4, %v1340_v63 }
 0x402   : > { %v1214_v42 = vmul.f32 1.442695, %v1204_v45  ;;  %2131 = vmatpush3.bf16.msra.mxu1 %v715_v40  ;;  %2132 = vmatprep.mubr.msk.bf16.mxu1 %vm2605_vm1, %v2604_v0 }
 0x403   : > { %v1190_v52 = vpop.permute.xlu1 %1189  ;;  %2142 = vmatprep.subr.bf16.mxu1 %v2604_v0 }
 0x404   : > { %2342 = vpow2.f32 %v1214_v42  ;;  %v1207_v5 = vsub.f32 %v3089_v15, %v1190_v52  ;;  %v1148_v42 = vmul.f32 1.442695, %v1139_v43 }
 0x406   : > { %v1220_v59 = vmul.f32 1.442695, %v1207_v5  ;;  %v2317_v5 = vunpack.i.h.bf16 %v2315_v35 }
 0x407   : > { %v1185_v61 = vpop.permute.xlu1 %1184 }
 0x408   : > { %2344 = vpow2.f32 %v1220_v59  ;;  %v1206_v7 = vsub.f32 %v3091_v17, %v1185_v61  ;;  %v2316_v59 = vunpack.i.l.bf16 %v2315_v35 }
 0x40a   : > { %v2341_v4 = vpop.eup %2340  ;;  %v1218_v18 = vmul.f32 1.442695, %v1206_v7  ;;  %v718_v41 = vpack.c.bf16 %v2317_v5, %v2316_v59 }
 0x40b   : > { %v1200_v10 = vpop.permute.xlu1 %1199  ;;  %v1342_v13 = vpack.c.bf16 %v2341_v4, %v2341_v4  ;;  %v1251_v29 = vsel %vm1105_vm4, %v2341_v4, 0.0  ;;  %v1158_v4 = vmul.f32 1.442695, %v1144_v12 }
 0x40c   : > { %v1209_v16 = vsub.f32 %v3097_v25, %v1200_v10  ;;  %2346 = vpow2.f32 %v1218_v18 }
 0x40d   : > { %2133 = vmatmul.mubr.msk.bf16.vlgmr.msra.gmra.mrb[24].mxu1 %vm1105_vm4, %v1342_v13 }
 0x40e   : > { %v2343_v14 = vpop.eup %2342  ;;  %2144 = vmatprep.mubr.msk.bf16.mxu1 %vm2605_vm1, %v2604_v0  ;;  %v1224_v22 = vmul.f32 1.442695, %v1209_v16 }
 0x40f   : > { %v1195_v19 = vpop.permute.xlu1 %1194  ;;  %v1248_v15 = vsel %vm1105_vm4, %v2343_v14, 0.0 }
 0x410   : > { %v1208_v20 = vsub.f32 %v3106_v32, %v1195_v19  ;;  %1249 = vadd.xlane.f32.xlu0 %v1248_v15  ;;  %v1341_v32 = vpack.c.bf16 %v2343_v14, %v2343_v14  ;;  %v1227_v14 = vld [vmem:[#allocation4 + $0x8] sm:$0xff]  ;;  %v1228_v19 = vld [vmem:[#allocation4 + $0x10] sm:$0xff] }
 0x412   : > { %v2345_v21 = vpop.eup %2344  ;;  %v1222_v17 = vmul.f32 1.442695, %v1208_v20 }
 0x413   : > { %v2300_v23 = vpop.permute.xlu1 %2299  ;;  %v1257_v50 = vsel %vm1105_vm4, %v2345_v21, 0.0  ;;  %v1344_v61 = vpack.c.bf16 %v2345_v21, %v2345_v21  ;;  %v1231_v21 = vld [vmem:[#allocation4 + $0x28] sm:$0xff] }
 0x414   : > { %2348 = vpow2.f32 %v1222_v17  ;;  %v2302_v24 = vunpack.i.h.bf16 %v2300_v23  ;;  %v2301_v25 = vunpack.i.l.bf16 %v2300_v23  ;;  %1258 = vadd.xlane.f32.xlu1 %v1257_v50  ;;  %v1229_v50 = vld [vmem:[#allocation4 + $0x18] sm:$0xff] }
 0x415   : > { %2350 = vpow2.f32 %v1224_v22 }
 0x416   : > { %v714_v27 = vpack.c.bf16 %v2302_v24, %v2301_v25  ;;  %v2347_v45 = vpop.eup %2346  ;;  %2352 = vpow2.f32 %v1148_v42 }
 0x417   : > { %v2310_v28 = vpop.permute.xlu1 %2309  ;;  %2354 = vpow2.f32 %v1150_v39  ;;  %v1254_v10 = vsel %vm1105_vm4, %v2347_v45, 0.0 }
 0x418   : > { %v2312_v30 = vunpack.i.h.bf16 %v2310_v28  ;;  %v2311_v33 = vunpack.i.l.bf16 %v2310_v28  ;;  %1252 = vadd.xlane.f32.xlu1 %v1251_v29  ;;  %2125 = vmatpush3.bf16.msra.mxu0 %v714_v27  ;;  %2356 = vpow2.f32 %v1158_v4  ;;  %v1226_v28 = vld [vmem:[#allocation4] sm:$0xff] }
 0x419   : > { %2136 = vmatprep.subr.bf16.mxu0 %v2604_v0  ;;  %2358 = vpow2.f32 %v1160_v46 }
 0x41a   : > { %v717_v34 = vpack.c.bf16 %v2312_v30, %v2311_v33  ;;  %2360 = vpow2.f32 %v1156_v51 }
 0x41b   : > { %v2320_v37 = vpop.permute.xlu1 %2319  ;;  %2127 = vmatmul.mubr.msk.bf16.vlgmr.msra.gmra.mrb[28].mxu0 %vm1105_vm4, %v1341_v32  ;;  %2362 = vpow2.f32 %v1152_v11 }
 0x41c   : > { %v2322_v63 = vunpack.i.h.bf16 %v2320_v37  ;;  %v2321_v40 = vunpack.i.l.bf16 %v2320_v37  ;;  %1243 = vadd.xlane.f32.xlu1 %v1242_v38  ;;  %2137 = vmatpush3.bf16.msra.mxu0 %v716_v1  ;;  %v1343_v1 = vpack.c.bf16 %v2347_v45, %v2347_v45 }
 0x41d   : > { %2143 = vmatpush3.bf16.msra.mxu1 %v717_v34  ;;  %2138 = vmatprep.mubr.msk.bf16.mxu0 %vm2605_vm1, %v2604_v0  ;;  %v1232_v34 = vld [vmem:[#allocation4 + $0x30] sm:$0xff] }
 0x41e   : > { %v2349_v52 = vpop.eup %2348  ;;  %v719_v57 = vpack.c.bf16 %v2322_v63, %v2321_v40  ;;  %2154 = vmatprep.subr.bf16.mxu1 %v2604_v0  ;;  %2148 = vmatprep.subr.bf16.mxu0 %v2604_v0 }
 0x41f   : > { %v1260_v55 = vsel %vm1105_vm4, %v2349_v52, 0.0  ;;  %v2351_v60 = vpop.eup %2350  ;;  %v1345_v44 = vpack.c.bf16 %v2349_v52, %v2349_v52  ;;  %v1230_v52 = vld [vmem:[#allocation4 + $0x20] sm:$0xff] }
 0x420   : > { %2145 = vmatmul.mubr.msk.bf16.vlgmr.msra.gmra.mrb[28].mxu1 %vm1105_vm4, %v1344_v61  ;;  %1261 = vadd.xlane.f32.xlu0 %v1260_v55  ;;  %v1263_v43 = vsel %vm1105_vm4, %v2351_v60, 0.0  ;;  %v1346_v7 = vpack.c.bf16 %v2351_v60, %v2351_v60 }
 0x421   : > { %2155 = vmatpush3.bf16.msra.mxu1 %v719_v57  ;;  %2156 = vmatprep.mubr.msk.bf16.mxu1 %vm2605_vm1, %v2604_v0 }
 0x423   : > { %2139 = vmatmul.mubr.msk.bf16.vlgmr.msra.gmra.mrb[32].mxu0 %vm1105_vm4, %v1343_v1 }
 0x424   : > { %2149 = vmatpush3.bf16.msra.mxu0 %v718_v41  ;;  %1264 = vadd.xlane.f32.xlu0 %v1263_v43 }
 0x425   : > { %2150 = vmatprep.mubr.msk.bf16.mxu0 %vm2605_vm1, %v2604_v0  ;;  %v2353_v0 = vpop.eup %2352 }
 0x426   : > { %v2355_v8 = vpop.eup %2354  ;;  %v1235_v16 = vmul.f32 %v2353_v0, %v1227_v14 }
 0x427   : > { %v2357_v12 = vpop.eup %2356  ;;  %v1236_v15 = vmul.f32 %v2355_v8, %v1228_v19  ;;  %v1285_v19 = vld [vmem:[#allocation5 + $0x10] sm:$0xff] }
 0x428   : > { %2157 = vmatmul.mubr.msk.bf16.vlgmr.msra.gmra.mrb[32].mxu1 %vm1105_vm4, %v1346_v7  ;;  %1255 = vadd.xlane.f32.xlu0 %v1254_v10  ;;  %v2359_v3 = vpop.eup %2358  ;;  %v1240_v56 = vmul.f32 %v2357_v12, %v1232_v34 }
 0x429   : > { %v2361_v6 = vpop.eup %2360  ;;  %v1241_v40 = vmul.f32 %v2359_v3, %v1233_v49 }
 0x42a   : > { %v2363_v9 = vpop.eup %2362  ;;  %v1239_v17 = vmul.f32 %v2361_v6, %v1231_v21 }
 0x42b   : > { %2151 = vmatmul.mubr.msk.bf16.vlgmr.msra.gmra.mrb[36].mxu0 %vm1105_vm4, %v1345_v44  ;;  %v1237_v31 = vmul.f32 %v2363_v9, %v1229_v50 }
 0x42d   : > { %1298 = vperm.xlu1 %2291, %v2353_v0   ;;  %v1284_v0 = vld [vmem:[#allocation5 + $0x8] sm:$0xff] }
 0x431   : > { %1303 = vperm.xlu1 %2291, %v2355_v8  }
 0x435   : > { %1323 = vperm.xlu1 %2291, %v2357_v12  }
 0x439   : > { %1328 = vperm.xlu1 %2291, %v2359_v3  }
 0x43e   : > { %1318 = vperm.xlu0 %2292, %v2361_v6  }
 0x442   : > { %1308 = vperm.xlu0 %2292, %v2363_v9  }
 0x46f   : > { %v3264_v13 = vpop.f32.mrb[24].mxu0 }
 0x470   : > { %v2116_v54 = vpop.f32.mrb[25].mxu0 }
 0x471   : > { %v1387_v62 = vpop.f32.mrb[26].mxu0 }
 0x472   : > { %v2117_v47 = vpop.f32.mrb[27].mxu0  ;;  %v1286_v62 = vld [vmem:[#allocation5 + $0x18] sm:$0xff] }
 0x48d   : > { %v1247_v18 = vpop.xlane.xlu0 %1246 }
 0x48e   : > { %v1267_v48 = vadd.f32 %v1247_v18, %v1235_v16 }
 0x490   : > { %1276 = vst.msk [vmem:[#allocation4 + $0x8] sm:$0xff] %vm473_vm5, %v1267_v48 }
 0x497   : > { %v1727_v58 = vld [vmem:[#allocation4 + $0x8] sm:$0xff] }
 0x498   : > { %2364 = vrcp.f32 %v1727_v58 }
 0x499   : > { %2366 = vpow2.f32 %v1146_v53 }
 0x49a   : > { %2368 = vpow2.f32 %v1154_v26 }
 0x49d   : > { %v1250_v20 = vpop.xlane.xlu0 %1249 }
 0x49e   : > { %v1268_v22 = vadd.f32 %v1250_v20, %v1236_v15 }
 0x4a0   : > { %1277 = vst.msk [vmem:[#allocation4 + $0x10] sm:$0xff] %vm473_vm5, %v1268_v22  ;;  %v1288_v22 = vld [vmem:[#allocation5 + $0x28] sm:$0xff] }
 0x4a1   : > { %v1259_v23 = vpop.xlane.xlu1 %1258 }
 0x4a2   : > { %v2365_v24 = vpop.eup %2364  ;;  %v1271_v25 = vadd.f32 %v1259_v23, %v1239_v17 }
 0x4a3   : > { %1749 = vperm.xlu0 %2292, %v2365_v24   ;;  %v2367_v36 = vpop.eup %2366 }
 0x4a4   : > { %1280 = vst.msk [vmem:[#allocation4 + $0x28] sm:$0xff] %vm473_vm5, %v1271_v25  ;;  %v1234_v33 = vmul.f32 %v2367_v36, %v1226_v28  ;;  %v2369_v45 = vpop.eup %2368 }
 0x4a5   : > { %v1253_v27 = vpop.xlane.xlu1 %1252  ;;  %v1238_v57 = vmul.f32 %v2369_v45, %v1230_v52 }
 0x4a6   : > { %v1269_v29 = vadd.f32 %v1253_v27, %v1237_v31 }
 0x4a7   : > { %v1728_v30 = vld [vmem:[#allocation4 + $0x10] sm:$0xff] }
 0x4a8   : > { %1278 = vst.msk [vmem:[#allocation4 + $0x18] sm:$0xff] %vm473_vm5, %v1269_v29  ;;  %2370 = vrcp.f32 %v1728_v30 }
 0x4a9   : > { %v1244_v32 = vpop.xlane.xlu1 %1243 }
 0x4aa   : > { %v1266_v35 = vadd.f32 %v1244_v32, %v1234_v33  ;;  %v1290_v33 = vld [vmem:[#allocation5 + $0x38] sm:$0xff] }
 0x4ab   : > { %v1731_v37 = vld [vmem:[#allocation4 + $0x28] sm:$0xff] }
 0x4ac   : > { %1275 = vst.msk [vmem:[#allocation4] sm:$0xff] %vm473_vm5, %v1266_v35  ;;  %2372 = vrcp.f32 %v1731_v37 }
 0x4ad   : > { %v1262_v2 = vpop.xlane.xlu0 %1261  ;;  %v1299_v51 = vpop.permute.xlu1 %1298 }
 0x4ae   : > { %v1272_v38 = vadd.f32 %v1262_v2, %v1240_v56  ;;  %v1332_v8 = vmul.f32 %v1299_v51, %v1284_v0  ;;  %v1289_v56 = vld [vmem:[#allocation5 + $0x30] sm:$0xff]  ;;  %v1283_v51 = vld [vmem:[#allocation5] sm:$0xff] }
 0x4af   : > { %v1729_v63 = vld [vmem:[#allocation4 + $0x18] sm:$0xff] }
 0x4b0   : > { %1281 = vst.msk [vmem:[#allocation4 + $0x30] sm:$0xff] %vm473_vm5, %v1272_v38  ;;  %2374 = vrcp.f32 %v1729_v63 }
 0x4b1   : > { %v1265_v42 = vpop.xlane.xlu0 %1264  ;;  %v1304_v15 = vpop.permute.xlu1 %1303 }
 0x4b2   : > { %v2371_v5 = vpop.eup %2370  ;;  %v1273_v59 = vadd.f32 %v1265_v42, %v1241_v40  ;;  %v1333_v20 = vmul.f32 %v1304_v15, %v1285_v19 }
 0x4b3   : > { %1754 = vperm.xlu0 %2292, %v2371_v5   ;;  %v1726_v61 = vld [vmem:[#allocation4] sm:$0xff] }
 0x4b4   : > { %1282 = vst.msk [vmem:[#allocation4 + $0x38] sm:$0xff] %vm473_vm5, %v1273_v59  ;;  %2376 = vrcp.f32 %v1726_v61 }
 0x4b5   : > { %v1256_v55 = vpop.xlane.xlu0 %1255  ;;  %v1324_v24 = vpop.permute.xlu1 %1323 }
 0x4b6   : > { %v2373_v60 = vpop.eup %2372  ;;  %v1270_v1 = vadd.f32 %v1256_v55, %v1238_v57  ;;  %v1337_v40 = vmul.f32 %v1324_v24, %v1289_v56 }
 0x4b7   : > { %1769 = vperm.xlu1 %2291, %v2373_v60   ;;  %v1732_v39 = vld [vmem:[#allocation4 + $0x30] sm:$0xff] }
 0x4b8   : > { %1279 = vst.msk [vmem:[#allocation4 + $0x20] sm:$0xff] %vm473_vm5, %v1270_v1  ;;  %2378 = vrcp.f32 %v1732_v39 }
 0x4b9   : > { %v1329_v32 = vpop.permute.xlu1 %1328 }
 0x4ba   : > { %v2375_v41 = vpop.eup %2374  ;;  %v1338_v2 = vmul.f32 %v1329_v32, %v1290_v33 }
 0x4bb   : > { %1759 = vperm.xlu0 %2292, %v2375_v41   ;;  %v1733_v43 = vld [vmem:[#allocation4 + $0x38] sm:$0xff] }
 0x4bc   : > { %2380 = vrcp.f32 %v1733_v43 }
 0x4bd   : > { %v1319_v6 = vpop.permute.xlu0 %1318 }
 0x4be   : > { %v2377_v4 = vpop.eup %2376  ;;  %v1336_v26 = vmul.f32 %v1319_v6, %v1288_v22 }
 0x4bf   : > { %1293 = vperm.xlu0 %2292, %v2367_v36   ;;  %v1730_v7 = vld [vmem:[#allocation4 + $0x20] sm:$0xff] }
 0x4c0   : > { %2382 = vrcp.f32 %v1730_v7 }
 0x4c1   : > { %v1309_v47 = vpop.permute.xlu0 %1308 }
 0x4c2   : > { %v2379_v10 = vpop.eup %2378  ;;  %v1334_v14 = vmul.f32 %v1309_v47, %v1286_v62 }
 0x4c3   : > { %1774 = vperm.xlu1 %2291, %v2379_v10   ;;  %1744 = vperm.xlu0 %2292, %v2377_v4  }
 0x4c6   : > { %v2381_v44 = vpop.eup %2380 }
 0x4c7   : > { %1779 = vperm.xlu1 %2291, %v2381_v44  }
 0x4ca   : > { %v2383_v46 = vpop.eup %2382 }
 0x4cb   : > { %1313 = vperm.xlu1 %2291, %v2369_v45  }
 0x4cf   : > { %1764 = vperm.xlu1 %2291, %v2383_v46  }
 0x4d4   : > { %v1427_v11 = vpop.f32.mrb[20].mxu1 }
 0x4d5   : > { %v1692_v12 = vadd.f32 %v1427_v11, %v1332_v8  ;;  %v2122_v3 = vpop.f32.mrb[21].mxu1 }
 0x4d6   : > { %v1430_v9 = vpop.f32.mrb[22].mxu1 }
 0x4d7   : > { %1700 = vst.msk [vmem:[#allocation5 + $0x8] sm:$0xff] %vm391_vm0, %v1692_v12  ;;  %v2123_v54 = vpop.f32.mrb[23].mxu1 }
 0x4de   : > { %v1719_v60 = vld [vmem:[#allocation5 + $0x8] sm:$0xff] }
 0x4e0   : > { %v1513_v16 = vpop.f32.mrb[24].mxu1 }
 0x4e1   : > { %v1694_v18 = vadd.f32 %v1513_v16, %v1334_v14  ;;  %v2134_v48 = vpop.f32.mrb[25].mxu1  ;;  %v1287_v14 = vld [vmem:[#allocation5 + $0x20] sm:$0xff] }
 0x4e2   : > { %v1516_v53 = vpop.f32.mrb[26].mxu1 }
 0x4e3   : > { %1702 = vst.msk [vmem:[#allocation5 + $0x18] sm:$0xff] %vm391_vm0, %v1694_v18  ;;  %v2135_v58 = vpop.f32.mrb[27].mxu1 }
 0x4ea   : > { %v1721_v46 = vld [vmem:[#allocation5 + $0x18] sm:$0xff] }
 0x4ee   : > { %v1470_v21 = vpop.f32.mrb[28].mxu0 }
 0x4ef   : > { %v1693_v17 = vadd.f32 %v1470_v21, %v1333_v20  ;;  %v2128_v23 = vpop.f32.mrb[29].mxu0 }
 0x4f0   : > { %v1473_v50 = vpop.f32.mrb[30].mxu0 }
 0x4f1   : > { %1701 = vst.msk [vmem:[#allocation5 + $0x10] sm:$0xff] %vm391_vm0, %v1693_v17  ;;  %v2129_v25 = vpop.f32.mrb[31].mxu0 }
 0x4f3   : > { %v1599_v31 = vpop.f32.mrb[28].mxu1 }
 0x4f4   : > { %v1696_v36 = vadd.f32 %v1599_v31, %v1336_v26  ;;  %v2146_v27 = vpop.f32.mrb[29].mxu1 }
 0x4f5   : > { %v1602_v28 = vpop.f32.mrb[30].mxu1 }
 0x4f6   : > { %1704 = vst.msk [vmem:[#allocation5 + $0x28] sm:$0xff] %vm391_vm0, %v1696_v36  ;;  %v2147_v29 = vpop.f32.mrb[31].mxu1  ;;  %v1556_v30 = vpop.f32.mrb[32].mxu0 }
 0x4f7   : > { %v2140_v34 = vpop.f32.mrb[33].mxu0 }
 0x4f8   : > { %v1559_v35 = vpop.f32.mrb[34].mxu0  ;;  %v1720_v41 = vld [vmem:[#allocation5 + $0x10] sm:$0xff] }
 0x4f9   : > { %v2141_v37 = vpop.f32.mrb[35].mxu0 }
 0x4fb   : > { %v1685_v49 = vpop.f32.mrb[32].mxu1 }
 0x4fc   : > { %v1698_v38 = vadd.f32 %v1685_v49, %v1338_v2  ;;  %v2158_v63 = vpop.f32.mrb[33].mxu1 }
 0x4fd   : > { %v1688_v45 = vpop.f32.mrb[34].mxu1  ;;  %v1723_v7 = vld [vmem:[#allocation5 + $0x28] sm:$0xff] }
 0x4fe   : > { %1706 = vst.msk [vmem:[#allocation5 + $0x38] sm:$0xff] %vm391_vm0, %v1698_v38  ;;  %v2159_v42 = vpop.f32.mrb[35].mxu1  ;;  %v1642_v52 = vpop.f32.mrb[36].mxu0 }
 0x4ff   : > { %v1697_v5 = vadd.f32 %v1642_v52, %v1337_v40  ;;  %v2152_v59 = vpop.f32.mrb[37].mxu0 }
 0x500   : > { %v1645_v57 = vpop.f32.mrb[38].mxu0 }
 0x501   : > { %1705 = vst.msk [vmem:[#allocation5 + $0x30] sm:$0xff] %vm391_vm0, %v1697_v5  ;;  %v2153_v61 = vpop.f32.mrb[39].mxu0 }
 0x505   : > { %v1725_v62 = vld [vmem:[#allocation5 + $0x38] sm:$0xff] }
 0x508   : > { %v1724_v6 = vld [vmem:[#allocation5 + $0x30] sm:$0xff] }
 0x522   : > { %v1750_v55 = vpop.permute.xlu0 %1749 }
 0x523   : > { %v1783_v1 = vmul.f32 %v1750_v55, %v1719_v60 }
 0x525   : > { %1791 = vrot.lane.b32.xlu0 %v1783_v1, %s2609_s16 }
 0x532   : > { %v1755_v39 = vpop.permute.xlu0 %1754 }
 0x533   : > { %v1784_v43 = vmul.f32 %v1755_v39, %v1720_v41 }
 0x535   : > { %1795 = vrot.lane.b32.xlu0 %v1784_v43, %s2607_s17 }
 0x536   : > { %v1770_v4 = vpop.permute.xlu1 %1769 }
 0x537   : > { %v1787_v10 = vmul.f32 %v1770_v4, %v1723_v7 }
 0x539   : > { %1807 = vrot.lane.b32.xlu1 %v1787_v10, %s2609_s16 }
 0x53a   : > { %v1760_v44 = vpop.permute.xlu0 %1759 }
 0x53b   : > { %v1785_v0 = vmul.f32 %v1760_v44, %v1721_v46 }
 0x53d   : > { %1799 = vrot.lane.b32.xlu0 %v1785_v0, %s2608_s11 }
 0x53e   : > { %v1294_v8 = vpop.permute.xlu0 %1293 }
 0x53f   : > { %v1331_v11 = vmul.f32 %v1294_v8, %v1283_v51 }
 0x541   : > { %v1691_v12 = vadd.f32 %v3264_v13, %v1331_v11 }
 0x542   : > { %v1775_v3 = vpop.permute.xlu1 %1774  ;;  %v1745_v13 = vpop.permute.xlu0 %1744 }
 0x543   : > { %1699 = vst.msk [vmem:[#allocation5] sm:$0xff] %vm391_vm0, %v1691_v12  ;;  %v1788_v9 = vmul.f32 %v1775_v3, %v1724_v6 }
 0x545   : > { %1811 = vrot.lane.b32.xlu1 %v1788_v9, %s2607_s17 }
 0x546   : > { %v1780_v54 = vpop.permute.xlu1 %1779 }
 0x547   : > { %v1789_v47 = vmul.f32 %v1780_v54, %v1725_v62 }
 0x549   : > { %1815 = vrot.lane.b32.xlu1 %v1789_v47, %s2608_s11 }
 0x54a   : > { %v1314_v16 = vpop.permute.xlu1 %1313  ;;  %v1718_v58 = vld [vmem:[#allocation5] sm:$0xff] }
 0x54b   : > { %v1335_v18 = vmul.f32 %v1314_v16, %v1287_v14  ;;  %v1782_v15 = vmul.f32 %v1745_v13, %v1718_v58 }
 0x54d   : > { %v1695_v48 = vadd.f32 %v1556_v30, %v1335_v18 }
 0x54e   : > { %v1765_v21 = vpop.permute.xlu1 %1764 }
 0x54f   : > { %1703 = vst.msk [vmem:[#allocation5 + $0x20] sm:$0xff] %vm391_vm0, %v1695_v48 }
 0x556   : > { %v1722_v24 = vld [vmem:[#allocation5 + $0x20] sm:$0xff] }
 0x557   : > { %v1786_v26 = vmul.f32 %v1765_v21, %v1722_v24 }
 0x597   : > { %v1792_v53 = vpop.permute.xlu0 %1791 }
 0x598   : > { %v1802_v20 = vsel %vm391_vm0, %v1782_v15, %v1792_v53 }
 0x5a7   : > { %v1796_v19 = vpop.permute.xlu0 %1795 }
 0x5a8   : > { %v1803_v22 = vsel %vm564_vm2, %v1802_v20, %v1796_v19 }
 0x5ab   : > { %v1808_v50 = vpop.permute.xlu1 %1807 }
 0x5ac   : > { %v1818_v31 = vsel %vm391_vm0, %v1786_v26, %v1808_v50 }
 0x5af   : > { %v1800_v17 = vpop.permute.xlu0 %1799 }
 0x5b0   : > { %v1805_v23 = vsel %vm1804_vm6, %v1803_v22, %v1800_v17 }
 0x5b1   : > { %1821 = vst [vmem:[%s355_s12] sm:$0xff] %v1805_v23 }
 0x5b7   : > { %v1812_v25 = vpop.permute.xlu1 %1811 }
 0x5b8   : > { %v1819_v36 = vsel %vm564_vm2, %v1818_v31, %v1812_v25 }
 0x5bb   : > { %v1816_v27 = vpop.permute.xlu1 %1815 }
 0x5bc   : > { %v1820_v28 = vsel %vm1804_vm6, %v1819_v36, %v1816_v27 }
 0x5bd   : > { %1822 = vst [vmem:[%s355_s12 + $0x8] sm:$0xff] %v1820_v28 }
 0x5be   : > { %2513 = shalt.err (!%p2510_p7)
}
 0x5bf   : > { %s2514_s19 = scalar_lea.hbm %s3307_s28, 256  ;;  %s2518_s29 = scalar_lea.hbm %s3364_s6, 512 }
 0x5c0   : > { %p2515_p11 = scmp.ne.s32.totalorder %s3307_s28, %s2514_s19  ;;  %p2519_p12 = scmp.lt.u32.totalorder %s3307_s28, %s3364_s6 }
 0x5c1   : > { %p2520_p13 = scmp.lt.u32.totalorder %s2518_s29, %s2514_s19  ;;  %p2522_p1 = scmp.lt.u32.totalorder %s2514_s19, %s3307_s28 }
 0x5c2   : > { %p2516_p2 = pnand %p2515_p11, %p3398_p6 }
 0x5c3   : > { %p2521_p0 = por %p2520_p13, %p2519_p12 }
 0x5c4   : > { %p2517_p8 = pneg %p2516_p2 }
 0x5c5   : > { %p2523_p10 = por %p2522_p1, %p2521_p0 }
 0x5c7   : > { %p2524_p3 = pnand %p2523_p10, %p2517_p8 }
 0x5c9   : > { %2527 = shalt.err (!%p2524_p3)
}
 0x5ca   : > { %s2612_s17 = smov 128   ;;  %s2613_s11 = smov 8  }
 0x5cb   : > { %2172 = dma.vmem_to_hbm [thread:$0]  (%p3398_p6), %s3301_s0, 256, %s3307_s28, %s1824_s24, %s2612_s17, %s2612_s17, %s2613_s11  }
 0x5cc PF: > { %s1852_s16 = sand.u32 1, %s2574_s21   ;;  %p3399_p4 = scmp.ne.s32.totalorder %s3379_s30, 0 }
 0x5cd   : > { %p3400_p9 = scmp.ge.s32.totalorder %s2594_s26, 2  ;;  %s1853_s12 = scalar_lea.sflag [#allocation8], %s1852_s16 }
 0x5cf   : > { %p2189_p5 = pnand %p3400_p9, %p3399_p4 }
 0x5d1   : > { %2569 = dma.done.wait (!%p2189_p5), %s1853_s12, 256  }
 0x5d2   : > { %2571 = vsyncadd (!%p2189_p5), %s1853_s12, 4294967040  ;;  %s26_s26 = sadd.s32 1, %s2594_s26   ;;  %s3401_s14 = sld [smem:[#allocation20_spill]] }
 0x5d3   : > { %p23_p7 = scmp.ge.s32.totalorder %s26_s26, 4   ;;  %s3402_s23 = sld [smem:[#allocation22_spill]] }
 0x5d4   : > { %s3403_s10 = sld [smem:[#allocation21_spill]]  ;;  %s3404_s21 = smov %s2578_s22 }
 0x5d5   : > { %s3406_s24 = smov %s2590_s25  ;;  %25 = sbr.rel (!%p23_p7) target bundleno = 13 (0xd), region = 118 }
 0x5d8   : > { %s3405_s22 = smov %s3401_s14 }
 0x5da   : > { %s3407_s25 = smov %s3403_s10 }
 0x5dc   :  { %1858 = vsyncpa [#allocation7], 1 }
 0x5dd   :  { %1860 = vsyncpa [#allocation7 + $0x1], 1 }
 0x5de   :  { %1861 = vsyncpa [#allocation10], 1 }
 0x5df   :  { %1863 = vsyncpa [#allocation10 + $0x1], 1 }
 0x5e0   :  { %1864 = vsyncpa [#allocation13], 1 }
 0x5e1   :  { %1865 = vsyncpa [#allocation8], 1 }
 0x5e2   :  { %1867 = vsyncpa [#allocation8 + $0x1], 1 }

</bundles_post_ra>
